<compile_context>
chip_gen: v5e
topology: v5e:2x2
jax: 0.10.0
libtpu: 0.0.40
codegen_flags: <defaults>
</compile_context>

<pallas_src>
import functools

import jax
import jax.numpy as jnp
from jax.experimental import pallas as pl
from jax.experimental.pallas import tpu as pltpu


# ------------------------------ tile helpers --------------------------------

def _row_tile(n, cap=256):
    """Largest multiple of 8 <= cap that divides n (falls back to full n)."""
    t = min(cap, n)
    t -= t % 8
    while t >= 8:
        if n % t == 0:
            return t
        t -= 8
    return n


def _col_tile(n, cap=256):
    """Largest multiple of 128 <= cap that divides n (falls back to full n)."""
    t = min(cap, n)
    t -= t % 128
    while t >= 128:
        if n % t == 0:
            return t
        t -= 128
    return n


# ------------------------------ kernel bodies -------------------------------

def _layernorm(x, g, b, eps):
    mu = jnp.mean(x, axis=-1, keepdims=True)
    var = jnp.mean((x - mu) ** 2, axis=-1, keepdims=True)
    return (x - mu) * jax.lax.rsqrt(var + eps) * g + b


# LN(x) followed by the three bias-free q/k/v projections (bf16 outputs).
def ln_qkv_kernel(x_ref, g_ref, b_ref, wq_ref, wk_ref, wv_ref,
                  q_ref, k_ref, v_ref, *, eps):
    xn = _layernorm(x_ref[...], g_ref[...], b_ref[...], eps).astype(jnp.bfloat16)
    q_ref[...] = jnp.dot(xn, wq_ref[...],
                         preferred_element_type=jnp.float32).astype(jnp.bfloat16)
    k_ref[...] = jnp.dot(xn, wk_ref[...],
                         preferred_element_type=jnp.float32).astype(jnp.bfloat16)
    v_ref[...] = jnp.dot(xn, wv_ref[...],
                         preferred_element_type=jnp.float32).astype(jnp.bfloat16)


# Fused per-batch: softmax(q k^T / sqrt(Dh)) v  over all heads, head-merge
# permute folded into a per-head slice of Wproj, + output projection + residual.
def attn_proj_kernel(x_ref, q_ref, k_ref, v_ref, wp_ref, o_ref,
                     *, scale, n_head, d_head):
    x = x_ref[0]                       # (S, E) f32 residual
    out = x
    for h in range(n_head):            # static unroll over heads
        q = q_ref[0, h]                # (S, Dh) bf16
        k = k_ref[0, h]
        v = v_ref[0, h]
        s = jax.lax.dot_general(q, k, (((1,), (1,)), ((), ())),
                                preferred_element_type=jnp.float32) * scale
        s = s - jnp.max(s, axis=-1, keepdims=True)
        e = jnp.exp(s)
        p = e * pl.reciprocal(jnp.sum(e, axis=-1, keepdims=True), approx=True)
        o_h = jnp.dot(p.astype(jnp.bfloat16), v,
                      preferred_element_type=jnp.float32)          # (S, Dh)
        # permute(0,2,1,3).view(S,E) @ Wproj  ==  sum_h o_h @ Wproj[h*Dh:(h+1)*Dh]
        out = out + jnp.dot(o_h.astype(jnp.bfloat16),
                            wp_ref[h * d_head:(h + 1) * d_head, :],
                            preferred_element_type=jnp.float32)
    o_ref[0] = out


# residual + MLP(LN(x))   MLP = relu(x W1 + b1) W2 + b2
def ln_mlp_kernel(x_ref, g_ref, b_ref, w1_ref, b1_ref, w2_ref, b2_ref,
                  o_ref, *, eps):
    x = x_ref[...]
    xn = _layernorm(x, g_ref[...], b_ref[...], eps).astype(jnp.bfloat16)
    h = jnp.dot(xn, w1_ref[...], preferred_element_type=jnp.float32) + b1_ref[...]
    h = jnp.maximum(h, 0.0).astype(jnp.bfloat16)
    o_ref[...] = x + jnp.dot(h, w2_ref[...],
                             preferred_element_type=jnp.float32) + b2_ref[...]


# final LayerNorm + LM head (bias-free), tiled over vocab.
def ln_lmhead_kernel(x_ref, g_ref, b_ref, w_ref, o_ref, *, eps):
    xn = _layernorm(x_ref[...], g_ref[...], b_ref[...], eps).astype(jnp.bfloat16)
    o_ref[...] = jnp.dot(xn, w_ref[...], preferred_element_type=jnp.float32)


# ----------------------------- pallas wrappers -------------------------------

def _ln_qkv(x2, g, b, wq, wk, wv, eps, tm):
    N, E = x2.shape
    row = pl.BlockSpec((tm, E), lambda i: (i, 0))
    vec = pl.BlockSpec((1, E), lambda i: (0, 0))
    wsp = pl.BlockSpec((E, E), lambda i: (0, 0))
    out = jax.ShapeDtypeStruct((N, E), jnp.bfloat16)
    return pl.pallas_call(
        functools.partial(ln_qkv_kernel, eps=eps),
        out_shape=(out, out, out),
        grid=(N // tm,),
        in_specs=[row, vec, vec, wsp, wsp, wsp],
        out_specs=(row, row, row),
        compiler_params=pltpu.CompilerParams(dimension_semantics=("parallel",)),
    )(x2, g, b, wq, wk, wv)


def _attn_proj_residual(x3, q4, k4, v4, wp, d_head):
    B, S, E = x3.shape
    H = E // d_head
    scale = 1.0 / float(d_head) ** 0.5
    xspec = pl.BlockSpec((1, S, E), lambda bb: (bb, 0, 0))
    hspec = pl.BlockSpec((1, H, S, d_head), lambda bb: (bb, 0, 0, 0))
    wspec = pl.BlockSpec((E, E), lambda bb: (0, 0))
    return pl.pallas_call(
        functools.partial(attn_proj_kernel, scale=scale, n_head=H, d_head=d_head),
        out_shape=jax.ShapeDtypeStruct((B, S, E), jnp.float32),
        grid=(B,),
        in_specs=[xspec, hspec, hspec, hspec, wspec],
        out_specs=xspec,
        input_output_aliases={0: 0},
        compiler_params=pltpu.CompilerParams(dimension_semantics=("parallel",)),
    )(x3, q4, k4, v4, wp)


def _ln_mlp_residual(x2, g, b, w1, b1, w2, b2, eps, tm):
    N, E = x2.shape
    Hd = w1.shape[1]
    row = pl.BlockSpec((tm, E), lambda i: (i, 0))
    vecE = pl.BlockSpec((1, E), lambda i: (0, 0))
    vecH = pl.BlockSpec((1, Hd), lambda i: (0, 0))
    w1s = pl.BlockSpec((E, Hd), lambda i: (0, 0))
    w2s = pl.BlockSpec((Hd, E), lambda i: (0, 0))
    return pl.pallas_call(
        functools.partial(ln_mlp_kernel, eps=eps),
        out_shape=jax.ShapeDtypeStruct((N, E), jnp.float32),
        grid=(N // tm,),
        in_specs=[row, vecE, vecE, w1s, vecH, w2s, vecE],
        out_specs=row,
        input_output_aliases={0: 0},
        compiler_params=pltpu.CompilerParams(dimension_semantics=("parallel",)),
    )(x2, g, b, w1, b1, w2, b2)


def _ln_lmhead(x2, g, b, w, eps, tm, tn):
    N, E = x2.shape
    V = w.shape[1]
    return pl.pallas_call(
        functools.partial(ln_lmhead_kernel, eps=eps),
        out_shape=jax.ShapeDtypeStruct((N, V), jnp.float32),
        grid=(N // tm, V // tn),
        in_specs=[pl.BlockSpec((tm, E), lambda i, j: (i, 0)),
                  pl.BlockSpec((1, E), lambda i, j: (0, 0)),
                  pl.BlockSpec((1, E), lambda i, j: (0, 0)),
                  pl.BlockSpec((E, tn), lambda i, j: (0, j))],
        out_specs=pl.BlockSpec((tm, tn), lambda i, j: (i, j)),
        compiler_params=pltpu.CompilerParams(
            dimension_semantics=("parallel", "parallel")),
    )(x2, g, b, w)


# --------------------------------- model -------------------------------------

def init_params(key, cfg):
    """Weights stored pre-transposed to [in, out] and pre-cast to bf16."""
    V, E, P, L = (cfg['vocab_size'], cfg['n_embed'],
                  cfg['n_positions'], cfg['n_layer'])
    Hd = 4 * E

    def nrm(k, shape, std=0.02):
        return std * jax.random.normal(k, shape, dtype=jnp.float32)

    bf = lambda w: w.astype(jnp.bfloat16)
    keys = iter(jax.random.split(key, 3 + 6 * L))
    params = {
        'wte': nrm(next(keys), (V, E)),
        'wpe': nrm(next(keys), (P, E)),
        'lnf_g': jnp.ones((1, E), jnp.float32),
        'lnf_b': jnp.zeros((1, E), jnp.float32),
        'lm_w': bf(nrm(next(keys), (E, V))),
        'layers': [],
    }
    for _ in range(L):
        params['layers'].append({
            'ln1_g': jnp.ones((1, E), jnp.float32),
            'ln1_b': jnp.zeros((1, E), jnp.float32),
            'wq': bf(nrm(next(keys), (E, E))),
            'wk': bf(nrm(next(keys), (E, E))),
            'wv': bf(nrm(next(keys), (E, E))),
            'wproj': bf(nrm(next(keys), (E, E))),
            'ln2_g': jnp.ones((1, E), jnp.float32),
            'ln2_b': jnp.zeros((1, E), jnp.float32),
            'fc1_w': bf(nrm(next(keys), (E, Hd))),
            'fc1_b': jnp.zeros((1, Hd), jnp.float32),
            'fc2_w': bf(nrm(next(keys), (Hd, E))),
            'fc2_b': jnp.zeros((1, E), jnp.float32),
        })
    return params


def gpt2_lm_forward(params, input_ids, cfg):
    B, S = input_ids.shape
    E, H, V = cfg['n_embed'], cfg['n_head'], cfg['vocab_size']
    Dh = E // H
    eps = cfg['layer_norm_epsilon']
    N = B * S
    tm = _row_tile(N)
    tn = _col_tile(V)

    # embeddings (gather = glue, kept in plain JAX); dropout(eval) = identity
    pos = jnp.arange(S)
    x = params['wte'][input_ids] + params['wpe'][pos][None]
    x2 = x.reshape(N, E).astype(jnp.float32)

    for layer in params['layers']:
        q2, k2, v2 = _ln_qkv(x2, layer['ln1_g'], layer['ln1_b'],
                             layer['wq'], layer['wk'], layer['wv'], eps, tm)
        # exact reproduction of the reference's nonstandard head split:
        # (B,S,E).view(B,H,S,Dh)  (row-major bitcast, no transpose)
        q4 = q2.reshape(B, H, S, Dh)
        k4 = k2.reshape(B, H, S, Dh)
        v4 = v2.reshape(B, H, S, Dh)

        x3 = _attn_proj_residual(x2.reshape(B, S, E), q4, k4, v4,
                                 layer['wproj'], Dh)

        x2 = _ln_mlp_residual(x3.reshape(N, E),
                              layer['ln2_g'], layer['ln2_b'],
                              layer['fc1_w'], layer['fc1_b'],
                              layer['fc2_w'], layer['fc2_b'], eps, tm)

    logits2 = _ln_lmhead(x2, params['lnf_g'], params['lnf_b'],
                         params['lm_w'], eps, tm, tn)
    return logits2.reshape(B, S, V)


# ---------------------------- pure-JAX reference -----------------------------

def gpt2_lm_reference(params, input_ids, cfg):
    B, S = input_ids.shape
    E, H = cfg['n_embed'], cfg['n_head']
    Dh = E // H
    eps = cfg['layer_norm_epsilon']
    f32 = lambda w: w.astype(jnp.float32)

    def ln(x, g, b):
        mu = x.mean(-1, keepdims=True)
        var = ((x - mu) ** 2).mean(-1, keepdims=True)
        return (x - mu) / jnp.sqrt(var + eps) * g + b

    pos = jnp.arange(S)
    x = params['wte'][input_ids] + params['wpe'][pos][None]
    x = x.astype(jnp.float32)
    for layer in params['layers']:
        xn = ln(x, layer['ln1_g'], layer['ln1_b'])
        q = (xn @ f32(layer['wq'])).reshape(B, H, S, Dh)
        k = (xn @ f32(layer['wk'])).reshape(B, H, S, Dh)
        v = (xn @ f32(layer['wv'])).reshape(B, H, S, Dh)
        w = jnp.einsum('bhqd,bhkd->bhqk', q, k) / float(Dh) ** 0.5
        w = jax.nn.softmax(w, axis=-1)
        o = jnp.einsum('bhqk,bhkd->bhqd', w, v)
        o = o.transpose(0, 2, 1, 3).reshape(B, S, E)
        x = x + o @ f32(layer['wproj'])
        xn2 = ln(x, layer['ln2_g'], layer['ln2_b'])
        hdn = jnp.maximum(xn2 @ f32(layer['fc1_w']) + layer['fc1_b'], 0.0)
        x = x + hdn @ f32(layer['fc2_w']) + layer['fc2_b']
    x = ln(x, params['lnf_g'], params['lnf_b'])
    return x @ f32(params['lm_w'])


# ---------------------------------- main --------------------------------------

if __name__ == "__main__":
    cfg = {
        'vocab_size': 512,
        'n_embed': 64,
        'n_positions': 128,
        'n_layer': 2,
        'n_head': 4,
        'layer_norm_epsilon': 1e-5,
        'dropout': 0.5,
    }
    key = jax.random.PRNGKey(0)
    k_param, k_ids = jax.random.split(key)
    params = init_params(k_param, cfg)

    B, S = 4, 128
    input_ids = jax.random.randint(k_ids, (B, S), 0, cfg['vocab_size'],
                                   dtype=jnp.int32)

    fwd = jax.jit(functools.partial(gpt2_lm_forward, cfg=cfg))
    logits = jax.block_until_ready(fwd(params, input_ids))
    assert logits.shape == (B, S, cfg['vocab_size'])
    assert logits.dtype == jnp.float32

    ref = jax.block_until_ready(gpt2_lm_reference(params, input_ids, cfg))
    max_err = float(jnp.max(jnp.abs(logits - ref)))
    assert jnp.allclose(logits, ref, atol=5e-2, rtol=5e-2), max_err

    print("KERNEL_OK")
</pallas_src>

<mosaic_0001>
module attributes {stable_mosaic.version = 11 : i64} {
  func.func @ln_qkv_kernel(%arg0: i32, %arg1: memref<256x64xf32, #tpu.memory_space<vmem>>, %arg2: memref<1x64xf32, #tpu.memory_space<vmem>>, %arg3: memref<1x64xf32, #tpu.memory_space<vmem>>, %arg4: memref<64x64xbf16, #tpu.memory_space<vmem>>, %arg5: memref<64x64xbf16, #tpu.memory_space<vmem>>, %arg6: memref<64x64xbf16, #tpu.memory_space<vmem>>, %arg7: memref<256x64xbf16, #tpu.memory_space<vmem>>, %arg8: memref<256x64xbf16, #tpu.memory_space<vmem>>, %arg9: memref<256x64xbf16, #tpu.memory_space<vmem>>) attributes {dimension_semantics = [#tpu.dimension_semantics<parallel>], iteration_bounds = array<i64: 2>, scalar_prefetch = 0 : i64, scratch_operands = 0 : i64, tpu.core_type = #tpu.core_type<tc>, window_params = [{transform_indices = @transform_0, window_bounds = array<i64: 256, 64>}, {pipeline_mode = #tpu.pipeline_mode<synchronous>, transform_indices = @transform_1, window_bounds = array<i64: 1, 64>}, {pipeline_mode = #tpu.pipeline_mode<synchronous>, transform_indices = @transform_2, window_bounds = array<i64: 1, 64>}, {pipeline_mode = #tpu.pipeline_mode<synchronous>, transform_indices = @transform_3, window_bounds = array<i64: 64, 64>}, {pipeline_mode = #tpu.pipeline_mode<synchronous>, transform_indices = @transform_4, window_bounds = array<i64: 64, 64>}, {pipeline_mode = #tpu.pipeline_mode<synchronous>, transform_indices = @transform_5, window_bounds = array<i64: 64, 64>}, {transform_indices = @transform_6, window_bounds = array<i64: 256, 64>}, {transform_indices = @transform_7, window_bounds = array<i64: 256, 64>}, {transform_indices = @transform_8, window_bounds = array<i64: 256, 64>}]} {
    %c0 = arith.constant 0 : index
    %c0_0 = arith.constant 0 : index
    %0 = vector.load %arg1[%c0, %c0_0] : memref<256x64xf32, #tpu.memory_space<vmem>>, vector<256x64xf32>
    %c0_1 = arith.constant 0 : index
    %c0_2 = arith.constant 0 : index
    %1 = vector.load %arg2[%c0_1, %c0_2] : memref<1x64xf32, #tpu.memory_space<vmem>>, vector<1x64xf32>
    %c0_3 = arith.constant 0 : index
    %c0_4 = arith.constant 0 : index
    %2 = vector.load %arg3[%c0_3, %c0_4] : memref<1x64xf32, #tpu.memory_space<vmem>>, vector<1x64xf32>
    %cst = arith.constant dense<0.000000e+00> : vector<256xf32>
    %3 = vector.multi_reduction <add>, %0, %cst [1] : vector<256x64xf32> to vector<256xf32>
    %4 = vector.shape_cast %3 : vector<256xf32> to vector<256x1xf32>
    %cst_5 = arith.constant 6.400000e+01 : f32
    %5 = vector.broadcast %cst_5 : f32 to vector<256x1xf32>
    %6 = arith.divf %4, %5 : vector<256x1xf32>
    %7 = vector.broadcast %6 : vector<256x1xf32> to vector<256x64xf32>
    %8 = arith.subf %0, %7 : vector<256x64xf32>
    %9 = arith.mulf %8, %8 : vector<256x64xf32>
    %cst_6 = arith.constant dense<0.000000e+00> : vector<256xf32>
    %10 = vector.multi_reduction <add>, %9, %cst_6 [1] : vector<256x64xf32> to vector<256xf32>
    %11 = vector.shape_cast %10 : vector<256xf32> to vector<256x1xf32>
    %cst_7 = arith.constant 6.400000e+01 : f32
    %12 = vector.broadcast %cst_7 : f32 to vector<256x1xf32>
    %13 = arith.divf %11, %12 : vector<256x1xf32>
    %14 = vector.broadcast %6 : vector<256x1xf32> to vector<256x64xf32>
    %15 = arith.subf %0, %14 : vector<256x64xf32>
    %cst_8 = arith.constant 9.99999974E-6 : f32
    %16 = vector.broadcast %cst_8 : f32 to vector<256x1xf32>
    %17 = arith.addf %13, %16 : vector<256x1xf32>
    %18 = math.rsqrt %17 : vector<256x1xf32>
    %19 = vector.broadcast %18 : vector<256x1xf32> to vector<256x64xf32>
    %20 = arith.mulf %15, %19 : vector<256x64xf32>
    %21 = vector.broadcast %1 : vector<1x64xf32> to vector<256x64xf32>
    %22 = arith.mulf %20, %21 : vector<256x64xf32>
    %23 = vector.broadcast %2 : vector<1x64xf32> to vector<256x64xf32>
    %24 = arith.addf %22, %23 : vector<256x64xf32>
    %25 = arith.truncf %24 : vector<256x64xf32> to vector<256x64xbf16>
    %c0_9 = arith.constant 0 : index
    %c0_10 = arith.constant 0 : index
    %26 = vector.load %arg4[%c0_9, %c0_10] : memref<64x64xbf16, #tpu.memory_space<vmem>>, vector<64x64xbf16>
    %cst_11 = arith.constant dense<0.000000e+00> : vector<256x64xf32>
    %27 = tpu.matmul %25, %26, %cst_11 {dimension_numbers = #tpu.dot_dimension_numbers<[1], [0], [0], [1], [0, 0, 1, 1], [], []>} : vector<256x64xbf16>, vector<64x64xbf16>, vector<256x64xf32> -> vector<256x64xf32>
    %28 = arith.truncf %27 : vector<256x64xf32> to vector<256x64xbf16>
    %c0_12 = arith.constant 0 : index
    %c0_13 = arith.constant 0 : index
    %29 = vector.load %arg7[%c0_12, %c0_13] : memref<256x64xbf16, #tpu.memory_space<vmem>>, vector<256x64xbf16>
    tpu.vector_store %arg7[%c0_12, %c0_13], %28 {strides = array<i32>} : memref<256x64xbf16, #tpu.memory_space<vmem>>, vector<256x64xbf16>,
    %c0_14 = arith.constant 0 : index
    %c0_15 = arith.constant 0 : index
    %30 = vector.load %arg5[%c0_14, %c0_15] : memref<64x64xbf16, #tpu.memory_space<vmem>>, vector<64x64xbf16>
    %cst_16 = arith.constant dense<0.000000e+00> : vector<256x64xf32>
    %31 = tpu.matmul %25, %30, %cst_16 {dimension_numbers = #tpu.dot_dimension_numbers<[1], [0], [0], [1], [0, 0, 1, 1], [], []>} : vector<256x64xbf16>, vector<64x64xbf16>, vector<256x64xf32> -> vector<256x64xf32>
    %32 = arith.truncf %31 : vector<256x64xf32> to vector<256x64xbf16>
    %c0_17 = arith.constant 0 : index
    %c0_18 = arith.constant 0 : index
    %33 = vector.load %arg8[%c0_17, %c0_18] : memref<256x64xbf16, #tpu.memory_space<vmem>>, vector<256x64xbf16>
    tpu.vector_store %arg8[%c0_17, %c0_18], %32 {strides = array<i32>} : memref<256x64xbf16, #tpu.memory_space<vmem>>, vector<256x64xbf16>,
    %c0_19 = arith.constant 0 : index
    %c0_20 = arith.constant 0 : index
    %34 = vector.load %arg6[%c0_19, %c0_20] : memref<64x64xbf16, #tpu.memory_space<vmem>>, vector<64x64xbf16>
    %cst_21 = arith.constant dense<0.000000e+00> : vector<256x64xf32>
    %35 = tpu.matmul %25, %34, %cst_21 {dimension_numbers = #tpu.dot_dimension_numbers<[1], [0], [0], [1], [0, 0, 1, 1], [], []>} : vector<256x64xbf16>, vector<64x64xbf16>, vector<256x64xf32> -> vector<256x64xf32>
    %36 = arith.truncf %35 : vector<256x64xf32> to vector<256x64xbf16>
    %c0_22 = arith.constant 0 : index
    %c0_23 = arith.constant 0 : index
    %37 = vector.load %arg9[%c0_22, %c0_23] : memref<256x64xbf16, #tpu.memory_space<vmem>>, vector<256x64xbf16>
    tpu.vector_store %arg9[%c0_22, %c0_23], %36 {strides = array<i32>} : memref<256x64xbf16, #tpu.memory_space<vmem>>, vector<256x64xbf16>,
    return
  }
  func.func @transform_0(%arg0: i32) -> (i32, i32) {
    %c0_i32 = arith.constant 0 : i32
    %c0_i32_0 = arith.constant 0 : i32
    return %arg0, %c0_i32 : i32, i32
  }
  func.func @transform_1(%arg0: i32) -> (i32, i32) {
    %c0_i32 = arith.constant 0 : i32
    %c0_i32_0 = arith.constant 0 : i32
    %c0_i32_1 = arith.constant 0 : i32
    return %c0_i32, %c0_i32_0 : i32, i32
  }
  func.func @transform_2(%arg0: i32) -> (i32, i32) {
    %c0_i32 = arith.constant 0 : i32
    %c0_i32_0 = arith.constant 0 : i32
    %c0_i32_1 = arith.constant 0 : i32
    return %c0_i32, %c0_i32_0 : i32, i32
  }
  func.func @transform_3(%arg0: i32) -> (i32, i32) {
    %c0_i32 = arith.constant 0 : i32
    %c0_i32_0 = arith.constant 0 : i32
    %c0_i32_1 = arith.constant 0 : i32
    return %c0_i32, %c0_i32_0 : i32, i32
  }
  func.func @transform_4(%arg0: i32) -> (i32, i32) {
    %c0_i32 = arith.constant 0 : i32
    %c0_i32_0 = arith.constant 0 : i32
    %c0_i32_1 = arith.constant 0 : i32
    return %c0_i32, %c0_i32_0 : i32, i32
  }
  func.func @transform_5(%arg0: i32) -> (i32, i32) {
    %c0_i32 = arith.constant 0 : i32
    %c0_i32_0 = arith.constant 0 : i32
    %c0_i32_1 = arith.constant 0 : i32
    return %c0_i32, %c0_i32_0 : i32, i32
  }
  func.func @transform_6(%arg0: i32) -> (i32, i32) {
    %c0_i32 = arith.constant 0 : i32
    %c0_i32_0 = arith.constant 0 : i32
    return %arg0, %c0_i32 : i32, i32
  }
  func.func @transform_7(%arg0: i32) -> (i32, i32) {
    %c0_i32 = arith.constant 0 : i32
    %c0_i32_0 = arith.constant 0 : i32
    return %arg0, %c0_i32 : i32, i32
  }
  func.func @transform_8(%arg0: i32) -> (i32, i32) {
    %c0_i32 = arith.constant 0 : i32
    %c0_i32_0 = arith.constant 0 : i32
    return %arg0, %c0_i32 : i32, i32
  }
}

module attributes {stable_mosaic.version = 11 : i64} {
  func.func @attn_proj_kernel(%arg0: i32, %arg1: memref<1x128x64xf32, #tpu.memory_space<vmem>>, %arg2: memref<1x4x128x16xbf16, #tpu.memory_space<vmem>>, %arg3: memref<1x4x128x16xbf16, #tpu.memory_space<vmem>>, %arg4: memref<1x4x128x16xbf16, #tpu.memory_space<vmem>>, %arg5: memref<64x64xbf16, #tpu.memory_space<vmem>>, %arg6: memref<1x128x64xf32, #tpu.memory_space<vmem>>) attributes {dimension_semantics = [#tpu.dimension_semantics<parallel>], iteration_bounds = array<i64: 4>, scalar_prefetch = 0 : i64, scratch_operands = 0 : i64, tpu.core_type = #tpu.core_type<tc>, window_params = [{transform_indices = @transform_0, window_bounds = array<i64: 1, 128, 64>}, {transform_indices = @transform_1, window_bounds = array<i64: 1, 4, 128, 16>}, {transform_indices = @transform_2, window_bounds = array<i64: 1, 4, 128, 16>}, {transform_indices = @transform_3, window_bounds = array<i64: 1, 4, 128, 16>}, {pipeline_mode = #tpu.pipeline_mode<synchronous>, transform_indices = @transform_4, window_bounds = array<i64: 64, 64>}, {transform_indices = @transform_5, window_bounds = array<i64: 1, 128, 64>}]} {
    %c0 = arith.constant 0 : index
    %c0_0 = arith.constant 0 : index
    %c0_1 = arith.constant 0 : index
    %0 = vector.load %arg1[%c0, %c0_0, %c0_1] : memref<1x128x64xf32, #tpu.memory_space<vmem>>, vector<1x128x64xf32>
    %1 = vector.shape_cast %0 : vector<1x128x64xf32> to vector<128x64xf32>
    %c0_2 = arith.constant 0 : index
    %c0_3 = arith.constant 0 : index
    %c0_4 = arith.constant 0 : index
    %c0_5 = arith.constant 0 : index
    %2 = vector.load %arg2[%c0_2, %c0_3, %c0_4, %c0_5] : memref<1x4x128x16xbf16, #tpu.memory_space<vmem>>, vector<1x1x128x16xbf16>
    %3 = vector.shape_cast %2 : vector<1x1x128x16xbf16> to vector<128x16xbf16>
    %c0_6 = arith.constant 0 : index
    %c0_7 = arith.constant 0 : index
    %c0_8 = arith.constant 0 : index
    %c0_9 = arith.constant 0 : index
    %4 = vector.load %arg3[%c0_6, %c0_7, %c0_8, %c0_9] : memref<1x4x128x16xbf16, #tpu.memory_space<vmem>>, vector<1x1x128x16xbf16>
    %5 = vector.shape_cast %4 : vector<1x1x128x16xbf16> to vector<128x16xbf16>
    %c0_10 = arith.constant 0 : index
    %c0_11 = arith.constant 0 : index
    %c0_12 = arith.constant 0 : index
    %c0_13 = arith.constant 0 : index
    %6 = vector.load %arg4[%c0_10, %c0_11, %c0_12, %c0_13] : memref<1x4x128x16xbf16, #tpu.memory_space<vmem>>, vector<1x1x128x16xbf16>
    %7 = vector.shape_cast %6 : vector<1x1x128x16xbf16> to vector<128x16xbf16>
    %cst = arith.constant dense<0.000000e+00> : vector<128x128xf32>
    %8 = tpu.matmul %3, %5, %cst {dimension_numbers = #tpu.dot_dimension_numbers<[1], [1], [0], [0], [0, 0, 1, 0], [], []>} : vector<128x16xbf16>, vector<128x16xbf16>, vector<128x128xf32> -> vector<128x128xf32>
    %cst_14 = arith.constant 2.500000e-01 : f32
    %9 = vector.broadcast %cst_14 : f32 to vector<128x128xf32>
    %10 = arith.mulf %8, %9 : vector<128x128xf32>
    %cst_15 = arith.constant dense<0xFF800000> : vector<128xf32>
    %11 = vector.multi_reduction <maximumf>, %10, %cst_15 [1] : vector<128x128xf32> to vector<128xf32>
    %12 = vector.shape_cast %11 : vector<128xf32> to vector<128x1xf32>
    %13 = vector.broadcast %12 : vector<128x1xf32> to vector<128x128xf32>
    %14 = arith.subf %10, %13 : vector<128x128xf32>
    %15 = math.exp %14 : vector<128x128xf32>
    %cst_16 = arith.constant dense<0.000000e+00> : vector<128xf32>
    %16 = vector.multi_reduction <add>, %15, %cst_16 [1] : vector<128x128xf32> to vector<128xf32>
    %17 = vector.shape_cast %16 : vector<128xf32> to vector<128x1xf32>
    %18 = tpu.reciprocal %17 {approx = true} : vector<128x1xf32> -> vector<128x1xf32>
    %19 = vector.broadcast %18 : vector<128x1xf32> to vector<128x128xf32>
    %20 = arith.mulf %15, %19 : vector<128x128xf32>
    %21 = arith.truncf %20 : vector<128x128xf32> to vector<128x128xbf16>
    %cst_17 = arith.constant dense<0.000000e+00> : vector<128x16xf32>
    %22 = tpu.matmul %21, %7, %cst_17 {dimension_numbers = #tpu.dot_dimension_numbers<[1], [0], [0], [1], [0, 0, 1, 1], [], []>} : vector<128x128xbf16>, vector<128x16xbf16>, vector<128x16xf32> -> vector<128x16xf32>
    %23 = arith.truncf %22 : vector<128x16xf32> to vector<128x16xbf16>
    %c0_18 = arith.constant 0 : index
    %c0_19 = arith.constant 0 : index
    %24 = vector.load %arg5[%c0_18, %c0_19] : memref<64x64xbf16, #tpu.memory_space<vmem>>, vector<16x64xbf16>
    %cst_20 = arith.constant dense<0.000000e+00> : vector<128x64xf32>
    %25 = tpu.matmul %23, %24, %cst_20 {dimension_numbers = #tpu.dot_dimension_numbers<[1], [0], [0], [1], [0, 0, 1, 1], [], []>} : vector<128x16xbf16>, vector<16x64xbf16>, vector<128x64xf32> -> vector<128x64xf32>
    %26 = arith.addf %1, %25 : vector<128x64xf32>
    %c0_21 = arith.constant 0 : index
    %c1 = arith.constant 1 : index
    %c0_22 = arith.constant 0 : index
    %c0_23 = arith.constant 0 : index
    %27 = vector.load %arg2[%c0_21, %c1, %c0_22, %c0_23] : memref<1x4x128x16xbf16, #tpu.memory_space<vmem>>, vector<1x1x128x16xbf16>
    %28 = vector.shape_cast %27 : vector<1x1x128x16xbf16> to vector<128x16xbf16>
    %c0_24 = arith.constant 0 : index
    %c1_25 = arith.constant 1 : index
    %c0_26 = arith.constant 0 : index
    %c0_27 = arith.constant 0 : index
    %29 = vector.load %arg3[%c0_24, %c1_25, %c0_26, %c0_27] : memref<1x4x128x16xbf16, #tpu.memory_space<vmem>>, vector<1x1x128x16xbf16>
    %30 = vector.shape_cast %29 : vector<1x1x128x16xbf16> to vector<128x16xbf16>
    %c0_28 = arith.constant 0 : index
    %c1_29 = arith.constant 1 : index
    %c0_30 = arith.constant 0 : index
    %c0_31 = arith.constant 0 : index
    %31 = vector.load %arg4[%c0_28, %c1_29, %c0_30, %c0_31] : memref<1x4x128x16xbf16, #tpu.memory_space<vmem>>, vector<1x1x128x16xbf16>
    %32 = vector.shape_cast %31 : vector<1x1x128x16xbf16> to vector<128x16xbf16>
    %cst_32 = arith.constant dense<0.000000e+00> : vector<128x128xf32>
    %33 = tpu.matmul %28, %30, %cst_32 {dimension_numbers = #tpu.dot_dimension_numbers<[1], [1], [0], [0], [0, 0, 1, 0], [], []>} : vector<128x16xbf16>, vector<128x16xbf16>, vector<128x128xf32> -> vector<128x128xf32>
    %cst_33 = arith.constant 2.500000e-01 : f32
    %34 = vector.broadcast %cst_33 : f32 to vector<128x128xf32>
    %35 = arith.mulf %33, %34 : vector<128x128xf32>
    %cst_34 = arith.constant dense<0xFF800000> : vector<128xf32>
    %36 = vector.multi_reduction <maximumf>, %35, %cst_34 [1] : vector<128x128xf32> to vector<128xf32>
    %37 = vector.shape_cast %36 : vector<128xf32> to vector<128x1xf32>
    %38 = vector.broadcast %37 : vector<128x1xf32> to vector<128x128xf32>
    %39 = arith.subf %35, %38 : vector<128x128xf32>
    %40 = math.exp %39 : vector<128x128xf32>
    %cst_35 = arith.constant dense<0.000000e+00> : vector<128xf32>
    %41 = vector.multi_reduction <add>, %40, %cst_35 [1] : vector<128x128xf32> to vector<128xf32>
    %42 = vector.shape_cast %41 : vector<128xf32> to vector<128x1xf32>
    %43 = tpu.reciprocal %42 {approx = true} : vector<128x1xf32> -> vector<128x1xf32>
    %44 = vector.broadcast %43 : vector<128x1xf32> to vector<128x128xf32>
    %45 = arith.mulf %40, %44 : vector<128x128xf32>
    %46 = arith.truncf %45 : vector<128x128xf32> to vector<128x128xbf16>
    %cst_36 = arith.constant dense<0.000000e+00> : vector<128x16xf32>
    %47 = tpu.matmul %46, %32, %cst_36 {dimension_numbers = #tpu.dot_dimension_numbers<[1], [0], [0], [1], [0, 0, 1, 1], [], []>} : vector<128x128xbf16>, vector<128x16xbf16>, vector<128x16xf32> -> vector<128x16xf32>
    %48 = arith.truncf %47 : vector<128x16xf32> to vector<128x16xbf16>
    %c16 = arith.constant 16 : index
    %c0_37 = arith.constant 0 : index
    %49 = vector.load %arg5[%c16, %c0_37] : memref<64x64xbf16, #tpu.memory_space<vmem>>, vector<16x64xbf16>
    %cst_38 = arith.constant dense<0.000000e+00> : vector<128x64xf32>
    %50 = tpu.matmul %48, %49, %cst_38 {dimension_numbers = #tpu.dot_dimension_numbers<[1], [0], [0], [1], [0, 0, 1, 1], [], []>} : vector<128x16xbf16>, vector<16x64xbf16>, vector<128x64xf32> -> vector<128x64xf32>
    %51 = arith.addf %26, %50 : vector<128x64xf32>
    %c0_39 = arith.constant 0 : index
    %c2 = arith.constant 2 : index
    %c0_40 = arith.constant 0 : index
    %c0_41 = arith.constant 0 : index
    %52 = vector.load %arg2[%c0_39, %c2, %c0_40, %c0_41] : memref<1x4x128x16xbf16, #tpu.memory_space<vmem>>, vector<1x1x128x16xbf16>
    %53 = vector.shape_cast %52 : vector<1x1x128x16xbf16> to vector<128x16xbf16>
    %c0_42 = arith.constant 0 : index
    %c2_43 = arith.constant 2 : index
    %c0_44 = arith.constant 0 : index
    %c0_45 = arith.constant 0 : index
    %54 = vector.load %arg3[%c0_42, %c2_43, %c0_44, %c0_45] : memref<1x4x128x16xbf16, #tpu.memory_space<vmem>>, vector<1x1x128x16xbf16>
    %55 = vector.shape_cast %54 : vector<1x1x128x16xbf16> to vector<128x16xbf16>
    %c0_46 = arith.constant 0 : index
    %c2_47 = arith.constant 2 : index
    %c0_48 = arith.constant 0 : index
    %c0_49 = arith.constant 0 : index
    %56 = vector.load %arg4[%c0_46, %c2_47, %c0_48, %c0_49] : memref<1x4x128x16xbf16, #tpu.memory_space<vmem>>, vector<1x1x128x16xbf16>
    %57 = vector.shape_cast %56 : vector<1x1x128x16xbf16> to vector<128x16xbf16>
    %cst_50 = arith.constant dense<0.000000e+00> : vector<128x128xf32>
    %58 = tpu.matmul %53, %55, %cst_50 {dimension_numbers = #tpu.dot_dimension_numbers<[1], [1], [0], [0], [0, 0, 1, 0], [], []>} : vector<128x16xbf16>, vector<128x16xbf16>, vector<128x128xf32> -> vector<128x128xf32>
    %cst_51 = arith.constant 2.500000e-01 : f32
    %59 = vector.broadcast %cst_51 : f32 to vector<128x128xf32>
    %60 = arith.mulf %58, %59 : vector<128x128xf32>
    %cst_52 = arith.constant dense<0xFF800000> : vector<128xf32>
    %61 = vector.multi_reduction <maximumf>, %60, %cst_52 [1] : vector<128x128xf32> to vector<128xf32>
    %62 = vector.shape_cast %61 : vector<128xf32> to vector<128x1xf32>
    %63 = vector.broadcast %62 : vector<128x1xf32> to vector<128x128xf32>
    %64 = arith.subf %60, %63 : vector<128x128xf32>
    %65 = math.exp %64 : vector<128x128xf32>
    %cst_53 = arith.constant dense<0.000000e+00> : vector<128xf32>
    %66 = vector.multi_reduction <add>, %65, %cst_53 [1] : vector<128x128xf32> to vector<128xf32>
    %67 = vector.shape_cast %66 : vector<128xf32> to vector<128x1xf32>
    %68 = tpu.reciprocal %67 {approx = true} : vector<128x1xf32> -> vector<128x1xf32>
    %69 = vector.broadcast %68 : vector<128x1xf32> to vector<128x128xf32>
    %70 = arith.mulf %65, %69 : vector<128x128xf32>
    %71 = arith.truncf %70 : vector<128x128xf32> to vector<128x128xbf16>
    %cst_54 = arith.constant dense<0.000000e+00> : vector<128x16xf32>
    %72 = tpu.matmul %71, %57, %cst_54 {dimension_numbers = #tpu.dot_dimension_numbers<[1], [0], [0], [1], [0, 0, 1, 1], [], []>} : vector<128x128xbf16>, vector<128x16xbf16>, vector<128x16xf32> -> vector<128x16xf32>
    %73 = arith.truncf %72 : vector<128x16xf32> to vector<128x16xbf16>
    %c32 = arith.constant 32 : index
    %c0_55 = arith.constant 0 : index
    %74 = vector.load %arg5[%c32, %c0_55] : memref<64x64xbf16, #tpu.memory_space<vmem>>, vector<16x64xbf16>
    %cst_56 = arith.constant dense<0.000000e+00> : vector<128x64xf32>
    %75 = tpu.matmul %73, %74, %cst_56 {dimension_numbers = #tpu.dot_dimension_numbers<[1], [0], [0], [1], [0, 0, 1, 1], [], []>} : vector<128x16xbf16>, vector<16x64xbf16>, vector<128x64xf32> -> vector<128x64xf32>
    %76 = arith.addf %51, %75 : vector<128x64xf32>
    %c0_57 = arith.constant 0 : index
    %c3 = arith.constant 3 : index
    %c0_58 = arith.constant 0 : index
    %c0_59 = arith.constant 0 : index
    %77 = vector.load %arg2[%c0_57, %c3, %c0_58, %c0_59] : memref<1x4x128x16xbf16, #tpu.memory_space<vmem>>, vector<1x1x128x16xbf16>
    %78 = vector.shape_cast %77 : vector<1x1x128x16xbf16> to vector<128x16xbf16>
    %c0_60 = arith.constant 0 : index
    %c3_61 = arith.constant 3 : index
    %c0_62 = arith.constant 0 : index
    %c0_63 = arith.constant 0 : index
    %79 = vector.load %arg3[%c0_60, %c3_61, %c0_62, %c0_63] : memref<1x4x128x16xbf16, #tpu.memory_space<vmem>>, vector<1x1x128x16xbf16>
    %80 = vector.shape_cast %79 : vector<1x1x128x16xbf16> to vector<128x16xbf16>
    %c0_64 = arith.constant 0 : index
    %c3_65 = arith.constant 3 : index
    %c0_66 = arith.constant 0 : index
    %c0_67 = arith.constant 0 : index
    %81 = vector.load %arg4[%c0_64, %c3_65, %c0_66, %c0_67] : memref<1x4x128x16xbf16, #tpu.memory_space<vmem>>, vector<1x1x128x16xbf16>
    %82 = vector.shape_cast %81 : vector<1x1x128x16xbf16> to vector<128x16xbf16>
    %cst_68 = arith.constant dense<0.000000e+00> : vector<128x128xf32>
    %83 = tpu.matmul %78, %80, %cst_68 {dimension_numbers = #tpu.dot_dimension_numbers<[1], [1], [0], [0], [0, 0, 1, 0], [], []>} : vector<128x16xbf16>, vector<128x16xbf16>, vector<128x128xf32> -> vector<128x128xf32>
    %cst_69 = arith.constant 2.500000e-01 : f32
    %84 = vector.broadcast %cst_69 : f32 to vector<128x128xf32>
    %85 = arith.mulf %83, %84 : vector<128x128xf32>
    %cst_70 = arith.constant dense<0xFF800000> : vector<128xf32>
    %86 = vector.multi_reduction <maximumf>, %85, %cst_70 [1] : vector<128x128xf32> to vector<128xf32>
    %87 = vector.shape_cast %86 : vector<128xf32> to vector<128x1xf32>
    %88 = vector.broadcast %87 : vector<128x1xf32> to vector<128x128xf32>
    %89 = arith.subf %85, %88 : vector<128x128xf32>
    %90 = math.exp %89 : vector<128x128xf32>
    %cst_71 = arith.constant dense<0.000000e+00> : vector<128xf32>
    %91 = vector.multi_reduction <add>, %90, %cst_71 [1] : vector<128x128xf32> to vector<128xf32>
    %92 = vector.shape_cast %91 : vector<128xf32> to vector<128x1xf32>
    %93 = tpu.reciprocal %92 {approx = true} : vector<128x1xf32> -> vector<128x1xf32>
    %94 = vector.broadcast %93 : vector<128x1xf32> to vector<128x128xf32>
    %95 = arith.mulf %90, %94 : vector<128x128xf32>
    %96 = arith.truncf %95 : vector<128x128xf32> to vector<128x128xbf16>
    %cst_72 = arith.constant dense<0.000000e+00> : vector<128x16xf32>
    %97 = tpu.matmul %96, %82, %cst_72 {dimension_numbers = #tpu.dot_dimension_numbers<[1], [0], [0], [1], [0, 0, 1, 1], [], []>} : vector<128x128xbf16>, vector<128x16xbf16>, vector<128x16xf32> -> vector<128x16xf32>
    %98 = arith.truncf %97 : vector<128x16xf32> to vector<128x16xbf16>
    %c48 = arith.constant 48 : index
    %c0_73 = arith.constant 0 : index
    %99 = vector.load %arg5[%c48, %c0_73] : memref<64x64xbf16, #tpu.memory_space<vmem>>, vector<16x64xbf16>
    %cst_74 = arith.constant dense<0.000000e+00> : vector<128x64xf32>
    %100 = tpu.matmul %98, %99, %cst_74 {dimension_numbers = #tpu.dot_dimension_numbers<[1], [0], [0], [1], [0, 0, 1, 1], [], []>} : vector<128x16xbf16>, vector<16x64xbf16>, vector<128x64xf32> -> vector<128x64xf32>
    %101 = arith.addf %76, %100 : vector<128x64xf32>
    %c0_75 = arith.constant 0 : index
    %c0_76 = arith.constant 0 : index
    %c0_77 = arith.constant 0 : index
    %102 = vector.load %arg6[%c0_75, %c0_76, %c0_77] : memref<1x128x64xf32, #tpu.memory_space<vmem>>, vector<1x128x64xf32>
    %103 = vector.shape_cast %102 : vector<1x128x64xf32> to vector<128x64xf32>
    %104 = vector.shape_cast %101 : vector<128x64xf32> to vector<1x128x64xf32>
    tpu.vector_store %arg6[%c0_75, %c0_76, %c0_77], %104 {strides = array<i32>} : memref<1x128x64xf32, #tpu.memory_space<vmem>>, vector<1x128x64xf32>,
    return
  }
  func.func @transform_0(%arg0: i32) -> (i32, i32, i32) {
    %c0_i32 = arith.constant 0 : i32
    %c0_i32_0 = arith.constant 0 : i32
    %c0_i32_1 = arith.constant 0 : i32
    return %arg0, %c0_i32, %c0_i32_0 : i32, i32, i32
  }
  func.func @transform_1(%arg0: i32) -> (i32, i32, i32, i32) {
    %c0_i32 = arith.constant 0 : i32
    %c0_i32_0 = arith.constant 0 : i32
    %c0_i32_1 = arith.constant 0 : i32
    %c0_i32_2 = arith.constant 0 : i32
    return %arg0, %c0_i32, %c0_i32_0, %c0_i32_1 : i32, i32, i32, i32
  }
  func.func @transform_2(%arg0: i32) -> (i32, i32, i32, i32) {
    %c0_i32 = arith.constant 0 : i32
    %c0_i32_0 = arith.constant 0 : i32
    %c0_i32_1 = arith.constant 0 : i32
    %c0_i32_2 = arith.constant 0 : i32
    return %arg0, %c0_i32, %c0_i32_0, %c0_i32_1 : i32, i32, i32, i32
  }
  func.func @transform_3(%arg0: i32) -> (i32, i32, i32, i32) {
    %c0_i32 = arith.constant 0 : i32
    %c0_i32_0 = arith.constant 0 : i32
    %c0_i32_1 = arith.constant 0 : i32
    %c0_i32_2 = arith.constant 0 : i32
    return %arg0, %c0_i32, %c0_i32_0, %c0_i32_1 : i32, i32, i32, i32
  }
  func.func @transform_4(%arg0: i32) -> (i32, i32) {
    %c0_i32 = arith.constant 0 : i32
    %c0_i32_0 = arith.constant 0 : i32
    %c0_i32_1 = arith.constant 0 : i32
    return %c0_i32, %c0_i32_0 : i32, i32
  }
  func.func @transform_5(%arg0: i32) -> (i32, i32, i32) {
    %c0_i32 = arith.constant 0 : i32
    %c0_i32_0 = arith.constant 0 : i32
    %c0_i32_1 = arith.constant 0 : i32
    return %arg0, %c0_i32, %c0_i32_0 : i32, i32, i32
  }
}

module attributes {stable_mosaic.version = 11 : i64} {
  func.func @ln_mlp_kernel(%arg0: i32, %arg1: memref<256x64xf32, #tpu.memory_space<vmem>>, %arg2: memref<1x64xf32, #tpu.memory_space<vmem>>, %arg3: memref<1x64xf32, #tpu.memory_space<vmem>>, %arg4: memref<64x256xbf16, #tpu.memory_space<vmem>>, %arg5: memref<1x256xf32, #tpu.memory_space<vmem>>, %arg6: memref<256x64xbf16, #tpu.memory_space<vmem>>, %arg7: memref<1x64xf32, #tpu.memory_space<vmem>>, %arg8: memref<256x64xf32, #tpu.memory_space<vmem>>) attributes {dimension_semantics = [#tpu.dimension_semantics<parallel>], iteration_bounds = array<i64: 2>, scalar_prefetch = 0 : i64, scratch_operands = 0 : i64, tpu.core_type = #tpu.core_type<tc>, window_params = [{transform_indices = @transform_0, window_bounds = array<i64: 256, 64>}, {pipeline_mode = #tpu.pipeline_mode<synchronous>, transform_indices = @transform_1, window_bounds = array<i64: 1, 64>}, {pipeline_mode = #tpu.pipeline_mode<synchronous>, transform_indices = @transform_2, window_bounds = array<i64: 1, 64>}, {pipeline_mode = #tpu.pipeline_mode<synchronous>, transform_indices = @transform_3, window_bounds = array<i64: 64, 256>}, {pipeline_mode = #tpu.pipeline_mode<synchronous>, transform_indices = @transform_4, window_bounds = array<i64: 1, 256>}, {pipeline_mode = #tpu.pipeline_mode<synchronous>, transform_indices = @transform_5, window_bounds = array<i64: 256, 64>}, {pipeline_mode = #tpu.pipeline_mode<synchronous>, transform_indices = @transform_6, window_bounds = array<i64: 1, 64>}, {transform_indices = @transform_7, window_bounds = array<i64: 256, 64>}]} {
    %c0 = arith.constant 0 : index
    %c0_0 = arith.constant 0 : index
    %0 = vector.load %arg1[%c0, %c0_0] : memref<256x64xf32, #tpu.memory_space<vmem>>, vector<256x64xf32>
    %c0_1 = arith.constant 0 : index
    %c0_2 = arith.constant 0 : index
    %1 = vector.load %arg2[%c0_1, %c0_2] : memref<1x64xf32, #tpu.memory_space<vmem>>, vector<1x64xf32>
    %c0_3 = arith.constant 0 : index
    %c0_4 = arith.constant 0 : index
    %2 = vector.load %arg3[%c0_3, %c0_4] : memref<1x64xf32, #tpu.memory_space<vmem>>, vector<1x64xf32>
    %cst = arith.constant dense<0.000000e+00> : vector<256xf32>
    %3 = vector.multi_reduction <add>, %0, %cst [1] : vector<256x64xf32> to vector<256xf32>
    %4 = vector.shape_cast %3 : vector<256xf32> to vector<256x1xf32>
    %cst_5 = arith.constant 6.400000e+01 : f32
    %5 = vector.broadcast %cst_5 : f32 to vector<256x1xf32>
    %6 = arith.divf %4, %5 : vector<256x1xf32>
    %7 = vector.broadcast %6 : vector<256x1xf32> to vector<256x64xf32>
    %8 = arith.subf %0, %7 : vector<256x64xf32>
    %9 = arith.mulf %8, %8 : vector<256x64xf32>
    %cst_6 = arith.constant dense<0.000000e+00> : vector<256xf32>
    %10 = vector.multi_reduction <add>, %9, %cst_6 [1] : vector<256x64xf32> to vector<256xf32>
    %11 = vector.shape_cast %10 : vector<256xf32> to vector<256x1xf32>
    %cst_7 = arith.constant 6.400000e+01 : f32
    %12 = vector.broadcast %cst_7 : f32 to vector<256x1xf32>
    %13 = arith.divf %11, %12 : vector<256x1xf32>
    %14 = vector.broadcast %6 : vector<256x1xf32> to vector<256x64xf32>
    %15 = arith.subf %0, %14 : vector<256x64xf32>
    %cst_8 = arith.constant 9.99999974E-6 : f32
    %16 = vector.broadcast %cst_8 : f32 to vector<256x1xf32>
    %17 = arith.addf %13, %16 : vector<256x1xf32>
    %18 = math.rsqrt %17 : vector<256x1xf32>
    %19 = vector.broadcast %18 : vector<256x1xf32> to vector<256x64xf32>
    %20 = arith.mulf %15, %19 : vector<256x64xf32>
    %21 = vector.broadcast %1 : vector<1x64xf32> to vector<256x64xf32>
    %22 = arith.mulf %20, %21 : vector<256x64xf32>
    %23 = vector.broadcast %2 : vector<1x64xf32> to vector<256x64xf32>
    %24 = arith.addf %22, %23 : vector<256x64xf32>
    %25 = arith.truncf %24 : vector<256x64xf32> to vector<256x64xbf16>
    %c0_9 = arith.constant 0 : index
    %c0_10 = arith.constant 0 : index
    %26 = vector.load %arg4[%c0_9, %c0_10] : memref<64x256xbf16, #tpu.memory_space<vmem>>, vector<64x256xbf16>
    %cst_11 = arith.constant dense<0.000000e+00> : vector<256x256xf32>
    %27 = tpu.matmul %25, %26, %cst_11 {dimension_numbers = #tpu.dot_dimension_numbers<[1], [0], [0], [1], [0, 0, 1, 1], [], []>} : vector<256x64xbf16>, vector<64x256xbf16>, vector<256x256xf32> -> vector<256x256xf32>
    %c0_12 = arith.constant 0 : index
    %c0_13 = arith.constant 0 : index
    %28 = vector.load %arg5[%c0_12, %c0_13] : memref<1x256xf32, #tpu.memory_space<vmem>>, vector<1x256xf32>
    %29 = vector.broadcast %28 : vector<1x256xf32> to vector<256x256xf32>
    %30 = arith.addf %27, %29 : vector<256x256xf32>
    %cst_14 = arith.constant 0.000000e+00 : f32
    %31 = vector.broadcast %cst_14 : f32 to vector<256x256xf32>
    %32 = arith.maximumf %30, %31 : vector<256x256xf32>
    %33 = arith.truncf %32 : vector<256x256xf32> to vector<256x256xbf16>
    %c0_15 = arith.constant 0 : index
    %c0_16 = arith.constant 0 : index
    %34 = vector.load %arg6[%c0_15, %c0_16] : memref<256x64xbf16, #tpu.memory_space<vmem>>, vector<256x64xbf16>
    %cst_17 = arith.constant dense<0.000000e+00> : vector<256x64xf32>
    %35 = tpu.matmul %33, %34, %cst_17 {dimension_numbers = #tpu.dot_dimension_numbers<[1], [0], [0], [1], [0, 0, 1, 1], [], []>} : vector<256x256xbf16>, vector<256x64xbf16>, vector<256x64xf32> -> vector<256x64xf32>
    %36 = arith.addf %0, %35 : vector<256x64xf32>
    %c0_18 = arith.constant 0 : index
    %c0_19 = arith.constant 0 : index
    %37 = vector.load %arg7[%c0_18, %c0_19] : memref<1x64xf32, #tpu.memory_space<vmem>>, vector<1x64xf32>
    %38 = vector.broadcast %37 : vector<1x64xf32> to vector<256x64xf32>
    %39 = arith.addf %36, %38 : vector<256x64xf32>
    %c0_20 = arith.constant 0 : index
    %c0_21 = arith.constant 0 : index
    %40 = vector.load %arg8[%c0_20, %c0_21] : memref<256x64xf32, #tpu.memory_space<vmem>>, vector<256x64xf32>
    tpu.vector_store %arg8[%c0_20, %c0_21], %39 {strides = array<i32>} : memref<256x64xf32, #tpu.memory_space<vmem>>, vector<256x64xf32>,
    return
  }
  func.func @transform_0(%arg0: i32) -> (i32, i32) {
    %c0_i32 = arith.constant 0 : i32
    %c0_i32_0 = arith.constant 0 : i32
    return %arg0, %c0_i32 : i32, i32
  }
  func.func @transform_1(%arg0: i32) -> (i32, i32) {
    %c0_i32 = arith.constant 0 : i32
    %c0_i32_0 = arith.constant 0 : i32
    %c0_i32_1 = arith.constant 0 : i32
    return %c0_i32, %c0_i32_0 : i32, i32
  }
  func.func @transform_2(%arg0: i32) -> (i32, i32) {
    %c0_i32 = arith.constant 0 : i32
    %c0_i32_0 = arith.constant 0 : i32
    %c0_i32_1 = arith.constant 0 : i32
    return %c0_i32, %c0_i32_0 : i32, i32
  }
  func.func @transform_3(%arg0: i32) -> (i32, i32) {
    %c0_i32 = arith.constant 0 : i32
    %c0_i32_0 = arith.constant 0 : i32
    %c0_i32_1 = arith.constant 0 : i32
    return %c0_i32, %c0_i32_0 : i32, i32
  }
  func.func @transform_4(%arg0: i32) -> (i32, i32) {
    %c0_i32 = arith.constant 0 : i32
    %c0_i32_0 = arith.constant 0 : i32
    %c0_i32_1 = arith.constant 0 : i32
    return %c0_i32, %c0_i32_0 : i32, i32
  }
  func.func @transform_5(%arg0: i32) -> (i32, i32) {
    %c0_i32 = arith.constant 0 : i32
    %c0_i32_0 = arith.constant 0 : i32
    %c0_i32_1 = arith.constant 0 : i32
    return %c0_i32, %c0_i32_0 : i32, i32
  }
  func.func @transform_6(%arg0: i32) -> (i32, i32) {
    %c0_i32 = arith.constant 0 : i32
    %c0_i32_0 = arith.constant 0 : i32
    %c0_i32_1 = arith.constant 0 : i32
    return %c0_i32, %c0_i32_0 : i32, i32
  }
  func.func @transform_7(%arg0: i32) -> (i32, i32) {
    %c0_i32 = arith.constant 0 : i32
    %c0_i32_0 = arith.constant 0 : i32
    return %arg0, %c0_i32 : i32, i32
  }
}

module attributes {stable_mosaic.version = 11 : i64} {
  func.func @ln_lmhead_kernel(%arg0: i32, %arg1: i32, %arg2: memref<256x64xf32, #tpu.memory_space<vmem>>, %arg3: memref<1x64xf32, #tpu.memory_space<vmem>>, %arg4: memref<1x64xf32, #tpu.memory_space<vmem>>, %arg5: memref<64x256xbf16, #tpu.memory_space<vmem>>, %arg6: memref<256x256xf32, #tpu.memory_space<vmem>>) attributes {dimension_semantics = [#tpu.dimension_semantics<parallel>, #tpu.dimension_semantics<parallel>], iteration_bounds = array<i64: 2, 2>, scalar_prefetch = 0 : i64, scratch_operands = 0 : i64, tpu.core_type = #tpu.core_type<tc>, window_params = [{transform_indices = @transform_0, window_bounds = array<i64: 256, 64>}, {pipeline_mode = #tpu.pipeline_mode<synchronous>, transform_indices = @transform_1, window_bounds = array<i64: 1, 64>}, {pipeline_mode = #tpu.pipeline_mode<synchronous>, transform_indices = @transform_2, window_bounds = array<i64: 1, 64>}, {transform_indices = @transform_3, window_bounds = array<i64: 64, 256>}, {transform_indices = @transform_4, window_bounds = array<i64: 256, 256>}]} {
    %c0 = arith.constant 0 : index
    %c0_0 = arith.constant 0 : index
    %0 = vector.load %arg2[%c0, %c0_0] : memref<256x64xf32, #tpu.memory_space<vmem>>, vector<256x64xf32>
    %c0_1 = arith.constant 0 : index
    %c0_2 = arith.constant 0 : index
    %1 = vector.load %arg3[%c0_1, %c0_2] : memref<1x64xf32, #tpu.memory_space<vmem>>, vector<1x64xf32>
    %c0_3 = arith.constant 0 : index
    %c0_4 = arith.constant 0 : index
    %2 = vector.load %arg4[%c0_3, %c0_4] : memref<1x64xf32, #tpu.memory_space<vmem>>, vector<1x64xf32>
    %cst = arith.constant dense<0.000000e+00> : vector<256xf32>
    %3 = vector.multi_reduction <add>, %0, %cst [1] : vector<256x64xf32> to vector<256xf32>
    %4 = vector.shape_cast %3 : vector<256xf32> to vector<256x1xf32>
    %cst_5 = arith.constant 6.400000e+01 : f32
    %5 = vector.broadcast %cst_5 : f32 to vector<256x1xf32>
    %6 = arith.divf %4, %5 : vector<256x1xf32>
    %7 = vector.broadcast %6 : vector<256x1xf32> to vector<256x64xf32>
    %8 = arith.subf %0, %7 : vector<256x64xf32>
    %9 = arith.mulf %8, %8 : vector<256x64xf32>
    %cst_6 = arith.constant dense<0.000000e+00> : vector<256xf32>
    %10 = vector.multi_reduction <add>, %9, %cst_6 [1] : vector<256x64xf32> to vector<256xf32>
    %11 = vector.shape_cast %10 : vector<256xf32> to vector<256x1xf32>
    %cst_7 = arith.constant 6.400000e+01 : f32
    %12 = vector.broadcast %cst_7 : f32 to vector<256x1xf32>
    %13 = arith.divf %11, %12 : vector<256x1xf32>
    %14 = vector.broadcast %6 : vector<256x1xf32> to vector<256x64xf32>
    %15 = arith.subf %0, %14 : vector<256x64xf32>
    %cst_8 = arith.constant 9.99999974E-6 : f32
    %16 = vector.broadcast %cst_8 : f32 to vector<256x1xf32>
    %17 = arith.addf %13, %16 : vector<256x1xf32>
    %18 = math.rsqrt %17 : vector<256x1xf32>
    %19 = vector.broadcast %18 : vector<256x1xf32> to vector<256x64xf32>
    %20 = arith.mulf %15, %19 : vector<256x64xf32>
    %21 = vector.broadcast %1 : vector<1x64xf32> to vector<256x64xf32>
    %22 = arith.mulf %20, %21 : vector<256x64xf32>
    %23 = vector.broadcast %2 : vector<1x64xf32> to vector<256x64xf32>
    %24 = arith.addf %22, %23 : vector<256x64xf32>
    %25 = arith.truncf %24 : vector<256x64xf32> to vector<256x64xbf16>
    %c0_9 = arith.constant 0 : index
    %c0_10 = arith.constant 0 : index
    %26 = vector.load %arg5[%c0_9, %c0_10] : memref<64x256xbf16, #tpu.memory_space<vmem>>, vector<64x256xbf16>
    %cst_11 = arith.constant dense<0.000000e+00> : vector<256x256xf32>
    %27 = tpu.matmul %25, %26, %cst_11 {dimension_numbers = #tpu.dot_dimension_numbers<[1], [0], [0], [1], [0, 0, 1, 1], [], []>} : vector<256x64xbf16>, vector<64x256xbf16>, vector<256x256xf32> -> vector<256x256xf32>
    %c0_12 = arith.constant 0 : index
    %c0_13 = arith.constant 0 : index
    %28 = vector.load %arg6[%c0_12, %c0_13] : memref<256x256xf32, #tpu.memory_space<vmem>>, vector<256x256xf32>
    tpu.vector_store %arg6[%c0_12, %c0_13], %27 {strides = array<i32>} : memref<256x256xf32, #tpu.memory_space<vmem>>, vector<256x256xf32>,
    return
  }
  func.func @transform_0(%arg0: i32, %arg1: i32) -> (i32, i32) {
    %c0_i32 = arith.constant 0 : i32
    %c0_i32_0 = arith.constant 0 : i32
    return %arg0, %c0_i32 : i32, i32
  }
  func.func @transform_1(%arg0: i32, %arg1: i32) -> (i32, i32) {
    %c0_i32 = arith.constant 0 : i32
    %c0_i32_0 = arith.constant 0 : i32
    %c0_i32_1 = arith.constant 0 : i32
    return %c0_i32, %c0_i32_0 : i32, i32
  }
  func.func @transform_2(%arg0: i32, %arg1: i32) -> (i32, i32) {
    %c0_i32 = arith.constant 0 : i32
    %c0_i32_0 = arith.constant 0 : i32
    %c0_i32_1 = arith.constant 0 : i32
    return %c0_i32, %c0_i32_0 : i32, i32
  }
  func.func @transform_3(%arg0: i32, %arg1: i32) -> (i32, i32) {
    %c0_i32 = arith.constant 0 : i32
    %c0_i32_0 = arith.constant 0 : i32
    return %c0_i32, %arg1 : i32, i32
  }
  func.func @transform_4(%arg0: i32, %arg1: i32) -> (i32, i32) {
    %c0_i32 = arith.constant 0 : i32
    return %arg0, %arg1 : i32, i32
  }
}

</mosaic_0001>

<bundles_post_ra>
// kernel: gpt2_lm_forward.7
= control target key start
LH: loop header
LB: loop body
LE: loop exit
PB: predicated region body
PF: predicated region fallthrough
CT: control target
= control target key end

     0   :  { %s2165_s27 = smov 0   ;;  %s3354_s0 = inlined_call_operand.vmem [shape: f32[512,64], index: 0, kind: input, shape index: {}]   ;;  %s3355_s1 = inlined_call_operand.vmem [shape: f32[1,64], index: 1, kind: input, shape index: {}]   ;;  %s3356_s2 = inlined_call_operand.vmem [shape: f32[1,64], index: 2, kind: input, shape index: {}]   ;;  %s3357_s3 = inlined_call_operand.vmem [shape: bf16[64,64], index: 3, kind: input, shape index: {}]   ;;  %s3358_s4 = inlined_call_operand.vmem [shape: bf16[64,64], index: 4, kind: input, shape index: {}]   ;;  %s3359_s5 = inlined_call_operand.vmem [shape: bf16[64,64], index: 5, kind: input, shape index: {}]   ;;  %s3360_s6 = inlined_call_operand.vmem [shape: bf16[512,64], index: 6, kind: output, shape index: {0}]   ;;  %s3361_s7 = inlined_call_operand.vmem [shape: bf16[512,64], index: 7, kind: output, shape index: {1}]   ;;  %s3362_s8 = inlined_call_operand.vmem [shape: bf16[512,64], index: 8, kind: output, shape index: {2}]  }
   0x1 LB: > { %s1897_s28 = sadd.s32 4294967295, %s2117_s27   ;;  %p1901_p0 = scmp.ge.s32.totalorder %s2117_s27, 1  ;;  %s2117_s27 = sphi %s2165_s27, %s19_s27  }
   0x2   : > { %p268_p1 = scmp.lt.s32.totalorder %s2117_s27, 3 }
   0x4   : > { %p269_p2 = pnand %p1901_p0, %p268_p1 }
   0x5   : > { %s1902_s29 = sshll.u32 (!%p269_p2), %s1897_s28, 5 }
   0x6   : > { %272 = sbr.rel (%p269_p2) target bundleno = 859 (0x35b), region = 44  ;;  %p313_p3 = scmp.lt.s32.totalorder (!%p269_p2), %s1902_s29, 63 }
   0xb   : > { %s3392_s29 = smov (!%p313_p3, %s1902_s29), 63  ;;  %vm371_vm0 = vcmask 523264   ;;  %v2119_v28 = vmov 64.0  }
   0xc   : > { %s1903_s30 = sshll.u32 %s3392_s29, 3  ;;  %2043 = vrcp.f32 %v2119_v28  ;;  %s2863_s21 = sshll.u32 %s3392_s29, 2 }
   0xd   : > { %s2179_s11 = scalar_lea.vmem %s3354_s0, %s1903_s30  ;;  %s2877_s23 = scalar_lea.vmem %s3360_s6, %s2863_s21 }
   0xe   : > { %v361_v0 = vld [vmem:[%s2179_s11 + $0xc0] sm:$0xff]  ;;  %v339_v4 = vld [vmem:[%s2179_s11 + $0x10] sm:$0xff]  ;;  %v2188_v6 = vld [vmem:[%s2179_s11 + $0xc8] sm:$0xff]  ;;  %s2884_s26 = scalar_lea.vmem %s3361_s7, %s2863_s21  ;;  %s2915_s9 = scalar_lea.vmem %s3362_s8, %s2863_s21 }
   0xf   : > { %v337_v1 = vld [vmem:[%s2179_s11] sm:$0xff]  ;;  %v444_v2 = vsel %vm371_vm0, %v361_v0, 0.0  ;;  %v378_v5 = vsel %vm371_vm0, %v339_v4, 0.0  ;;  %v2191_v7 = vld [vmem:[%s2179_s11 + $0x8] sm:$0xff]  ;;  %v2194_v8 = vld [vmem:[%s2179_s11 + $0x18] sm:$0xff]  ;;  %v447_v9 = vsel %vm371_vm0, %v2188_v6, 0.0 }
  0x10   : > { %v372_v3 = vsel %vm371_vm0, %v337_v1, 0.0  ;;  %445 = vadd.xlane.f32.xlu1 %v444_v2  ;;  %379 = vadd.xlane.f32.xlu2 %v378_v5  ;;  %v375_v10 = vsel %vm371_vm0, %v2191_v7, 0.0  ;;  %v381_v11 = vsel %vm371_vm0, %v2194_v8, 0.0  ;;  %v2203_v12 = vld [vmem:[%s2179_s11 + $0xd8] sm:$0xff]  ;;  %v2206_v13 = vld [vmem:[%s2179_s11 + $0xd0] sm:$0xff]  ;;  %v2209_v14 = vld [vmem:[%s2179_s11 + $0x20] sm:$0xff] }
  0x11   : > { %373 = vadd.xlane.f32.xlu0 %v372_v3  ;;  %v453_v15 = vsel %vm371_vm0, %v2203_v12, 0.0  ;;  %v450_v16 = vsel %vm371_vm0, %v2206_v13, 0.0  ;;  %v384_v17 = vsel %vm371_vm0, %v2209_v14, 0.0  ;;  %v2218_v18 = vld [vmem:[%s2179_s11 + $0xe0] sm:$0xff]  ;;  %v2221_v19 = vld [vmem:[%s2179_s11 + $0x28] sm:$0xff]  ;;  %v2233_v24 = vld [vmem:[%s2179_s11 + $0x30] sm:$0xff] }
  0x12   : > { %v2224_v20 = vld [vmem:[%s2179_s11 + $0xe8] sm:$0xff]  ;;  %v456_v21 = vsel %vm371_vm0, %v2218_v18, 0.0  ;;  %v387_v22 = vsel %vm371_vm0, %v2221_v19, 0.0  ;;  %v2236_v25 = vld [vmem:[%s2179_s11 + $0x38] sm:$0xff]  ;;  %v390_v26 = vsel %vm371_vm0, %v2233_v24, 0.0  ;;  %v2044_v29 = vpop.eup %2043  ;;  %v2280_v3 = vld [vmem:[%s2179_s11 + $0xf0] sm:$0xff] }
  0x13   : > { %v459_v23 = vsel %vm371_vm0, %v2224_v20, 0.0  ;;  %v393_v27 = vsel %vm371_vm0, %v2236_v25, 0.0  ;;  %v469_v30 = vmul.f32 64.0, %v2044_v29  ;;  %vm473_vm1 = vweird.f32 %v2044_v29 }
  0x15   : > { %v470_v31 = vsub.f32 1.0, %v469_v30 }
  0x17   : > { %v471_v32 = vmul.f32 %v2044_v29, %v470_v31 }
  0x18   : > { %448 = vadd.xlane.f32.xlu1 %v447_v9  ;;  %382 = vadd.xlane.f32.xlu2 %v381_v11  ;;  %v462_v11 = vsel %vm371_vm0, %v2280_v3, 0.0 }
  0x19   : > { %376 = vadd.xlane.f32.xlu0 %v375_v10  ;;  %v472_v33 = vadd.f32 %v2044_v29, %v471_v32 }
  0x1b   : > { %v2242_v34 = vsel %vm473_vm1, %v2044_v29, %v472_v33 }
  0x20   : > { %454 = vadd.xlane.f32.xlu1 %v453_v15  ;;  %385 = vadd.xlane.f32.xlu2 %v384_v17 }
  0x21   : > { %451 = vadd.xlane.f32.xlu0 %v450_v16 }
  0x28   : > { %457 = vadd.xlane.f32.xlu1 %v456_v21  ;;  %460 = vadd.xlane.f32.xlu2 %v459_v23 }
  0x29   : > { %388 = vadd.xlane.f32.xlu0 %v387_v22 }
  0x30   : > { %391 = vadd.xlane.f32.xlu1 %v390_v26  ;;  %394 = vadd.xlane.f32.xlu2 %v393_v27 }
  0x83   : > { %v446_v35 = vpop.xlane.xlu1 %445  ;;  %v380_v39 = vpop.xlane.xlu2 %379 }
  0x84   : > { %v374_v36 = vpop.xlane.xlu0 %373  ;;  %v499_v37 = vmul.f32 %v2242_v34, %v446_v35  ;;  %v477_v40 = vmul.f32 %v2242_v34, %v380_v39 }
  0x85   : > { %v475_v38 = vmul.f32 %v2242_v34, %v374_v36  ;;  %v2327_v36 = vld [vmem:[%s2179_s11 + $0x48] sm:$0xff] }
  0x86   : > { %v2247_v41 = vsub.f32 %v361_v0, %v499_v37  ;;  %v2253_v44 = vsub.f32 %v339_v4, %v477_v40 }
  0x87   : > { %v2249_v42 = vsub.f32 %v337_v1, %v475_v38 }
  0x88   : > { %v563_v43 = vmul.f32 %v2247_v41, %v2247_v41  ;;  %v541_v52 = vmul.f32 %v2253_v44, %v2253_v44 }
  0x89   : > { %v539_v45 = vmul.f32 %v2249_v42, %v2249_v42 }
  0x8a   : > { %v643_v46 = vsel %vm371_vm0, %v563_v43, 0.0  ;;  %v577_v56 = vsel %vm371_vm0, %v541_v52, 0.0  ;;  %v2357_v52 = vld [vmem:[%s2179_s11 + $0x58] sm:$0xff] }
  0x8b   : > { %v571_v47 = vsel %vm371_vm0, %v539_v45, 0.0  ;;  %v449_v48 = vpop.xlane.xlu1 %448  ;;  %644 = vadd.xlane.f32.xlu2 %v643_v46  ;;  %v383_v53 = vpop.xlane.xlu2 %382  ;;  %v399_v45 = vsel %vm371_vm0, %v2327_v36, 0.0 }
  0x8c   : > { %572 = vadd.xlane.f32.xlu0 %v571_v47  ;;  %v377_v49 = vpop.xlane.xlu0 %376  ;;  %v500_v50 = vmul.f32 %v2242_v34, %v449_v48  ;;  %v478_v0 = vmul.f32 %v2242_v34, %v383_v53 }
  0x8d   : > { %v476_v51 = vmul.f32 %v2242_v34, %v377_v49 }
  0x8e   : > { %v2264_v54 = vsub.f32 %v2188_v6, %v500_v50  ;;  %v2287_v6 = vld [vmem:[%s2179_s11 + $0xf8] sm:$0xff] }
  0x8f   : > { %v2267_v55 = vsub.f32 %v2191_v7, %v476_v51  ;;  %v2290_v7 = vsub.f32 %v2194_v8, %v478_v0  ;;  %v465_v15 = vsel %vm371_vm0, %v2287_v6, 0.0  ;;  %v2354_v51 = vld [vmem:[%s2179_s11 + $0x50] sm:$0xff] }
  0x90   : > { %v564_v57 = vmul.f32 %v2264_v54, %v2264_v54  ;;  %v2010_v0 = vld [vmem:[%s3357_s3 + $0x10] sm:$0xff] }
  0x91   : > { %v540_v58 = vmul.f32 %v2267_v55, %v2267_v55  ;;  %v542_v21 = vmul.f32 %v2290_v7, %v2290_v7 }
  0x92   : > { %v646_v59 = vsel %vm371_vm0, %v564_v57, 0.0  ;;  %v405_v57 = vsel %vm371_vm0, %v2357_v52, 0.0 }
  0x93   : > { %v574_v60 = vsel %vm371_vm0, %v540_v58, 0.0  ;;  %v455_v61 = vpop.xlane.xlu1 %454  ;;  %578 = vadd.xlane.f32.xlu2 %v577_v56  ;;  %v386_v1 = vpop.xlane.xlu2 %385  ;;  %v580_v27 = vsel %vm371_vm0, %v542_v21, 0.0  ;;  %v402_v56 = vsel %vm371_vm0, %v2354_v51, 0.0 }
  0x94   : > { %647 = vadd.xlane.f32.xlu0 %v646_v59  ;;  %v452_v62 = vpop.xlane.xlu0 %451  ;;  %v502_v63 = vmul.f32 %v2242_v34, %v455_v61  ;;  %575 = vadd.xlane.f32.xlu1 %v574_v60  ;;  %v479_v2 = vmul.f32 %v2242_v34, %v386_v1  ;;  %v2370_v60 = vld [vmem:[%s2179_s11 + $0x60] sm:$0xff]  ;;  %v2011_v61 = vld [vmem:[%s3357_s3 + $0x18] sm:$0xff]  ;;  %v2014_v1 = vld [vmem:[%s3358_s4 + $0x10] sm:$0xff] }
  0x95   : > { %v501_v4 = vmul.f32 %v2242_v34, %v452_v62  ;;  %v2015_v62 = vld [vmem:[%s3358_s4 + $0x18] sm:$0xff]  ;;  %1253 = vmatpush.bf16.msra.mxu0 %v2011_v61  ;;  %2020 = vmatpush.bf16.msra.mxu3 %v2011_v61 }
  0x96   : > { %v2284_v5 = vsub.f32 %v2203_v12, %v502_v63  ;;  %v2295_v10 = vsub.f32 %v2209_v14, %v479_v2  ;;  %v2383_v63 = vld [vmem:[%s3359_s5 + $0x18] sm:$0xff]  ;;  %1439 = vmatpush.bf16.msra.mxu1 %v2015_v62  ;;  %v2395_v2 = vld [vmem:[%s3359_s5 + $0x10] sm:$0xff] }
  0x97   : > { %v2302_v12 = vsub.f32 %v2206_v13, %v501_v4  ;;  %1624 = vmatpush.bf16.msra.mxu2 %v2383_v63 }
  0x98   : > { %v566_v9 = vmul.f32 %v2284_v5, %v2284_v5  ;;  %v543_v17 = vmul.f32 %v2295_v10, %v2295_v10 }
  0x99   : > { %v565_v13 = vmul.f32 %v2302_v12, %v2302_v12  ;;  %1254 = vmatpush.bf16.msra.mxu0 %v2010_v0  ;;  %2021 = vmatpush.bf16.msra.mxu3 %v2010_v0 }
  0x9a   : > { %v652_v16 = vsel %vm371_vm0, %v566_v9, 0.0  ;;  %v583_v23 = vsel %vm371_vm0, %v543_v17, 0.0  ;;  %1440 = vmatpush.bf16.msra.mxu1 %v2014_v1  ;;  %v2409_v17 = vld [vmem:[%s3359_s5 + $0x8] sm:$0xff] }
  0x9b   : > { %653 = vadd.xlane.f32.xlu2 %v652_v16  ;;  %v458_v8 = vpop.xlane.xlu1 %457  ;;  %v461_v14 = vpop.xlane.xlu2 %460  ;;  %v649_v28 = vsel %vm371_vm0, %v565_v13, 0.0  ;;  %1625 = vmatpush.bf16.msra.mxu2 %v2395_v2  ;;  %v2009_v16 = vld [vmem:[%s3357_s3 + $0x8] sm:$0xff]  ;;  %v2012_v13 = vld [vmem:[%s3358_s4] sm:$0xff] }
  0x9c   : > { %463 = vadd.xlane.f32.xlu0 %v462_v11  ;;  %466 = vadd.xlane.f32.xlu1 %v465_v15  ;;  %v504_v22 = vmul.f32 %v2242_v34, %v461_v14  ;;  %v389_v29 = vpop.xlane.xlu0 %388  ;;  %v503_v35 = vmul.f32 %v2242_v34, %v458_v8  ;;  %v2013_v8 = vld [vmem:[%s3358_s4 + $0x8] sm:$0xff] }
  0x9d   : > { %v480_v33 = vmul.f32 %v2242_v34, %v389_v29  ;;  %1255 = vmatpush.bf16.msra.mxu0 %v2009_v16  ;;  %2022 = vmatpush.bf16.msra.mxu3 %v2009_v16 }
  0x9e   : > { %v2314_v26 = vsub.f32 %v2224_v20, %v504_v22  ;;  %v2324_v20 = vld [vmem:[%s2179_s11 + $0x40] sm:$0xff]  ;;  %v2339_v43 = vsub.f32 %v2218_v18, %v503_v35  ;;  %1441 = vmatpush.bf16.msra.mxu1 %v2013_v8 }
  0x9f   : > { %v396_v39 = vsel %vm371_vm0, %v2324_v20, 0.0  ;;  %v2336_v40 = vsub.f32 %v2221_v19, %v480_v33  ;;  %1626 = vmatpush.bf16.msra.mxu2 %v2409_v17  ;;  %v2008_v22 = vld [vmem:[%s3357_s3] sm:$0xff] }
  0xa0   : > { %v568_v32 = vmul.f32 %v2314_v26, %v2314_v26  ;;  %v567_v19 = vmul.f32 %v2339_v43, %v2339_v43 }
  0xa1   : > { %v544_v46 = vmul.f32 %v2336_v40, %v2336_v40  ;;  %1256 = vmatpush.bf16.msra.mxu0 %v2008_v22  ;;  %2023 = vmatpush.bf16.msra.mxu3 %v2008_v22 }
  0xa2   : > { %v658_v38 = vsel %vm371_vm0, %v568_v32, 0.0  ;;  %v655_v48 = vsel %vm371_vm0, %v567_v19, 0.0  ;;  %1442 = vmatpush.bf16.msra.mxu1 %v2012_v13 }
  0xa3   : > { %584 = vadd.xlane.f32.xlu2 %v583_v23  ;;  %v392_v30 = vpop.xlane.xlu1 %391  ;;  %v586_v47 = vsel %vm371_vm0, %v544_v46, 0.0  ;;  %v395_v49 = vpop.xlane.xlu2 %394  ;;  %v2427_v23 = vld [vmem:[%s3359_s5] sm:$0xff] }
  0xa4   : > { %581 = vadd.xlane.f32.xlu0 %v580_v27  ;;  %650 = vadd.xlane.f32.xlu1 %v649_v28  ;;  %v481_v31 = vmul.f32 %v2242_v34, %v392_v30  ;;  %v482_v50 = vmul.f32 %v2242_v34, %v395_v49 }
  0xa5   : > { %1627 = vmatpush.bf16.msra.mxu2 %v2427_v23  ;;  %2024 = vmatpush.bf16.msrb.mxu3 %v2015_v62 }
  0xa6   : > { %v2330_v37 = vsub.f32 %v2233_v24, %v481_v31  ;;  %v2360_v53 = vsub.f32 %v2236_v25, %v482_v50  ;;  %v408_v25 = vsel %vm371_vm0, %v2370_v60, 0.0  ;;  %v2453_v50 = vld [vmem:[%s2179_s11 + $0x68] sm:$0xff] }
  0xa8   : > { %v545_v24 = vmul.f32 %v2330_v37, %v2330_v37  ;;  %v546_v58 = vmul.f32 %v2360_v53, %v2360_v53 }
  0xa9   : > { %2025 = vmatpush.bf16.msrb.mxu3 %v2014_v1 }
  0xaa   : > { %v589_v18 = vsel %vm371_vm0, %v545_v24, 0.0  ;;  %v592_v59 = vsel %vm371_vm0, %v546_v58, 0.0 }
  0xab   : > { %659 = vadd.xlane.f32.xlu2 %v658_v38 }
  0xac   : > { %397 = vadd.xlane.f32.xlu0 %v396_v39  ;;  %400 = vadd.xlane.f32.xlu1 %v399_v45 }
  0xad   : > { %2026 = vmatpush.bf16.msrb.mxu3 %v2013_v8 }
  0xb1   : > { %2027 = vmatpush.bf16.msrb.mxu3 %v2012_v13 }
  0xb3   : > { %590 = vadd.xlane.f32.xlu2 %v589_v18 }
  0xb4   : > { %587 = vadd.xlane.f32.xlu0 %v586_v47  ;;  %656 = vadd.xlane.f32.xlu1 %v655_v48 }
  0xbc   : > { %403 = vadd.xlane.f32.xlu0 %v402_v56  ;;  %406 = vadd.xlane.f32.xlu1 %v405_v57 }
  0xc4   : > { %593 = vadd.xlane.f32.xlu0 %v592_v59 }
  0xcc   : > { %409 = vadd.xlane.f32.xlu0 %v408_v25 }
  0xfe   : > { %v645_v4 = vpop.xlane.xlu2 %644 }
  0xff   : > { %v573_v9 = vpop.xlane.xlu0 %572  ;;  %v691_v11 = vmul.f32 %v645_v4, %v2242_v34  ;;  %v2464_v4 = vsel %vm371_vm0, %v2453_v50, 0.0 }
 0x100   : > { %v667_v15 = vmul.f32 %v573_v9, %v2242_v34 }
 0x101   : > { %v2411_v14 = vadd.f32 1e-05, %v691_v11 }
 0x102   : > { %v2413_v21 = vadd.f32 1e-05, %v667_v15 }
 0x103   : > { %2045 = vrsqrt.f32 %v2411_v14  ;;  %vm977_vm2 = vweird.f32 %v2411_v14 }
 0x104   : > { %2047 = vrsqrt.f32 %v2413_v21  ;;  %vm737_vm3 = vweird.f32 %v2413_v21 }
 0x106   : > { %v579_v27 = vpop.xlane.xlu2 %578 }
 0x107   : > { %v648_v28 = vpop.xlane.xlu0 %647  ;;  %v669_v29 = vmul.f32 %v579_v27, %v2242_v34  ;;  %v576_v30 = vpop.xlane.xlu1 %575 }
 0x108   : > { %v692_v31 = vmul.f32 %v648_v28, %v2242_v34  ;;  %v668_v32 = vmul.f32 %v576_v30, %v2242_v34 }
 0x109   : > { %v2433_v33 = vpop.eup %2045  ;;  %v2435_v35 = vadd.f32 1e-05, %v669_v29 }
 0x10a   : > { %v2437_v38 = vadd.f32 1e-05, %v692_v31  ;;  %v2439_v39 = vpop.eup %2047  ;;  %v972_v45 = vmul.f32 %v2433_v33, %v2411_v14  ;;  %v2443_v24 = vadd.f32 1e-05, %v668_v32  ;;  %vm978_vm4 = vweird.f32 %v2433_v33 }
 0x10b   : > { %v732_v46 = vmul.f32 %v2439_v39, %v2413_v21  ;;  %2049 = vrsqrt.f32 %v2435_v35  ;;  %vm738_vm5 = vweird.f32 %v2439_v39  ;;  %vm2518_vm10 = vmor %vm977_vm2, %vm978_vm4  ;;  %vm757_vm13 = vweird.f32 %v2435_v35 }
 0x10c   : > { %v973_v19 = vmul.f32 %v2433_v33, %v972_v45  ;;  %2051 = vrsqrt.f32 %v2443_v24  ;;  %vm747_vm6 = vweird.f32 %v2443_v24  ;;  %vm987_vm7 = vweird.f32 %v2437_v38  ;;  %vm2499_vm9 = vmor %vm737_vm3, %vm738_vm5 }
 0x10d   : > { %v733_v18 = vmul.f32 %v2439_v39, %v732_v46  ;;  %2053 = vrsqrt.f32 %v2437_v38 }
 0x10e   : > { %v974_v47 = vmul.f32 0.5, %v973_v19  ;;  %v654_v48 = vpop.xlane.xlu2 %653 }
 0x10f   : > { %v464_v49 = vpop.xlane.xlu0 %463  ;;  %v734_v56 = vmul.f32 0.5, %v733_v18  ;;  %v694_v57 = vmul.f32 %v654_v48, %v2242_v34  ;;  %v467_v58 = vpop.xlane.xlu1 %466 }
 0x110   : > { %v505_v59 = vmul.f32 %v2242_v34, %v464_v49  ;;  %v506_v25 = vmul.f32 %v2242_v34, %v467_v58  ;;  %v975_v62 = vsub.f32 1.5, %v974_v47 }
 0x111   : > { %v2458_v61 = vpop.eup %2049  ;;  %v735_v0 = vsub.f32 1.5, %v734_v56  ;;  %v2460_v1 = vadd.f32 1e-05, %v694_v57 }
 0x112   : > { %v2466_v9 = vpop.eup %2051  ;;  %v752_v11 = vmul.f32 %v2458_v61, %v2435_v35  ;;  %v2473_v15 = vsub.f32 %v2287_v6, %v506_v25  ;;  %v2482_v22 = vsub.f32 %v2280_v3, %v505_v59  ;;  %v976_v29 = vmul.f32 %v2433_v33, %v975_v62 }
 0x113   : > { %v2475_v16 = vpop.eup %2053  ;;  %v742_v8 = vmul.f32 %v2466_v9, %v2443_v24  ;;  %2055 = vrsqrt.f32 %v2460_v1  ;;  %v736_v27 = vmul.f32 %v2439_v39, %v735_v0  ;;  %vm748_vm8 = vweird.f32 %v2466_v9  ;;  %v2559_v24 = vld [vmem:[%s2179_s11 + $0x70] sm:$0xff] }
 0x114   : > { %v753_v28 = vmul.f32 %v2458_v61, %v752_v11  ;;  %v982_v6 = vmul.f32 %v2475_v16, %v2437_v38  ;;  %v570_v45 = vmul.f32 %v2473_v15, %v2473_v15  ;;  %v569_v48 = vmul.f32 %v2482_v22, %v2482_v22  ;;  %vm749_vm12 = vmor %vm747_vm6, %vm748_vm8 }
 0x115   : > { %v743_v30 = vmul.f32 %v2466_v9, %v742_v8  ;;  %v740_v56 = vsel %vm2499_vm9, %v2439_v39, %v736_v27  ;;  %v980_v8 = vsel %vm2518_vm10, %v2433_v33, %v976_v29  ;;  %vm988_vm11 = vweird.f32 %v2475_v16 }
 0x116   : > { %v754_v3 = vmul.f32 0.5, %v753_v28  ;;  %v983_v31 = vmul.f32 %v2475_v16, %v982_v6  ;;  %v585_v32 = vpop.xlane.xlu2 %584  ;;  %v664_v21 = vsel %vm371_vm0, %v570_v45, 0.0  ;;  %v661_v39 = vsel %vm371_vm0, %v569_v48, 0.0  ;;  %vm989_vm15 = vmor %vm987_vm7, %vm988_vm11 }
 0x117   : > { %v582_v46 = vpop.xlane.xlu0 %581  ;;  %v744_v19 = vmul.f32 0.5, %v743_v30  ;;  %v671_v18 = vmul.f32 %v585_v32, %v2242_v34  ;;  %v651_v47 = vpop.xlane.xlu1 %650  ;;  %665 = vadd.xlane.f32.xlu2 %v664_v21  ;;  %662 = vadd.xlane.f32.xlu1 %v661_v39  ;;  %vm758_vm14 = vweird.f32 %v2458_v61  ;;  %v1075_v32 = vmul.f32 %v980_v8, %v2247_v41 }
 0x118   : > { %v670_v49 = vmul.f32 %v582_v46, %v2242_v34  ;;  %v984_v57 = vmul.f32 0.5, %v983_v31  ;;  %v693_v58 = vmul.f32 %v651_v47, %v2242_v34  ;;  %v755_v28 = vsub.f32 1.5, %v754_v3  ;;  %v2548_v3 = vld [vmem:[%s3355_s1] ss:$0 sm:$0xff]  ;;  %vm2590_vm3 = vmor %vm757_vm13, %vm758_vm14 }
 0x119   : > { %v2512_v59 = vpop.eup %2055  ;;  %v745_v62 = vsub.f32 1.5, %v744_v19  ;;  %v2522_v0 = vadd.f32 1e-05, %v671_v18  ;;  %v1051_v31 = vmul.f32 %v740_v56, %v2249_v42  ;;  %vm1007_vm1 = vweird.f32 %v2460_v1 }
 0x11a   : > { %v2525_v11 = vadd.f32 1e-05, %v670_v49  ;;  %v985_v27 = vsub.f32 1.5, %v984_v57  ;;  %v1002_v14 = vmul.f32 %v2512_v59, %v2460_v1  ;;  %v2535_v30 = vadd.f32 1e-05, %v693_v58 }
 0x11b   : > { %v746_v6 = vmul.f32 %v2466_v9, %v745_v62  ;;  %2057 = vrsqrt.f32 %v2522_v0  ;;  %v1086_v41 = vmul.f32 %v2548_v3, %v1051_v31  ;;  %vm1008_vm2 = vweird.f32 %v2512_v59 }
 0x11c   : > { %v986_v33 = vmul.f32 %v2475_v16, %v985_v27  ;;  %v1003_v29 = vmul.f32 %v2512_v59, %v1002_v14  ;;  %2059 = vrsqrt.f32 %v2525_v11  ;;  %v1110_v27 = vmul.f32 %v2548_v3, %v1075_v32  ;;  %vm2634_vm6 = vmor %vm1007_vm1, %vm1008_vm2 }
 0x11d   : > { %v750_v42 = vsel %vm749_vm12, %v2466_v9, %v746_v6  ;;  %2061 = vrsqrt.f32 %v2535_v30  ;;  %v756_v9 = vmul.f32 %v2458_v61, %v755_v28  ;;  %vm997_vm4 = vweird.f32 %v2535_v30 }
 0x11e   : > { %v1052_v45 = vmul.f32 %v750_v42, %v2267_v55  ;;  %v990_v46 = vsel %vm989_vm15, %v2475_v16, %v986_v33  ;;  %v1004_v13 = vmul.f32 0.5, %v1003_v29  ;;  %v660_v19 = vpop.xlane.xlu2 %659  ;;  %v2573_v55 = vld [vmem:[%s3356_s2] ss:$0 sm:$0xff]  ;;  %v414_v16 = vsel %vm371_vm0, %v2559_v24, 0.0 }
 0x11f   : > { %v398_v18 = vpop.xlane.xlu0 %397  ;;  %v1076_v47 = vmul.f32 %v990_v46, %v2264_v54  ;;  %v696_v38 = vmul.f32 %v660_v19, %v2242_v34  ;;  %v401_v48 = vpop.xlane.xlu1 %400  ;;  %412 = vadd.xlane.f32.xlu1 %v2464_v4  ;;  %v760_v35 = vsel %vm2590_vm3, %v2458_v61, %v756_v9  ;;  %v1121_v33 = vadd.f32 %v2573_v55, %v1086_v41 }
 0x120   : > { %v483_v49 = vmul.f32 %v2242_v34, %v398_v18  ;;  %v1005_v56 = vsub.f32 1.5, %v1004_v13  ;;  %v484_v57 = vmul.f32 %v2242_v34, %v401_v48  ;;  %v1087_v58 = vmul.f32 %v2548_v3, %v1052_v45 }
 0x121   : > { %v2577_v21 = vpop.eup %2057  ;;  %v2581_v54 = vadd.f32 1e-05, %v696_v38  ;;  %v1111_v14 = vmul.f32 %v2548_v3, %v1076_v47  ;;  %v1145_v32 = vadd.f32 %v2573_v55, %v1110_v27  ;;  %vm767_vm9 = vweird.f32 %v2525_v11 }
 0x122   : > { %v2584_v25 = vpop.eup %2059  ;;  %v772_v39 = vmul.f32 %v2577_v21, %v2522_v0  ;;  %v2597_v8 = vsub.f32 %v2327_v36, %v484_v57  ;;  %v2611_v36 = vsub.f32 %v2324_v20, %v483_v49  ;;  %v1006_v4 = vmul.f32 %v2512_v59, %v1005_v56 }
 0x123   : > { %v2602_v28 = vpop.eup %2061  ;;  %v762_v6 = vmul.f32 %v2584_v25, %v2525_v11  ;;  %2063 = vrsqrt.f32 %v2581_v54  ;;  %vm768_vm5 = vweird.f32 %v2584_v25  ;;  %v1122_v42 = vadd.f32 %v2573_v55, %v1087_v58 }
 0x124   : > { %v992_v31 = vmul.f32 %v2602_v28, %v2535_v30  ;;  %v773_v29 = vmul.f32 %v2577_v21, %v772_v39  ;;  %v1146_v45 = vadd.f32 %v2573_v55, %v1111_v14  ;;  %v548_v13 = vmul.f32 %v2597_v8, %v2597_v8  ;;  %vm769_vm10 = vmor %vm767_vm9, %vm768_vm5 }
 0x125   : > { %v763_v61 = vmul.f32 %v2584_v25, %v762_v6  ;;  %v1153_v9 = vpack.c.bf16 %v1122_v42, %v1121_v33  ;;  %v547_v48 = vmul.f32 %v2611_v36, %v2611_v36  ;;  %vm998_vm7 = vweird.f32 %v2602_v28 }
 0x126   : > { %v993_v20 = vmul.f32 %v2602_v28, %v992_v31  ;;  %v591_v46 = vpop.xlane.xlu2 %590  ;;  %v2639_v57 = vpack.c.bf16 %v1146_v45, %v1145_v32  ;;  %v598_v1 = vsel %vm371_vm0, %v548_v13, 0.0  ;;  %v1053_v14 = vmul.f32 %v760_v35, %v2253_v44  ;;  %vm2663_vm8 = vmor %vm997_vm4, %vm998_vm7 }
 0x127   : > { %v588_v19 = vpop.xlane.xlu0 %587  ;;  %v764_v18 = vmul.f32 0.5, %v763_v61  ;;  %v673_v47 = vmul.f32 %v591_v46, %v2242_v34  ;;  %v657_v38 = vpop.xlane.xlu1 %656  ;;  %1926 = vmatmul.msk.bf16.vlgmr.msra.gmra.mxu0 %vm371_vm0, %v1153_v9  ;;  %1958 = vmatmul.msk.bf16.vlgmr.msra.gmra.mxu1 %vm371_vm0, %v1153_v9  ;;  %v595_v27 = vsel %vm371_vm0, %v547_v48, 0.0  ;;  %v1010_v33 = vsel %vm2634_vm6, %v2512_v59, %v1006_v4  ;;  %v2687_v46 = vld [vmem:[%s2179_s11 + $0x78] sm:$0xff] }
 0x128   : > { %v994_v56 = vmul.f32 0.5, %v993_v20  ;;  %v695_v41 = vmul.f32 %v657_v38, %v2242_v34  ;;  %1938 = vmatmul.msk.bf16.vlgmr.msra.gmra.mxu3 %vm371_vm0, %v2639_v57  ;;  %1990 = vmatmul.msk.bf16.vlgmr.msra.gmra.mxu2 %vm371_vm0, %v1153_v9  ;;  %v672_v30 = vmul.f32 %v588_v19, %v2242_v34  ;;  %v774_v4 = vmul.f32 0.5, %v773_v29 }
 0x129   : > { %v2642_v58 = vpop.eup %2063  ;;  %v765_v62 = vsub.f32 1.5, %v764_v18  ;;  %v2646_v39 = vadd.f32 1e-05, %v673_v47  ;;  %599 = vadd.xlane.f32.xlu0 %v598_v1  ;;  %415 = vadd.xlane.f32.xlu1 %v414_v16  ;;  %v1078_v29 = vmul.f32 %v1010_v33, %v2284_v5  ;;  %vm1027_vm11 = vweird.f32 %v2581_v54 }
 0x12a   : > { %v995_v6 = vsub.f32 1.5, %v994_v56  ;;  %v1022_v31 = vmul.f32 %v2642_v58, %v2581_v54  ;;  %v2669_v35 = vadd.f32 1e-05, %v695_v41  ;;  %596 = vadd.xlane.f32.xlu2 %v595_v27  ;;  %2028 = vmatpush.bf16.msra.mxu3 %v2383_v63  ;;  %v2684_v45 = vadd.f32 1e-05, %v672_v30 }
 0x12b   : > { %v766_v44 = vmul.f32 %v2584_v25, %v765_v62  ;;  %2065 = vrsqrt.f32 %v2646_v39  ;;  %v1088_v63 = vmul.f32 %v2548_v3, %v1053_v14  ;;  %v775_v38 = vsub.f32 1.5, %v774_v4 }
 0x12c   : > { %v996_v42 = vmul.f32 %v2602_v28, %v995_v6  ;;  %v1023_v59 = vmul.f32 %v2642_v58, %v1022_v31  ;;  %2067 = vrsqrt.f32 %v2669_v35  ;;  %vm1028_vm12 = vweird.f32 %v2642_v58 }
 0x12d   : > { %v770_v11 = vsel %vm769_vm10, %v2584_v25, %v766_v44  ;;  %2069 = vrsqrt.f32 %v2684_v45  ;;  %v1123_v41 = vadd.f32 %v2573_v55, %v1088_v63  ;;  %v1113_v1 = vmul.f32 %v2548_v3, %v1078_v29  ;;  %vm2729_vm15 = vmor %vm1027_vm11, %vm1028_vm12 }
 0x12e   : > { %v1000_v16 = vsel %vm2663_vm8, %v2602_v28, %v996_v42  ;;  %v1054_v20 = vmul.f32 %v770_v11, %v2290_v7  ;;  %v1024_v32 = vmul.f32 0.5, %v1023_v59  ;;  %v417_v28 = vsel %vm371_vm0, %v2687_v46, 0.0  ;;  %2029 = vmatpush.bf16.msra.mxu3 %v2395_v2  ;;  %v2734_v59 = vld [vmem:[%s2179_s11 + $0x80] sm:$0xff] }
 0x12f   : > { %v404_v13 = vpop.xlane.xlu0 %403  ;;  %v1077_v25 = vmul.f32 %v1000_v16, %v2302_v12  ;;  %v407_v19 = vpop.xlane.xlu1 %406  ;;  %vm777_vm13 = vweird.f32 %v2522_v0  ;;  %vm778_vm14 = vweird.f32 %v2577_v21  ;;  %v1148_v6 = vadd.f32 %v2573_v55, %v1113_v1 }
 0x130   : > { %v485_v18 = vmul.f32 %v2242_v34, %v404_v13  ;;  %v1025_v9 = vsub.f32 1.5, %v1024_v32  ;;  %v486_v7 = vmul.f32 %v2242_v34, %v407_v19  ;;  %v1089_v47 = vmul.f32 %v2548_v3, %v1054_v20  ;;  %vm2747_vm2 = vmor %vm777_vm13, %vm778_vm14 }
 0x131   : > { %v1112_v5 = vmul.f32 %v2548_v3, %v1077_v25  ;;  %v2701_v12 = vpop.eup %2065  ;;  %v776_v61 = vmul.f32 %v2577_v21, %v775_v38  ;;  %vm1017_vm1 = vweird.f32 %v2669_v35  ;;  %v420_v0 = vsel %vm371_vm0, %v2734_v59, 0.0  ;;  %v2778_v38 = vld [vmem:[%s2179_s11 + $0x88] sm:$0xff] }
 0x132   : > { %v2705_v48 = vsub.f32 %v2357_v52, %v486_v7  ;;  %v2708_v49 = vsub.f32 %v2354_v51, %v485_v18  ;;  %v2068_v56 = vpop.eup %2067  ;;  %v1124_v62 = vadd.f32 %v2573_v55, %v1089_v47  ;;  %v1026_v52 = vmul.f32 %v2642_v58, %v1025_v9  ;;  %418 = vadd.xlane.f32.xlu2 %v417_v28 }
 0x133   : > { %v1147_v2 = vadd.f32 %v2573_v55, %v1112_v5  ;;  %v1012_v27 = vmul.f32 %v2068_v56, %v2669_v35  ;;  %v792_v51 = vmul.f32 %v2701_v12, %v2646_v39  ;;  %2030 = vmatpush.bf16.msra.mxu3 %v2409_v17  ;;  %v2070_v33 = vpop.eup %2069  ;;  %vm1018_vm3 = vweird.f32 %v2068_v56 }
 0x134   : > { %v1154_v14 = vpack.c.bf16 %v1124_v62, %v1123_v41  ;;  %v550_v31 = vmul.f32 %v2705_v48, %v2705_v48  ;;  %v549_v30 = vmul.f32 %v2708_v49, %v2708_v49  ;;  %v782_v17 = vmul.f32 %v2070_v33, %v2684_v45  ;;  %vm2770_vm4 = vmor %vm1017_vm1, %vm1018_vm3 }
 0x135   : > { %v1013_v42 = vmul.f32 %v2068_v56, %v1012_v27  ;;  %v2740_v11 = vpack.c.bf16 %v1148_v6, %v1147_v2  ;;  %v1030_v29 = vsel %vm2729_vm15, %v2642_v58, %v1026_v52  ;;  %v793_v25 = vmul.f32 %v2701_v12, %v792_v51 }
 0x136   : > { %v604_v16 = vsel %vm371_vm0, %v550_v31, 0.0  ;;  %v601_v32 = vsel %vm371_vm0, %v549_v30, 0.0  ;;  %v783_v19 = vmul.f32 %v2070_v33, %v782_v17  ;;  %v780_v58 = vsel %vm2747_vm2, %v2577_v21, %v776_v61 }
 0x137   : > { %v594_v4 = vpop.xlane.xlu0 %593  ;;  %v1014_v20 = vmul.f32 0.5, %v1013_v42  ;;  %605 = vadd.xlane.f32.xlu1 %v604_v16  ;;  %1927 = vmatmul.msk.bf16.gmra.mxu0 %vm371_vm0, %v1154_v14  ;;  %vm787_vm5 = vweird.f32 %v2684_v45  ;;  %vm788_vm6 = vweird.f32 %v2070_v33  ;;  %v1080_v28 = vmul.f32 %v1030_v29, %v2314_v26  ;;  %v2812_v16 = vld [vmem:[%s2179_s11 + $0x90] sm:$0xff] }
 0x138   : > { %v674_v13 = vmul.f32 %v594_v4, %v2242_v34  ;;  %1959 = vmatmul.msk.bf16.gmra.mxu1 %vm371_vm0, %v1154_v14  ;;  %1939 = vmatmul.msk.bf16.gmra.mxu3 %vm371_vm0, %v2740_v11  ;;  %v784_v7 = vmul.f32 0.5, %v783_v19  ;;  %v794_v21 = vmul.f32 0.5, %v793_v25  ;;  %v1055_v35 = vmul.f32 %v780_v58, %v2295_v10  ;;  %vm789_vm7 = vmor %vm787_vm5, %vm788_vm6 }
 0x139   : > { %v1015_v18 = vsub.f32 1.5, %v1014_v20  ;;  %1991 = vmatmul.msk.bf16.gmra.mxu2 %vm371_vm0, %v1154_v14  ;;  %602 = vadd.xlane.f32.xlu0 %v601_v32  ;;  %v423_v26 = vsel %vm371_vm0, %v2778_v38, 0.0  ;;  %v1115_v2 = vmul.f32 %v2548_v3, %v1080_v28  ;;  %vm797_vm8 = vweird.f32 %v2646_v39  ;;  %v2815_v32 = vld [vmem:[%s2179_s11 + $0x98] sm:$0xff] }
 0x13a   : > { %v706_v63 = vadd.f32 1e-05, %v674_v13  ;;  %2031 = vmatpush.bf16.msra.mxu3 %v2427_v23  ;;  %421 = vadd.xlane.f32.xlu2 %v420_v0  ;;  %v785_v5 = vsub.f32 1.5, %v784_v7  ;;  %v795_v52 = vsub.f32 1.5, %v794_v21  ;;  %v1090_v14 = vmul.f32 %v2548_v3, %v1055_v35  ;;  %v2834_v7 = vld [vmem:[%s2179_s11 + $0xa0] sm:$0xff] }
 0x13b   : > { %v1016_v47 = vmul.f32 %v2068_v56, %v1015_v18  ;;  %vm798_vm9 = vweird.f32 %v2701_v12  ;;  %v1150_v61 = vadd.f32 %v2573_v55, %v1115_v2  ;;  %v426_v25 = vsel %vm371_vm0, %v2812_v16, 0.0 }
 0x13c   : > { %2071 = vrsqrt.f32 %v706_v63  ;;  %v786_v1 = vmul.f32 %v2070_v33, %v785_v5  ;;  %v796_v39 = vmul.f32 %v2701_v12, %v795_v52  ;;  %vm2803_vm10 = vmor %vm797_vm8, %vm798_vm9  ;;  %v1125_v30 = vadd.f32 %v2573_v55, %v1090_v14 }
 0x13d   : > { %v1020_v41 = vsel %vm2770_vm4, %v2068_v56, %v1016_v47  ;;  %vm807_vm11 = vweird.f32 %v706_v63  ;;  %v429_v0 = vsel %vm371_vm0, %v2815_v32, 0.0  ;;  %v432_v47 = vsel %vm371_vm0, %v2834_v7, 0.0 }
 0x13e   : > { %v1079_v62 = vmul.f32 %v1020_v41, %v2339_v43  ;;  %v790_v27 = vsel %vm789_vm7, %v2070_v33, %v786_v1  ;;  %v800_v13 = vsel %vm2803_vm10, %v2701_v12, %v796_v39  ;;  %vm1370_vm5 = vcmask 519168  }
 0x13f   : > { %v410_v45 = vpop.xlane.xlu0 %409  ;;  %v1056_v43 = vmul.f32 %v790_v27, %v2336_v40  ;;  %v1057_v12 = vmul.f32 %v800_v13, %v2330_v37 }
 0x140   : > { %v487_v23 = vmul.f32 %v2242_v34, %v410_v45  ;;  %v1114_v10 = vmul.f32 %v2548_v3, %v1079_v62 }
 0x141   : > { %424 = vadd.xlane.f32.xlu0 %v423_v26  ;;  %v1091_v33 = vmul.f32 %v2548_v3, %v1056_v43  ;;  %v1092_v58 = vmul.f32 %v2548_v3, %v1057_v12 }
 0x142   : > { %v2789_v51 = vsub.f32 %v2370_v60, %v487_v23  ;;  %v2072_v56 = vpop.eup %2071  ;;  %v1149_v31 = vadd.f32 %v2573_v55, %v1114_v10 }
 0x143   : > { %v802_v6 = vmul.f32 %v2072_v56, %v706_v63  ;;  %v1126_v4 = vadd.f32 %v2573_v55, %v1091_v33  ;;  %vm808_vm12 = vweird.f32 %v2072_v56  ;;  %v1127_v21 = vadd.f32 %v2573_v55, %v1092_v58 }
 0x144   : > { %v551_v60 = vmul.f32 %v2789_v51, %v2789_v51  ;;  %v2809_v17 = vpack.c.bf16 %v1150_v61, %v1149_v31  ;;  %vm809_vm13 = vmor %vm807_vm11, %vm808_vm12 }
 0x145   : > { %v803_v40 = vmul.f32 %v2072_v56, %v802_v6  ;;  %v1155_v20 = vpack.c.bf16 %v1126_v4, %v1125_v30 }
 0x146   : > { %v607_v44 = vsel %vm371_vm0, %v551_v60, 0.0 }
 0x147   : > { %608 = vadd.xlane.f32.xlu1 %v607_v44  ;;  %v804_v54 = vmul.f32 0.5, %v803_v40  ;;  %1928 = vmatmul.msk.bf16.gmra.mxu0 %vm371_vm0, %v1155_v20 }
 0x148   : > { %1940 = vmatmul.msk.bf16.gmra.mxu3 %vm371_vm0, %v2809_v17  ;;  %1960 = vmatmul.msk.bf16.gmra.mxu1 %vm371_vm0, %v1155_v20 }
 0x149   : > { %v805_v29 = vsub.f32 1.5, %v804_v54  ;;  %1992 = vmatmul.msk.bf16.gmra.mxu2 %vm371_vm0, %v1155_v20  ;;  %427 = vadd.xlane.f32.xlu0 %v426_v25 }
 0x14b   : > { %v806_v19 = vmul.f32 %v2072_v56, %v805_v29 }
 0x14d   : > { %v810_v18 = vsel %vm809_vm13, %v2072_v56, %v806_v19 }
 0x14e   : > { %v1058_v63 = vmul.f32 %v810_v18, %v2360_v53 }
 0x14f   : > { %430 = vadd.xlane.f32.xlu1 %v429_v0 }
 0x150   : > { %v1093_v9 = vmul.f32 %v2548_v3, %v1058_v63 }
 0x152   : > { %v1128_v28 = vadd.f32 %v2573_v55, %v1093_v9 }
 0x154   : > { %v1156_v5 = vpack.c.bf16 %v1128_v28, %v1127_v21 }
 0x157   : > { %433 = vadd.xlane.f32.xlu1 %v432_v47  ;;  %1929 = vmatmul.msk.bf16.gmra.mxu0 %vm371_vm0, %v1156_v5 }
 0x158   : > { %1961 = vmatmul.msk.bf16.gmra.mxu1 %vm371_vm0, %v1156_v5 }
 0x159   : > { %1993 = vmatmul.msk.bf16.gmra.mxu2 %vm371_vm0, %v1156_v5 }
 0x18a   : > { %v666_v37 = vpop.xlane.xlu2 %665  ;;  %v663_v35 = vpop.xlane.xlu1 %662 }
 0x18b   : > { %v698_v53 = vmul.f32 %v666_v37, %v2242_v34  ;;  %v697_v41 = vmul.f32 %v663_v35, %v2242_v34  ;;  %v2892_v35 = vld [vmem:[%s2179_s11 + $0xa8] sm:$0xff] }
 0x18d   : > { %v730_v45 = vadd.f32 1e-05, %v698_v53  ;;  %v729_v62 = vadd.f32 1e-05, %v697_v41 }
 0x18f   : > { %2073 = vrsqrt.f32 %v730_v45  ;;  %vm1047_vm14 = vweird.f32 %v730_v45  ;;  %vm1037_vm3 = vweird.f32 %v729_v62 }
 0x190   : > { %2075 = vrsqrt.f32 %v729_v62 }
 0x192   : > { %v413_v1 = vpop.xlane.xlu1 %412 }
 0x193   : > { %v488_v23 = vmul.f32 %v2242_v34, %v413_v1 }
 0x195   : > { %v2074_v26 = vpop.eup %2073  ;;  %v2847_v27 = vsub.f32 %v2453_v50, %v488_v23 }
 0x196   : > { %v2076_v2 = vpop.eup %2075  ;;  %v1042_v52 = vmul.f32 %v2074_v26, %v730_v45  ;;  %vm1048_vm15 = vweird.f32 %v2074_v26 }
 0x197   : > { %v1032_v10 = vmul.f32 %v2076_v2, %v729_v62  ;;  %v552_v43 = vmul.f32 %v2847_v27, %v2847_v27  ;;  %vm1038_vm1 = vweird.f32 %v2076_v2  ;;  %vm1049_vm2 = vmor %vm1047_vm14, %vm1048_vm15 }
 0x198   : > { %v1043_v56 = vmul.f32 %v2074_v26, %v1042_v52  ;;  %vm1039_vm4 = vmor %vm1037_vm3, %vm1038_vm1 }
 0x199   : > { %v1033_v14 = vmul.f32 %v2076_v2, %v1032_v10  ;;  %v610_v31 = vsel %vm371_vm0, %v552_v43, 0.0  ;;  %v435_v10 = vsel %vm371_vm0, %v2892_v35, 0.0 }
 0x19a   : > { %v1044_v6 = vmul.f32 0.5, %v1043_v56  ;;  %611 = vadd.xlane.f32.xlu2 %v610_v31 }
 0x19b   : > { %v1034_v60 = vmul.f32 0.5, %v1033_v14 }
 0x19c   : > { %v1045_v33 = vsub.f32 1.5, %v1044_v6  ;;  %v416_v61 = vpop.xlane.xlu1 %415  ;;  %v600_v39 = vpop.xlane.xlu0 %599 }
 0x19d   : > { %v1035_v40 = vsub.f32 1.5, %v1034_v60  ;;  %v489_v50 = vmul.f32 %v2242_v34, %v416_v61  ;;  %v597_v44 = vpop.xlane.xlu2 %596  ;;  %v676_v42 = vmul.f32 %v600_v39, %v2242_v34 }
 0x19e   : > { %v1046_v30 = vmul.f32 %v2074_v26, %v1045_v33  ;;  %v675_v4 = vmul.f32 %v597_v44, %v2242_v34 }
 0x19f   : > { %v1036_v54 = vmul.f32 %v2076_v2, %v1035_v40  ;;  %v2856_v20 = vsub.f32 %v2559_v24, %v489_v50  ;;  %v2858_v13 = vadd.f32 1e-05, %v676_v42 }
 0x1a0   : > { %v1050_v29 = vsel %vm1049_vm2, %v2074_v26, %v1046_v30  ;;  %v2860_v25 = vadd.f32 1e-05, %v675_v4 }
 0x1a1   : > { %v1082_v19 = vmul.f32 %v1050_v29, %v2473_v15  ;;  %v1040_v0 = vsel %vm1039_vm4, %v2076_v2, %v1036_v54  ;;  %2077 = vrsqrt.f32 %v2858_v13  ;;  %v553_v24 = vmul.f32 %v2856_v20, %v2856_v20 }
 0x1a2   : > { %v1081_v12 = vmul.f32 %v1040_v0, %v2482_v22  ;;  %2079 = vrsqrt.f32 %v2860_v25  ;;  %vm827_vm6 = vweird.f32 %v2858_v13  ;;  %vm817_vm10 = vweird.f32 %v2860_v25 }
 0x1a3   : > { %v1117_v18 = vmul.f32 %v2548_v3, %v1082_v19  ;;  %v613_v63 = vsel %vm371_vm0, %v553_v24, 0.0 }
 0x1a4   : > { %v1258_v15 = vpop.f32.mrf.mxu0  ;;  %v1444_v58 = vpop.f32.mrf.mxu1  ;;  %v1116_v22 = vmul.f32 %v2548_v3, %v1081_v12  ;;  %614 = vadd.xlane.f32.xlu2 %v613_v63 }
 0x1a5   : > { %v419_v9 = vpop.xlane.xlu2 %418  ;;  %v1338_v28 = vpack.c.bf16 %v1258_v15, %v1258_v15  ;;  %v1524_v47 = vpack.c.bf16 %v1444_v58, %v1444_v58  ;;  %v1152_v21 = vadd.f32 %v2573_v55, %v1117_v18  ;;  %v2937_v18 = vld [vmem:[%s2179_s11 + $0xb0] sm:$0xff] }
 0x1a6   : > { %v490_v5 = vmul.f32 %v2242_v34, %v419_v9  ;;  %v1151_v37 = vadd.f32 %v2573_v55, %v1116_v22  ;;  %v438_v22 = vsel %vm371_vm0, %v2937_v18, 0.0 }
 0x1a7   : > { %v2078_v53 = vpop.eup %2077  ;;  %1371 = vst.msk [vmem:[%s2877_s23] sm:$0xf] %vm1370_vm5, %v1338_v28 }
 0x1a8   : > { %v2080_v41 = vpop.eup %2079  ;;  %v822_v45 = vmul.f32 %v2078_v53, %v2858_v13  ;;  %v2896_v62 = vsub.f32 %v2687_v46, %v490_v5  ;;  %1556 = vst.msk [vmem:[%s2884_s26] sm:$0xf] %vm1370_vm5, %v1524_v47  ;;  %v2900_v1 = vpack.c.bf16 %v1152_v21, %v1151_v37  ;;  %vm828_vm7 = vweird.f32 %v2078_v53 }
 0x1a9   : > { %v812_v23 = vmul.f32 %v2080_v41, %v2860_v25  ;;  %vm818_vm8 = vweird.f32 %v2080_v41  ;;  %vm2928_vm9 = vmor %vm827_vm6, %vm828_vm7 }
 0x1aa   : > { %v606_v26 = vpop.xlane.xlu1 %605  ;;  %v823_v2 = vmul.f32 %v2078_v53, %v822_v45  ;;  %1941 = vmatmul.msk.bf16.gmra.mxu3 %vm371_vm0, %v2900_v1  ;;  %v554_v46 = vmul.f32 %v2896_v62, %v2896_v62  ;;  %vm819_vm11 = vmor %vm817_vm10, %vm818_vm8 }
 0x1ab   : > { %v678_v52 = vmul.f32 %v606_v26, %v2242_v34  ;;  %v813_v56 = vmul.f32 %v2080_v41, %v812_v23  ;;  %v1318_v43 = vpop.f32.mrf.mxu3  ;;  %v1629_v14 = vpop.f32.mrf.mxu2 }
 0x1ac   : > { %v824_v6 = vmul.f32 0.5, %v823_v2  ;;  %v1362_v31 = vpack.c.bf16 %v1318_v43, %v1318_v43  ;;  %v1709_v60 = vpack.c.bf16 %v1629_v14, %v1629_v14  ;;  %v603_v61 = vpop.xlane.xlu0 %602  ;;  %v1260_v39 = vpop.f32.mrf.mxu0  ;;  %436 = vadd.xlane.f32.xlu2 %v435_v10  ;;  %v616_v44 = vsel %vm371_vm0, %v554_v46, 0.0 }
 0x1ad   : > { %v2917_v33 = vadd.f32 1e-05, %v678_v52  ;;  %v814_v40 = vmul.f32 0.5, %v813_v56  ;;  %v422_v50 = vpop.xlane.xlu2 %421  ;;  %v677_v42 = vmul.f32 %v603_v61, %v2242_v34  ;;  %v1339_v30 = vpack.c.bf16 %v1260_v39, %v1260_v39  ;;  %v1446_v4 = vpop.f32.mrf.mxu1  ;;  %617 = vadd.xlane.f32.xlu0 %v616_v44  ;;  %v2980_v39 = vld [vmem:[%s2179_s11 + $0xb8] sm:$0xff] }
 0x1ae   : > { %v825_v54 = vsub.f32 1.5, %v824_v6  ;;  %1395 = vst.msk [vmem:[%s2877_s23 + $0x60] sm:$0xf] %vm1370_vm5, %v1362_v31  ;;  %v491_v29 = vmul.f32 %v2242_v34, %v422_v50  ;;  %v1525_v24 = vpack.c.bf16 %v1446_v4, %v1446_v4 }
 0x1af   : > { %2081 = vrsqrt.f32 %v2917_v33  ;;  %v815_v19 = vsub.f32 1.5, %v814_v40  ;;  %1741 = vst.msk [vmem:[%s2915_s9] sm:$0xf] %vm1370_vm5, %v1709_v60  ;;  %v2934_v12 = vadd.f32 1e-05, %v677_v42  ;;  %vm847_vm12 = vweird.f32 %v2917_v33 }
 0x1b0   : > { %v826_v63 = vmul.f32 %v2078_v53, %v825_v54  ;;  %v2940_v15 = vsub.f32 %v2734_v59, %v491_v29  ;;  %1372 = vst.msk [vmem:[%s2877_s23 + $0x4] sm:$0xf] %vm1370_vm5, %v1339_v30 }
 0x1b1   : > { %v816_v58 = vmul.f32 %v2080_v41, %v815_v19  ;;  %2083 = vrsqrt.f32 %v2934_v12  ;;  %1557 = vst.msk [vmem:[%s2884_s26 + $0x4] sm:$0xf] %vm1370_vm5, %v1525_v24  ;;  %vm837_vm14 = vweird.f32 %v2934_v12 }
 0x1b2   : > { %v830_v13 = vsel %vm2928_vm9, %v2078_v53, %v826_v63  ;;  %v555_v59 = vmul.f32 %v2940_v15, %v2940_v15 }
 0x1b3   : > { %v820_v9 = vsel %vm819_vm11, %v2080_v41, %v816_v58  ;;  %v1060_v28 = vmul.f32 %v830_v13, %v2597_v8  ;;  %v1320_v47 = vpop.f32.mrf.mxu3  ;;  %v1631_v25 = vpop.f32.mrf.mxu2 }
 0x1b4   : > { %v1059_v5 = vmul.f32 %v820_v9, %v2611_v36  ;;  %v1363_v37 = vpack.c.bf16 %v1320_v47, %v1320_v47  ;;  %v1710_v45 = vpack.c.bf16 %v1631_v25, %v1631_v25  ;;  %v619_v53 = vsel %vm371_vm0, %v555_v59, 0.0  ;;  %v425_v23 = vpop.xlane.xlu0 %424  ;;  %v1263_v26 = vpop.f32.mrf.mxu0  ;;  %439 = vadd.xlane.f32.xlu2 %v438_v22 }
 0x1b5   : > { %v2955_v21 = vpop.eup %2081  ;;  %v492_v8 = vmul.f32 %v2242_v34, %v425_v23  ;;  %v1340_v41 = vpack.c.bf16 %v1263_v26, %v1263_v26  ;;  %v1449_v52 = vpop.f32.mrf.mxu1  ;;  %620 = vadd.xlane.f32.xlu0 %v619_v53  ;;  %v1095_v46 = vmul.f32 %v2548_v3, %v1060_v28 }
 0x1b6   : > { %v842_v2 = vmul.f32 %v2955_v21, %v2917_v33  ;;  %1396 = vst.msk [vmem:[%s2877_s23 + $0x64] sm:$0xf] %vm1370_vm5, %v1363_v37  ;;  %v1526_v36 = vpack.c.bf16 %v1449_v52, %v1449_v52  ;;  %v1094_v10 = vmul.f32 %v2548_v3, %v1059_v5  ;;  %vm848_vm13 = vweird.f32 %v2955_v21 }
 0x1b7   : > { %v2084_v56 = vpop.eup %2083  ;;  %1742 = vst.msk [vmem:[%s2915_s9 + $0x4] sm:$0xf] %vm1370_vm5, %v1710_v45  ;;  %v2970_v14 = vsub.f32 %v2778_v38, %v492_v8  ;;  %v1130_v61 = vadd.f32 %v2573_v55, %v1095_v46  ;;  %v441_v33 = vsel %vm371_vm0, %v2980_v39, 0.0  ;;  %vm2994_vm15 = vmor %vm847_vm12, %vm848_vm13 }
 0x1b8   : > { %v843_v43 = vmul.f32 %v2955_v21, %v842_v2  ;;  %v832_v31 = vmul.f32 %v2084_v56, %v2934_v12  ;;  %1373 = vst.msk [vmem:[%s2877_s23 + $0x8] sm:$0xf] %vm1370_vm5, %v1340_v41  ;;  %v1129_v60 = vadd.f32 %v2573_v55, %v1094_v10  ;;  %vm838_vm1 = vweird.f32 %v2084_v56 }
 0x1b9   : > { %1558 = vst.msk [vmem:[%s2884_s26 + $0x8] sm:$0xf] %vm1370_vm5, %v1526_v36  ;;  %v556_v38 = vmul.f32 %v2970_v14, %v2970_v14  ;;  %vm839_vm2 = vmor %vm837_vm14, %vm838_vm1 }
 0x1ba   : > { %v2972_v6 = vpop.xlane.xlu1 %608  ;;  %v844_v40 = vmul.f32 0.5, %v843_v43  ;;  %v833_v50 = vmul.f32 %v2084_v56, %v832_v31  ;;  %v1157_v44 = vpack.c.bf16 %v1130_v61, %v1129_v60  ;;  %1970 = vmatmul.msk.bf16.vlgmr.msrb.gmra.mxu3 %vm371_vm0, %v2639_v57 }
 0x1bb   : > { %v1323_v30 = vpop.f32.mrf.mxu3  ;;  %v622_v54 = vsel %vm371_vm0, %v556_v38, 0.0 }
 0x1bc   : > { %v845_v42 = vsub.f32 1.5, %v844_v40  ;;  %v1634_v4 = vpop.f32.mrf.mxu2  ;;  %v834_v19 = vmul.f32 0.5, %v833_v50  ;;  %1930 = vmatmul.msk.bf16.gmra.mxu0 %vm371_vm0, %v1157_v44  ;;  %v1364_v0 = vpack.c.bf16 %v1323_v30, %v1323_v30  ;;  %1962 = vmatmul.msk.bf16.gmra.mxu1 %vm371_vm0, %v1157_v44  ;;  %v1265_v63 = vpop.f32.mrf.mxu0 }
 0x1bd   : > { %v1711_v24 = vpack.c.bf16 %v1634_v4, %v1634_v4  ;;  %1994 = vmatmul.msk.bf16.gmra.mxu2 %vm371_vm0, %v1157_v44  ;;  %623 = vadd.xlane.f32.xlu1 %v622_v54  ;;  %v428_v13 = vpop.xlane.xlu0 %427  ;;  %v1341_v22 = vpack.c.bf16 %v1265_v63, %v1265_v63  ;;  %v1451_v59 = vpop.f32.mrf.mxu1 }
 0x1be   : > { %v846_v58 = vmul.f32 %v2955_v21, %v845_v42  ;;  %v835_v9 = vsub.f32 1.5, %v834_v19  ;;  %1397 = vst.msk [vmem:[%s2877_s23 + $0x68] sm:$0xf] %vm1370_vm5, %v1364_v0  ;;  %442 = vadd.xlane.f32.xlu0 %v441_v33  ;;  %v493_v28 = vmul.f32 %v2242_v34, %v428_v13  ;;  %v1527_v47 = vpack.c.bf16 %v1451_v59, %v1451_v59 }
 0x1bf   : > { %1743 = vst.msk [vmem:[%s2915_s9 + $0x8] sm:$0xf] %vm1370_vm5, %v1711_v24 }
 0x1c0   : > { %v850_v25 = vsel %vm2994_vm15, %v2955_v21, %v846_v58  ;;  %v836_v45 = vmul.f32 %v2084_v56, %v835_v9  ;;  %v3015_v53 = vsub.f32 %v2812_v16, %v493_v28  ;;  %1374 = vst.msk [vmem:[%s2877_s23 + $0xc] sm:$0xf] %vm1370_vm5, %v1341_v22 }
 0x1c1   : > { %v1062_v37 = vmul.f32 %v850_v25, %v2705_v48  ;;  %1559 = vst.msk [vmem:[%s2884_s26 + $0xc] sm:$0xf] %vm1370_vm5, %v1527_v47 }
 0x1c2   : > { %v431_v5 = vpop.xlane.xlu1 %430  ;;  %v840_v21 = vsel %vm839_vm2, %v2084_v56, %v836_v45  ;;  %v557_v26 = vmul.f32 %v3015_v53, %v3015_v53 }
 0x1c3   : > { %v494_v23 = vmul.f32 %v2242_v34, %v431_v5  ;;  %v1097_v48 = vmul.f32 %v2548_v3, %v1062_v37  ;;  %v1061_v16 = vmul.f32 %v840_v21, %v2708_v49  ;;  %v1325_v2 = vpop.f32.mrf.mxu3 }
 0x1c4   : > { %v1636_v8 = vpop.f32.mrf.mxu2  ;;  %v1365_v41 = vpack.c.bf16 %v1325_v2, %v1325_v2  ;;  %v625_v36 = vsel %vm371_vm0, %v557_v26, 0.0  ;;  %v1268_v10 = vpop.f32.mrf.mxu0  ;;  %v679_v26 = vmul.f32 %v2972_v6, %v2242_v34 }
 0x1c5   : > { %v3023_v12 = vsub.f32 %v2815_v32, %v494_v23  ;;  %v1712_v52 = vpack.c.bf16 %v1636_v8, %v1636_v8  ;;  %v1096_v32 = vmul.f32 %v2548_v3, %v1061_v16  ;;  %v1132_v46 = vadd.f32 %v2573_v55, %v1097_v48  ;;  %626 = vadd.xlane.f32.xlu1 %v625_v36  ;;  %v1454_v43 = vpop.f32.mrf.mxu1 }
 0x1c6   : > { %1398 = vst.msk [vmem:[%s2877_s23 + $0x6c] sm:$0xf] %vm1370_vm5, %v1365_v41  ;;  %v1342_v49 = vpack.c.bf16 %v1268_v10, %v1268_v10  ;;  %v1528_v31 = vpack.c.bf16 %v1454_v43, %v1454_v43  ;;  %v711_v48 = vadd.f32 1e-05, %v679_v26 }
 0x1c7   : > { %v558_v56 = vmul.f32 %v3023_v12, %v3023_v12  ;;  %1744 = vst.msk [vmem:[%s2915_s9 + $0xc] sm:$0xf] %vm1370_vm5, %v1712_v52  ;;  %v1131_v60 = vadd.f32 %v2573_v55, %v1096_v32 }
 0x1c8   : > { %1375 = vst.msk [vmem:[%s2877_s23 + $0x10] sm:$0xf] %vm1370_vm5, %v1342_v49  ;;  %2085 = vrsqrt.f32 %v711_v48  ;;  %vm857_vm3 = vweird.f32 %v711_v48 }
 0x1c9   : > { %v628_v61 = vsel %vm371_vm0, %v558_v56, 0.0  ;;  %1560 = vst.msk [vmem:[%s2884_s26 + $0x10] sm:$0xf] %vm1370_vm5, %v1528_v31  ;;  %v1158_v38 = vpack.c.bf16 %v1132_v46, %v1131_v60 }
 0x1ca   : > { %v434_v40 = vpop.xlane.xlu1 %433  ;;  %629 = vadd.xlane.f32.xlu2 %v628_v61  ;;  %1971 = vmatmul.msk.bf16.gmra.mxu3 %vm371_vm0, %v2740_v11 }
 0x1cb   : > { %v495_v3 = vmul.f32 %v2242_v34, %v434_v40  ;;  %v1328_v55 = vpop.f32.mrf.mxu3 }
 0x1cc   : > { %1931 = vmatmul.msk.bf16.gmra.mxu0 %vm371_vm0, %v1158_v38  ;;  %v1366_v44 = vpack.c.bf16 %v1328_v55, %v1328_v55  ;;  %1963 = vmatmul.msk.bf16.gmra.mxu1 %vm371_vm0, %v1158_v38  ;;  %v1639_v42 = vpop.f32.mrf.mxu2  ;;  %v1270_v33 = vpop.f32.mrf.mxu0 }
 0x1cd   : > { %v3048_v50 = vsub.f32 %v2834_v7, %v495_v3  ;;  %v1713_v4 = vpack.c.bf16 %v1639_v42, %v1639_v42  ;;  %1995 = vmatmul.msk.bf16.gmra.mxu2 %vm371_vm0, %v1158_v38  ;;  %v1343_v7 = vpack.c.bf16 %v1270_v33, %v1270_v33  ;;  %v1456_v54 = vpop.f32.mrf.mxu1 }
 0x1ce   : > { %1399 = vst.msk [vmem:[%s2877_s23 + $0x70] sm:$0xf] %vm1370_vm5, %v1366_v44  ;;  %v1529_v19 = vpack.c.bf16 %v1456_v54, %v1456_v54  ;;  %v2086_v16 = vpop.eup %2085 }
 0x1cf   : > { %v559_v30 = vmul.f32 %v3048_v50, %v3048_v50  ;;  %1745 = vst.msk [vmem:[%s2915_s9 + $0x10] sm:$0xf] %vm1370_vm5, %v1713_v4  ;;  %v852_v2 = vmul.f32 %v2086_v16, %v711_v48  ;;  %vm858_vm4 = vweird.f32 %v2086_v16 }
 0x1d0   : > { %1376 = vst.msk [vmem:[%s2877_s23 + $0x14] sm:$0xf] %vm1370_vm5, %v1343_v7  ;;  %vm859_vm6 = vmor %vm857_vm3, %vm858_vm4 }
 0x1d1   : > { %v631_v29 = vsel %vm371_vm0, %v559_v30, 0.0  ;;  %1561 = vst.msk [vmem:[%s2884_s26 + $0x14] sm:$0xf] %vm1370_vm5, %v1529_v19  ;;  %v853_v8 = vmul.f32 %v2086_v16, %v852_v2 }
 0x1d2   : > { %632 = vadd.xlane.f32.xlu0 %v631_v29  ;;  %v3106_v29 = vld [vmem:[%s3355_s1] ss:$0 sm:$0xff] }
 0x1d3   : > { %v1330_v0 = vpop.f32.mrf.mxu3  ;;  %v854_v10 = vmul.f32 0.5, %v853_v8 }
 0x1d4   : > { %v1367_v24 = vpack.c.bf16 %v1330_v0, %v1330_v0  ;;  %v1641_v63 = vpop.f32.mrf.mxu2  ;;  %v1273_v13 = vpop.f32.mrf.mxu0 }
 0x1d5   : > { %v1714_v58 = vpack.c.bf16 %v1641_v63, %v1641_v63  ;;  %v1344_v22 = vpack.c.bf16 %v1273_v13, %v1273_v13  ;;  %v1459_v59 = vpop.f32.mrf.mxu1  ;;  %v855_v32 = vsub.f32 1.5, %v854_v10 }
 0x1d6   : > { %1400 = vst.msk [vmem:[%s2877_s23 + $0x74] sm:$0xf] %vm1370_vm5, %v1367_v24  ;;  %v1530_v9 = vpack.c.bf16 %v1459_v59, %v1459_v59 }
 0x1d7   : > { %1746 = vst.msk [vmem:[%s2915_s9 + $0x14] sm:$0xf] %vm1370_vm5, %v1714_v58  ;;  %v856_v56 = vmul.f32 %v2086_v16, %v855_v32 }
 0x1d8   : > { %1377 = vst.msk [vmem:[%s2877_s23 + $0x18] sm:$0xf] %vm1370_vm5, %v1344_v22  ;;  %v3115_v22 = vld [vmem:[%s3356_s2] ss:$0 sm:$0xff] }
 0x1d9   : > { %1562 = vst.msk [vmem:[%s2884_s26 + $0x18] sm:$0xf] %vm1370_vm5, %v1530_v9  ;;  %v860_v31 = vsel %vm859_vm6, %v2086_v16, %v856_v56 }
 0x1da   : > { %1972 = vmatmul.msk.bf16.gmra.mxu3 %vm371_vm0, %v2809_v17  ;;  %v1063_v3 = vmul.f32 %v860_v31, %v2789_v51 }
 0x1dc   : > { %v1644_v28 = vpop.f32.mrf.mxu2  ;;  %v1275_v25 = vpop.f32.mrf.mxu0  ;;  %v1098_v19 = vmul.f32 %v3106_v29, %v1063_v3 }
 0x1dd   : > { %v1715_v47 = vpack.c.bf16 %v1644_v28, %v1644_v28  ;;  %v1345_v5 = vpack.c.bf16 %v1275_v25, %v1275_v25  ;;  %v1461_v37 = vpop.f32.mrf.mxu1 }
 0x1de   : > { %v1531_v45 = vpack.c.bf16 %v1461_v37, %v1461_v37  ;;  %v1133_v59 = vadd.f32 %v3115_v22, %v1098_v19 }
 0x1df   : > { %1747 = vst.msk [vmem:[%s2915_s9 + $0x18] sm:$0xf] %vm1370_vm5, %v1715_v47 }
 0x1e0   : > { %1378 = vst.msk [vmem:[%s2877_s23 + $0x1c] sm:$0xf] %vm1370_vm5, %v1345_v5 }
 0x1e1   : > { %1563 = vst.msk [vmem:[%s2884_s26 + $0x1c] sm:$0xf] %vm1370_vm5, %v1531_v45 }
 0x1e4   : > { %v1646_v23 = vpop.f32.mrf.mxu2 }
 0x1e5   : > { %v1716_v21 = vpack.c.bf16 %v1646_v23, %v1646_v23 }
 0x1e7   : > { %1748 = vst.msk [vmem:[%s2915_s9 + $0x1c] sm:$0xf] %vm1370_vm5, %v1716_v21 }
 0x1ea   : > { %1973 = vmatmul.msk.bf16.gmra.mxu3 %vm371_vm0, %v2900_v1 }
 0x1fa   : > { %2002 = vmatmul.msk.bf16.vlgmr.msra.gmra.mxu3 %vm371_vm0, %v2639_v57 }
 0x20a   : > { %2003 = vmatmul.msk.bf16.gmra.mxu3 %vm371_vm0, %v2740_v11 }
 0x20d   : > { %v612_v41 = vpop.xlane.xlu2 %611 }
 0x20e   : > { %v680_v52 = vmul.f32 %v612_v41, %v2242_v34 }
 0x210   : > { %v712_v36 = vadd.f32 1e-05, %v680_v52 }
 0x212   : > { %2087 = vrsqrt.f32 %v712_v36  ;;  %vm867_vm8 = vweird.f32 %v712_v36 }
 0x217   : > { %v615_v6 = vpop.xlane.xlu2 %614 }
 0x218   : > { %v2088_v46 = vpop.eup %2087  ;;  %v681_v57 = vmul.f32 %v615_v6, %v2242_v34 }
 0x219   : > { %v862_v49 = vmul.f32 %v2088_v46, %v712_v36  ;;  %vm868_vm7 = vweird.f32 %v2088_v46 }
 0x21a   : > { %2004 = vmatmul.msk.bf16.gmra.mxu3 %vm371_vm0, %v2809_v17  ;;  %v713_v11 = vadd.f32 1e-05, %v681_v57  ;;  %vm869_vm9 = vmor %vm867_vm8, %vm868_vm7 }
 0x21b   : > { %v863_v43 = vmul.f32 %v2088_v46, %v862_v49 }
 0x21c   : > { %2089 = vrsqrt.f32 %v713_v11  ;;  %vm877_vm11 = vweird.f32 %v713_v11 }
 0x21d   : > { %v864_v60 = vmul.f32 0.5, %v863_v43 }
 0x21f   : > { %v865_v61 = vsub.f32 1.5, %v864_v60  ;;  %v437_v40 = vpop.xlane.xlu2 %436 }
 0x220   : > { %v496_v38 = vmul.f32 %v2242_v34, %v437_v40  ;;  %v618_v55 = vpop.xlane.xlu0 %617 }
 0x221   : > { %v866_v44 = vmul.f32 %v2088_v46, %v865_v61  ;;  %v682_v42 = vmul.f32 %v618_v55, %v2242_v34 }
 0x222   : > { %v2090_v30 = vpop.eup %2089  ;;  %v3098_v17 = vsub.f32 %v2892_v35, %v496_v38 }
 0x223   : > { %v870_v4 = vsel %vm869_vm9, %v2088_v46, %v866_v44  ;;  %v872_v33 = vmul.f32 %v2090_v30, %v713_v11  ;;  %v714_v7 = vadd.f32 1e-05, %v682_v42  ;;  %vm878_vm10 = vweird.f32 %v2090_v30 }
 0x224   : > { %v1064_v54 = vmul.f32 %v870_v4, %v2847_v27  ;;  %v560_v51 = vmul.f32 %v3098_v17, %v3098_v17  ;;  %vm879_vm12 = vmor %vm877_vm11, %vm878_vm10 }
 0x225   : > { %v873_v0 = vmul.f32 %v2090_v30, %v872_v33  ;;  %2091 = vrsqrt.f32 %v714_v7  ;;  %vm887_vm14 = vweird.f32 %v714_v7 }
 0x226   : > { %v634_v35 = vsel %vm371_vm0, %v560_v51, 0.0  ;;  %v1099_v24 = vmul.f32 %v3106_v29, %v1064_v54 }
 0x227   : > { %v874_v63 = vmul.f32 0.5, %v873_v0  ;;  %v440_v58 = vpop.xlane.xlu2 %439  ;;  %635 = vadd.xlane.f32.xlu1 %v634_v35 }
 0x228   : > { %v497_v27 = vmul.f32 %v2242_v34, %v440_v58  ;;  %v621_v13 = vpop.xlane.xlu0 %620  ;;  %v1134_v9 = vadd.f32 %v3115_v22, %v1099_v24 }
 0x229   : > { %v875_v28 = vsub.f32 1.5, %v874_v63  ;;  %v683_v47 = vmul.f32 %v621_v13, %v2242_v34 }
 0x22a   : > { %2005 = vmatmul.msk.bf16.gmra.mxu3 %vm371_vm0, %v2900_v1  ;;  %v3123_v25 = vsub.f32 %v2937_v18, %v497_v27  ;;  %v1159_v5 = vpack.c.bf16 %v1134_v9, %v1133_v59 }
 0x22b   : > { %v2092_v37 = vpop.eup %2091  ;;  %v876_v45 = vmul.f32 %v2090_v30, %v875_v28  ;;  %v3125_v23 = vadd.f32 1e-05, %v683_v47 }
 0x22c   : > { %v882_v21 = vmul.f32 %v2092_v37, %v714_v7  ;;  %1932 = vmatmul.msk.bf16.gmra.mxu0 %vm371_vm0, %v1159_v5  ;;  %1964 = vmatmul.msk.bf16.gmra.mxu1 %vm371_vm0, %v1159_v5  ;;  %v561_v48 = vmul.f32 %v3123_v25, %v3123_v25  ;;  %vm888_vm13 = vweird.f32 %v2092_v37 }
 0x22d   : > { %v1333_v26 = vpop.f32.mrf.mxu3  ;;  %2093 = vrsqrt.f32 %v3125_v23  ;;  %1996 = vmatmul.msk.bf16.gmra.mxu2 %vm371_vm0, %v1159_v5  ;;  %v880_v2 = vsel %vm879_vm12, %v2090_v30, %v876_v45  ;;  %vm889_vm15 = vmor %vm887_vm14, %vm888_vm13  ;;  %vm897_vm2 = vweird.f32 %v3125_v23 }
 0x22e   : > { %v1368_v1 = vpack.c.bf16 %v1333_v26, %v1333_v26  ;;  %v883_v18 = vmul.f32 %v2092_v37, %v882_v21  ;;  %v637_v16 = vsel %vm371_vm0, %v561_v48, 0.0  ;;  %v1065_v32 = vmul.f32 %v880_v2, %v2856_v20 }
 0x22f   : > { %638 = vadd.xlane.f32.xlu2 %v637_v16 }
 0x230   : > { %1401 = vst.msk [vmem:[%s2877_s23 + $0x78] sm:$0xf] %vm1370_vm5, %v1368_v1  ;;  %v624_v8 = vpop.xlane.xlu1 %623  ;;  %v884_v41 = vmul.f32 0.5, %v883_v18  ;;  %v1100_v40 = vmul.f32 %v3106_v29, %v1065_v32 }
 0x231   : > { %v684_v52 = vmul.f32 %v624_v8, %v2242_v34  ;;  %v443_v36 = vpop.xlane.xlu0 %442 }
 0x232   : > { %v498_v10 = vmul.f32 %v2242_v34, %v443_v36  ;;  %v885_v6 = vsub.f32 1.5, %v884_v41 }
 0x233   : > { %v716_v46 = vadd.f32 1e-05, %v684_v52  ;;  %v2094_v57 = vpop.eup %2093 }
 0x234   : > { %v3140_v56 = vsub.f32 %v2980_v39, %v498_v10  ;;  %v886_v49 = vmul.f32 %v2092_v37, %v885_v6  ;;  %v892_v11 = vmul.f32 %v2094_v57, %v3125_v23  ;;  %vm898_vm1 = vweird.f32 %v2094_v57 }
 0x235   : > { %2095 = vrsqrt.f32 %v716_v46  ;;  %v1335_v43 = vpop.f32.mrf.mxu3  ;;  %vm3160_vm3 = vmor %vm897_vm2, %vm898_vm1  ;;  %vm907_vm4 = vweird.f32 %v716_v46 }
 0x236   : > { %v1369_v31 = vpack.c.bf16 %v1335_v43, %v1335_v43  ;;  %v562_v60 = vmul.f32 %v3140_v56, %v3140_v56  ;;  %v890_v20 = vsel %vm889_vm15, %v2092_v37, %v886_v49  ;;  %v893_v61 = vmul.f32 %v2094_v57, %v892_v11 }
 0x237   : > { %v1066_v3 = vmul.f32 %v890_v20, %v2896_v62  ;;  %v1135_v62 = vadd.f32 %v3115_v22, %v1100_v40 }
 0x238   : > { %1402 = vst.msk [vmem:[%s2877_s23 + $0x7c] sm:$0xf] %vm1370_vm5, %v1369_v31  ;;  %v640_v39 = vsel %vm371_vm0, %v562_v60, 0.0  ;;  %v894_v38 = vmul.f32 0.5, %v893_v61  ;;  %v627_v55 = vpop.xlane.xlu1 %626 }
 0x239   : > { %641 = vadd.xlane.f32.xlu0 %v640_v39  ;;  %v1278_v44 = vpop.f32.mrf.mxu0  ;;  %v685_v42 = vmul.f32 %v627_v55, %v2242_v34  ;;  %v1464_v4 = vpop.f32.mrf.mxu1  ;;  %v1101_v33 = vmul.f32 %v3106_v29, %v1066_v3 }
 0x23a   : > { %v1346_v30 = vpack.c.bf16 %v1278_v44, %v1278_v44  ;;  %v895_v54 = vsub.f32 1.5, %v894_v38  ;;  %v1532_v51 = vpack.c.bf16 %v1464_v4, %v1464_v4 }
 0x23b   : > { %v2096_v7 = vpop.eup %2095  ;;  %v717_v35 = vadd.f32 1e-05, %v685_v42  ;;  %v1136_v24 = vadd.f32 %v3115_v22, %v1101_v33 }
 0x23c   : > { %v902_v0 = vmul.f32 %v2096_v7, %v716_v46  ;;  %1379 = vst.msk [vmem:[%s2877_s23 + $0x20] sm:$0xf] %vm1370_vm5, %v1346_v30  ;;  %v896_v63 = vmul.f32 %v2094_v57, %v895_v54  ;;  %vm908_vm6 = vweird.f32 %v2096_v7 }
 0x23d   : > { %v630_v19 = vpop.xlane.xlu2 %629  ;;  %1564 = vst.msk [vmem:[%s2884_s26 + $0x20] sm:$0xf] %vm1370_vm5, %v1532_v51  ;;  %v1504_v58 = vpop.f32.mrf.mxu3  ;;  %2097 = vrsqrt.f32 %v717_v35  ;;  %v1160_v59 = vpack.c.bf16 %v1136_v24, %v1135_v62  ;;  %vm909_vm7 = vmor %vm907_vm4, %vm908_vm6  ;;  %vm917_vm8 = vweird.f32 %v717_v35 }
 0x23e   : > { %v686_v27 = vmul.f32 %v630_v19, %v2242_v34  ;;  %v903_v13 = vmul.f32 %v2096_v7, %v902_v0  ;;  %v1548_v28 = vpack.c.bf16 %v1504_v58, %v1504_v58  ;;  %v900_v5 = vsel %vm3160_vm3, %v2094_v57, %v896_v63 }
 0x23f   : > { %1933 = vmatmul.msk.bf16.gmra.mxu0 %vm371_vm0, %v1160_v59  ;;  %1965 = vmatmul.msk.bf16.gmra.mxu1 %vm371_vm0, %v1160_v59  ;;  %v1067_v18 = vmul.f32 %v900_v5, %v2940_v15 }
 0x240   : > { %v718_v47 = vadd.f32 1e-05, %v686_v27  ;;  %v904_v37 = vmul.f32 0.5, %v903_v13  ;;  %v1649_v45 = vpop.f32.mrf.mxu2  ;;  %1580 = vst.msk [vmem:[%s2884_s26 + $0x60] sm:$0xf] %vm1370_vm5, %v1548_v28  ;;  %1997 = vmatmul.msk.bf16.gmra.mxu2 %vm371_vm0, %v1160_v59 }
 0x241   : > { %v1717_v23 = vpack.c.bf16 %v1649_v45, %v1649_v45  ;;  %v1280_v21 = vpop.f32.mrf.mxu0  ;;  %v1466_v1 = vpop.f32.mrf.mxu1  ;;  %v1102_v46 = vmul.f32 %v3106_v29, %v1067_v18 }
 0x242   : > { %2099 = vrsqrt.f32 %v718_v47  ;;  %v905_v26 = vsub.f32 1.5, %v904_v37  ;;  %v1347_v48 = vpack.c.bf16 %v1280_v21, %v1280_v21  ;;  %v1533_v16 = vpack.c.bf16 %v1466_v1, %v1466_v1 }
 0x243   : > { %1749 = vst.msk [vmem:[%s2915_s9 + $0x20] sm:$0xf] %vm1370_vm5, %v1717_v23  ;;  %v2098_v2 = vpop.eup %2097  ;;  %v1137_v39 = vadd.f32 %v3115_v22, %v1102_v46  ;;  %vm927_vm11 = vweird.f32 %v718_v47 }
 0x244   : > { %v906_v8 = vmul.f32 %v2096_v7, %v905_v26  ;;  %1380 = vst.msk [vmem:[%s2877_s23 + $0x24] sm:$0xf] %vm1370_vm5, %v1347_v48  ;;  %v912_v41 = vmul.f32 %v2098_v2, %v717_v35  ;;  %vm918_vm9 = vweird.f32 %v2098_v2 }
 0x245   : > { %1565 = vst.msk [vmem:[%s2884_s26 + $0x24] sm:$0xf] %vm1370_vm5, %v1533_v16  ;;  %v1506_v52 = vpop.f32.mrf.mxu3  ;;  %vm3188_vm10 = vmor %vm917_vm8, %vm918_vm9 }
 0x246   : > { %v910_v36 = vsel %vm909_vm7, %v2096_v7, %v906_v8  ;;  %v1549_v10 = vpack.c.bf16 %v1506_v52, %v1506_v52  ;;  %v913_v15 = vmul.f32 %v2098_v2, %v912_v41  ;;  %v633_v52 = vpop.xlane.xlu0 %632 }
 0x247   : > { %v1068_v6 = vmul.f32 %v910_v36, %v2970_v14 }
 0x248   : > { %v2100_v32 = vpop.eup %2099  ;;  %1581 = vst.msk [vmem:[%s2884_s26 + $0x64] sm:$0xf] %vm1370_vm5, %v1549_v10  ;;  %v1651_v49 = vpop.f32.mrf.mxu2  ;;  %v914_v11 = vmul.f32 0.5, %v913_v15  ;;  %v687_v10 = vmul.f32 %v633_v52, %v2242_v34 }
 0x249   : > { %v922_v57 = vmul.f32 %v2100_v32, %v718_v47  ;;  %v1718_v43 = vpack.c.bf16 %v1651_v49, %v1651_v49  ;;  %v1283_v31 = vpop.f32.mrf.mxu0  ;;  %v1103_v60 = vmul.f32 %v3106_v29, %v1068_v6  ;;  %v1469_v14 = vpop.f32.mrf.mxu1  ;;  %vm928_vm12 = vweird.f32 %v2100_v32 }
 0x24a   : > { %v1348_v61 = vpack.c.bf16 %v1283_v31, %v1283_v31  ;;  %v915_v40 = vsub.f32 1.5, %v914_v11  ;;  %v1534_v3 = vpack.c.bf16 %v1469_v14, %v1469_v14  ;;  %vm929_vm13 = vmor %vm927_vm11, %vm928_vm12  ;;  %v719_v6 = vadd.f32 1e-05, %v687_v10 }
 0x24b   : > { %v923_v20 = vmul.f32 %v2100_v32, %v922_v57  ;;  %1750 = vst.msk [vmem:[%s2915_s9 + $0x24] sm:$0xf] %vm1370_vm5, %v1718_v43  ;;  %v1138_v38 = vadd.f32 %v3115_v22, %v1103_v60 }
 0x24c   : > { %1381 = vst.msk [vmem:[%s2877_s23 + $0x28] sm:$0xf] %vm1370_vm5, %v1348_v61  ;;  %v916_v42 = vmul.f32 %v2098_v2, %v915_v40  ;;  %2101 = vrsqrt.f32 %v719_v6  ;;  %vm937_vm14 = vweird.f32 %v719_v6 }
 0x24d   : > { %v924_v44 = vmul.f32 0.5, %v923_v20  ;;  %1566 = vst.msk [vmem:[%s2884_s26 + $0x28] sm:$0xf] %vm1370_vm5, %v1534_v3  ;;  %v1161_v30 = vpack.c.bf16 %v1138_v38, %v1137_v39  ;;  %v1509_v4 = vpop.f32.mrf.mxu3 }
 0x24e   : > { %v1550_v7 = vpack.c.bf16 %v1509_v4, %v1509_v4  ;;  %v920_v54 = vsel %vm3188_vm10, %v2098_v2, %v916_v42 }
 0x24f   : > { %v925_v33 = vsub.f32 1.5, %v924_v44  ;;  %1934 = vmatmul.msk.bf16.gmra.mxu0 %vm371_vm0, %v1161_v30  ;;  %1966 = vmatmul.msk.bf16.gmra.mxu1 %vm371_vm0, %v1161_v30  ;;  %v1069_v35 = vmul.f32 %v920_v54, %v3015_v53 }
 0x250   : > { %1582 = vst.msk [vmem:[%s2884_s26 + $0x68] sm:$0xf] %vm1370_vm5, %v1550_v7  ;;  %v1654_v62 = vpop.f32.mrf.mxu2  ;;  %1998 = vmatmul.msk.bf16.gmra.mxu2 %vm371_vm0, %v1161_v30 }
 0x251   : > { %v926_v51 = vmul.f32 %v2100_v32, %v925_v33  ;;  %v1719_v19 = vpack.c.bf16 %v1654_v62, %v1654_v62  ;;  %v1285_v0 = vpop.f32.mrf.mxu0  ;;  %v1471_v58 = vpop.f32.mrf.mxu1  ;;  %v1104_v53 = vmul.f32 %v3106_v29, %v1069_v35 }
 0x252   : > { %v1349_v63 = vpack.c.bf16 %v1285_v0, %v1285_v0  ;;  %v1535_v13 = vpack.c.bf16 %v1471_v58, %v1471_v58  ;;  %v2102_v57 = vpop.eup %2101 }
 0x253   : > { %v930_v24 = vsel %vm929_vm13, %v2100_v32, %v926_v51  ;;  %1751 = vst.msk [vmem:[%s2915_s9 + $0x28] sm:$0xf] %vm1370_vm5, %v1719_v19  ;;  %v1139_v37 = vadd.f32 %v3115_v22, %v1104_v53  ;;  %v932_v43 = vmul.f32 %v2102_v57, %v719_v6  ;;  %vm938_vm15 = vweird.f32 %v2102_v57 }
 0x254   : > { %v1070_v27 = vmul.f32 %v930_v24, %v3023_v12  ;;  %1382 = vst.msk [vmem:[%s2877_s23 + $0x2c] sm:$0xf] %vm1370_vm5, %v1349_v63  ;;  %vm3245_vm1 = vmor %vm937_vm14, %vm938_vm15 }
 0x255   : > { %1567 = vst.msk [vmem:[%s2884_s26 + $0x2c] sm:$0xf] %vm1370_vm5, %v1535_v13  ;;  %v1511_v59 = vpop.f32.mrf.mxu3  ;;  %v933_v31 = vmul.f32 %v2102_v57, %v932_v43 }
 0x256   : > { %v1105_v9 = vmul.f32 %v3106_v29, %v1070_v27  ;;  %v1551_v28 = vpack.c.bf16 %v1511_v59, %v1511_v59 }
 0x257   : > { %v934_v3 = vmul.f32 0.5, %v933_v31 }
 0x258   : > { %1583 = vst.msk [vmem:[%s2884_s26 + $0x6c] sm:$0xf] %vm1370_vm5, %v1551_v28  ;;  %v1656_v47 = vpop.f32.mrf.mxu2  ;;  %v1140_v12 = vadd.f32 %v3115_v22, %v1105_v9 }
 0x259   : > { %v1720_v5 = vpack.c.bf16 %v1656_v47, %v1656_v47  ;;  %v935_v39 = vsub.f32 1.5, %v934_v3 }
 0x25a   : > { %v1162_v45 = vpack.c.bf16 %v1140_v12, %v1139_v37 }
 0x25b   : > { %1752 = vst.msk [vmem:[%s2915_s9 + $0x2c] sm:$0xf] %vm1370_vm5, %v1720_v5  ;;  %v936_v33 = vmul.f32 %v2102_v57, %v935_v39 }
 0x25d   : > { %v1514_v23 = vpop.f32.mrf.mxu3  ;;  %v940_v0 = vsel %vm3245_vm1, %v2102_v57, %v936_v33 }
 0x25e   : > { %v1552_v21 = vpack.c.bf16 %v1514_v23, %v1514_v23  ;;  %v1071_v28 = vmul.f32 %v940_v0, %v3048_v50 }
 0x25f   : > { %1935 = vmatmul.msk.bf16.gmra.mxu0 %vm371_vm0, %v1162_v45  ;;  %1967 = vmatmul.msk.bf16.gmra.mxu1 %vm371_vm0, %v1162_v45 }
 0x260   : > { %1584 = vst.msk [vmem:[%s2884_s26 + $0x70] sm:$0xf] %vm1370_vm5, %v1552_v21  ;;  %1999 = vmatmul.msk.bf16.gmra.mxu2 %vm371_vm0, %v1162_v45 }
 0x265   : > { %v1516_v26 = vpop.f32.mrf.mxu3 }
 0x266   : > { %v1553_v48 = vpack.c.bf16 %v1516_v26, %v1516_v26 }
 0x268   : > { %1585 = vst.msk [vmem:[%s2884_s26 + $0x74] sm:$0xf] %vm1370_vm5, %v1553_v48  ;;  %v1106_v48 = vmul.f32 %v3106_v29, %v1071_v28 }
 0x26a   : > { %v1141_v52 = vadd.f32 %v3115_v22, %v1106_v48 }
 0x26d   : > { %v1519_v1 = vpop.f32.mrf.mxu3 }
 0x26e   : > { %v1554_v18 = vpack.c.bf16 %v1519_v1, %v1519_v1 }
 0x270   : > { %1586 = vst.msk [vmem:[%s2884_s26 + $0x78] sm:$0xf] %vm1370_vm5, %v1554_v18 }
 0x275   : > { %v1521_v16 = vpop.f32.mrf.mxu3 }
 0x276   : > { %v1555_v2 = vpack.c.bf16 %v1521_v16, %v1521_v16 }
 0x278   : > { %1587 = vst.msk [vmem:[%s2884_s26 + $0x7c] sm:$0xf] %vm1370_vm5, %v1555_v2 }
 0x27d   : > { %v1689_v8 = vpop.f32.mrf.mxu3 }
 0x27e   : > { %v1733_v41 = vpack.c.bf16 %v1689_v8, %v1689_v8 }
 0x280   : > { %1765 = vst.msk [vmem:[%s2915_s9 + $0x60] sm:$0xf] %vm1370_vm5, %v1733_v41 }
 0x285   : > { %v1691_v36 = vpop.f32.mrf.mxu3 }
 0x286   : > { %v1734_v32 = vpack.c.bf16 %v1691_v36, %v1691_v36 }
 0x288   : > { %1766 = vst.msk [vmem:[%s2915_s9 + $0x64] sm:$0xf] %vm1370_vm5, %v1734_v32 }
 0x28d   : > { %v1694_v15 = vpop.f32.mrf.mxu3 }
 0x28e   : > { %v1735_v46 = vpack.c.bf16 %v1694_v15, %v1694_v15 }
 0x290   : > { %1767 = vst.msk [vmem:[%s2915_s9 + $0x68] sm:$0xf] %vm1370_vm5, %v1735_v46 }
 0x295   : > { %v1696_v49 = vpop.f32.mrf.mxu3 }
 0x296   : > { %v1736_v11 = vpack.c.bf16 %v1696_v49, %v1696_v49 }
 0x298   : > { %1768 = vst.msk [vmem:[%s2915_s9 + $0x6c] sm:$0xf] %vm1370_vm5, %v1736_v11 }
 0x29a   : > { %v636_v60 = vpop.xlane.xlu1 %635 }
 0x29b   : > { %v688_v20 = vmul.f32 %v636_v60, %v2242_v34 }
 0x29d   : > { %v1699_v61 = vpop.f32.mrf.mxu3  ;;  %v720_v14 = vadd.f32 1e-05, %v688_v20 }
 0x29e   : > { %v1737_v40 = vpack.c.bf16 %v1699_v61, %v1699_v61 }
 0x29f   : > { %2103 = vrsqrt.f32 %v720_v14  ;;  %vm947_vm3 = vweird.f32 %v720_v14 }
 0x2a0   : > { %1769 = vst.msk [vmem:[%s2915_s9 + $0x70] sm:$0xf] %vm1370_vm5, %v1737_v40 }
 0x2a2   : > { %v639_v38 = vpop.xlane.xlu2 %638 }
 0x2a3   : > { %v689_v55 = vmul.f32 %v639_v38, %v2242_v34 }
 0x2a5   : > { %v1701_v44 = vpop.f32.mrf.mxu3  ;;  %v2104_v42 = vpop.eup %2103  ;;  %v3243_v30 = vadd.f32 1e-05, %v689_v55 }
 0x2a6   : > { %v1738_v4 = vpack.c.bf16 %v1701_v44, %v1701_v44  ;;  %v942_v7 = vmul.f32 %v2104_v42, %v720_v14  ;;  %vm948_vm2 = vweird.f32 %v2104_v42 }
 0x2a7   : > { %2105 = vrsqrt.f32 %v3243_v30  ;;  %vm949_vm4 = vmor %vm947_vm3, %vm948_vm2  ;;  %vm957_vm6 = vweird.f32 %v3243_v30 }
 0x2a8   : > { %1770 = vst.msk [vmem:[%s2915_s9 + $0x74] sm:$0xf] %vm1370_vm5, %v1738_v4  ;;  %v943_v51 = vmul.f32 %v2104_v42, %v942_v7 }
 0x2a9   : > { %v1288_v62 = vpop.f32.mrf.mxu0  ;;  %v1474_v19 = vpop.f32.mrf.mxu1 }
 0x2aa   : > { %v944_v35 = vmul.f32 0.5, %v943_v51  ;;  %v1350_v24 = vpack.c.bf16 %v1288_v62, %v1288_v62  ;;  %v1536_v63 = vpack.c.bf16 %v1474_v19, %v1474_v19 }
 0x2ac   : > { %v642_v58 = vpop.xlane.xlu0 %641  ;;  %v945_v27 = vsub.f32 1.5, %v944_v35  ;;  %1383 = vst.msk [vmem:[%s2877_s23 + $0x30] sm:$0xf] %vm1370_vm5, %v1350_v24 }
 0x2ad   : > { %v690_v13 = vmul.f32 %v642_v58, %v2242_v34  ;;  %v1704_v59 = vpop.f32.mrf.mxu3  ;;  %v2106_v9 = vpop.eup %2105  ;;  %1568 = vst.msk [vmem:[%s2884_s26 + $0x30] sm:$0xf] %vm1370_vm5, %v1536_v63 }
 0x2ae   : > { %v1739_v53 = vpack.c.bf16 %v1704_v59, %v1704_v59  ;;  %v946_v47 = vmul.f32 %v2104_v42, %v945_v27  ;;  %v952_v12 = vmul.f32 %v2106_v9, %v3243_v30  ;;  %vm958_vm7 = vweird.f32 %v2106_v9 }
 0x2af   : > { %v722_v5 = vadd.f32 1e-05, %v690_v13  ;;  %vm959_vm8 = vmor %vm957_vm6, %vm958_vm7 }
 0x2b0   : > { %1771 = vst.msk [vmem:[%s2915_s9 + $0x78] sm:$0xf] %vm1370_vm5, %v1739_v53  ;;  %v950_v34 = vsel %vm949_vm4, %v2104_v42, %v946_v47  ;;  %v953_v37 = vmul.f32 %v2106_v9, %v952_v12  ;;  %v1659_v45 = vpop.f32.mrf.mxu2 }
 0x2b1   : > { %2107 = vrsqrt.f32 %v722_v5  ;;  %v1072_v50 = vmul.f32 %v950_v34, %v3098_v17  ;;  %v1721_v23 = vpack.c.bf16 %v1659_v45, %v1659_v45  ;;  %v1290_v21 = vpop.f32.mrf.mxu0  ;;  %v1476_v26 = vpop.f32.mrf.mxu1  ;;  %vm967_vm10 = vweird.f32 %v722_v5 }
 0x2b2   : > { %v954_v1 = vmul.f32 0.5, %v953_v37  ;;  %v1351_v18 = vpack.c.bf16 %v1290_v21, %v1290_v21  ;;  %v1537_v16 = vpack.c.bf16 %v1476_v26, %v1476_v26 }
 0x2b3   : > { %1753 = vst.msk [vmem:[%s2915_s9 + $0x30] sm:$0xf] %vm1370_vm5, %v1721_v23  ;;  %v1107_v2 = vmul.f32 %v3106_v29, %v1072_v50 }
 0x2b4   : > { %v955_v8 = vsub.f32 1.5, %v954_v1  ;;  %1384 = vst.msk [vmem:[%s2877_s23 + $0x34] sm:$0xf] %vm1370_vm5, %v1351_v18 }
 0x2b5   : > { %v1706_v41 = vpop.f32.mrf.mxu3  ;;  %1569 = vst.msk [vmem:[%s2884_s26 + $0x34] sm:$0xf] %vm1370_vm5, %v1537_v16  ;;  %v1142_v36 = vadd.f32 %v3115_v22, %v1107_v2 }
 0x2b6   : > { %v1740_v17 = vpack.c.bf16 %v1706_v41, %v1706_v41  ;;  %v956_v32 = vmul.f32 %v2106_v9, %v955_v8 }
 0x2b7   : > { %v2108_v10 = vpop.eup %2107  ;;  %v1163_v15 = vpack.c.bf16 %v1142_v36, %v1141_v52 }
 0x2b8   : > { %v962_v6 = vmul.f32 %v2108_v10, %v722_v5  ;;  %1772 = vst.msk [vmem:[%s2915_s9 + $0x7c] sm:$0xf] %vm1370_vm5, %v1740_v17  ;;  %v1661_v46 = vpop.f32.mrf.mxu2  ;;  %v960_v11 = vsel %vm959_vm8, %v2106_v9, %v956_v32  ;;  %vm968_vm9 = vweird.f32 %v2108_v10 }
 0x2b9   : > { %1936 = vmatmul.msk.bf16.gmra.mxu0 %vm371_vm0, %v1163_v15  ;;  %1968 = vmatmul.msk.bf16.gmra.mxu1 %vm371_vm0, %v1163_v15  ;;  %v1722_v49 = vpack.c.bf16 %v1661_v46, %v1661_v46  ;;  %v1073_v40 = vmul.f32 %v960_v11, %v3123_v25  ;;  %vm969_vm11 = vmor %vm967_vm10, %vm968_vm9 }
 0x2ba   : > { %v963_v57 = vmul.f32 %v2108_v10, %v962_v6  ;;  %2000 = vmatmul.msk.bf16.gmra.mxu2 %vm371_vm0, %v1163_v15 }
 0x2bb   : > { %1754 = vst.msk [vmem:[%s2915_s9 + $0x34] sm:$0xf] %vm1370_vm5, %v1722_v49  ;;  %v1108_v55 = vmul.f32 %v3106_v29, %v1073_v40 }
 0x2bc   : > { %v964_v43 = vmul.f32 0.5, %v963_v57  ;;  %v1293_v31 = vpop.f32.mrf.mxu0  ;;  %v1479_v60 = vpop.f32.mrf.mxu1 }
 0x2bd   : > { %v1352_v61 = vpack.c.bf16 %v1293_v31, %v1293_v31  ;;  %v1538_v14 = vpack.c.bf16 %v1479_v60, %v1479_v60  ;;  %v1143_v54 = vadd.f32 %v3115_v22, %v1108_v55 }
 0x2be   : > { %v965_v20 = vsub.f32 1.5, %v964_v43 }
 0x2bf   : > { %1385 = vst.msk [vmem:[%s2877_s23 + $0x38] sm:$0xf] %vm1370_vm5, %v1352_v61 }
 0x2c0   : > { %v966_v3 = vmul.f32 %v2108_v10, %v965_v20  ;;  %1570 = vst.msk [vmem:[%s2884_s26 + $0x38] sm:$0xf] %vm1370_vm5, %v1538_v14 }
 0x2c2   : > { %v970_v39 = vsel %vm969_vm11, %v2108_v10, %v966_v3 }
 0x2c3   : > { %v1074_v38 = vmul.f32 %v970_v39, %v3140_v56  ;;  %v1664_v44 = vpop.f32.mrf.mxu2 }
 0x2c4   : > { %v1723_v42 = vpack.c.bf16 %v1664_v44, %v1664_v44  ;;  %v1295_v30 = vpop.f32.mrf.mxu0  ;;  %v1481_v4 = vpop.f32.mrf.mxu1 }
 0x2c5   : > { %v1109_v25 = vmul.f32 %v3106_v29, %v1074_v38  ;;  %v1353_v33 = vpack.c.bf16 %v1295_v30, %v1295_v30  ;;  %v1539_v7 = vpack.c.bf16 %v1481_v4, %v1481_v4 }
 0x2c6   : > { %1755 = vst.msk [vmem:[%s2915_s9 + $0x38] sm:$0xf] %vm1370_vm5, %v1723_v42 }
 0x2c7   : > { %v1144_v51 = vadd.f32 %v3115_v22, %v1109_v25  ;;  %1386 = vst.msk [vmem:[%s2877_s23 + $0x3c] sm:$0xf] %vm1370_vm5, %v1353_v33 }
 0x2c8   : > { %1571 = vst.msk [vmem:[%s2884_s26 + $0x3c] sm:$0xf] %vm1370_vm5, %v1539_v7 }
 0x2c9   : > { %v1164_v56 = vpack.c.bf16 %v1144_v51, %v1143_v54 }
 0x2cb   : > { %1937 = vmatmul.msk.bf16.gmra.mxu0 %vm371_vm0, %v1164_v56  ;;  %1969 = vmatmul.msk.bf16.gmra.mxu1 %vm371_vm0, %v1164_v56  ;;  %v1666_v29 = vpop.f32.mrf.mxu2 }
 0x2cc   : > { %2001 = vmatmul.msk.bf16.gmra.mxu2 %vm371_vm0, %v1164_v56  ;;  %v1724_v62 = vpack.c.bf16 %v1666_v29, %v1666_v29  ;;  %v1298_v19 = vpop.f32.mrf.mxu0  ;;  %v1484_v0 = vpop.f32.mrf.mxu1 }
 0x2cd   : > { %v1354_v35 = vpack.c.bf16 %v1298_v19, %v1298_v19  ;;  %v1540_v22 = vpack.c.bf16 %v1484_v0, %v1484_v0 }
 0x2ce   : > { %1756 = vst.msk [vmem:[%s2915_s9 + $0x3c] sm:$0xf] %vm1370_vm5, %v1724_v62 }
 0x2cf   : > { %1387 = vst.msk [vmem:[%s2877_s23 + $0x40] sm:$0xf] %vm1370_vm5, %v1354_v35 }
 0x2d0   : > { %1572 = vst.msk [vmem:[%s2884_s26 + $0x40] sm:$0xf] %vm1370_vm5, %v1540_v22 }
 0x2d3   : > { %v1669_v24 = vpop.f32.mrf.mxu2 }
 0x2d4   : > { %v1725_v63 = vpack.c.bf16 %v1669_v24, %v1669_v24  ;;  %v1300_v58 = vpop.f32.mrf.mxu0  ;;  %v1486_v27 = vpop.f32.mrf.mxu1 }
 0x2d5   : > { %v1355_v13 = vpack.c.bf16 %v1300_v58, %v1300_v58  ;;  %v1541_v59 = vpack.c.bf16 %v1486_v27, %v1486_v27 }
 0x2d6   : > { %1757 = vst.msk [vmem:[%s2915_s9 + $0x40] sm:$0xf] %vm1370_vm5, %v1725_v63 }
 0x2d7   : > { %1388 = vst.msk [vmem:[%s2877_s23 + $0x44] sm:$0xf] %vm1370_vm5, %v1355_v13 }
 0x2d8   : > { %1573 = vst.msk [vmem:[%s2884_s26 + $0x44] sm:$0xf] %vm1370_vm5, %v1541_v59 }
 0x2db   : > { %v1671_v9 = vpop.f32.mrf.mxu2 }
 0x2dc   : > { %v1726_v28 = vpack.c.bf16 %v1671_v9, %v1671_v9  ;;  %v1303_v53 = vpop.f32.mrf.mxu0  ;;  %v1489_v47 = vpop.f32.mrf.mxu1 }
 0x2dd   : > { %v1356_v12 = vpack.c.bf16 %v1303_v53, %v1303_v53  ;;  %v1542_v5 = vpack.c.bf16 %v1489_v47, %v1489_v47 }
 0x2de   : > { %1758 = vst.msk [vmem:[%s2915_s9 + $0x44] sm:$0xf] %vm1370_vm5, %v1726_v28 }
 0x2df   : > { %1389 = vst.msk [vmem:[%s2877_s23 + $0x48] sm:$0xf] %vm1370_vm5, %v1356_v12 }
 0x2e0   : > { %1574 = vst.msk [vmem:[%s2884_s26 + $0x48] sm:$0xf] %vm1370_vm5, %v1542_v5 }
 0x2e3   : > { %v1674_v34 = vpop.f32.mrf.mxu2 }
 0x2e4   : > { %v1727_v37 = vpack.c.bf16 %v1674_v34, %v1674_v34  ;;  %v1305_v45 = vpop.f32.mrf.mxu0  ;;  %v1491_v50 = vpop.f32.mrf.mxu1 }
 0x2e5   : > { %v1357_v23 = vpack.c.bf16 %v1305_v45, %v1305_v45  ;;  %v1543_v21 = vpack.c.bf16 %v1491_v50, %v1491_v50 }
 0x2e6   : > { %1759 = vst.msk [vmem:[%s2915_s9 + $0x48] sm:$0xf] %vm1370_vm5, %v1727_v37 }
 0x2e7   : > { %1390 = vst.msk [vmem:[%s2877_s23 + $0x4c] sm:$0xf] %vm1370_vm5, %v1357_v23 }
 0x2e8   : > { %1575 = vst.msk [vmem:[%s2884_s26 + $0x4c] sm:$0xf] %vm1370_vm5, %v1543_v21 }
 0x2eb   : > { %v1676_v26 = vpop.f32.mrf.mxu2 }
 0x2ec   : > { %v1728_v48 = vpack.c.bf16 %v1676_v26, %v1676_v26 }
 0x2ee   : > { %1760 = vst.msk [vmem:[%s2915_s9 + $0x4c] sm:$0xf] %vm1370_vm5, %v1728_v48 }
 0x336   : > { %v1308_v1 = vpop.f32.mrf.mxu0  ;;  %v1494_v18 = vpop.f32.mrf.mxu1 }
 0x337   : > { %v1358_v16 = vpack.c.bf16 %v1308_v1, %v1308_v1  ;;  %v1544_v2 = vpack.c.bf16 %v1494_v18, %v1494_v18 }
 0x339   : > { %1391 = vst.msk [vmem:[%s2877_s23 + $0x50] sm:$0xf] %vm1370_vm5, %v1358_v16 }
 0x33a   : > { %1576 = vst.msk [vmem:[%s2884_s26 + $0x50] sm:$0xf] %vm1370_vm5, %v1544_v2 }
 0x33d   : > { %v1679_v8 = vpop.f32.mrf.mxu2 }
 0x33e   : > { %v1729_v41 = vpack.c.bf16 %v1679_v8, %v1679_v8  ;;  %v1310_v17 = vpop.f32.mrf.mxu0  ;;  %v1496_v52 = vpop.f32.mrf.mxu1 }
 0x33f   : > { %v1359_v36 = vpack.c.bf16 %v1310_v17, %v1310_v17  ;;  %v1545_v10 = vpack.c.bf16 %v1496_v52, %v1496_v52 }
 0x340   : > { %1761 = vst.msk [vmem:[%s2915_s9 + $0x50] sm:$0xf] %vm1370_vm5, %v1729_v41 }
 0x341   : > { %1392 = vst.msk [vmem:[%s2877_s23 + $0x54] sm:$0xf] %vm1370_vm5, %v1359_v36 }
 0x342   : > { %1577 = vst.msk [vmem:[%s2884_s26 + $0x54] sm:$0xf] %vm1370_vm5, %v1545_v10 }
 0x345   : > { %v1681_v32 = vpop.f32.mrf.mxu2 }
 0x346   : > { %v1730_v6 = vpack.c.bf16 %v1681_v32, %v1681_v32 }
 0x348   : > { %v1313_v15 = vpop.f32.mrf.mxu0  ;;  %v1499_v46 = vpop.f32.mrf.mxu1  ;;  %1762 = vst.msk [vmem:[%s2915_s9 + $0x54] sm:$0xf] %vm1370_vm5, %v1730_v6 }
 0x349   : > { %v1360_v57 = vpack.c.bf16 %v1313_v15, %v1313_v15  ;;  %v1546_v49 = vpack.c.bf16 %v1499_v46, %v1499_v46 }
 0x34b   : > { %1393 = vst.msk [vmem:[%s2877_s23 + $0x58] sm:$0xf] %vm1370_vm5, %v1360_v57 }
 0x34c   : > { %1578 = vst.msk [vmem:[%s2884_s26 + $0x58] sm:$0xf] %vm1370_vm5, %v1546_v49 }
 0x34f   : > { %v1684_v11 = vpop.f32.mrf.mxu2 }
 0x350   : > { %v1731_v43 = vpack.c.bf16 %v1684_v11, %v1684_v11  ;;  %v1315_v31 = vpop.f32.mrf.mxu0  ;;  %v1501_v60 = vpop.f32.mrf.mxu1 }
 0x351   : > { %v1361_v20 = vpack.c.bf16 %v1315_v31, %v1315_v31  ;;  %v1547_v61 = vpack.c.bf16 %v1501_v60, %v1501_v60 }
 0x352   : > { %1763 = vst.msk [vmem:[%s2915_s9 + $0x58] sm:$0xf] %vm1370_vm5, %v1731_v43 }
 0x353   : > { %1394 = vst.msk [vmem:[%s2877_s23 + $0x5c] sm:$0xf] %vm1370_vm5, %v1361_v20 }
 0x354   : > { %1579 = vst.msk [vmem:[%s2884_s26 + $0x5c] sm:$0xf] %vm1370_vm5, %v1547_v61 }
 0x357   : > { %v1686_v14 = vpop.f32.mrf.mxu2 }
 0x358   : > { %v1732_v40 = vpack.c.bf16 %v1686_v14, %v1686_v14 }
 0x35a   : > { %1764 = vst.msk [vmem:[%s2915_s9 + $0x5c] sm:$0xf] %vm1370_vm5, %v1732_v40 }
 0x35b PF: > { %s19_s27 = sadd.s32 1, %s2117_s27  }
 0x35c   : > { %p16_p4 = scmp.ge.s32.totalorder %s19_s27, 4  }
 0x35e   :  { %18 = sbr.rel (!%p16_p4) target bundleno = 1 (0x1), region = 98 }

// kernel: gpt2_lm_forward.9
= control target key start
LH: loop header
LB: loop body
LE: loop exit
PB: predicated region body
PF: predicated region fallthrough
CT: control target
= control target key end

     0   :  { %s2247_s24 = smov 0   ;;  %s3522_s0 = inlined_call_operand.vmem [shape: f32[512,64], index: 0, kind: input, shape index: {}, may-alias: {0,7}]   ;;  %s3523_s1 = inlined_call_operand.vmem [shape: f32[1,64], index: 1, kind: input, shape index: {}]   ;;  %s3524_s2 = inlined_call_operand.vmem [shape: f32[1,64], index: 2, kind: input, shape index: {}]   ;;  %s3525_s3 = inlined_call_operand.vmem [shape: bf16[64,256], index: 3, kind: input, shape index: {}]   ;;  %s3526_s4 = inlined_call_operand.vmem [shape: f32[1,256], index: 4, kind: input, shape index: {}]   ;;  %s3527_s5 = inlined_call_operand.vmem [shape: bf16[256,64], index: 5, kind: input, shape index: {}]   ;;  %s3528_s6 = inlined_call_operand.vmem [shape: f32[1,64], index: 6, kind: input, shape index: {}]   ;;  %s3529_s7 = inlined_call_operand.vmem [shape: f32[512,64], index: 7, kind: output, shape index: {}, may-alias: {0,7}]  }
   0x1 LB: > { %s1953_s25 = sadd.s32 4294967295, %s2204_s24   ;;  %p1957_p0 = scmp.ge.s32.totalorder %s2204_s24, 1  ;;  %s2204_s24 = sphi %s2247_s24, %s17_s24  }
   0x2   : > { %p238_p1 = scmp.lt.s32.totalorder %s2204_s24, 3 }
   0x4   : > { %p239_p2 = pnand %p1957_p0, %p238_p1 }
   0x6   : > { %242 = sbr.rel (%p239_p2) target bundleno = 1125 (0x465), region = 48 }
   0xb   : > { %s1958_s26 = sshll.u32 %s1953_s25, 5  ;;  %vm317_vm0 = vcmask 523264   ;;  %v2206_v14 = vmov 64.0  }
   0xc   : > { %p271_p3 = scmp.lt.s32.totalorder %s1958_s26, 63  ;;  %2128 = vrcp.f32 %v2206_v14  ;;  %v1988_v14 = vld [vmem:[%s3525_s3 + $0x30] sm:$0xf] }
   0xe   : > { %s3618_s26 = smov (!%p271_p3, %s1958_s26), 63 }
   0xf   : > { %s1959_s27 = sshll.u32 %s3618_s26, 3 }
  0x10   : > { %s2263_s30 = scalar_lea.vmem %s3522_s0, %s1959_s27  ;;  %s3089_s8 = scalar_lea.vmem %s3529_s7, %s1959_s27 }
  0x11   : > { %v2266_v0 = vld [vmem:[%s2263_s30 + $0x10] sm:$0xff]  ;;  %v283_v1 = vld [vmem:[%s2263_s30] sm:$0xff]  ;;  %v2278_v6 = vld [vmem:[%s2263_s30 + $0x18] sm:$0xff] }
  0x12   : > { %v324_v2 = vsel %vm317_vm0, %v2266_v0, 0.0  ;;  %v318_v3 = vsel %vm317_vm0, %v283_v1, 0.0  ;;  %v2273_v4 = vld [vmem:[%s2263_s30 + $0x20] sm:$0xff]  ;;  %v2281_v7 = vld [vmem:[%s2263_s30 + $0x8] sm:$0xff]  ;;  %v327_v9 = vsel %vm317_vm0, %v2278_v6, 0.0  ;;  %v2293_v12 = vld [vmem:[%s2263_s30 + $0x30] sm:$0xff]  ;;  %v2129_v15 = vpop.eup %2128 }
  0x13   : > { %325 = vadd.xlane.f32.xlu1 %v324_v2  ;;  %319 = vadd.xlane.f32.xlu0 %v318_v3  ;;  %v330_v5 = vsel %vm317_vm0, %v2273_v4, 0.0  ;;  %v2284_v8 = vld [vmem:[%s2263_s30 + $0x28] sm:$0xff]  ;;  %v321_v10 = vsel %vm317_vm0, %v2281_v7, 0.0  ;;  %v336_v13 = vsel %vm317_vm0, %v2293_v12, 0.0  ;;  %v415_v16 = vmul.f32 64.0, %v2129_v15  ;;  %v2310_v34 = vld [vmem:[%s2263_s30 + $0x38] sm:$0xff] }
  0x14   : > { %331 = vadd.xlane.f32.xlu2 %v330_v5  ;;  %v333_v11 = vsel %vm317_vm0, %v2284_v8, 0.0  ;;  %vm419_vm1 = vweird.f32 %v2129_v15  ;;  %v339_v40 = vsel %vm317_vm0, %v2310_v34, 0.0  ;;  %v2336_v47 = vld [vmem:[%s2263_s30 + $0x40] sm:$0xff]  ;;  %v2351_v56 = vld [vmem:[%s2263_s30 + $0x58] sm:$0xff]  ;;  %v2354_v57 = vld [vmem:[%s2263_s30 + $0x48] sm:$0xff] }
  0x15   : > { %v416_v17 = vsub.f32 1.0, %v415_v16  ;;  %v342_v51 = vsel %vm317_vm0, %v2336_v47, 0.0  ;;  %v351_v59 = vsel %vm317_vm0, %v2351_v56, 0.0  ;;  %v345_v61 = vsel %vm317_vm0, %v2354_v57, 0.0  ;;  %v2367_v63 = vld [vmem:[%s2263_s30 + $0x60] sm:$0xff] }
  0x16   : > { %3547 = vst [vmem:[#allocation2_spill] sm:$0xff] %v2367_v63  ;;  %v354_v2 = vsel %vm317_vm0, %v2367_v63, 0.0  ;;  %v2098_v16 = vld [vmem:[%s3525_s3 + $0x34] sm:$0xf] }
  0x17   : > { %v417_v18 = vmul.f32 %v2129_v15, %v416_v17 }
  0x19   : > { %v418_v19 = vadd.f32 %v2129_v15, %v417_v18  ;;  %v1990_v18 = vld [vmem:[%s3525_s3 + $0x38] sm:$0xf0] }
  0x1b   : > { %328 = vadd.xlane.f32.xlu1 %v327_v9  ;;  %322 = vadd.xlane.f32.xlu0 %v321_v10  ;;  %v2297_v20 = vsel %vm419_vm1, %v2129_v15, %v418_v19  ;;  %v2378_v9 = vld [vmem:[%s2263_s30 + $0x68] sm:$0xff]  ;;  %v2099_v15 = vld [vmem:[%s3525_s3 + $0x34] sm:$0xf0]  ;;  %v1993_v19 = vor.u32 %v2098_v16, %v1990_v18 }
  0x1c   : > { %334 = vadd.xlane.f32.xlu2 %v333_v11  ;;  %3548 = vst [vmem:[#allocation3_spill] sm:$0xff] %v2378_v9  ;;  %v357_v10 = vsel %vm317_vm0, %v2378_v9, 0.0  ;;  %v2383_v11 = vld [vmem:[%s2263_s30 + $0x70] sm:$0xff]  ;;  %v1989_v17 = vor.u32 %v2099_v15, %v1988_v14 }
  0x1d   : > { %3549 = vst [vmem:[#allocation4_spill] sm:$0xff] %v2383_v11  ;;  %1310 = vmatpush.bf16.msra.mxu1 %v1993_v19 }
  0x1e   : > { %1221 = vmatpush.bf16.msra.mxu0 %v1989_v17 }
  0x24   : > { %337 = vadd.xlane.f32.xlu2 %v336_v13  ;;  %v360_v13 = vsel %vm317_vm0, %v2383_v11, 0.0 }
  0x86   : > { %v326_v21 = vpop.xlane.xlu1 %325  ;;  %v320_v22 = vpop.xlane.xlu0 %319 }
  0x87   : > { %v421_v23 = vmul.f32 %v2297_v20, %v320_v22  ;;  %v332_v24 = vpop.xlane.xlu2 %331  ;;  %v423_v33 = vmul.f32 %v2297_v20, %v326_v21  ;;  %v1980_v21 = vld [vmem:[%s3525_s3 + $0x20] sm:$0xf]  ;;  %v2097_v22 = vld [vmem:[%s3525_s3 + $0x24] sm:$0xf0] }
  0x88   : > { %v425_v32 = vmul.f32 %v2297_v20, %v332_v24  ;;  %v1981_v24 = vor.u32 %v2097_v22, %v1980_v21 }
  0x89   : > { %v2300_v25 = vsub.f32 %v283_v1, %v421_v23  ;;  %v2328_v42 = vsub.f32 %v2266_v0, %v423_v33  ;;  %v2370_v1 = vld [vmem:[%s2263_s30 + $0x50] sm:$0xff]  ;;  %v2096_v23 = vld [vmem:[%s3525_s3 + $0x24] sm:$0xf]  ;;  %v1974_v33 = vld [vmem:[%s3525_s3 + $0x18] sm:$0xf0] }
  0x8a   : > { %v2319_v38 = vsub.f32 %v2273_v4, %v425_v32  ;;  %v348_v5 = vsel %vm317_vm0, %v2370_v1, 0.0  ;;  %1222 = vmatpush.bf16.msra.mxu0 %v1981_v24 }
  0x8b   : > { %v485_v26 = vmul.f32 %v2300_v25, %v2300_v25  ;;  %v487_v48 = vmul.f32 %v2328_v42, %v2328_v42 }
  0x8c   : > { %v489_v46 = vmul.f32 %v2319_v38, %v2319_v38 }
  0x8d   : > { %v517_v27 = vsel %vm317_vm0, %v485_v26, 0.0  ;;  %v523_v52 = vsel %vm317_vm0, %v487_v48, 0.0  ;;  %v1982_v26 = vld [vmem:[%s3525_s3 + $0x28] sm:$0xf0] }
  0x8e   : > { %v329_v28 = vpop.xlane.xlu1 %328  ;;  %518 = vadd.xlane.f32.xlu0 %v517_v27  ;;  %v323_v29 = vpop.xlane.xlu0 %322  ;;  %v529_v50 = vsel %vm317_vm0, %v489_v46, 0.0  ;;  %v1985_v27 = vor.u32 %v2096_v23, %v1982_v26  ;;  %v1966_v46 = vld [vmem:[%s3525_s3 + $0x8] sm:$0xf0] }
  0x8f   : > { %v424_v30 = vmul.f32 %v2297_v20, %v329_v28  ;;  %v422_v31 = vmul.f32 %v2297_v20, %v323_v29  ;;  %v335_v37 = vpop.xlane.xlu2 %334  ;;  %v1972_v28 = vld [vmem:[%s3525_s3 + $0x10] sm:$0xf]  ;;  %v2095_v29 = vld [vmem:[%s3525_s3 + $0x14] sm:$0xf0] }
  0x90   : > { %v426_v45 = vmul.f32 %v2297_v20, %v335_v37  ;;  %1311 = vmatpush.bf16.msra.mxu1 %v1985_v27  ;;  %v1973_v32 = vor.u32 %v2095_v29, %v1972_v28 }
  0x91   : > { %v2313_v35 = vsub.f32 %v2278_v6, %v424_v30  ;;  %v2316_v36 = vsub.f32 %v2281_v7, %v422_v31  ;;  %v2094_v30 = vld [vmem:[%s3525_s3 + $0x14] sm:$0xf] }
  0x92   : > { %v2341_v49 = vsub.f32 %v2284_v8, %v426_v45  ;;  %1223 = vmatpush.bf16.msra.mxu0 %v1973_v32  ;;  %v2092_v45 = vld [vmem:[%s3525_s3 + $0x4] sm:$0xf] }
  0x93   : > { %v488_v39 = vmul.f32 %v2313_v35, %v2313_v35  ;;  %v486_v41 = vmul.f32 %v2316_v36, %v2316_v36  ;;  %v1969_v48 = vor.u32 %v2092_v45, %v1966_v46 }
  0x94   : > { %v490_v55 = vmul.f32 %v2341_v49, %v2341_v49 }
  0x95   : > { %v526_v43 = vsel %vm317_vm0, %v488_v39, 0.0  ;;  %v520_v44 = vsel %vm317_vm0, %v486_v41, 0.0  ;;  %v1977_v39 = vor.u32 %v2094_v30, %v1974_v33  ;;  %v1964_v41 = vld [vmem:[%s3525_s3] sm:$0xf] }
  0x96   : > { %527 = vadd.xlane.f32.xlu2 %v526_v43  ;;  %340 = vadd.xlane.f32.xlu0 %v339_v40  ;;  %v532_v60 = vsel %vm317_vm0, %v490_v55, 0.0  ;;  %v2093_v43 = vld [vmem:[%s3525_s3 + $0x4] sm:$0xf0] }
  0x97   : > { %521 = vadd.xlane.f32.xlu1 %v520_v44  ;;  %v338_v53 = vpop.xlane.xlu2 %337  ;;  %1312 = vmatpush.bf16.msra.mxu1 %v1977_v39  ;;  %v1965_v44 = vor.u32 %v2093_v43, %v1964_v41 }
  0x98   : > { %v427_v54 = vmul.f32 %v2297_v20, %v338_v53 }
  0x99   : > { %1224 = vmatpush.bf16.msra.mxu0 %v1965_v44 }
  0x9a   : > { %v2357_v58 = vsub.f32 %v2293_v12, %v427_v54 }
  0x9b   : > { %1313 = vmatpush.bf16.msra.mxu1 %v1969_v48 }
  0x9c   : > { %v491_v62 = vmul.f32 %v2357_v58, %v2357_v58 }
  0x9e   : > { %530 = vadd.xlane.f32.xlu2 %v529_v50  ;;  %343 = vadd.xlane.f32.xlu0 %v342_v51  ;;  %v535_v3 = vsel %vm317_vm0, %v491_v62, 0.0 }
  0x9f   : > { %524 = vadd.xlane.f32.xlu1 %v523_v52 }
  0xa6   : > { %352 = vadd.xlane.f32.xlu2 %v351_v59  ;;  %533 = vadd.xlane.f32.xlu0 %v532_v60 }
  0xa7   : > { %346 = vadd.xlane.f32.xlu1 %v345_v61 }
  0xae   : > { %355 = vadd.xlane.f32.xlu2 %v354_v2  ;;  %536 = vadd.xlane.f32.xlu0 %v535_v3 }
  0xaf   : > { %349 = vadd.xlane.f32.xlu1 %v348_v5 }
  0xb6   : > { %358 = vadd.xlane.f32.xlu0 %v357_v10 }
  0xbe   : > { %361 = vadd.xlane.f32.xlu0 %v360_v13 }
 0x101   : > { %v519_v31 = vpop.xlane.xlu0 %518 }
 0x102   : > { %v613_v37 = vmul.f32 %v519_v31, %v2297_v20 }
 0x104   : > { %v645_v40 = vadd.f32 1e-05, %v613_v37 }
 0x106   : > { %2130 = vrsqrt.f32 %v645_v40  ;;  %vm683_vm3 = vweird.f32 %v645_v40 }
 0x109   : > { %v528_v50 = vpop.xlane.xlu2 %527  ;;  %v341_v51 = vpop.xlane.xlu0 %340 }
 0x10a   : > { %v616_v52 = vmul.f32 %v528_v50, %v2297_v20  ;;  %v522_v53 = vpop.xlane.xlu1 %521  ;;  %v428_v54 = vmul.f32 %v2297_v20, %v341_v51 }
 0x10b   : > { %v614_v55 = vmul.f32 %v522_v53, %v2297_v20 }
 0x10c   : > { %v2131_v59 = vpop.eup %2130  ;;  %v2439_v60 = vadd.f32 1e-05, %v616_v52  ;;  %v2442_v61 = vsub.f32 %v2310_v34, %v428_v54 }
 0x10d   : > { %v678_v62 = vmul.f32 %v2131_v59, %v645_v40  ;;  %v646_v2 = vadd.f32 1e-05, %v614_v55  ;;  %vm684_vm2 = vweird.f32 %v2131_v59 }
 0x10e   : > { %2132 = vrsqrt.f32 %v2439_v60  ;;  %v492_v3 = vmul.f32 %v2442_v61, %v2442_v61  ;;  %vm2465_vm6 = vmor %vm683_vm3, %vm684_vm2  ;;  %vm713_vm10 = vweird.f32 %v2439_v60 }
 0x10f   : > { %v679_v5 = vmul.f32 %v2131_v59, %v678_v62  ;;  %2134 = vrsqrt.f32 %v646_v2  ;;  %vm693_vm4 = vweird.f32 %v646_v2 }
 0x110   : > { %v538_v10 = vsel %vm317_vm0, %v492_v3, 0.0 }
 0x111   : > { %v680_v13 = vmul.f32 0.5, %v679_v5  ;;  %v531_v14 = vpop.xlane.xlu2 %530  ;;  %539 = vadd.xlane.f32.xlu1 %v538_v10  ;;  %v344_v15 = vpop.xlane.xlu0 %343 }
 0x112   : > { %v525_v16 = vpop.xlane.xlu1 %524  ;;  %v429_v17 = vmul.f32 %v2297_v20, %v344_v15  ;;  %v617_v24 = vmul.f32 %v531_v14, %v2297_v20 }
 0x113   : > { %v681_v18 = vsub.f32 1.5, %v680_v13  ;;  %v615_v19 = vmul.f32 %v525_v16, %v2297_v20 }
 0x114   : > { %v2450_v21 = vpop.eup %2132  ;;  %v2453_v22 = vsub.f32 %v2336_v47, %v429_v17  ;;  %v2463_v32 = vadd.f32 1e-05, %v617_v24 }
 0x115   : > { %v2135_v23 = vpop.eup %2134  ;;  %v2456_v26 = vadd.f32 1e-05, %v615_v19  ;;  %v682_v28 = vmul.f32 %v2131_v59, %v681_v18  ;;  %v708_v29 = vmul.f32 %v2450_v21, %v2439_v60  ;;  %vm714_vm11 = vweird.f32 %v2450_v21 }
 0x116   : > { %v688_v27 = vmul.f32 %v2135_v23, %v646_v2  ;;  %v493_v31 = vmul.f32 %v2453_v22, %v2453_v22  ;;  %vm694_vm5 = vweird.f32 %v2135_v23  ;;  %v2499_v2 = vld [vmem:[%s3523_s1] ss:$0 sm:$0xff]  ;;  %vm2557_vm13 = vmor %vm713_vm10, %vm714_vm11  ;;  %vm723_vm1 = vweird.f32 %v2463_v32 }
 0x117   : > { %2136 = vrsqrt.f32 %v2456_v26  ;;  %v686_v40 = vsel %vm2465_vm6, %v2131_v59, %v682_v28  ;;  %v709_v48 = vmul.f32 %v2450_v21, %v708_v29  ;;  %vm695_vm7 = vmor %vm693_vm4, %vm694_vm5  ;;  %v2490_v59 = vld [vmem:[%s2263_s30 + $0x78] sm:$0xff]  ;;  %vm703_vm8 = vweird.f32 %v2456_v26 }
 0x118   : > { %v689_v30 = vmul.f32 %v2135_v23, %v688_v27  ;;  %v541_v45 = vsel %vm317_vm0, %v493_v31, 0.0  ;;  %2138 = vrsqrt.f32 %v2463_v32  ;;  %3552 = vst [vmem:[#allocation5_spill] sm:$0xff] %v2490_v59  ;;  %v997_v62 = vmul.f32 %v686_v40, %v2300_v25  ;;  %v2539_v40 = vld [vmem:[%s2263_s30 + $0x80] sm:$0xff] }
 0x119   : > { %v353_v33 = vpop.xlane.xlu2 %352  ;;  %v534_v37 = vpop.xlane.xlu0 %533  ;;  %542 = vadd.xlane.f32.xlu1 %v541_v45  ;;  %v710_v10 = vmul.f32 0.5, %v709_v48  ;;  %v363_v16 = vsel %vm317_vm0, %v2490_v59, 0.0  ;;  %3553 = vst [vmem:[#allocation6_spill] sm:$0xff] %v2539_v40 }
 0x11a   : > { %v690_v41 = vmul.f32 0.5, %v689_v30  ;;  %v432_v43 = vmul.f32 %v2297_v20, %v353_v33  ;;  %v347_v44 = vpop.xlane.xlu1 %346  ;;  %v618_v46 = vmul.f32 %v534_v37, %v2297_v20  ;;  %v1032_v30 = vmul.f32 %v2499_v2, %v997_v62 }
 0x11b   : > { %v430_v50 = vmul.f32 %v2297_v20, %v347_v44  ;;  %v711_v33 = vsub.f32 1.5, %v710_v10 }
 0x11c   : > { %v691_v51 = vsub.f32 1.5, %v690_v41  ;;  %v2477_v52 = vsub.f32 %v2351_v56, %v432_v43  ;;  %v2479_v53 = vadd.f32 1e-05, %v618_v46 }
 0x11d   : > { %v2481_v54 = vpop.eup %2136  ;;  %v2487_v55 = vsub.f32 %v2354_v57, %v430_v50  ;;  %v712_v62 = vmul.f32 %v2450_v21, %v711_v33  ;;  %v2584_v33 = vld [vmem:[%s2263_s30 + $0x88] sm:$0xff] }
 0x11e   : > { %v692_v3 = vmul.f32 %v2135_v23, %v691_v51  ;;  %v698_v5 = vmul.f32 %v2481_v54, %v2456_v26  ;;  %2140 = vrsqrt.f32 %v2479_v53  ;;  %v496_v13 = vmul.f32 %v2477_v52, %v2477_v52  ;;  %v2521_v31 = vpop.eup %2138  ;;  %3559 = vst [vmem:[#allocation8_spill] sm:$0xff] %v2584_v33  ;;  %v2607_v26 = vld [vmem:[%s2263_s30 + $0xa0] sm:$0xff] }
 0x11f   : > { %v494_v25 = vmul.f32 %v2487_v55, %v2487_v55  ;;  %vm704_vm9 = vweird.f32 %v2481_v54  ;;  %vm733_vm14 = vweird.f32 %v2479_v53  ;;  %vm724_vm2 = vweird.f32 %v2521_v31  ;;  %3560 = vst [vmem:[#allocation9_spill] sm:$0xff] %v2607_v26 }
 0x120   : > { %v696_v14 = vsel %vm695_vm7, %v2135_v23, %v692_v3  ;;  %v699_v15 = vmul.f32 %v2481_v54, %v698_v5  ;;  %v550_v19 = vsel %vm317_vm0, %v496_v13, 0.0  ;;  %vm2544_vm12 = vmor %vm703_vm8, %vm704_vm9  ;;  %v718_v3 = vmul.f32 %v2521_v31, %v2463_v32 }
 0x121   : > { %v998_v17 = vmul.f32 %v696_v14, %v2316_v36  ;;  %v356_v18 = vpop.xlane.xlu2 %355  ;;  %v2511_v24 = vpop.xlane.xlu0 %536  ;;  %551 = vadd.xlane.f32.xlu0 %v550_v19  ;;  %v544_v28 = vsel %vm317_vm0, %v494_v25, 0.0  ;;  %v2519_v36 = vld [vmem:[%s3524_s2] ss:$0 sm:$0xff]  ;;  %364 = vadd.xlane.f32.xlu1 %v363_v16  ;;  %v366_v14 = vsel %vm317_vm0, %v2539_v40, 0.0  ;;  %vm725_vm4 = vmor %vm723_vm1, %vm724_vm2  ;;  %v378_v32 = vsel %vm317_vm0, %v2607_v26, 0.0 }
 0x122   : > { %v700_v27 = vmul.f32 0.5, %v699_v15  ;;  %v433_v23 = vmul.f32 %v2297_v20, %v356_v18  ;;  %v350_v29 = vpop.xlane.xlu1 %349  ;;  %545 = vadd.xlane.f32.xlu2 %v544_v28  ;;  %v1067_v60 = vadd.f32 %v2519_v36, %v1032_v30  ;;  %v2581_v30 = vld [vmem:[%s2263_s30 + $0x98] sm:$0xff] }
 0x123   : > { %v431_v37 = vmul.f32 %v2297_v20, %v350_v29  ;;  %v1033_v39 = vmul.f32 %v2499_v2, %v998_v17  ;;  %3558 = vst [vmem:[#allocation7_spill] sm:$0xff] %v2581_v30 }
 0x124   : > { %v2526_v41 = vpop.eup %2140  ;;  %v701_v43 = vsub.f32 1.5, %v700_v27  ;;  %v2529_v44 = vsub.f32 %v2367_v63, %v433_v23  ;;  %v716_v27 = vsel %vm2557_vm13, %v2450_v21, %v712_v62 }
 0x125   : > { %v728_v45 = vmul.f32 %v2526_v41, %v2479_v53  ;;  %v2536_v46 = vsub.f32 %v2370_v1, %v431_v37  ;;  %v1068_v51 = vadd.f32 %v2519_v36, %v1033_v39  ;;  %v1000_v37 = vmul.f32 %v716_v27, %v2313_v35 }
 0x126   : > { %v702_v48 = vmul.f32 %v2481_v54, %v701_v43  ;;  %v497_v5 = vmul.f32 %v2529_v44, %v2529_v44  ;;  %v375_v43 = vsel %vm317_vm0, %v2581_v30, 0.0  ;;  %vm734_vm15 = vweird.f32 %v2526_v41 }
 0x127   : > { %v495_v10 = vmul.f32 %v2536_v46, %v2536_v46  ;;  %v1099_v13 = vpack.c.bf16 %v1068_v51, %v1067_v60  ;;  %v729_v25 = vmul.f32 %v2526_v41, %v728_v45  ;;  %v1035_v51 = vmul.f32 %v2499_v2, %v1000_v37  ;;  %vm735_vm3 = vmor %vm733_vm14, %vm734_vm15 }
 0x128   : > { %v706_v15 = vsel %vm2544_vm12, %v2481_v54, %v702_v48  ;;  %v553_v16 = vsel %vm317_vm0, %v497_v5, 0.0  ;;  %v719_v54 = vmul.f32 %v2521_v31, %v718_v3 }
 0x129   : > { %v547_v17 = vsel %vm317_vm0, %v495_v10, 0.0  ;;  %v359_v18 = vpop.xlane.xlu0 %358  ;;  %1994 = vmatmul.msk.bf16.vlgmr.msra.gmra.mxu0 %vm317_vm0, %v1099_v13  ;;  %2010 = vmatmul.msk.bf16.vlgmr.msra.gmra.mxu1 %vm317_vm0, %v1099_v13  ;;  %v999_v23 = vmul.f32 %v706_v15, %v2328_v42  ;;  %v730_v29 = vmul.f32 0.5, %v729_v25  ;;  %v369_v42 = vsel %vm317_vm0, %v2584_v33, 0.0  ;;  %v2610_v13 = vld [vmem:[%s2263_s30 + $0x90] sm:$0xff] }
 0x12a   : > { %v434_v19 = vmul.f32 %v2297_v20, %v359_v18  ;;  %554 = vadd.xlane.f32.xlu0 %v553_v16  ;;  %548 = vadd.xlane.f32.xlu2 %v547_v17  ;;  %v720_v39 = vmul.f32 0.5, %v719_v54  ;;  %3561 = vst [vmem:[#allocation10_spill] sm:$0xff] %v2610_v13  ;;  %v1070_v53 = vadd.f32 %v2519_v36, %v1035_v51  ;;  %v372_v16 = vsel %vm317_vm0, %v2610_v13, 0.0  ;;  %v2113_v51 = vld [vmem:[%s3527_s5 + $0x68] sm:$0xff] }
 0x12b   : > { %367 = vadd.xlane.f32.xlu1 %v366_v14  ;;  %v1034_v45 = vmul.f32 %v2499_v2, %v999_v23  ;;  %v731_v48 = vsub.f32 1.5, %v730_v29  ;;  %v2628_v23 = vld [vmem:[%s2263_s30 + $0xa8] sm:$0xff] }
 0x12c   : > { %v2578_v28 = vsub.f32 %v2378_v9, %v434_v19  ;;  %v721_v62 = vsub.f32 1.5, %v720_v39  ;;  %3562 = vst [vmem:[#allocation11_spill] sm:$0xff] %v2628_v23  ;;  %v381_v29 = vsel %vm317_vm0, %v2628_v23, 0.0  ;;  %v2637_v39 = vld [vmem:[%s2263_s30 + $0xb0] sm:$0xff] }
 0x12d   : > { %v1069_v5 = vadd.f32 %v2519_v36, %v1034_v45  ;;  %v732_v10 = vmul.f32 %v2526_v41, %v731_v48  ;;  %3563 = vst [vmem:[#allocation12_spill] sm:$0xff] %v2637_v39  ;;  %v2107_v45 = vld [vmem:[%s3527_s5 + $0x38] sm:$0xff] }
 0x12e   : > { %v498_v21 = vmul.f32 %v2578_v28, %v2578_v28  ;;  %v722_v15 = vmul.f32 %v2521_v31, %v721_v62  ;;  %v2115_v48 = vld [vmem:[%s3527_s5 + $0x78] sm:$0xff]  ;;  %1619 = vmatpush.bf16.msra.mxu2 %v2107_v45 }
 0x12f   : > { %v1100_v25 = vpack.c.bf16 %v1070_v53, %v1069_v5  ;;  %v736_v17 = vsel %vm735_vm3, %v2526_v41, %v732_v10  ;;  %1708 = vmatpush.bf16.msra.mxu3 %v2115_v48  ;;  %v2104_v10 = vld [vmem:[%s3527_s5 + $0x20] sm:$0xff] }
 0x130   : > { %v556_v50 = vsel %vm317_vm0, %v498_v21, 0.0  ;;  %v726_v19 = vsel %vm725_vm4, %v2521_v31, %v722_v15  ;;  %v1002_v27 = vmul.f32 %v736_v17, %v2341_v49  ;;  %v2112_v53 = vld [vmem:[%s3527_s5 + $0x60] sm:$0xff] }
 0x131   : > { %v362_v60 = vpop.xlane.xlu0 %361  ;;  %v1001_v54 = vmul.f32 %v726_v19, %v2319_v38  ;;  %v384_v38 = vsel %vm317_vm0, %v2637_v39, 0.0  ;;  %v2110_v19 = vld [vmem:[%s3527_s5 + $0x50] sm:$0xff]  ;;  %v2100_v48 = vld [vmem:[%s3527_s5] sm:$0xff] }
 0x132   : > { %v435_v35 = vmul.f32 %v2297_v20, %v362_v60  ;;  %376 = vadd.xlane.f32.xlu0 %v375_v43  ;;  %370 = vadd.xlane.f32.xlu2 %v369_v42  ;;  %v1037_v41 = vmul.f32 %v2499_v2, %v1002_v27  ;;  %v619_v43 = vmul.f32 %v2511_v24, %v2297_v20  ;;  %v2114_v24 = vld [vmem:[%s3527_s5 + $0x70] sm:$0xff] }
 0x133   : > { %557 = vadd.xlane.f32.xlu1 %v556_v50  ;;  %v1036_v37 = vmul.f32 %v2499_v2, %v1001_v54  ;;  %v2106_v50 = vld [vmem:[%s3527_s5 + $0x30] sm:$0xff]  ;;  %1709 = vmatpush.bf16.msra.mxu3 %v2114_v24 }
 0x134   : > { %v2600_v3 = vsub.f32 %v2383_v11, %v435_v35  ;;  %v1072_v21 = vadd.f32 %v2519_v36, %v1037_v41  ;;  %v651_v42 = vadd.f32 1e-05, %v619_v43  ;;  %1620 = vmatpush.bf16.msra.mxu2 %v2106_v50  ;;  %v2105_v35 = vld [vmem:[%s3527_s5 + $0x28] sm:$0xff]  ;;  %v2108_v50 = vld [vmem:[%s3527_s5 + $0x40] sm:$0xff] }
 0x135   : > { %v1071_v31 = vadd.f32 %v2519_v36, %v1036_v37 }
 0x136   : > { %v499_v14 = vmul.f32 %v2600_v3, %v2600_v3  ;;  %2142 = vrsqrt.f32 %v651_v42  ;;  %vm743_vm5 = vweird.f32 %v651_v42 }
 0x137   : > { %v1101_v49 = vpack.c.bf16 %v1072_v21, %v1071_v31  ;;  %1710 = vmatpush.bf16.msra.mxu3 %v2113_v51  ;;  %v2101_v21 = vld [vmem:[%s3527_s5 + $0x8] sm:$0xff] }
 0x138   : > { %v559_v18 = vsel %vm317_vm0, %v499_v14, 0.0  ;;  %1621 = vmatpush.bf16.msra.mxu2 %v2105_v35  ;;  %v2109_v31 = vld [vmem:[%s3527_s5 + $0x48] sm:$0xff] }
 0x139   : > { %1995 = vmatmul.msk.bf16.gmra.mxu0 %vm317_vm0, %v1100_v25  ;;  %2011 = vmatmul.msk.bf16.gmra.mxu1 %vm317_vm0, %v1100_v25 }
 0x13a   : > { %379 = vadd.xlane.f32.xlu0 %v378_v32  ;;  %373 = vadd.xlane.f32.xlu2 %v372_v16  ;;  %v2103_v32 = vld [vmem:[%s3527_s5 + $0x18] sm:$0xff] }
 0x13b   : > { %560 = vadd.xlane.f32.xlu1 %v559_v18  ;;  %1711 = vmatpush.bf16.msra.mxu3 %v2112_v53  ;;  %v2111_v16 = vld [vmem:[%s3527_s5 + $0x58] sm:$0xff]  ;;  %v2102_v18 = vld [vmem:[%s3527_s5 + $0x10] sm:$0xff] }
 0x13c   : > { %v2143_v60 = vpop.eup %2142  ;;  %1622 = vmatpush.bf16.msra.mxu2 %v2104_v10 }
 0x13d   : > { %v738_v62 = vmul.f32 %v2143_v60, %v651_v42  ;;  %vm744_vm6 = vweird.f32 %v2143_v60 }
 0x13e   : > { %vm2689_vm7 = vmor %vm743_vm5, %vm744_vm6 }
 0x13f   : > { %v739_v15 = vmul.f32 %v2143_v60, %v738_v62  ;;  %1712 = vmatpush.bf16.msra.mxu3 %v2111_v16 }
 0x140   : > { %1623 = vmatpush.bf16.msra.mxu2 %v2103_v32 }
 0x141   : > { %v740_v17 = vmul.f32 0.5, %v739_v15 }
 0x143   : > { %382 = vadd.xlane.f32.xlu1 %v381_v29  ;;  %v741_v27 = vsub.f32 1.5, %v740_v17  ;;  %1713 = vmatpush.bf16.msra.mxu3 %v2110_v19 }
 0x144   : > { %1624 = vmatpush.bf16.msra.mxu2 %v2102_v18 }
 0x147   : > { %1714 = vmatpush.bf16.msra.mxu3 %v2109_v31 }
 0x148   : > { %1625 = vmatpush.bf16.msra.mxu2 %v2101_v21 }
 0x149   : > { %1996 = vmatmul.msk.bf16.gmra.mxu0 %vm317_vm0, %v1101_v49  ;;  %2012 = vmatmul.msk.bf16.gmra.mxu1 %vm317_vm0, %v1101_v49 }
 0x14b   : > { %385 = vadd.xlane.f32.xlu1 %v384_v38  ;;  %v742_v38 = vmul.f32 %v2143_v60, %v741_v27  ;;  %1715 = vmatpush.bf16.msra.mxu3 %v2108_v50 }
 0x14c   : > { %1626 = vmatpush.bf16.msra.mxu2 %v2100_v48 }
 0x14d   : > { %v746_v35 = vsel %vm2689_vm7, %v2143_v60, %v742_v38 }
 0x14e   : > { %v1003_v17 = vmul.f32 %v746_v35, %v2357_v58 }
 0x184   : > { %v540_v5 = vpop.xlane.xlu1 %539 }
 0x185   : > { %v620_v14 = vmul.f32 %v540_v5, %v2297_v20 }
 0x187   : > { %v652_v25 = vadd.f32 1e-05, %v620_v14 }
 0x189   : > { %2144 = vrsqrt.f32 %v652_v25  ;;  %vm753_vm9 = vweird.f32 %v652_v25 }
 0x18c   : > { %v543_v54 = vpop.xlane.xlu1 %542 }
 0x18d   : > { %v621_v29 = vmul.f32 %v543_v54, %v2297_v20 }
 0x18f   : > { %v2145_v41 = vpop.eup %2144  ;;  %v653_v49 = vadd.f32 1e-05, %v621_v29 }
 0x190   : > { %v748_v37 = vmul.f32 %v2145_v41, %v652_v25  ;;  %vm754_vm8 = vweird.f32 %v2145_v41 }
 0x191   : > { %2146 = vrsqrt.f32 %v653_v49  ;;  %vm755_vm10 = vmor %vm753_vm9, %vm754_vm8  ;;  %vm763_vm12 = vweird.f32 %v653_v49 }
 0x192   : > { %v749_v43 = vmul.f32 %v2145_v41, %v748_v37  ;;  %v1038_v37 = vmul.f32 %v2499_v2, %v1003_v17 }
 0x194   : > { %v750_v42 = vmul.f32 0.5, %v749_v43  ;;  %v552_v24 = vpop.xlane.xlu0 %551  ;;  %v365_v5 = vpop.xlane.xlu1 %364 }
 0x195   : > { %v546_v62 = vpop.xlane.xlu2 %545  ;;  %v624_v10 = vmul.f32 %v552_v24, %v2297_v20  ;;  %v436_v14 = vmul.f32 %v2297_v20, %v365_v5 }
 0x196   : > { %v751_v51 = vsub.f32 1.5, %v750_v42  ;;  %v622_v53 = vmul.f32 %v546_v62, %v2297_v20  ;;  %v1073_v62 = vadd.f32 %v2519_v36, %v1038_v37 }
 0x197   : > { %v2704_v32 = vadd.f32 1e-05, %v624_v10  ;;  %v2147_v16 = vpop.eup %2146  ;;  %v2708_v18 = vsub.f32 %v2490_v59, %v436_v14 }
 0x198   : > { %v752_v15 = vmul.f32 %v2145_v41, %v751_v51  ;;  %v654_v60 = vadd.f32 1e-05, %v622_v53  ;;  %v758_v27 = vmul.f32 %v2147_v16, %v653_v49  ;;  %vm764_vm11 = vweird.f32 %v2147_v16 }
 0x199   : > { %2148 = vrsqrt.f32 %v2704_v32  ;;  %v500_v25 = vmul.f32 %v2708_v18, %v2708_v18  ;;  %vm2732_vm13 = vmor %vm763_vm12, %vm764_vm11  ;;  %vm793_vm4 = vweird.f32 %v2704_v32 }
 0x19a   : > { %v756_v19 = vsel %vm755_vm10, %v2145_v41, %v752_v15  ;;  %2150 = vrsqrt.f32 %v654_v60  ;;  %v759_v29 = vmul.f32 %v2147_v16, %v758_v27  ;;  %vm773_vm14 = vweird.f32 %v654_v60 }
 0x19b   : > { %v1004_v54 = vmul.f32 %v756_v19, %v2442_v61  ;;  %v562_v38 = vsel %vm317_vm0, %v500_v25, 0.0 }
 0x19c   : > { %v760_v21 = vmul.f32 0.5, %v759_v29  ;;  %563 = vadd.xlane.f32.xlu2 %v562_v38 }
 0x19d   : > { %v1039_v58 = vmul.f32 %v2499_v2, %v1004_v54  ;;  %v549_v31 = vpop.xlane.xlu2 %548  ;;  %v555_v43 = vpop.xlane.xlu0 %554 }
 0x19e   : > { %v623_v41 = vmul.f32 %v549_v31, %v2297_v20  ;;  %v368_v45 = vpop.xlane.xlu1 %367  ;;  %v761_v61 = vsub.f32 1.5, %v760_v21  ;;  %v625_v14 = vmul.f32 %v555_v43, %v2297_v20 }
 0x19f   : > { %v2718_v42 = vpop.eup %2148  ;;  %v437_v48 = vmul.f32 %v2297_v20, %v368_v45  ;;  %v1074_v50 = vadd.f32 %v2519_v36, %v1039_v58  ;;  %v1123_v58 = vld [vmem:[%s3526_s4] sm:$0x3] }
 0x1a0   : > { %v2151_v24 = vpop.eup %2150  ;;  %v788_v35 = vmul.f32 %v2718_v42, %v2704_v32  ;;  %v2724_v51 = vadd.f32 1e-05, %v623_v41  ;;  %v762_v5 = vmul.f32 %v2147_v16, %v761_v61  ;;  %v2746_v21 = vadd.f32 1e-05, %v625_v14  ;;  %v2763_v14 = vld [vmem:[%s2263_s30 + $0xb8] sm:$0xff] }
 0x1a1   : > { %v768_v10 = vmul.f32 %v2151_v24, %v654_v60  ;;  %v2728_v53 = vsub.f32 %v2539_v40, %v437_v48  ;;  %v1102_v17 = vpack.c.bf16 %v1074_v50, %v1073_v62  ;;  %vm774_vm15 = vweird.f32 %v2151_v24  ;;  %3568 = vst [vmem:[#allocation13_spill] sm:$0xff] %v2763_v14 }
 0x1a2   : > { %2152 = vrsqrt.f32 %v2724_v51  ;;  %v789_v27 = vmul.f32 %v2718_v42, %v788_v35  ;;  %v766_v29 = vsel %vm2732_vm13, %v2147_v16, %v762_v5  ;;  %vm775_vm1 = vmor %vm773_vm14, %vm774_vm15  ;;  %vm783_vm2 = vweird.f32 %v2724_v51 }
 0x1a3   : > { %v769_v15 = vmul.f32 %v2151_v24, %v768_v10  ;;  %v501_v54 = vmul.f32 %v2728_v53, %v2728_v53  ;;  %1997 = vmatmul.msk.bf16.gmra.mxu0 %vm317_vm0, %v1102_v17  ;;  %2013 = vmatmul.msk.bf16.gmra.mxu1 %vm317_vm0, %v1102_v17  ;;  %v1005_v35 = vmul.f32 %v766_v29, %v2453_v22  ;;  %v2760_v10 = vperm.slane %v1123_v58, 0 }
 0x1a4   : > { %v790_v62 = vmul.f32 0.5, %v789_v27  ;;  %2154 = vrsqrt.f32 %v2746_v21  ;;  %v2773_v22 = vperm.slane %v1123_v58, 1  ;;  %v387_v29 = vsel %vm317_vm0, %v2763_v14, 0.0 }
 0x1a5   : > { %v770_v25 = vmul.f32 0.5, %v769_v15  ;;  %v371_v49 = vpop.xlane.xlu2 %370  ;;  %v377_v37 = vpop.xlane.xlu0 %376  ;;  %v565_v16 = vsel %vm317_vm0, %v501_v54, 0.0  ;;  %vm794_vm5 = vweird.f32 %v2718_v42  ;;  %vm803_vm10 = vweird.f32 %v2746_v21 }
 0x1a6   : > { %v438_v31 = vmul.f32 %v2297_v20, %v371_v49  ;;  %v558_v38 = vpop.xlane.xlu1 %557  ;;  %v440_v43 = vmul.f32 %v2297_v20, %v377_v37  ;;  %v1226_v41 = vpop.f32.mrf.mxu0  ;;  %566 = vadd.xlane.f32.xlu2 %v565_v16  ;;  %v791_v49 = vsub.f32 1.5, %v790_v62  ;;  %vm2833_vm7 = vmor %vm793_vm4, %vm794_vm5 }
 0x1a7   : > { %v771_v45 = vsub.f32 1.5, %v770_v25  ;;  %v626_v61 = vmul.f32 %v558_v38, %v2297_v20  ;;  %v1315_v48 = vpop.f32.mrf.mxu1  ;;  %v1227_v37 = vadd.f32 %v1226_v41, %v2760_v10 }
 0x1a8   : > { %v2752_v50 = vpop.eup %2152  ;;  %v2758_v5 = vsub.f32 %v2584_v33, %v438_v31  ;;  %v2770_v54 = vsub.f32 %v2581_v30, %v440_v43  ;;  %v1040_v43 = vmul.f32 %v2499_v2, %v1005_v35 }
 0x1a9   : > { %v772_v15 = vmul.f32 %v2151_v24, %v771_v45  ;;  %v778_v17 = vmul.f32 %v2752_v50, %v2724_v51  ;;  %v2767_v19 = vadd.f32 1e-05, %v626_v61  ;;  %vm784_vm3 = vweird.f32 %v2752_v50 }
 0x1aa   : > { %v502_v58 = vmul.f32 %v2758_v5, %v2758_v5  ;;  %v2796_v30 = vpop.eup %2154  ;;  %vm2809_vm6 = vmor %vm783_vm2, %vm784_vm3 }
 0x1ab   : > { %v776_v60 = vsel %vm775_vm1, %v2151_v24, %v772_v15  ;;  %v779_v27 = vmul.f32 %v2752_v50, %v778_v17  ;;  %2156 = vrsqrt.f32 %v2767_v19  ;;  %v504_v24 = vmul.f32 %v2770_v54, %v2770_v54 }
 0x1ac   : > { %v1006_v25 = vmul.f32 %v776_v60, %v2487_v55  ;;  %v1316_v17 = vadd.f32 %v1315_v48, %v2773_v22  ;;  %v568_v60 = vsel %vm317_vm0, %v502_v58, 0.0  ;;  %vm813_vm8 = vweird.f32 %v2767_v19 }
 0x1ad   : > { %v780_v31 = vmul.f32 0.5, %v779_v27  ;;  %v374_v16 = vpop.xlane.xlu2 %373  ;;  %v380_v38 = vpop.xlane.xlu0 %379  ;;  %v574_v35 = vsel %vm317_vm0, %v504_v24, 0.0  ;;  %569 = vadd.xlane.f32.xlu0 %v568_v60  ;;  %v1075_v60 = vadd.f32 %v2519_v36, %v1040_v43  ;;  %vm804_vm11 = vweird.f32 %v2796_v30 }
 0x1ae   : > { %v439_v55 = vmul.f32 %v2297_v20, %v374_v16  ;;  %v2789_v45 = vpop.xlane.xlu1 %560  ;;  %v441_v61 = vmul.f32 %v2297_v20, %v380_v38  ;;  %v1228_v41 = vpop.f32.mrf.mxu0  ;;  %v1041_v62 = vmul.f32 %v2499_v2, %v1006_v25  ;;  %388 = vadd.xlane.f32.xlu2 %v387_v29  ;;  %v792_v16 = vmul.f32 %v2718_v42, %v791_v49  ;;  %v2819_v38 = vld [vmem:[%s2263_s30 + $0xc0] sm:$0xff]  ;;  %vm2912_vm13 = vmor %vm803_vm10, %vm804_vm11 }
 0x1af   : > { %v781_v15 = vsub.f32 1.5, %v780_v31  ;;  %v1317_v27 = vpop.f32.mrf.mxu1  ;;  %575 = vadd.xlane.f32.xlu1 %v574_v35  ;;  %v1229_v25 = vadd.f32 %v1228_v41, %v2760_v10  ;;  %3571 = vst [vmem:[#allocation14_spill] sm:$0xff] %v2819_v38  ;;  %v798_v35 = vmul.f32 %v2796_v30, %v2746_v21  ;;  %v390_v43 = vsel %vm317_vm0, %v2819_v38, 0.0 }
 0x1b0   : > { %v2814_v49 = vsub.f32 %v2610_v13, %v439_v55  ;;  %v1318_v58 = vadd.f32 %v1317_v27, %v2773_v22  ;;  %v1076_v24 = vadd.f32 %v2519_v36, %v1041_v62  ;;  %v1395_v55 = vmax.f32 %v1227_v37, 0.0 }
 0x1b1   : > { %v2802_v48 = vpop.eup %2156  ;;  %v782_v29 = vmul.f32 %v2752_v50, %v781_v15  ;;  %v2824_v15 = vsub.f32 %v2607_v26, %v441_v61  ;;  %v1397_v51 = vmax.f32 %v1229_v25, 0.0  ;;  %v1396_v13 = vmax.f32 %v1316_v17, 0.0 }
 0x1b2   : > { %v808_v41 = vmul.f32 %v2802_v48, %v2767_v19  ;;  %v1398_v33 = vmax.f32 %v1318_v58, 0.0  ;;  %v1103_v27 = vpack.c.bf16 %v1076_v24, %v1075_v60  ;;  %v503_v17 = vmul.f32 %v2814_v49, %v2814_v49 }
 0x1b3   : > { %v786_v61 = vsel %vm2809_vm6, %v2752_v50, %v782_v29  ;;  %v1459_v25 = vpack.c.bf16 %v1397_v51, %v1395_v55  ;;  %v505_v31 = vmul.f32 %v2824_v15, %v2824_v15  ;;  %v796_v29 = vsel %vm2833_vm7, %v2718_v42, %v792_v16  ;;  %v2862_v16 = vld [vmem:[%s2263_s30 + $0xc8] sm:$0xff] }
 0x1b4   : > { %v809_v37 = vmul.f32 %v2802_v48, %v808_v41  ;;  %v1460_v58 = vpack.c.bf16 %v1398_v33, %v1396_v13  ;;  %1998 = vmatmul.msk.bf16.gmra.mxu0 %vm317_vm0, %v1103_v27  ;;  %2014 = vmatmul.msk.bf16.gmra.mxu1 %vm317_vm0, %v1103_v27  ;;  %v799_v24 = vmul.f32 %v2796_v30, %v798_v35  ;;  %v571_v41 = vsel %vm317_vm0, %v503_v17, 0.0  ;;  %v2867_v17 = vld [vmem:[%s2263_s30 + $0xd8] sm:$0xff] }
 0x1b5   : > { %1627 = vmatmul.bf16.vlgmr.msra.gmra.mxu2 %v1459_v25  ;;  %v1007_v51 = vmul.f32 %v786_v61, %v2536_v46  ;;  %572 = vadd.xlane.f32.xlu0 %v571_v41  ;;  %v577_v60 = vsel %vm317_vm0, %v505_v31, 0.0  ;;  %v1008_v42 = vmul.f32 %v796_v29, %v2477_v52  ;;  %3574 = vst [vmem:[#allocation15_spill] sm:$0xff] %v2862_v16  ;;  %vm814_vm9 = vweird.f32 %v2802_v48 }
 0x1b6   : > { %v383_v32 = vpop.xlane.xlu1 %382  ;;  %v1231_v50 = vpop.f32.mrf.mxu0  ;;  %1716 = vmatmul.bf16.vlgmr.msra.gmra.mxu3 %v1460_v58  ;;  %391 = vadd.xlane.f32.xlu2 %v390_v43  ;;  %v810_v55 = vmul.f32 0.5, %v809_v37  ;;  %v800_v35 = vmul.f32 0.5, %v799_v24  ;;  %3575 = vst [vmem:[#allocation16_spill] sm:$0xff] %v2867_v17  ;;  %v393_v37 = vsel %vm317_vm0, %v2862_v16, 0.0  ;;  %vm2894_vm12 = vmor %vm813_vm8, %vm814_vm9 }
 0x1b7   : > { %v442_v33 = vmul.f32 %v2297_v20, %v383_v32  ;;  %v1320_v13 = vpop.f32.mrf.mxu1  ;;  %578 = vadd.xlane.f32.xlu1 %v577_v60  ;;  %v1042_v46 = vmul.f32 %v2499_v2, %v1007_v51  ;;  %v1232_v43 = vadd.f32 %v1231_v50, %v2760_v10  ;;  %v399_v32 = vsel %vm317_vm0, %v2867_v17, 0.0 }
 0x1b8   : > { %v811_v61 = vsub.f32 1.5, %v810_v55  ;;  %v1321_v52 = vadd.f32 %v1320_v13, %v2773_v22  ;;  %v1043_v29 = vmul.f32 %v2499_v2, %v1008_v42  ;;  %v801_v24 = vsub.f32 1.5, %v800_v35 }
 0x1b9   : > { %v2858_v62 = vsub.f32 %v2628_v23, %v442_v33  ;;  %v1077_v51 = vadd.f32 %v2519_v36, %v1042_v46  ;;  %v1399_v55 = vmax.f32 %v1232_v43, 0.0 }
 0x1ba   : > { %v812_v60 = vmul.f32 %v2802_v48, %v811_v61  ;;  %v1078_v46 = vadd.f32 %v2519_v36, %v1043_v29  ;;  %v802_v61 = vmul.f32 %v2796_v30, %v801_v24 }
 0x1bb   : > { %v506_v27 = vmul.f32 %v2858_v62, %v2858_v62 }
 0x1bc   : > { %v816_v24 = vsel %vm2894_vm12, %v2802_v48, %v812_v60 }
 0x1bd   : > { %v580_v25 = vsel %vm317_vm0, %v506_v27, 0.0  ;;  %394 = vadd.xlane.f32.xlu0 %v393_v37  ;;  %v1400_v37 = vmax.f32 %v1321_v52, 0.0  ;;  %v1104_v52 = vpack.c.bf16 %v1078_v46, %v1077_v51  ;;  %v1010_v51 = vmul.f32 %v816_v24, %v2578_v28 }
 0x1be   : > { %v386_v58 = vpop.xlane.xlu1 %385  ;;  %v1233_v31 = vpop.f32.mrf.mxu0  ;;  %581 = vadd.xlane.f32.xlu2 %v580_v25 }
 0x1bf   : > { %v443_v50 = vmul.f32 %v2297_v20, %v386_v58  ;;  %v1234_v41 = vadd.f32 %v1233_v31, %v2760_v10  ;;  %v1322_v33 = vpop.f32.mrf.mxu1  ;;  %400 = vadd.xlane.f32.xlu1 %v399_v32  ;;  %v2900_v58 = vld [vmem:[%s2263_s30 + $0xd0] sm:$0xff]  ;;  %v2906_v31 = vld [vmem:[%s2263_s30 + $0xe0] sm:$0xff] }
 0x1c0   : > { %v1323_v13 = vadd.f32 %v1322_v33, %v2773_v22  ;;  %3578 = vst [vmem:[#allocation17_spill] sm:$0xff] %v2900_v58  ;;  %v402_v21 = vsel %vm317_vm0, %v2906_v31, 0.0 }
 0x1c1   : > { %v2888_v42 = vsub.f32 %v2637_v39, %v443_v50  ;;  %v1401_v35 = vmax.f32 %v1234_v41, 0.0  ;;  %3579 = vst [vmem:[#allocation18_spill] sm:$0xff] %v2906_v31  ;;  %v396_v50 = vsel %vm317_vm0, %v2900_v58, 0.0 }
 0x1c2   : > { %v1402_v25 = vmax.f32 %v1323_v13, 0.0  ;;  %v806_v13 = vsel %vm2912_vm13, %v2796_v30, %v802_v61 }
 0x1c3   : > { %v1461_v43 = vpack.c.bf16 %v1401_v35, %v1399_v55  ;;  %v507_v32 = vmul.f32 %v2888_v42, %v2888_v42  ;;  %v1009_v60 = vmul.f32 %v806_v13, %v2529_v44  ;;  %v2932_v55 = vld [vmem:[%s2263_s30 + $0xe8] sm:$0xff]  ;;  %v1045_v35 = vmul.f32 %v2499_v2, %v1010_v51 }
 0x1c4   : > { %v1462_v29 = vpack.c.bf16 %v1402_v25, %v1400_v37  ;;  %1999 = vmatmul.msk.bf16.gmra.mxu0 %vm317_vm0, %v1104_v52  ;;  %2015 = vmatmul.msk.bf16.gmra.mxu1 %vm317_vm0, %v1104_v52  ;;  %v405_v30 = vsel %vm317_vm0, %v2932_v55, 0.0 }
 0x1c5   : > { %v583_v41 = vsel %vm317_vm0, %v507_v32, 0.0  ;;  %1632 = vmatmul.bf16.gmra.mxu2 %v1461_v43  ;;  %397 = vadd.xlane.f32.xlu0 %v396_v50  ;;  %v1044_v28 = vmul.f32 %v2499_v2, %v1009_v60  ;;  %v1080_v43 = vadd.f32 %v2519_v36, %v1045_v35  ;;  %v2945_v50 = vld [vmem:[%s2263_s30 + $0xf0] sm:$0xff] }
 0x1c6   : > { %v1236_v33 = vpop.f32.mrf.mxu0  ;;  %1721 = vmatmul.bf16.gmra.mxu3 %v1462_v29  ;;  %584 = vadd.xlane.f32.xlu2 %v583_v41  ;;  %v408_v13 = vsel %vm317_vm0, %v2945_v50, 0.0 }
 0x1c7   : > { %v1325_v48 = vpop.f32.mrf.mxu1  ;;  %403 = vadd.xlane.f32.xlu1 %v402_v21  ;;  %v1237_v27 = vadd.f32 %v1236_v33, %v2760_v10  ;;  %v1079_v24 = vadd.f32 %v2519_v36, %v1044_v28 }
 0x1c8   : > { %v1326_v37 = vadd.f32 %v1325_v48, %v2773_v22  ;;  %v627_v48 = vmul.f32 %v2789_v45, %v2297_v20 }
 0x1c9   : > { %v1403_v32 = vmax.f32 %v1237_v27, 0.0  ;;  %v1105_v21 = vpack.c.bf16 %v1080_v43, %v1079_v24 }
 0x1ca   : > { %v1404_v52 = vmax.f32 %v1326_v37, 0.0  ;;  %v659_v51 = vadd.f32 1e-05, %v627_v48 }
 0x1cc   : > { %2158 = vrsqrt.f32 %v659_v51  ;;  %vm823_vm14 = vweird.f32 %v659_v51 }
 0x1ce   : > { %v1238_v25 = vpop.f32.mrf.mxu0  ;;  %406 = vadd.xlane.f32.xlu2 %v405_v30 }
 0x1cf   : > { %v1239_v46 = vadd.f32 %v1238_v25, %v2760_v10  ;;  %v1327_v61 = vpop.f32.mrf.mxu1 }
 0x1d0   : > { %v1328_v44 = vadd.f32 %v1327_v61, %v2773_v22 }
 0x1d1   : > { %v1405_v19 = vmax.f32 %v1239_v46, 0.0 }
 0x1d2   : > { %v1406_v29 = vmax.f32 %v1328_v44, 0.0  ;;  %v2159_v60 = vpop.eup %2158 }
 0x1d3   : > { %v1463_v41 = vpack.c.bf16 %v1405_v19, %v1403_v32  ;;  %v818_v35 = vmul.f32 %v2159_v60, %v659_v51  ;;  %vm824_vm15 = vweird.f32 %v2159_v60 }
 0x1d4   : > { %v1464_v33 = vpack.c.bf16 %v1406_v29, %v1404_v52  ;;  %2000 = vmatmul.msk.bf16.gmra.mxu0 %vm317_vm0, %v1105_v21  ;;  %2016 = vmatmul.msk.bf16.gmra.mxu1 %vm317_vm0, %v1105_v21  ;;  %vm825_vm1 = vmor %vm823_vm14, %vm824_vm15 }
 0x1d5   : > { %1637 = vmatmul.bf16.gmra.mxu2 %v1463_v41  ;;  %v819_v27 = vmul.f32 %v2159_v60, %v818_v35 }
 0x1d6   : > { %1726 = vmatmul.bf16.gmra.mxu3 %v1464_v33  ;;  %409 = vadd.xlane.f32.xlu2 %v408_v13 }
 0x1d7   : > { %v820_v25 = vmul.f32 0.5, %v819_v27 }
 0x1d9   : > { %v821_v46 = vsub.f32 1.5, %v820_v25 }
 0x1db   : > { %v822_v32 = vmul.f32 %v2159_v60, %v821_v46 }
 0x1dd   : > { %v826_v29 = vsel %vm825_vm1, %v2159_v60, %v822_v32 }
 0x1de   : > { %v1011_v33 = vmul.f32 %v826_v29, %v2600_v3 }
 0x20f   : > { %v564_v30 = vpop.xlane.xlu2 %563 }
 0x210   : > { %v628_v37 = vmul.f32 %v564_v30, %v2297_v20 }
 0x212   : > { %v660_v28 = vadd.f32 1e-05, %v628_v37 }
 0x214   : > { %2160 = vrsqrt.f32 %v660_v28  ;;  %vm833_vm3 = vweird.f32 %v660_v28 }
 0x219   : > { %v567_v61 = vpop.xlane.xlu2 %566 }
 0x21a   : > { %v629_v44 = vmul.f32 %v567_v61, %v2297_v20  ;;  %v2161_v43 = vpop.eup %2160 }
 0x21b   : > { %v828_v45 = vmul.f32 %v2161_v43, %v660_v28  ;;  %vm834_vm2 = vweird.f32 %v2161_v43 }
 0x21c   : > { %v2955_v19 = vadd.f32 1e-05, %v629_v44  ;;  %vm835_vm4 = vmor %vm833_vm3, %vm834_vm2 }
 0x21d   : > { %v829_v52 = vmul.f32 %v2161_v43, %v828_v45 }
 0x21e   : > { %2162 = vrsqrt.f32 %v2955_v19  ;;  %vm843_vm6 = vweird.f32 %v2955_v19 }
 0x21f   : > { %v830_v24 = vmul.f32 0.5, %v829_v52  ;;  %v1046_v52 = vmul.f32 %v2499_v2, %v1011_v33 }
 0x220   : > { %v1241_v21 = vpop.f32.mrf.mxu0  ;;  %v570_v35 = vpop.xlane.xlu0 %569 }
 0x221   : > { %v389_v41 = vpop.xlane.xlu2 %388  ;;  %v831_v13 = vsub.f32 1.5, %v830_v24  ;;  %v630_v30 = vmul.f32 %v570_v35, %v2297_v20  ;;  %v1330_v37 = vpop.f32.mrf.mxu1 }
 0x222   : > { %v444_v48 = vmul.f32 %v2297_v20, %v389_v41  ;;  %v576_v51 = vpop.xlane.xlu1 %575 }
 0x223   : > { %v632_v27 = vmul.f32 %v576_v51, %v2297_v20  ;;  %v832_v46 = vmul.f32 %v2161_v43, %v831_v13  ;;  %v2971_v44 = vadd.f32 1e-05, %v630_v30 }
 0x224   : > { %v2962_v25 = vpop.eup %2162  ;;  %v2965_v60 = vsub.f32 %v2763_v14, %v444_v48  ;;  %v1242_v48 = vadd.f32 %v1241_v21, %v2760_v10 }
 0x225   : > { %v838_v3 = vmul.f32 %v2962_v25, %v2955_v19  ;;  %v2969_v61 = vadd.f32 1e-05, %v632_v27  ;;  %v836_v32 = vsel %vm835_vm4, %v2161_v43, %v832_v46  ;;  %2164 = vrsqrt.f32 %v2971_v44 }
 0x226   : > { %v508_v45 = vmul.f32 %v2965_v60, %v2965_v60  ;;  %v1012_v29 = vmul.f32 %v836_v32, %v2708_v18  ;;  %v1081_v18 = vadd.f32 %v2519_v36, %v1046_v52  ;;  %vm844_vm5 = vweird.f32 %v2962_v25 }
 0x227   : > { %v839_v28 = vmul.f32 %v2962_v25, %v838_v3  ;;  %2166 = vrsqrt.f32 %v2969_v61  ;;  %vm3008_vm7 = vmor %vm843_vm6, %vm844_vm5  ;;  %vm853_vm8 = vweird.f32 %v2971_v44  ;;  %vm873_vm11 = vweird.f32 %v2969_v61 }
 0x228   : > { %v586_v24 = vsel %vm317_vm0, %v508_v45, 0.0  ;;  %v1243_v13 = vpop.f32.mrf.mxu0  ;;  %v1047_v43 = vmul.f32 %v2499_v2, %v1012_v29  ;;  %v573_v35 = vpop.xlane.xlu0 %572 }
 0x229   : > { %v840_v41 = vmul.f32 0.5, %v839_v28  ;;  %587 = vadd.xlane.f32.xlu0 %v586_v24  ;;  %v392_v51 = vpop.xlane.xlu2 %391  ;;  %v1244_v33 = vadd.f32 %v1243_v13, %v2760_v10  ;;  %v631_v3 = vmul.f32 %v573_v35, %v2297_v20  ;;  %v1332_v32 = vpop.f32.mrf.mxu1  ;;  %v1331_v28 = vadd.f32 %v1330_v37, %v2773_v22 }
 0x22a   : > { %v445_v30 = vmul.f32 %v2297_v20, %v392_v51  ;;  %v579_v46 = vpop.xlane.xlu1 %578  ;;  %v1082_v45 = vadd.f32 %v2519_v36, %v1047_v43  ;;  %v1333_v2 = vadd.f32 %v1332_v32, %v2773_v22  ;;  %v1407_v35 = vmax.f32 %v1242_v48, 0.0 }
 0x22b   : > { %v841_v27 = vsub.f32 1.5, %v840_v41  ;;  %v2993_v29 = vadd.f32 1e-05, %v631_v3  ;;  %v1409_v24 = vmax.f32 %v1244_v33, 0.0  ;;  %v2995_v41 = vpop.eup %2164  ;;  %v633_v51 = vmul.f32 %v579_v46, %v2297_v20 }
 0x22c   : > { %v2991_v21 = vsub.f32 %v2819_v38, %v445_v30  ;;  %v1106_v52 = vpack.c.bf16 %v1082_v45, %v1081_v18  ;;  %v1410_v36 = vmax.f32 %v1333_v2, 0.0  ;;  %v848_v37 = vmul.f32 %v2995_v41, %v2971_v44 }
 0x22d   : > { %v842_v13 = vmul.f32 %v2962_v25, %v841_v27  ;;  %v3000_v43 = vpop.eup %2166  ;;  %2168 = vrsqrt.f32 %v2993_v29  ;;  %v1408_v33 = vmax.f32 %v1331_v28, 0.0  ;;  %v1465_v46 = vpack.c.bf16 %v1409_v24, %v1407_v35 }
 0x22e   : > { %2001 = vmatmul.msk.bf16.gmra.mxu0 %vm317_vm0, %v1106_v52  ;;  %2017 = vmatmul.msk.bf16.gmra.mxu1 %vm317_vm0, %v1106_v52  ;;  %v849_v27 = vmul.f32 %v2995_v41, %v848_v37  ;;  %v509_v30 = vmul.f32 %v2991_v21, %v2991_v21  ;;  %v868_v3 = vmul.f32 %v3000_v43, %v2969_v61  ;;  %v3020_v32 = vadd.f32 1e-05, %v633_v51 }
 0x22f   : > { %v846_v48 = vsel %vm3008_vm7, %v2962_v25, %v842_v13  ;;  %v1466_v19 = vpack.c.bf16 %v1410_v36, %v1408_v33  ;;  %1642 = vmatmul.bf16.gmra.mxu2 %v1465_v46  ;;  %vm854_vm9 = vweird.f32 %v2995_v41  ;;  %vm874_vm12 = vweird.f32 %v3000_v43 }
 0x230   : > { %v395_v28 = vpop.xlane.xlu0 %394  ;;  %v850_v2 = vmul.f32 0.5, %v849_v27  ;;  %v589_v52 = vsel %vm317_vm0, %v509_v30, 0.0  ;;  %v1013_v27 = vmul.f32 %v846_v48, %v2728_v53  ;;  %vm3045_vm10 = vmor %vm853_vm8, %vm854_vm9  ;;  %2170 = vrsqrt.f32 %v3020_v32 }
 0x231   : > { %v582_v45 = vpop.xlane.xlu2 %581  ;;  %v446_v35 = vmul.f32 %v2297_v20, %v395_v28  ;;  %v1246_v18 = vpop.f32.mrf.mxu0  ;;  %590 = vadd.xlane.f32.xlu0 %v589_v52  ;;  %1731 = vmatmul.bf16.gmra.mxu3 %v1466_v19  ;;  %v869_v19 = vmul.f32 %v3000_v43, %v868_v3  ;;  %vm863_vm13 = vweird.f32 %v2993_v29  ;;  %vm3143_vm1 = vmor %vm873_vm11, %vm874_vm12  ;;  %vm883_vm4 = vweird.f32 %v3020_v32 }
 0x232   : > { %v634_v37 = vmul.f32 %v582_v45, %v2297_v20  ;;  %v401_v24 = vpop.xlane.xlu1 %400  ;;  %v1335_v13 = vpop.f32.mrf.mxu1  ;;  %v851_v36 = vsub.f32 1.5, %v850_v2  ;;  %v3039_v45 = vld [vmem:[%s2263_s30 + $0xf8] sm:$0xff]  ;;  %v3075_v2 = vld [vmem:[%s3523_s1] ss:$0 sm:$0xff] }
 0x233   : > { %v448_v25 = vmul.f32 %v2297_v20, %v401_v24  ;;  %v3028_v51 = vpop.eup %2168  ;;  %v3051_v53 = vsub.f32 %v2862_v16, %v446_v35  ;;  %v411_v3 = vsel %vm317_vm0, %v3039_v45, 0.0  ;;  %v3063_v35 = vld [vmem:[%s3528_s6] ss:$0 sm:$0xff]  ;;  %v870_v16 = vmul.f32 0.5, %v869_v19 }
 0x234   : > { %v3030_v33 = vadd.f32 1e-05, %v634_v37  ;;  %v858_v30 = vmul.f32 %v3028_v51, %v2993_v29  ;;  %v852_v28 = vmul.f32 %v2995_v41, %v851_v36  ;;  %vm864_vm14 = vweird.f32 %v3028_v51 }
 0x235   : > { %v3036_v46 = vsub.f32 %v2867_v17, %v448_v25  ;;  %v871_v40 = vsub.f32 1.5, %v870_v16  ;;  %vm3129_vm15 = vmor %vm863_vm13, %vm864_vm14 }
 0x236   : > { %v859_v48 = vmul.f32 %v3028_v51, %v858_v30  ;;  %2172 = vrsqrt.f32 %v3030_v33  ;;  %v856_v44 = vsel %vm3045_vm10, %v2995_v41, %v852_v28  ;;  %v510_v41 = vmul.f32 %v3051_v53, %v3051_v53  ;;  %v3082_v26 = vpop.eup %2170 }
 0x237   : > { %v512_v30 = vmul.f32 %v3036_v46, %v3036_v46  ;;  %vm893_vm2 = vweird.f32 %v3030_v33  ;;  %vm884_vm5 = vweird.f32 %v3082_v26 }
 0x238   : > { %v1628_v52 = vpop.f32.mrf.mxu2  ;;  %v860_v24 = vmul.f32 0.5, %v859_v48  ;;  %v398_v17 = vpop.xlane.xlu0 %397  ;;  %v1048_v48 = vmul.f32 %v3075_v2, %v1013_v27  ;;  %v1014_v27 = vmul.f32 %v856_v44, %v2758_v5  ;;  %vm885_vm7 = vmor %vm883_vm4, %vm884_vm5 }
 0x239   : > { %v1717_v37 = vpop.f32.mrf.mxu3  ;;  %v3065_v36 = vpop.xlane.xlu2 %584  ;;  %412 = vadd.xlane.f32.xlu0 %v411_v3  ;;  %v598_v14 = vsel %vm317_vm0, %v512_v30, 0.0  ;;  %v447_v39 = vmul.f32 %v2297_v20, %v398_v17  ;;  %v1336_v3 = vadd.f32 %v1335_v13, %v2773_v22  ;;  %v878_v13 = vmul.f32 %v3082_v26, %v3020_v32 }
 0x23a   : > { %v1718_v25 = vadd.f32 %v1717_v37, %v1628_v52  ;;  %v404_v38 = vpop.xlane.xlu1 %403  ;;  %v1248_v28 = vpop.f32.mrf.mxu0  ;;  %v2195_v52 = vld [vmem:[%s2263_s30] sm:$0xff]  ;;  %599 = vadd.xlane.f32.xlu2 %v598_v14  ;;  %v861_v17 = vsub.f32 1.5, %v860_v24 }
 0x23b   : > { %v449_v19 = vmul.f32 %v2297_v20, %v404_v38  ;;  %v1337_v23 = vpop.f32.mrf.mxu1  ;;  %v592_v38 = vsel %vm317_vm0, %v510_v41, 0.0  ;;  %v3107_v14 = vld [vmem:[%s3524_s2] ss:$0 sm:$0xff]  ;;  %v3115_v44 = vsub.f32 %v2900_v58, %v447_v39  ;;  %v1249_v16 = vadd.f32 %v1248_v28, %v2760_v10 }
 0x23c   : > { %v1797_v37 = vadd.f32 %v2195_v52, %v1718_v25  ;;  %v1247_v25 = vadd.f32 %v1246_v18, %v2760_v10  ;;  %593 = vadd.xlane.f32.xlu1 %v592_v38  ;;  %v3098_v52 = vpop.eup %2172  ;;  %v1083_v18 = vadd.f32 %v3107_v14, %v1048_v48  ;;  %v1338_v24 = vadd.f32 %v1337_v23, %v2773_v22 }
 0x23d   : > { %v3102_v5 = vsub.f32 %v2906_v31, %v449_v19  ;;  %v1049_v19 = vmul.f32 %v3075_v2, %v1014_v27  ;;  %v862_v59 = vmul.f32 %v3028_v51, %v861_v17  ;;  %v1413_v39 = vmax.f32 %v1249_v16, 0.0 }
 0x23e   : > { %v1833_v30 = vadd.f32 %v3063_v35, %v1797_v37  ;;  %v1411_v41 = vmax.f32 %v1247_v25, 0.0  ;;  %v1412_v37 = vmax.f32 %v1336_v3, 0.0  ;;  %v1414_v58 = vmax.f32 %v1338_v24, 0.0 }
 0x23f   : > { %v513_v48 = vmul.f32 %v3102_v5, %v3102_v5  ;;  %v1084_v28 = vadd.f32 %v3107_v14, %v1049_v19  ;;  %v872_v16 = vmul.f32 %v3000_v43, %v871_v40  ;;  %v511_v29 = vmul.f32 %v3115_v44, %v3115_v44 }
 0x240   : > { %1865 = vst.msk [vmem:[%s3089_s8] sm:$0xff] %vm317_vm0, %v1833_v30  ;;  %v1630_v38 = vpop.f32.mrf.mxu2  ;;  %v888_v30 = vmul.f32 %v3098_v52, %v3030_v33  ;;  %v1467_v24 = vpack.c.bf16 %v1413_v39, %v1411_v41  ;;  %v1468_v9 = vpack.c.bf16 %v1414_v58, %v1412_v37  ;;  %v866_v58 = vsel %vm3129_vm15, %v3028_v51, %v862_v59 }
 0x241   : > { %v1719_v31 = vpop.f32.mrf.mxu3  ;;  %v407_v11 = vpop.xlane.xlu2 %406  ;;  %v601_v3 = vsel %vm317_vm0, %v513_v48, 0.0  ;;  %v595_v61 = vsel %vm317_vm0, %v511_v29, 0.0  ;;  %v879_v37 = vmul.f32 %v3082_v26, %v878_v13  ;;  %v1015_v59 = vmul.f32 %v866_v58, %v2814_v49 }
 0x242   : > { %v1720_v27 = vadd.f32 %v1719_v31, %v1630_v38  ;;  %v450_v25 = vmul.f32 %v2297_v20, %v407_v11  ;;  %v1251_v17 = vpop.f32.mrf.mxu0  ;;  %602 = vadd.xlane.f32.xlu0 %v601_v3  ;;  %v1107_v11 = vpack.c.bf16 %v1084_v28, %v1083_v18  ;;  %v889_v41 = vmul.f32 %v3098_v52, %v888_v30 }
 0x243   : > { %v1340_v63 = vpop.f32.mrf.mxu1  ;;  %1647 = vmatmul.bf16.gmra.mxu2 %v1467_v24  ;;  %1736 = vmatmul.bf16.gmra.mxu3 %v1468_v9  ;;  %v876_v18 = vsel %vm3143_vm1, %v3000_v43, %v872_v16  ;;  %v880_v23 = vmul.f32 0.5, %v879_v37  ;;  %v1252_v43 = vadd.f32 %v1251_v17, %v2760_v10  ;;  %v1050_v31 = vmul.f32 %v3075_v2, %v1015_v59 }
 0x244   : > { %v1798_v19 = vadd.f32 %v1720_v27, %v2281_v7  ;;  %v3149_v40 = vsub.f32 %v2932_v55, %v450_v25  ;;  %2002 = vmatmul.msk.bf16.gmra.mxu0 %vm317_vm0, %v1107_v11  ;;  %2018 = vmatmul.msk.bf16.gmra.mxu1 %vm317_vm0, %v1107_v11  ;;  %v890_v38 = vmul.f32 0.5, %v889_v41  ;;  %v1016_v39 = vmul.f32 %v876_v18, %v2770_v54 }
 0x245   : > { %596 = vadd.xlane.f32.xlu1 %v595_v61  ;;  %v1341_v49 = vadd.f32 %v1340_v63, %v2773_v22  ;;  %v881_v41 = vsub.f32 1.5, %v880_v23  ;;  %vm894_vm3 = vweird.f32 %v3098_v52  ;;  %v1415_v61 = vmax.f32 %v1252_v43, 0.0 }
 0x246   : > { %v1834_v7 = vadd.f32 %v3063_v35, %v1798_v19  ;;  %v514_v13 = vmul.f32 %v3149_v40, %v3149_v40  ;;  %v891_v11 = vsub.f32 1.5, %v890_v38  ;;  %v1051_v63 = vmul.f32 %v3075_v2, %v1016_v39  ;;  %vm3197_vm6 = vmor %vm893_vm2, %vm894_vm3 }
 0x247   : > { %v1416_v37 = vmax.f32 %v1341_v49, 0.0 }
 0x248   : > { %1866 = vst.msk [vmem:[%s3089_s8 + $0x8] sm:$0xff] %vm317_vm0, %v1834_v7  ;;  %v1633_v9 = vpop.f32.mrf.mxu2  ;;  %v604_v29 = vsel %vm317_vm0, %v514_v13, 0.0  ;;  %v1085_v7 = vadd.f32 %v3107_v14, %v1050_v31  ;;  %v1086_v39 = vadd.f32 %v3107_v14, %v1051_v63 }
 0x249   : > { %v1722_v51 = vpop.f32.mrf.mxu3  ;;  %v410_v30 = vpop.xlane.xlu2 %409 }
 0x24a   : > { %v1723_v48 = vadd.f32 %v1722_v51, %v1633_v9  ;;  %v451_v28 = vmul.f32 %v2297_v20, %v410_v30  ;;  %v1253_v27 = vpop.f32.mrf.mxu0  ;;  %v892_v51 = vmul.f32 %v3098_v52, %v891_v11  ;;  %v1108_v49 = vpack.c.bf16 %v1086_v39, %v1085_v7 }
 0x24b   : > { %v1254_v3 = vadd.f32 %v1253_v27, %v2760_v10  ;;  %v1342_v16 = vpop.f32.mrf.mxu1  ;;  %v635_v39 = vmul.f32 %v3065_v36, %v2297_v20 }
 0x24c   : > { %v1799_v25 = vadd.f32 %v1723_v48, %v2266_v0  ;;  %v3175_v24 = vsub.f32 %v2945_v50, %v451_v28  ;;  %v1343_v54 = vadd.f32 %v1342_v16, %v2773_v22  ;;  %v882_v28 = vmul.f32 %v3082_v26, %v881_v41 }
 0x24d   : > { %v1417_v19 = vmax.f32 %v1254_v3, 0.0  ;;  %605 = vadd.xlane.f32.xlu1 %v604_v29  ;;  %v896_v33 = vsel %vm3197_vm6, %v3098_v52, %v892_v51 }
 0x24e   : > { %v1835_v17 = vadd.f32 %v3063_v35, %v1799_v25  ;;  %v1418_v0 = vmax.f32 %v1343_v54, 0.0  ;;  %v515_v58 = vmul.f32 %v3175_v24, %v3175_v24  ;;  %v1018_v32 = vmul.f32 %v896_v33, %v2858_v62 }
 0x24f   : > { %v1469_v13 = vpack.c.bf16 %v1417_v19, %v1415_v61 }
 0x250   : > { %1867 = vst.msk [vmem:[%s3089_s8 + $0x10] sm:$0xff] %vm317_vm0, %v1835_v17  ;;  %v1635_v18 = vpop.f32.mrf.mxu2  ;;  %v607_v9 = vsel %vm317_vm0, %v515_v58, 0.0  ;;  %v1470_v48 = vpack.c.bf16 %v1418_v0, %v1416_v37  ;;  %v1053_v62 = vmul.f32 %v3075_v2, %v1018_v32 }
 0x251   : > { %v1724_v59 = vpop.f32.mrf.mxu3  ;;  %608 = vadd.xlane.f32.xlu2 %v607_v9 }
 0x252   : > { %v1725_v38 = vadd.f32 %v1724_v59, %v1635_v18  ;;  %v1256_v23 = vpop.f32.mrf.mxu0 }
 0x253   : > { %v1345_v43 = vpop.f32.mrf.mxu1  ;;  %1652 = vmatmul.bf16.gmra.mxu2 %v1469_v13  ;;  %1741 = vmatmul.bf16.gmra.mxu3 %v1470_v48  ;;  %v1257_v31 = vadd.f32 %v1256_v23, %v2760_v10  ;;  %v667_v23 = vadd.f32 1e-05, %v635_v39 }
 0x254   : > { %v1800_v27 = vadd.f32 %v1725_v38, %v2278_v6  ;;  %2003 = vmatmul.msk.bf16.gmra.mxu0 %vm317_vm0, %v1108_v49  ;;  %2019 = vmatmul.msk.bf16.gmra.mxu1 %vm317_vm0, %v1108_v49  ;;  %v886_v6 = vsel %vm885_vm7, %v3082_v26, %v882_v28  ;;  %v1346_v11 = vadd.f32 %v1345_v43, %v2773_v22 }
 0x255   : > { %v1017_v52 = vmul.f32 %v886_v6, %v2824_v15  ;;  %v1419_v61 = vmax.f32 %v1257_v31, 0.0  ;;  %2174 = vrsqrt.f32 %v667_v23  ;;  %vm903_vm8 = vweird.f32 %v667_v23 }
 0x256   : > { %v1836_v25 = vadd.f32 %v3063_v35, %v1800_v27  ;;  %v1420_v37 = vmax.f32 %v1346_v11, 0.0 }
 0x257   : > { %v1052_v15 = vmul.f32 %v3075_v2, %v1017_v52 }
 0x258   : > { %1868 = vst.msk [vmem:[%s3089_s8 + $0x18] sm:$0xff] %vm317_vm0, %v1836_v25  ;;  %v1638_v3 = vpop.f32.mrf.mxu2 }
 0x259   : > { %v1727_v16 = vpop.f32.mrf.mxu3  ;;  %v1087_v13 = vadd.f32 %v3107_v14, %v1052_v15 }
 0x25a   : > { %v1728_v29 = vadd.f32 %v1727_v16, %v1638_v3  ;;  %v1258_v54 = vpop.f32.mrf.mxu0 }
 0x25b   : > { %v1259_v19 = vadd.f32 %v1258_v54, %v2760_v10  ;;  %v1347_v26 = vpop.f32.mrf.mxu1  ;;  %v2175_v28 = vpop.eup %2174 }
 0x25c   : > { %v1801_v17 = vadd.f32 %v1728_v29, %v2273_v4  ;;  %v1348_v0 = vadd.f32 %v1347_v26, %v2773_v22  ;;  %v1088_v4 = vadd.f32 %v3107_v14, %v1053_v62  ;;  %v898_v27 = vmul.f32 %v2175_v28, %v667_v23 }
 0x25d   : > { %v1421_v58 = vmax.f32 %v1259_v19, 0.0  ;;  %vm904_vm9 = vweird.f32 %v2175_v28 }
 0x25e   : > { %v1837_v63 = vadd.f32 %v3063_v35, %v1801_v17  ;;  %v1422_v41 = vmax.f32 %v1348_v0, 0.0  ;;  %v1109_v48 = vpack.c.bf16 %v1088_v4, %v1087_v13  ;;  %v899_v49 = vmul.f32 %v2175_v28, %v898_v27  ;;  %vm905_vm10 = vmor %vm903_vm8, %vm904_vm9 }
 0x25f   : > { %v1471_v59 = vpack.c.bf16 %v1421_v58, %v1419_v61 }
 0x260   : > { %1869 = vst.msk [vmem:[%s3089_s8 + $0x20] sm:$0xff] %vm317_vm0, %v1837_v63  ;;  %v1640_v7 = vpop.f32.mrf.mxu2  ;;  %v1472_v51 = vpack.c.bf16 %v1422_v41, %v1420_v37  ;;  %v900_v25 = vmul.f32 0.5, %v899_v49 }
 0x261   : > { %v1729_v18 = vpop.f32.mrf.mxu3 }
 0x262   : > { %v1730_v9 = vadd.f32 %v1729_v18, %v1640_v7  ;;  %v901_v6 = vsub.f32 1.5, %v900_v25 }
 0x263   : > { %1657 = vmatmul.bf16.gmra.mxu2 %v1471_v59  ;;  %1746 = vmatmul.bf16.gmra.mxu3 %v1472_v51 }
 0x264   : > { %v1802_v38 = vadd.f32 %v1730_v9, %v2284_v8  ;;  %2004 = vmatmul.msk.bf16.gmra.mxu0 %vm317_vm0, %v1109_v48  ;;  %2020 = vmatmul.msk.bf16.gmra.mxu1 %vm317_vm0, %v1109_v48  ;;  %v902_v36 = vmul.f32 %v2175_v28, %v901_v6 }
 0x266   : > { %v1838_v30 = vadd.f32 %v3063_v35, %v1802_v38  ;;  %v906_v19 = vsel %vm905_vm10, %v2175_v28, %v902_v36 }
 0x267   : > { %v1019_v41 = vmul.f32 %v906_v19, %v2888_v42 }
 0x268   : > { %1870 = vst.msk [vmem:[%s3089_s8 + $0x28] sm:$0xff] %vm317_vm0, %v1838_v30 }
 0x269   : > { %v1054_v28 = vmul.f32 %v3075_v2, %v1019_v41 }
 0x26b   : > { %v1089_v36 = vadd.f32 %v3107_v14, %v1054_v28 }
 0x29c   : > { %v588_v43 = vpop.xlane.xlu0 %587 }
 0x29d   : > { %v636_v8 = vmul.f32 %v588_v43, %v2297_v20 }
 0x29f   : > { %v668_v33 = vadd.f32 1e-05, %v636_v8 }
 0x2a1   : > { %2176 = vrsqrt.f32 %v668_v33  ;;  %vm913_vm12 = vweird.f32 %v668_v33 }
 0x2a4   : > { %v591_v3 = vpop.xlane.xlu0 %590 }
 0x2a5   : > { %v637_v29 = vmul.f32 %v591_v3, %v2297_v20 }
 0x2a7   : > { %v2177_v32 = vpop.eup %2176  ;;  %v3241_v54 = vadd.f32 1e-05, %v637_v29 }
 0x2a8   : > { %v908_v16 = vmul.f32 %v2177_v32, %v668_v33  ;;  %vm914_vm11 = vweird.f32 %v2177_v32 }
 0x2a9   : > { %2178 = vrsqrt.f32 %v3241_v54  ;;  %vm915_vm13 = vmor %vm913_vm12, %vm914_vm11  ;;  %vm923_vm15 = vweird.f32 %v3241_v54 }
 0x2aa   : > { %v909_v52 = vmul.f32 %v2177_v32, %v908_v16 }
 0x2ab   : > { %v1261_v11 = vpop.f32.mrf.mxu0  ;;  %v1350_v17 = vpop.f32.mrf.mxu1 }
 0x2ac   : > { %v910_v31 = vmul.f32 0.5, %v909_v52  ;;  %v413_v0 = vpop.xlane.xlu0 %412  ;;  %v1262_v42 = vadd.f32 %v1261_v11, %v2760_v10  ;;  %v1351_v38 = vadd.f32 %v1350_v17, %v2773_v22 }
 0x2ad   : > { %v600_v63 = vpop.xlane.xlu2 %599  ;;  %v452_v58 = vmul.f32 %v2297_v20, %v413_v0 }
 0x2ae   : > { %v911_v26 = vsub.f32 1.5, %v910_v31  ;;  %v640_v15 = vmul.f32 %v600_v63, %v2297_v20  ;;  %v1423_v33 = vmax.f32 %v1262_v42, 0.0  ;;  %v1424_v3 = vmax.f32 %v1351_v38, 0.0 }
 0x2af   : > { %v594_v61 = vpop.xlane.xlu1 %593  ;;  %v3247_v37 = vpop.eup %2178  ;;  %v3251_v18 = vsub.f32 %v3039_v45, %v452_v58 }
 0x2b0   : > { %v912_v62 = vmul.f32 %v2177_v32, %v911_v26  ;;  %v638_v7 = vmul.f32 %v594_v61, %v2297_v20  ;;  %v918_v9 = vmul.f32 %v3247_v37, %v3241_v54  ;;  %v3256_v51 = vadd.f32 1e-05, %v640_v15 }
 0x2b1   : > { %v516_v48 = vmul.f32 %v3251_v18, %v3251_v18  ;;  %vm924_vm14 = vweird.f32 %v3247_v37 }
 0x2b2   : > { %v916_v4 = vsel %vm915_vm13, %v2177_v32, %v912_v62  ;;  %v670_v13 = vadd.f32 1e-05, %v638_v7  ;;  %v919_v23 = vmul.f32 %v3247_v37, %v918_v9  ;;  %2180 = vrsqrt.f32 %v3256_v51  ;;  %v1643_v27 = vpop.f32.mrf.mxu2  ;;  %vm925_vm3 = vmor %vm923_vm15, %vm924_vm14 }
 0x2b3   : > { %v1020_v59 = vmul.f32 %v916_v4, %v2965_v60  ;;  %v1263_v30 = vpop.f32.mrf.mxu0  ;;  %v1352_v39 = vpop.f32.mrf.mxu1  ;;  %v610_v43 = vsel %vm317_vm0, %v516_v48, 0.0  ;;  %vm953_vm7 = vweird.f32 %v3256_v51 }
 0x2b4   : > { %v1264_v60 = vadd.f32 %v1263_v30, %v2760_v10  ;;  %2182 = vrsqrt.f32 %v670_v13  ;;  %v1353_v8 = vadd.f32 %v1352_v39, %v2773_v22  ;;  %v920_v49 = vmul.f32 0.5, %v919_v23  ;;  %v1732_v25 = vpop.f32.mrf.mxu3  ;;  %611 = vadd.xlane.f32.xlu0 %v610_v43 }
 0x2b5   : > { %v1055_v32 = vmul.f32 %v3075_v2, %v1020_v59  ;;  %v1733_v16 = vadd.f32 %v1732_v25, %v1643_v27  ;;  %v603_v17 = vpop.xlane.xlu0 %602  ;;  %vm933_vm1 = vweird.f32 %v670_v13 }
 0x2b6   : > { %v1425_v6 = vmax.f32 %v1264_v60, 0.0  ;;  %v1426_v29 = vmax.f32 %v1353_v8, 0.0  ;;  %v921_v0 = vsub.f32 1.5, %v920_v49  ;;  %v641_v4 = vmul.f32 %v603_v17, %v2297_v20 }
 0x2b7   : > { %v1090_v52 = vadd.f32 %v3107_v14, %v1055_v32  ;;  %v1803_v11 = vadd.f32 %v1733_v16, %v2293_v12 }
 0x2b8   : > { %v1473_v31 = vpack.c.bf16 %v1425_v6, %v1423_v33  ;;  %v1474_v19 = vpack.c.bf16 %v1426_v29, %v1424_v3  ;;  %v3272_v26 = vpop.eup %2180  ;;  %v597_v62 = vpop.xlane.xlu1 %596  ;;  %v922_v9 = vmul.f32 %v3247_v37, %v921_v0  ;;  %v3286_v39 = vadd.f32 1e-05, %v641_v4 }
 0x2b9   : > { %v1110_v63 = vpack.c.bf16 %v1090_v52, %v1089_v36  ;;  %v1839_v41 = vadd.f32 %v3063_v35, %v1803_v11  ;;  %v639_v15 = vmul.f32 %v597_v62, %v2297_v20  ;;  %v948_v12 = vmul.f32 %v3272_v26, %v3256_v51 }
 0x2ba   : > { %1662 = vmatmul.bf16.gmra.mxu2 %v1473_v31  ;;  %v2183_v58 = vpop.eup %2182  ;;  %1751 = vmatmul.bf16.gmra.mxu3 %v1474_v19  ;;  %v1645_v59 = vpop.f32.mrf.mxu2  ;;  %v926_v28 = vsel %vm925_vm3, %v3247_v37, %v922_v9  ;;  %vm954_vm8 = vweird.f32 %v3272_v26  ;;  %vm963_vm13 = vweird.f32 %v3286_v39 }
 0x2bb   : > { %v928_v61 = vmul.f32 %v2183_v58, %v670_v13  ;;  %2005 = vmatmul.msk.bf16.gmra.mxu0 %vm317_vm0, %v1110_v63  ;;  %2021 = vmatmul.msk.bf16.gmra.mxu1 %vm317_vm0, %v1110_v63  ;;  %1871 = vst.msk [vmem:[%s3089_s8 + $0x30] sm:$0xff] %vm317_vm0, %v1839_v41  ;;  %v671_v7 = vadd.f32 1e-05, %v639_v15  ;;  %vm934_vm2 = vweird.f32 %v2183_v58  ;;  %v949_v23 = vmul.f32 %v3272_v26, %v948_v12  ;;  %vm3329_vm10 = vmor %vm953_vm7, %vm954_vm8 }
 0x2bc   : > { %v1734_v38 = vpop.f32.mrf.mxu3  ;;  %vm935_vm4 = vmor %vm933_vm1, %vm934_vm2  ;;  %v1021_v6 = vmul.f32 %v926_v28, %v2991_v21 }
 0x2bd   : > { %v929_v42 = vmul.f32 %v2183_v58, %v928_v61  ;;  %2184 = vrsqrt.f32 %v671_v7  ;;  %v1735_v48 = vadd.f32 %v1734_v38, %v1645_v59  ;;  %v950_v32 = vmul.f32 0.5, %v949_v23 }
 0x2be   : > { %2186 = vrsqrt.f32 %v3286_v39  ;;  %vm943_vm5 = vweird.f32 %v671_v7  ;;  %v1056_v17 = vmul.f32 %v3075_v2, %v1021_v6 }
 0x2bf   : > { %v930_v30 = vmul.f32 0.5, %v929_v42  ;;  %v1804_v60 = vadd.f32 %v1735_v48, %v2310_v34  ;;  %v951_v31 = vsub.f32 1.5, %v950_v32 }
 0x2c0   : > { %v606_v43 = vpop.xlane.xlu1 %605  ;;  %v1091_v38 = vadd.f32 %v3107_v14, %v1056_v17 }
 0x2c1   : > { %v931_v27 = vsub.f32 1.5, %v930_v30  ;;  %v1840_v54 = vadd.f32 %v3063_v35, %v1804_v60  ;;  %v1266_v8 = vpop.f32.mrf.mxu0  ;;  %v1355_v49 = vpop.f32.mrf.mxu1  ;;  %v642_v13 = vmul.f32 %v606_v43, %v2297_v20  ;;  %v952_v59 = vmul.f32 %v3272_v26, %v951_v31 }
 0x2c2   : > { %v1267_v0 = vadd.f32 %v1266_v8, %v2760_v10  ;;  %v1356_v62 = vadd.f32 %v1355_v49, %v2773_v22 }
 0x2c3   : > { %v932_v33 = vmul.f32 %v2183_v58, %v931_v27  ;;  %v2185_v25 = vpop.eup %2184  ;;  %1872 = vst.msk [vmem:[%s3089_s8 + $0x38] sm:$0xff] %vm317_vm0, %v1840_v54  ;;  %v3298_v16 = vadd.f32 1e-05, %v642_v13  ;;  %v956_v32 = vsel %vm3329_vm10, %v3272_v26, %v952_v59 }
 0x2c4   : > { %v938_v37 = vmul.f32 %v2185_v25, %v671_v7  ;;  %v3302_v21 = vpop.eup %2186  ;;  %vm944_vm6 = vweird.f32 %v2185_v25  ;;  %v1427_v30 = vmax.f32 %v1267_v0, 0.0  ;;  %v1428_v8 = vmax.f32 %v1356_v62, 0.0 }
 0x2c5   : > { %v936_v34 = vsel %vm935_vm4, %v2183_v58, %v932_v33  ;;  %2188 = vrsqrt.f32 %v3298_v16  ;;  %vm3315_vm9 = vmor %vm943_vm5, %vm944_vm6  ;;  %v1024_v31 = vmul.f32 %v956_v32, %v3036_v46  ;;  %vm973_vm11 = vweird.f32 %v3298_v16 }
 0x2c6   : > { %v1022_v3 = vmul.f32 %v936_v34, %v3051_v53  ;;  %v939_v29 = vmul.f32 %v2185_v25, %v938_v37  ;;  %v1648_v36 = vpop.f32.mrf.mxu2  ;;  %v1737_v52 = vpop.f32.mrf.mxu3  ;;  %vm964_vm14 = vweird.f32 %v3302_v21 }
 0x2c7   : > { %v1738_v11 = vadd.f32 %v1737_v52, %v1648_v36  ;;  %vm3374_vm1 = vmor %vm963_vm13, %vm964_vm14 }
 0x2c8   : > { %v940_v19 = vmul.f32 0.5, %v939_v29  ;;  %v1057_v53 = vmul.f32 %v3075_v2, %v1022_v3 }
 0x2c9   : > { %v1805_v63 = vadd.f32 %v1738_v11, %v2336_v47  ;;  %v1268_v58 = vpop.f32.mrf.mxu0  ;;  %v1357_v41 = vpop.f32.mrf.mxu1  ;;  %v958_v47 = vmul.f32 %v3302_v21, %v3286_v39 }
 0x2ca   : > { %v941_v15 = vsub.f32 1.5, %v940_v19  ;;  %v1269_v61 = vadd.f32 %v1268_v58, %v2760_v10  ;;  %v1358_v4 = vadd.f32 %v1357_v41, %v2773_v22  ;;  %v1092_v12 = vadd.f32 %v3107_v14, %v1057_v53 }
 0x2cb   : > { %v1841_v42 = vadd.f32 %v3063_v35, %v1805_v63  ;;  %v3323_v28 = vpop.eup %2188  ;;  %v959_v6 = vmul.f32 %v3302_v21, %v958_v47 }
 0x2cc   : > { %v942_v48 = vmul.f32 %v2185_v25, %v941_v15  ;;  %v1429_v23 = vmax.f32 %v1269_v61, 0.0  ;;  %v1430_v60 = vmax.f32 %v1358_v4, 0.0  ;;  %v1111_v27 = vpack.c.bf16 %v1092_v12, %v1091_v38 }
 0x2cd   : > { %1873 = vst.msk [vmem:[%s3089_s8 + $0x40] sm:$0xff] %vm317_vm0, %v1841_v42  ;;  %v968_v54 = vmul.f32 %v3323_v28, %v3298_v16  ;;  %v960_v11 = vmul.f32 0.5, %v959_v6  ;;  %vm974_vm12 = vweird.f32 %v3323_v28 }
 0x2ce   : > { %v946_v43 = vsel %vm3315_vm9, %v2185_v25, %v942_v48  ;;  %v1650_v49 = vpop.f32.mrf.mxu2  ;;  %v1475_v33 = vpack.c.bf16 %v1429_v23, %v1427_v30  ;;  %v1739_v13 = vpop.f32.mrf.mxu3  ;;  %2006 = vmatmul.msk.bf16.gmra.mxu0 %vm317_vm0, %v1111_v27  ;;  %2022 = vmatmul.msk.bf16.gmra.mxu1 %vm317_vm0, %v1111_v27  ;;  %v1476_v34 = vpack.c.bf16 %v1430_v60, %v1428_v8  ;;  %vm3366_vm15 = vmor %vm973_vm11, %vm974_vm12 }
 0x2cf   : > { %v1740_v51 = vadd.f32 %v1739_v13, %v1650_v49  ;;  %v969_v25 = vmul.f32 %v3323_v28, %v968_v54  ;;  %v1023_v37 = vmul.f32 %v946_v43, %v3115_v44  ;;  %v961_v62 = vsub.f32 1.5, %v960_v11 }
 0x2d0   : > { %1667 = vmatmul.bf16.gmra.mxu2 %v1475_v33  ;;  %1756 = vmatmul.bf16.gmra.mxu3 %v1476_v34 }
 0x2d1   : > { %v1806_v3 = vadd.f32 %v1740_v51, %v2354_v57  ;;  %v1271_v29 = vpop.f32.mrf.mxu0  ;;  %v1360_v36 = vpop.f32.mrf.mxu1  ;;  %v970_v52 = vmul.f32 0.5, %v969_v25  ;;  %v1058_v26 = vmul.f32 %v3075_v2, %v1023_v37  ;;  %v1059_v57 = vmul.f32 %v3075_v2, %v1024_v31 }
 0x2d2   : > { %v1272_v46 = vadd.f32 %v1271_v29, %v2760_v10  ;;  %v1361_v63 = vadd.f32 %v1360_v36, %v2773_v22  ;;  %v962_v59 = vmul.f32 %v3302_v21, %v961_v62  ;;  %v3600_v29 = vld [vmem:[#allocation2_spill] sm:$0xff] }
 0x2d3   : > { %v1842_v17 = vadd.f32 %v3063_v35, %v1806_v3  ;;  %v971_v19 = vsub.f32 1.5, %v970_v52  ;;  %v1093_v61 = vadd.f32 %v3107_v14, %v1058_v26  ;;  %v1094_v47 = vadd.f32 %v3107_v14, %v1059_v57 }
 0x2d4   : > { %v1431_v42 = vmax.f32 %v1272_v46, 0.0  ;;  %v1432_v38 = vmax.f32 %v1361_v63, 0.0  ;;  %v966_v49 = vsel %vm3374_vm1, %v3302_v21, %v962_v59 }
 0x2d5   : > { %1874 = vst.msk [vmem:[%s3089_s8 + $0x48] sm:$0xff] %vm317_vm0, %v1842_v17  ;;  %v972_v4 = vmul.f32 %v3323_v28, %v971_v19  ;;  %v1112_v60 = vpack.c.bf16 %v1094_v47, %v1093_v61  ;;  %v1025_v51 = vmul.f32 %v966_v49, %v3102_v5  ;;  %v3601_v61 = vld [vmem:[#allocation3_spill] sm:$0xff] }
 0x2d6   : > { %v1653_v0 = vpop.f32.mrf.mxu2  ;;  %v1742_v53 = vpop.f32.mrf.mxu3 }
 0x2d7   : > { %v1743_v44 = vadd.f32 %v1742_v53, %v1653_v0  ;;  %v976_v7 = vsel %vm3366_vm15, %v3323_v28, %v972_v4  ;;  %v1060_v21 = vmul.f32 %v3075_v2, %v1025_v51 }
 0x2d8   : > { %v1026_v33 = vmul.f32 %v976_v7, %v3149_v40 }
 0x2d9   : > { %v1807_v58 = vadd.f32 %v1743_v44, %v2370_v1  ;;  %v1273_v41 = vpop.f32.mrf.mxu0  ;;  %v1362_v15 = vpop.f32.mrf.mxu1  ;;  %v1095_v19 = vadd.f32 %v3107_v14, %v1060_v21 }
 0x2da   : > { %v1274_v16 = vadd.f32 %v1273_v41, %v2760_v10  ;;  %v1363_v12 = vadd.f32 %v1362_v15, %v2773_v22  ;;  %v1061_v25 = vmul.f32 %v3075_v2, %v1026_v33 }
 0x2db   : > { %v1843_v1 = vadd.f32 %v3063_v35, %v1807_v58 }
 0x2dc   : > { %v1433_v48 = vmax.f32 %v1274_v16, 0.0  ;;  %v1434_v30 = vmax.f32 %v1363_v12, 0.0  ;;  %v1096_v31 = vadd.f32 %v3107_v14, %v1061_v25  ;;  %v609_v12 = vpop.xlane.xlu2 %608 }
 0x2dd   : > { %1875 = vst.msk [vmem:[%s3089_s8 + $0x50] sm:$0xff] %vm317_vm0, %v1843_v1  ;;  %v643_v59 = vmul.f32 %v609_v12, %v2297_v20 }
 0x2de   : > { %v1655_v27 = vpop.f32.mrf.mxu2  ;;  %v1477_v43 = vpack.c.bf16 %v1433_v48, %v1431_v42  ;;  %v1744_v54 = vpop.f32.mrf.mxu3  ;;  %v1478_v8 = vpack.c.bf16 %v1434_v30, %v1432_v38  ;;  %2007 = vmatmul.msk.bf16.gmra.mxu0 %vm317_vm0, %v1112_v60  ;;  %2023 = vmatmul.msk.bf16.gmra.mxu1 %vm317_vm0, %v1112_v60  ;;  %v1113_v57 = vpack.c.bf16 %v1096_v31, %v1095_v19 }
 0x2df   : > { %v1745_v39 = vadd.f32 %v1744_v54, %v1655_v27  ;;  %v675_v9 = vadd.f32 1e-05, %v643_v59 }
 0x2e0   : > { %1672 = vmatmul.bf16.gmra.mxu2 %v1477_v43  ;;  %1761 = vmatmul.bf16.gmra.mxu3 %v1478_v8 }
 0x2e1   : > { %v1808_v13 = vadd.f32 %v1745_v39, %v2351_v56  ;;  %v1276_v28 = vpop.f32.mrf.mxu0  ;;  %v1365_v6 = vpop.f32.mrf.mxu1  ;;  %2190 = vrsqrt.f32 %v675_v9  ;;  %vm983_vm2 = vweird.f32 %v675_v9 }
 0x2e2   : > { %v1277_v40 = vadd.f32 %v1276_v28, %v2760_v10  ;;  %v1366_v56 = vadd.f32 %v1365_v6, %v2773_v22 }
 0x2e3   : > { %v1844_v32 = vadd.f32 %v3063_v35, %v1808_v13 }
 0x2e4   : > { %v1435_v0 = vmax.f32 %v1277_v40, 0.0  ;;  %v1436_v53 = vmax.f32 %v1366_v56, 0.0  ;;  %v3602_v40 = vld [vmem:[#allocation4_spill] sm:$0xff] }
 0x2e5   : > { %1876 = vst.msk [vmem:[%s3089_s8 + $0x58] sm:$0xff] %vm317_vm0, %v1844_v32 }
 0x2e6   : > { %v1658_v34 = vpop.f32.mrf.mxu2  ;;  %v1747_v37 = vpop.f32.mrf.mxu3 }
 0x2e7   : > { %v1748_v3 = vadd.f32 %v1747_v37, %v1658_v34  ;;  %v2191_v1 = vpop.eup %2190 }
 0x2e8   : > { %v978_v47 = vmul.f32 %v2191_v1, %v675_v9  ;;  %vm984_vm3 = vweird.f32 %v2191_v1 }
 0x2e9   : > { %v1809_v36 = vadd.f32 %v1748_v3, %v3600_v29  ;;  %v1278_v52 = vpop.f32.mrf.mxu0  ;;  %v1367_v5 = vpop.f32.mrf.mxu1  ;;  %vm985_vm4 = vmor %vm983_vm2, %vm984_vm3 }
 0x2ea   : > { %v1279_v11 = vadd.f32 %v1278_v52, %v2760_v10  ;;  %v1368_v17 = vadd.f32 %v1367_v5, %v2773_v22  ;;  %v979_v42 = vmul.f32 %v2191_v1, %v978_v47 }
 0x2eb   : > { %v1845_v26 = vadd.f32 %v3063_v35, %v1809_v36 }
 0x2ec   : > { %v1437_v62 = vmax.f32 %v1279_v11, 0.0  ;;  %v1438_v44 = vmax.f32 %v1368_v17, 0.0  ;;  %v980_v30 = vmul.f32 0.5, %v979_v42 }
 0x2ed   : > { %1877 = vst.msk [vmem:[%s3089_s8 + $0x60] sm:$0xff] %vm317_vm0, %v1845_v26 }
 0x2ee   : > { %v1660_v46 = vpop.f32.mrf.mxu2  ;;  %v1479_v63 = vpack.c.bf16 %v1437_v62, %v1435_v0  ;;  %v1749_v58 = vpop.f32.mrf.mxu3  ;;  %v1480_v41 = vpack.c.bf16 %v1438_v44, %v1436_v53  ;;  %2008 = vmatmul.msk.bf16.gmra.mxu0 %vm317_vm0, %v1113_v57  ;;  %2024 = vmatmul.msk.bf16.gmra.mxu1 %vm317_vm0, %v1113_v57  ;;  %v981_v60 = vsub.f32 1.5, %v980_v30 }
 0x2ef   : > { %v1750_v15 = vadd.f32 %v1749_v58, %v1660_v46 }
 0x2f0   : > { %1677 = vmatmul.bf16.gmra.mxu2 %v1479_v63  ;;  %1766 = vmatmul.bf16.gmra.mxu3 %v1480_v41  ;;  %v982_v27 = vmul.f32 %v2191_v1, %v981_v60 }
 0x2f1   : > { %v1810_v4 = vadd.f32 %v1750_v15, %v3601_v61 }
 0x2f2   : > { %v986_v8 = vsel %vm985_vm4, %v2191_v1, %v982_v27 }
 0x2f3   : > { %v1846_v16 = vadd.f32 %v3063_v35, %v1810_v4  ;;  %v1027_v13 = vmul.f32 %v986_v8, %v3175_v24 }
 0x2f5   : > { %1878 = vst.msk [vmem:[%s3089_s8 + $0x68] sm:$0xff] %vm317_vm0, %v1846_v16  ;;  %v1062_v37 = vmul.f32 %v3075_v2, %v1027_v13 }
 0x2f7   : > { %v1097_v17 = vadd.f32 %v3107_v14, %v1062_v37 }
 0x327   : > { %v612_v38 = vpop.xlane.xlu0 %611 }
 0x328   : > { %v644_v48 = vmul.f32 %v612_v38, %v2297_v20 }
 0x32a   : > { %v676_v23 = vadd.f32 1e-05, %v644_v48 }
 0x32c   : > { %2192 = vrsqrt.f32 %v676_v23  ;;  %vm993_vm6 = vweird.f32 %v676_v23 }
 0x332   : > { %v2193_v7 = vpop.eup %2192 }
 0x333   : > { %v988_v43 = vmul.f32 %v2193_v7, %v676_v23  ;;  %vm994_vm5 = vweird.f32 %v2193_v7  ;;  %v3604_v23 = vld [vmem:[#allocation6_spill] sm:$0xff] }
 0x334   : > { %vm995_vm7 = vmor %vm993_vm6, %vm994_vm5 }
 0x335   : > { %v989_v54 = vmul.f32 %v2193_v7, %v988_v43  ;;  %v3442_v43 = vld [vmem:[%s3528_s6] ss:$0 sm:$0xff] }
 0x337   : > { %v990_v39 = vmul.f32 0.5, %v989_v54 }
 0x338   : > { %v1281_v49 = vpop.f32.mrf.mxu0  ;;  %v1370_v33 = vpop.f32.mrf.mxu1 }
 0x339   : > { %v991_v28 = vsub.f32 1.5, %v990_v39  ;;  %v1282_v25 = vadd.f32 %v1281_v49, %v2760_v10  ;;  %v1371_v21 = vadd.f32 %v1370_v33, %v2773_v22 }
 0x33b   : > { %v992_v20 = vmul.f32 %v2193_v7, %v991_v28  ;;  %v1439_v31 = vmax.f32 %v1282_v25, 0.0  ;;  %v1440_v26 = vmax.f32 %v1371_v21, 0.0  ;;  %v3605_v28 = vld [vmem:[#allocation8_spill] sm:$0xff] }
 0x33d   : > { %v1663_v6 = vpop.f32.mrf.mxu2  ;;  %v1752_v51 = vpop.f32.mrf.mxu3  ;;  %v996_v32 = vsel %vm995_vm7, %v2193_v7, %v992_v20 }
 0x33e   : > { %v1753_v34 = vadd.f32 %v1752_v51, %v1663_v6  ;;  %v1028_v3 = vmul.f32 %v996_v32, %v3251_v18 }
 0x340   : > { %v1811_v24 = vadd.f32 %v1753_v34, %v3602_v40  ;;  %v1283_v56 = vpop.f32.mrf.mxu0  ;;  %v1372_v29 = vpop.f32.mrf.mxu1  ;;  %v1063_v5 = vmul.f32 %v3075_v2, %v1028_v3  ;;  %v3603_v2 = vld [vmem:[#allocation5_spill] sm:$0xff] }
 0x341   : > { %v1284_v36 = vadd.f32 %v1283_v56, %v2760_v10  ;;  %v1373_v52 = vadd.f32 %v1372_v29, %v2773_v22 }
 0x342   : > { %v1847_v11 = vadd.f32 %v3063_v35, %v1811_v24  ;;  %v1098_v0 = vadd.f32 %v3107_v14, %v1063_v5  ;;  %v3606_v5 = vld [vmem:[#allocation10_spill] sm:$0xff] }
 0x343   : > { %v1441_v19 = vmax.f32 %v1284_v36, 0.0  ;;  %v1442_v18 = vmax.f32 %v1373_v52, 0.0 }
 0x344   : > { %1879 = vst.msk [vmem:[%s3089_s8 + $0x70] sm:$0xff] %vm317_vm0, %v1847_v11  ;;  %v1114_v62 = vpack.c.bf16 %v1098_v0, %v1097_v17 }
 0x345   : > { %v1665_v53 = vpop.f32.mrf.mxu2  ;;  %v1481_v44 = vpack.c.bf16 %v1441_v19, %v1439_v31  ;;  %v1754_v57 = vpop.f32.mrf.mxu3  ;;  %v1482_v46 = vpack.c.bf16 %v1442_v18, %v1440_v26 }
 0x346   : > { %v1755_v63 = vadd.f32 %v1754_v57, %v1665_v53  ;;  %2009 = vmatmul.msk.bf16.gmra.mxu0 %vm317_vm0, %v1114_v62  ;;  %2025 = vmatmul.msk.bf16.gmra.mxu1 %vm317_vm0, %v1114_v62 }
 0x347   : > { %1682 = vmatmul.bf16.gmra.mxu2 %v1481_v44  ;;  %1771 = vmatmul.bf16.gmra.mxu3 %v1482_v46  ;;  %v3607_v44 = vld [vmem:[#allocation7_spill] sm:$0xff] }
 0x348   : > { %v1812_v58 = vadd.f32 %v1755_v63, %v3603_v2 }
 0x34a   : > { %v1848_v41 = vadd.f32 %v3063_v35, %v1812_v58 }
 0x34b   : > { %v1286_v14 = vpop.f32.mrf.mxu0  ;;  %v1375_v15 = vpop.f32.mrf.mxu1 }
 0x34c   : > { %1880 = vst.msk [vmem:[%s3089_s8 + $0x78] sm:$0xff] %vm317_vm0, %v1848_v41  ;;  %v1287_v61 = vadd.f32 %v1286_v14, %v2760_v10  ;;  %v1376_v4 = vadd.f32 %v1375_v15, %v2773_v22 }
 0x34e   : > { %v1443_v38 = vmax.f32 %v1287_v61, 0.0  ;;  %v1444_v35 = vmax.f32 %v1376_v4, 0.0 }
 0x353   : > { %v1668_v16 = vpop.f32.mrf.mxu2  ;;  %v1288_v12 = vpop.f32.mrf.mxu0 }
 0x354   : > { %v1377_v59 = vpop.f32.mrf.mxu1  ;;  %v1757_v9 = vpop.f32.mrf.mxu3  ;;  %v1289_v1 = vadd.f32 %v1288_v12, %v2760_v10 }
 0x355   : > { %v1378_v47 = vadd.f32 %v1377_v59, %v2773_v22  ;;  %v1758_v42 = vadd.f32 %v1757_v9, %v1668_v16 }
 0x356   : > { %v1445_v48 = vmax.f32 %v1289_v1, 0.0 }
 0x357   : > { %v1446_v30 = vmax.f32 %v1378_v47, 0.0  ;;  %v1813_v60 = vadd.f32 %v1758_v42, %v3604_v23  ;;  %v3608_v47 = vld [vmem:[#allocation9_spill] sm:$0xff] }
 0x358   : > { %v1483_v7 = vpack.c.bf16 %v1445_v48, %v1443_v38 }
 0x359   : > { %v1484_v27 = vpack.c.bf16 %v1446_v30, %v1444_v35  ;;  %v1849_v54 = vadd.f32 %v3442_v43, %v1813_v60 }
 0x35a   : > { %1687 = vmatmul.bf16.gmra.mxu2 %v1483_v7  ;;  %v3609_v7 = vld [vmem:[#allocation11_spill] sm:$0xff] }
 0x35b   : > { %v1670_v8 = vpop.f32.mrf.mxu2  ;;  %1776 = vmatmul.bf16.gmra.mxu3 %v1484_v27  ;;  %1881 = vst.msk [vmem:[%s3089_s8 + $0x80] sm:$0xff] %vm317_vm0, %v1849_v54  ;;  %v1291_v39 = vpop.f32.mrf.mxu0 }
 0x35c   : > { %v1380_v49 = vpop.f32.mrf.mxu1  ;;  %v1759_v33 = vpop.f32.mrf.mxu3  ;;  %v1292_v51 = vadd.f32 %v1291_v39, %v2760_v10 }
 0x35d   : > { %v1760_v13 = vadd.f32 %v1759_v33, %v1670_v8  ;;  %v1381_v32 = vadd.f32 %v1380_v49, %v2773_v22 }
 0x35e   : > { %v1447_v56 = vmax.f32 %v1292_v51, 0.0 }
 0x35f   : > { %v1814_v20 = vadd.f32 %v1760_v13, %v3605_v28  ;;  %v1448_v29 = vmax.f32 %v1381_v32, 0.0 }
 0x361   : > { %v1850_v6 = vadd.f32 %v3442_v43, %v1814_v20 }
 0x363   : > { %v1673_v25 = vpop.f32.mrf.mxu2  ;;  %1882 = vst.msk [vmem:[%s3089_s8 + $0x88] sm:$0xff] %vm317_vm0, %v1850_v6  ;;  %v1293_v34 = vpop.f32.mrf.mxu0 }
 0x364   : > { %v1382_v37 = vpop.f32.mrf.mxu1  ;;  %v1762_v3 = vpop.f32.mrf.mxu3  ;;  %v1294_v21 = vadd.f32 %v1293_v34, %v2760_v10  ;;  %v3610_v34 = vld [vmem:[#allocation12_spill] sm:$0xff] }
 0x365   : > { %v1383_v40 = vadd.f32 %v1382_v37, %v2773_v22  ;;  %v1763_v24 = vadd.f32 %v1762_v3, %v1673_v25 }
 0x366   : > { %v1449_v36 = vmax.f32 %v1294_v21, 0.0 }
 0x367   : > { %v1450_v52 = vmax.f32 %v1383_v40, 0.0  ;;  %v1815_v31 = vadd.f32 %v1763_v24, %v3606_v5 }
 0x368   : > { %v1485_v11 = vpack.c.bf16 %v1449_v36, %v1447_v56 }
 0x369   : > { %v1486_v17 = vpack.c.bf16 %v1450_v52, %v1448_v29  ;;  %v1851_v26 = vadd.f32 %v3442_v43, %v1815_v31 }
 0x36a   : > { %1692 = vmatmul.bf16.gmra.mxu2 %v1485_v11 }
 0x36b   : > { %v1675_v19 = vpop.f32.mrf.mxu2  ;;  %1781 = vmatmul.bf16.gmra.mxu3 %v1486_v17  ;;  %1883 = vst.msk [vmem:[%s3089_s8 + $0x90] sm:$0xff] %vm317_vm0, %v1851_v26  ;;  %v1296_v18 = vpop.f32.mrf.mxu0 }
 0x36c   : > { %v1385_v0 = vpop.f32.mrf.mxu1  ;;  %v1764_v53 = vpop.f32.mrf.mxu3  ;;  %v1297_v63 = vadd.f32 %v1296_v18, %v2760_v10  ;;  %v3612_v18 = vld [vmem:[#allocation14_spill] sm:$0xff] }
 0x36d   : > { %v1765_v62 = vadd.f32 %v1764_v53, %v1675_v19  ;;  %v1386_v2 = vadd.f32 %v1385_v0, %v2773_v22 }
 0x36e   : > { %v1451_v12 = vmax.f32 %v1297_v63, 0.0 }
 0x36f   : > { %v1816_v57 = vadd.f32 %v1765_v62, %v3607_v44  ;;  %v1452_v59 = vmax.f32 %v1386_v2, 0.0 }
 0x371   : > { %v1852_v46 = vadd.f32 %v3442_v43, %v1816_v57 }
 0x373   : > { %v1678_v58 = vpop.f32.mrf.mxu2  ;;  %1884 = vst.msk [vmem:[%s3089_s8 + $0x98] sm:$0xff] %vm317_vm0, %v1852_v46  ;;  %v1298_v41 = vpop.f32.mrf.mxu0  ;;  %v3613_v46 = vld [vmem:[#allocation15_spill] sm:$0xff] }
 0x374   : > { %v1387_v14 = vpop.f32.mrf.mxu1  ;;  %v1767_v15 = vpop.f32.mrf.mxu3  ;;  %v1299_v61 = vadd.f32 %v1298_v41, %v2760_v10 }
 0x375   : > { %v1388_v4 = vadd.f32 %v1387_v14, %v2773_v22  ;;  %v1768_v16 = vadd.f32 %v1767_v15, %v1678_v58  ;;  %v3614_v15 = vld [vmem:[#allocation17_spill] sm:$0xff] }
 0x376   : > { %v1453_v9 = vmax.f32 %v1299_v61, 0.0 }
 0x377   : > { %v1454_v1 = vmax.f32 %v1388_v4, 0.0  ;;  %v1817_v42 = vadd.f32 %v1768_v16, %v3608_v47 }
 0x378   : > { %v1487_v38 = vpack.c.bf16 %v1453_v9, %v1451_v12  ;;  %v3615_v9 = vld [vmem:[#allocation16_spill] sm:$0xff] }
 0x379   : > { %v1488_v35 = vpack.c.bf16 %v1454_v1, %v1452_v59  ;;  %v1853_v48 = vadd.f32 %v3442_v43, %v1817_v42 }
 0x37a   : > { %1697 = vmatmul.bf16.gmra.mxu2 %v1487_v38 }
 0x37b   : > { %v1680_v30 = vpop.f32.mrf.mxu2  ;;  %1786 = vmatmul.bf16.gmra.mxu3 %v1488_v35  ;;  %1885 = vst.msk [vmem:[%s3089_s8 + $0xa0] sm:$0xff] %vm317_vm0, %v1853_v48  ;;  %v3616_v48 = vld [vmem:[#allocation18_spill] sm:$0xff] }
 0x37c   : > { %v1769_v23 = vpop.f32.mrf.mxu3 }
 0x37d   : > { %v1770_v60 = vadd.f32 %v1769_v23, %v1680_v30 }
 0x37f   : > { %v1818_v27 = vadd.f32 %v1770_v60, %v3609_v7 }
 0x381   : > { %v1854_v54 = vadd.f32 %v3442_v43, %v1818_v27 }
 0x383   : > { %1886 = vst.msk [vmem:[%s3089_s8 + $0xa8] sm:$0xff] %vm317_vm0, %v1854_v54 }
 0x3c3   : > { %v1301_v8 = vpop.f32.mrf.mxu0  ;;  %v1390_v39 = vpop.f32.mrf.mxu1 }
 0x3c4   : > { %v1302_v49 = vadd.f32 %v1301_v8, %v2760_v10  ;;  %v1391_v33 = vadd.f32 %v1390_v39, %v2773_v22 }
 0x3c6   : > { %v1455_v3 = vmax.f32 %v1302_v49, 0.0  ;;  %v1456_v21 = vmax.f32 %v1391_v33, 0.0 }
 0x3ca   : > { %v1683_v13 = vpop.f32.mrf.mxu2  ;;  %v1772_v28 = vpop.f32.mrf.mxu3 }
 0x3cb   : > { %v1773_v20 = vadd.f32 %v1772_v28, %v1683_v13  ;;  %v1303_v6 = vpop.f32.mrf.mxu0  ;;  %v1392_v51 = vpop.f32.mrf.mxu1 }
 0x3cc   : > { %v1304_v32 = vadd.f32 %v1303_v6, %v2760_v10  ;;  %v1393_v25 = vadd.f32 %v1392_v51, %v2773_v22  ;;  %v3611_v22 = vld [vmem:[#allocation13_spill] sm:$0xff] }
 0x3cd   : > { %v1819_v37 = vadd.f32 %v1773_v20, %v3610_v34 }
 0x3ce   : > { %v1457_v40 = vmax.f32 %v1304_v32, 0.0  ;;  %v1458_v24 = vmax.f32 %v1393_v25, 0.0 }
 0x3cf   : > { %v1855_v56 = vadd.f32 %v3442_v43, %v1819_v37 }
 0x3d0   : > { %v1489_v29 = vpack.c.bf16 %v1457_v40, %v1455_v3  ;;  %v1490_v36 = vpack.c.bf16 %v1458_v24, %v1456_v21 }
 0x3d1   : > { %1887 = vst.msk [vmem:[%s3089_s8 + $0xb0] sm:$0xff] %vm317_vm0, %v1855_v56 }
 0x3d2   : > { %v1685_v52 = vpop.f32.mrf.mxu2  ;;  %1702 = vmatmul.bf16.gmra.mxu2 %v1489_v29  ;;  %v1774_v5 = vpop.f32.mrf.mxu3  ;;  %1791 = vmatmul.bf16.gmra.mxu3 %v1490_v36 }
 0x3d3   : > { %v1775_v10 = vadd.f32 %v1774_v5, %v1685_v52 }
 0x3d5   : > { %v1820_v31 = vadd.f32 %v1775_v10, %v3611_v22 }
 0x3d7   : > { %v1856_v11 = vadd.f32 %v3442_v43, %v1820_v31 }
 0x3d9   : > { %1888 = vst.msk [vmem:[%s3089_s8 + $0xb8] sm:$0xff] %vm317_vm0, %v1856_v11 }
 0x3dd   : > { %v1688_v17 = vpop.f32.mrf.mxu2 }
 0x3de   : > { %v1777_v26 = vpop.f32.mrf.mxu3 }
 0x3df   : > { %v1778_v19 = vadd.f32 %v1777_v26, %v1688_v17 }
 0x3e1   : > { %v1821_v0 = vadd.f32 %v1778_v19, %v3612_v18 }
 0x3e3   : > { %v1857_v53 = vadd.f32 %v3442_v43, %v1821_v0 }
 0x3e5   : > { %1889 = vst.msk [vmem:[%s3089_s8 + $0xc0] sm:$0xff] %vm317_vm0, %v1857_v53  ;;  %v1690_v62 = vpop.f32.mrf.mxu2 }
 0x3e6   : > { %v1779_v44 = vpop.f32.mrf.mxu3 }
 0x3e7   : > { %v1780_v57 = vadd.f32 %v1779_v44, %v1690_v62 }
 0x3e9   : > { %v1822_v63 = vadd.f32 %v1780_v57, %v3613_v46 }
 0x3eb   : > { %v1858_v2 = vadd.f32 %v3442_v43, %v1822_v63 }
 0x3ed   : > { %1890 = vst.msk [vmem:[%s3089_s8 + $0xc8] sm:$0xff] %vm317_vm0, %v1858_v2  ;;  %v1693_v58 = vpop.f32.mrf.mxu2 }
 0x3ee   : > { %v1782_v41 = vpop.f32.mrf.mxu3 }
 0x3ef   : > { %v1783_v14 = vadd.f32 %v1782_v41, %v1693_v58 }
 0x3f1   : > { %v1823_v61 = vadd.f32 %v1783_v14, %v3614_v15 }
 0x3f3   : > { %v1859_v4 = vadd.f32 %v3442_v43, %v1823_v61 }
 0x3f5   : > { %1891 = vst.msk [vmem:[%s3089_s8 + $0xd0] sm:$0xff] %vm317_vm0, %v1859_v4  ;;  %v1695_v16 = vpop.f32.mrf.mxu2 }
 0x3f6   : > { %v1784_v12 = vpop.f32.mrf.mxu3 }
 0x3f7   : > { %v1785_v59 = vadd.f32 %v1784_v12, %v1695_v16 }
 0x3f9   : > { %v1824_v1 = vadd.f32 %v1785_v59, %v3615_v9 }
 0x3fb   : > { %v1860_v47 = vadd.f32 %v3442_v43, %v1824_v1 }
 0x3fd   : > { %1892 = vst.msk [vmem:[%s3089_s8 + $0xd8] sm:$0xff] %vm317_vm0, %v1860_v47  ;;  %v1698_v42 = vpop.f32.mrf.mxu2 }
 0x3fe   : > { %v1787_v38 = vpop.f32.mrf.mxu3 }
 0x3ff   : > { %v1788_v35 = vadd.f32 %v1787_v38, %v1698_v42 }
 0x401   : > { %v1825_v30 = vadd.f32 %v1788_v35, %v3616_v48 }
 0x403   : > { %v1861_v23 = vadd.f32 %v3442_v43, %v1825_v30 }
 0x405   : > { %1893 = vst.msk [vmem:[%s3089_s8 + $0xe0] sm:$0xff] %vm317_vm0, %v1861_v23  ;;  %v1700_v60 = vpop.f32.mrf.mxu2 }
 0x406   : > { %v1789_v7 = vpop.f32.mrf.mxu3 }
 0x407   : > { %v1790_v27 = vadd.f32 %v1789_v7, %v1700_v60 }
 0x409   : > { %v1826_v54 = vadd.f32 %v1790_v27, %v2932_v55 }
 0x40b   : > { %v1862_v8 = vadd.f32 %v3442_v43, %v1826_v54 }
 0x40d   : > { %1894 = vst.msk [vmem:[%s3089_s8 + $0xe8] sm:$0xff] %vm317_vm0, %v1862_v8 }
 0x455   : > { %v1703_v39 = vpop.f32.mrf.mxu2  ;;  %v1792_v49 = vpop.f32.mrf.mxu3 }
 0x456   : > { %v1793_v33 = vadd.f32 %v1792_v49, %v1703_v39 }
 0x458   : > { %v1827_v13 = vadd.f32 %v1793_v33, %v2945_v50 }
 0x45a   : > { %v1863_v28 = vadd.f32 %v3442_v43, %v1827_v13 }
 0x45c   : > { %1895 = vst.msk [vmem:[%s3089_s8 + $0xf0] sm:$0xff] %vm317_vm0, %v1863_v28 }
 0x45d   : > { %v1705_v20 = vpop.f32.mrf.mxu2  ;;  %v1794_v6 = vpop.f32.mrf.mxu3 }
 0x45e   : > { %v1795_v51 = vadd.f32 %v1794_v6, %v1705_v20 }
 0x460   : > { %v1828_v32 = vadd.f32 %v1795_v51, %v3039_v45 }
 0x462   : > { %v1864_v55 = vadd.f32 %v3442_v43, %v1828_v32 }
 0x464   : > { %1896 = vst.msk [vmem:[%s3089_s8 + $0xf8] sm:$0xff] %vm317_vm0, %v1864_v55 }
 0x465 PF: > { %s17_s24 = sadd.s32 1, %s2204_s24  }
 0x466   : > { %p14_p4 = scmp.ge.s32.totalorder %s17_s24, 4  }
 0x468   :  { %16 = sbr.rel (!%p14_p4) target bundleno = 1 (0x1), region = 78 }

// kernel: gpt2_lm_forward.13
= control target key start
LH: loop header
LB: loop body
LE: loop exit
PB: predicated region body
PF: predicated region fallthrough
CT: control target
= control target key end

     0   :  { %9 = vsyncpa [#allocation4], 0  ;;  %s3170_s0 = inlined_call_operand.vmem [shape: f32[512,64], index: 0, kind: input, shape index: {}]   ;;  %s3171_s1 = inlined_call_operand.vmem [shape: f32[1,64], index: 1, kind: input, shape index: {}]   ;;  %s3172_s2 = inlined_call_operand.vmem [shape: f32[1,64], index: 2, kind: input, shape index: {}]   ;;  %s3173_s3 = inlined_call_operand.vmem [shape: bf16[64,512], index: 3, kind: input, shape index: {}]   ;;  %s3174_s4 = inlined_call_operand.hbm [shape: f32[512,512], index: 4, kind: output, shape index: {}]  }
   0x1   :  { %11 = vsyncpa [#allocation4 + $0x1], 0  ;;  %s1986_s15 = smov 0   ;;  %s1988_s16 = smov 0  }
   0x2   :  { %s1990_s17 = smov 0   ;;  %s1992_s18 = smov 0  }
   0x3   :  { %s1994_s19 = smov 0   ;;  %s1996_s20 = smov 0  }
   0x4   :  { %s1998_s21 = smov 0   ;;  %s2000_s22 = smov 0  }
   0x5   :  { %s2002_s23 = smov 0   ;;  %s2004_s24 = smov 0  }
   0x6 LB: > { %s1583_s25 = sadd.s32 4294967295, %s1955_s24   ;;  %s1584_s26 = sadd.s32 4294967294, %s1955_s24   ;;  %s1955_s24 = sphi %s2004_s24, %s17_s24   ;;  %s1951_s23 = sphi %s2002_s23, %s3208_s23   ;;  %s1947_s22 = sphi %s2000_s22, %s3207_s22   ;;  %s1943_s21 = sphi %s1998_s21, %s3206_s21   ;;  %s1939_s20 = sphi %s1996_s20, %s3205_s20   ;;  %s1935_s19 = sphi %s1994_s19, %s3204_s19   ;;  %s1931_s18 = sphi %s1992_s18, %s3203_s18   ;;  %s1927_s17 = sphi %s1990_s17, %s3202_s17   ;;  %s1923_s16 = sphi %s1988_s16, %s3201_s16   ;;  %s1919_s15 = sphi %s1986_s15, %s3200_s15  }
   0x7   : > { %s26_s27 = sadd.s32 1, %s1947_s22  ;;  %s29_s28 = sadd.s32 1, %s1951_s23 }
   0x8   : > { %p27_p0 = scmp.ge.s32.totalorder %s26_s27, 2  ;;  %s104_s29 = sadd.s32 1, %s1935_s19 }
   0x9   : > { %p111_p1 = scmp.ne.s32.totalorder %s1935_s19, %s1931_s18  ;;  %p112_p2 = scmp.eq.s32.totalorder %s1955_s24, 0 }
   0xa   : > { %s3210_s27 = smov (%p27_p0, %s26_s27), 0  ;;  %s3212_s28 = smov (!%p27_p0, %s29_s28), %s1951_s23 }
   0xb   : > { %s101_s30 = ssub.s32 %s1947_s22, %s3210_s27  ;;  %p2049_p3 = por %p112_p2, %p111_p1 }
   0xc   : > { %p31_p4 = scmp.ge.s32.totalorder %s3212_s28, 2  ;;  %p102_p5 = scmp.eq.s32.totalorder %s101_s30, 0 }
   0xd   : > { %s132_s6 = sadd.s32 1, %s1927_s17  ;;  %p142_p6 = scmp.ne.s32.totalorder %s1927_s17, %s1923_s16 }
   0xe   : > { %s3214_s28 = smov (%p31_p4, %s3212_s28), 0  ;;  %p143_p7 = scmp.eq.s32.totalorder %s1583_s25, 3 }
   0xf   : > { %s2059_s7 = scalar_select %p102_p5, %s1935_s19, %s104_s29  }
  0x10   : > { %s127_s8 = ssub.s32 %s1951_s23, %s3214_s28  ;;  %p148_p8 = scmp.ne.s32.totalorder %s1923_s16, %s1919_s15 }
  0x11   : > { %s129_s9 = sor.u32 %s127_s8, %s101_s30  ;;  %p2065_p10 = por %p143_p7, %p142_p6 }
  0x12   : > { %p130_p9 = scmp.eq.s32.totalorder %s129_s9, 0  ;;  %p149_p11 = scmp.eq.s32.totalorder %s1584_s26, 3 }
  0x13   : > { %p1586_p13 = scmp.ge.s32.totalorder %s1955_s24, 4 }
  0x14   : > { %s2070_s11 = scalar_select %p130_p9, %s1927_s17, %s132_s6  }
  0x15   : > { %p2072_p12 = por %p149_p11, %p148_p8  ;;  %171 = sbr.rel (%p1586_p13) target bundleno = 38 (0x26), region = 24 }
  0x1a   : > { %183 = sbr.rel (!%p2049_p3) target bundleno = 38 (0x26), region = 32  ;;  %s185_s13 = sand.u32 (%p2049_p3), 1, %s1935_s19  }
  0x1b   : > { %s1666_s14 = sshll.u32 (%p2049_p3), %s1947_s22, 3  ;;  %s1587_s25 = sshll.u32 (%p2049_p3), %s185_s13, 6 }
  0x1c   : > { %s190_s26 = scalar_lea.vmem (%p2049_p3), %s3173_s3, %s1666_s14  ;;  %s187_s6 = scalar_lea.vmem (%p2049_p3), [#allocation2], %s1587_s25 }
  0x1d   : > { %v233_v0 = vld [vmem:[%s190_s26] sm:$0xff] (%p2049_p3)  ;;  %v235_v1 = vld [vmem:[%s190_s26 + $0x10] sm:$0xff] (%p2049_p3) }
  0x1e   : > { %v237_v2 = vld [vmem:[%s190_s26 + $0x20] sm:$0xff] (%p2049_p3)  ;;  %234 = vst [vmem:[%s187_s6] sm:$0xff] (%p2049_p3), %v233_v0  ;;  %v239_v3 = vld [vmem:[%s190_s26 + $0x30] sm:$0xff] (%p2049_p3) }
  0x1f   : > { %236 = vst [vmem:[%s187_s6 + $0x8] sm:$0xff] %v235_v1  ;;  %v241_v4 = vld [vmem:[%s190_s26 + $0x40] sm:$0xff]  ;;  %v243_v5 = vld [vmem:[%s190_s26 + $0x50] sm:$0xff] }
  0x20   : > { %238 = vst [vmem:[%s187_s6 + $0x10] sm:$0xff] %v237_v2  ;;  %v245_v6 = vld [vmem:[%s190_s26 + $0x60] sm:$0xff]  ;;  %v247_v7 = vld [vmem:[%s190_s26 + $0x70] sm:$0xff] }
  0x21   : > { %240 = vst [vmem:[%s187_s6 + $0x18] sm:$0xff] %v239_v3 }
  0x22   : > { %242 = vst [vmem:[%s187_s6 + $0x20] sm:$0xff] %v241_v4 }
  0x23   : > { %244 = vst [vmem:[%s187_s6 + $0x28] sm:$0xff] %v243_v5 }
  0x24   : > { %246 = vst [vmem:[%s187_s6 + $0x30] sm:$0xff] %v245_v6 }
  0x25   : > { %248 = vst [vmem:[%s187_s6 + $0x38] sm:$0xff] %v247_v7 }
  0x26 PF: > { %p1590_p0 = scmp.ge.s32.totalorder %s1955_s24, 1  ;;  %p253_p1 = scmp.lt.s32.totalorder %s1955_s24, 5 }
  0x28   : > { %p254_p2 = pnand %p1590_p0, %p253_p1 }
  0x29   : > { %s1593_s5 = sshll.u32 (!%p254_p2), %s1943_s21, 5  ;;  %s260_s25 = sand.u32 (!%p254_p2), 1, %s1931_s18  }
  0x2a   : > { %257 = sbr.rel (%p254_p2) target bundleno = 666 (0x29a), region = 70  ;;  %p291_p3 = scmp.lt.s32.totalorder (!%p254_p2), %s1593_s5, 63 }
  0x2b   : > { %s1591_s29 = sshll.u32 (!%p254_p2), %s260_s25, 6  ;;  %s1661_s18 = sshll.u32 (!%p254_p2), %s1939_s20, 1 }
  0x2c   : > { %s2409_s30 = scalar_lea.vmem (!%p254_p2), [#allocation2], %s1591_s29  ;;  %s1675_s26 = sshll.u32 (!%p254_p2), %s1943_s21, 7 }
  0x2d   : > { %s1483_s6 = sadd.s32 (!%p254_p2), %s1675_s26, %s1661_s18 }
  0x2f   : > { %s3216_s5 = smov (!%p291_p3, %s1593_s5), 63  ;;  %vm334_vm0 = vcmask 523264   ;;  %v1957_v52 = vmov 64.0  }
  0x30   : > { %s1594_s8 = sshll.u32 %s3216_s5, 3  ;;  %1777 = vrcp.f32 %v1957_v52  ;;  %s1663_s5 = sshll.u32 %s1483_s6, 3 }
  0x31   : > { %s2090_s14 = scalar_lea.vmem %s3170_s0, %s1594_s8  ;;  %s287_s8 = sand.u32 1, %s1923_s16  }
  0x32   : > { %v2093_v8 = vld [vmem:[%s2090_s14 + $0x90] sm:$0xff]  ;;  %v2096_v9 = vld [vmem:[%s2090_s14 + $0x80] sm:$0xff]  ;;  %v2108_v14 = vld [vmem:[%s2090_s14 + $0x98] sm:$0xff]  ;;  %s1592_s9 = sshll.u32 %s287_s8, 9  ;;  %s1485_s20 = scalar_lea.hbm %s3174_s4, %s1663_s5 }
  0x33   : > { %v2099_v10 = vld [vmem:[%s2090_s14] sm:$0xff]  ;;  %v389_v11 = vsel %vm334_vm0, %v2093_v8, 0.0  ;;  %v383_v12 = vsel %vm334_vm0, %v2096_v9, 0.0  ;;  %v2111_v15 = vld [vmem:[%s2090_s14 + $0x88] sm:$0xff]  ;;  %v392_v17 = vsel %vm334_vm0, %v2108_v14, 0.0  ;;  %v2123_v20 = vld [vmem:[%s2090_s14 + $0x10] sm:$0xff] }
  0x34   : > { %v335_v13 = vsel %vm334_vm0, %v2099_v10, 0.0  ;;  %390 = vadd.xlane.f32.xlu2 %v389_v11  ;;  %384 = vadd.xlane.f32.xlu0 %v383_v12  ;;  %v2114_v16 = vld [vmem:[%s2090_s14 + $0x8] sm:$0xff]  ;;  %v386_v18 = vsel %vm334_vm0, %v2111_v15, 0.0  ;;  %v2126_v21 = vld [vmem:[%s2090_s14 + $0xa0] sm:$0xff]  ;;  %v2129_v22 = vld [vmem:[%s2090_s14 + $0x18] sm:$0xff]  ;;  %v341_v23 = vsel %vm334_vm0, %v2123_v20, 0.0 }
  0x35   : > { %336 = vadd.xlane.f32.xlu1 %v335_v13  ;;  %v338_v19 = vsel %vm334_vm0, %v2114_v16, 0.0  ;;  %v395_v24 = vsel %vm334_vm0, %v2126_v21, 0.0  ;;  %v344_v25 = vsel %vm334_vm0, %v2129_v22, 0.0  ;;  %v2138_v26 = vld [vmem:[%s2090_s14 + $0x28] sm:$0xff]  ;;  %v2144_v28 = vld [vmem:[%s2090_s14 + $0x20] sm:$0xff]  ;;  %v2153_v32 = vld [vmem:[%s2090_s14 + $0xb0] sm:$0xff] }
  0x36   : > { %v2141_v27 = vld [vmem:[%s2090_s14 + $0xa8] sm:$0xff]  ;;  %v350_v29 = vsel %vm334_vm0, %v2138_v26, 0.0  ;;  %v347_v31 = vsel %vm334_vm0, %v2144_v28, 0.0  ;;  %v2156_v33 = vld [vmem:[%s2090_s14 + $0xb8] sm:$0xff]  ;;  %v401_v35 = vsel %vm334_vm0, %v2153_v32, 0.0  ;;  %v2171_v39 = vld [vmem:[%s2090_s14 + $0x30] sm:$0xff]  ;;  %v1778_v53 = vpop.eup %1777 }
  0x37   : > { %v398_v30 = vsel %vm334_vm0, %v2141_v27, 0.0  ;;  %v2159_v34 = vld [vmem:[%s2090_s14 + $0x38] sm:$0xff]  ;;  %v404_v36 = vsel %vm334_vm0, %v2156_v33, 0.0  ;;  %v2168_v38 = vld [vmem:[%s2090_s14 + $0xc8] sm:$0xff]  ;;  %v2174_v40 = vld [vmem:[%s2090_s14 + $0xc0] sm:$0xff]  ;;  %v353_v42 = vsel %vm334_vm0, %v2171_v39, 0.0  ;;  %vm436_vm1 = vweird.f32 %v1778_v53 }
  0x38   : > { %v356_v37 = vsel %vm334_vm0, %v2159_v34, 0.0  ;;  %v410_v41 = vsel %vm334_vm0, %v2168_v38, 0.0  ;;  %v407_v43 = vsel %vm334_vm0, %v2174_v40, 0.0  ;;  %v2183_v44 = vld [vmem:[%s2090_s14 + $0x40] sm:$0xff]  ;;  %v2186_v45 = vld [vmem:[%s2090_s14 + $0x48] sm:$0xff]  ;;  %v2189_v46 = vld [vmem:[%s2090_s14 + $0xd8] sm:$0xff] }
  0x39   : > { %v359_v47 = vsel %vm334_vm0, %v2183_v44, 0.0  ;;  %v362_v48 = vsel %vm334_vm0, %v2186_v45, 0.0  ;;  %v416_v49 = vsel %vm334_vm0, %v2189_v46, 0.0  ;;  %v2198_v50 = vld [vmem:[%s2090_s14 + $0xd0] sm:$0xff]  ;;  %v432_v54 = vmul.f32 64.0, %v1778_v53  ;;  %v2258_v52 = vld [vmem:[%s2090_s14 + $0xe8] sm:$0xff] }
  0x3a   : > { %v413_v51 = vsel %vm334_vm0, %v2198_v50, 0.0  ;;  %s2950_s13 = scalar_lea.vmem [#allocation3], %s1592_s9  ;;  %s1488_s25 = sshll.u32 %s1485_s20, 4  ;;  %s1489_s25 = int_to_ptr.hbm [resolvable:$true] %s1488_s25 }
  0x3b   : > { %v433_v55 = vsub.f32 1.0, %v432_v54  ;;  %v2262_v54 = vld [vmem:[%s2090_s14 + $0x50] sm:$0xff]  ;;  %s1486_s21 = sshll.u32 %s2950_s13, 4  ;;  %s1471_s29 = scalar_lea.sflag [#allocation4], %s287_s8  ;;  %s1487_s21 = int_to_ptr.vmem [resolvable:$true] %s1486_s21 }
  0x3c   : > { %393 = vadd.xlane.f32.xlu2 %v392_v17  ;;  %387 = vadd.xlane.f32.xlu0 %v386_v18  ;;  %s1865_s5 = scalar_lea.hbm %s3174_s4, 2048 }
  0x3d   : > { %339 = vadd.xlane.f32.xlu1 %v338_v19  ;;  %v434_v56 = vmul.f32 %v1778_v53, %v433_v55 }
  0x3f   : > { %v435_v57 = vadd.f32 %v1778_v53, %v434_v56  ;;  %v422_v56 = vsel %vm334_vm0, %v2258_v52, 0.0 }
  0x41   : > { %v2202_v58 = vsel %vm436_vm1, %v1778_v53, %v435_v57  ;;  %v365_v57 = vsel %vm334_vm0, %v2262_v54, 0.0 }
  0x44   : > { %342 = vadd.xlane.f32.xlu0 %v341_v23  ;;  %396 = vadd.xlane.f32.xlu2 %v395_v24 }
  0x45   : > { %345 = vadd.xlane.f32.xlu1 %v344_v25 }
  0x4c   : > { %351 = vadd.xlane.f32.xlu2 %v350_v29  ;;  %399 = vadd.xlane.f32.xlu0 %v398_v30 }
  0x4d   : > { %348 = vadd.xlane.f32.xlu1 %v347_v31  ;;  %v2243_v31 = vld [vmem:[%s2090_s14 + $0x58] sm:$0xff] }
  0x54   : > { %402 = vadd.xlane.f32.xlu2 %v401_v35  ;;  %405 = vadd.xlane.f32.xlu0 %v404_v36 }
  0x55   : > { %357 = vadd.xlane.f32.xlu1 %v356_v37 }
  0x5c   : > { %411 = vadd.xlane.f32.xlu2 %v410_v41  ;;  %354 = vadd.xlane.f32.xlu0 %v353_v42  ;;  %v368_v41 = vsel %vm334_vm0, %v2243_v31, 0.0 }
  0x5d   : > { %408 = vadd.xlane.f32.xlu1 %v407_v43 }
  0x64   : > { %360 = vadd.xlane.f32.xlu2 %v359_v47  ;;  %363 = vadd.xlane.f32.xlu0 %v362_v48 }
  0x65   : > { %417 = vadd.xlane.f32.xlu1 %v416_v49 }
  0x6c   : > { %414 = vadd.xlane.f32.xlu0 %v413_v51 }
  0xa7   : > { %v391_v59 = vpop.xlane.xlu2 %390  ;;  %v385_v60 = vpop.xlane.xlu0 %384 }
  0xa8   : > { %v454_v61 = vmul.f32 %v2202_v58, %v385_v60  ;;  %v337_v62 = vpop.xlane.xlu1 %336  ;;  %v456_v35 = vmul.f32 %v2202_v58, %v391_v59 }
  0xa9   : > { %v438_v11 = vmul.f32 %v2202_v58, %v337_v62 }
  0xaa   : > { %v2206_v63 = vsub.f32 %v2096_v9, %v454_v61  ;;  %v2253_v43 = vsub.f32 %v2093_v8, %v456_v35 }
  0xab   : > { %v2231_v23 = vsub.f32 %v2099_v10, %v438_v11 }
  0xac   : > { %v518_v0 = vmul.f32 %v2206_v63, %v2206_v63  ;;  %v520_v55 = vmul.f32 %v2253_v43, %v2253_v43 }
  0xad   : > { %v502_v10 = vmul.f32 %v2231_v23, %v2231_v23 }
  0xae   : > { %v582_v1 = vsel %vm334_vm0, %v518_v0, 0.0  ;;  %v588_v62 = vsel %vm334_vm0, %v520_v55, 0.0 }
  0xaf   : > { %v394_v2 = vpop.xlane.xlu2 %393  ;;  %v388_v3 = vpop.xlane.xlu0 %387  ;;  %583 = vadd.xlane.f32.xlu0 %v582_v1 }
  0xb0   : > { %v457_v4 = vmul.f32 %v2202_v58, %v394_v2  ;;  %v455_v5 = vmul.f32 %v2202_v58, %v388_v3  ;;  %v340_v6 = vpop.xlane.xlu1 %339 }
  0xb1   : > { %v439_v7 = vmul.f32 %v2202_v58, %v340_v6 }
  0xb2   : > { %v2216_v9 = vsub.f32 %v2108_v14, %v457_v4  ;;  %v2219_v12 = vsub.f32 %v2111_v15, %v455_v5 }
  0xb3   : > { %v2222_v13 = vsub.f32 %v2114_v16, %v439_v7 }
  0xb4   : > { %v521_v17 = vmul.f32 %v2216_v9, %v2216_v9  ;;  %v519_v18 = vmul.f32 %v2219_v12, %v2219_v12 }
  0xb5   : > { %v503_v19 = vmul.f32 %v2222_v13, %v2222_v13 }
  0xb6   : > { %v591_v14 = vsel %vm334_vm0, %v521_v17, 0.0  ;;  %v585_v15 = vsel %vm334_vm0, %v519_v18, 0.0  ;;  %v2299_v17 = vld [vmem:[%s2090_s14 + $0x60] sm:$0xff] }
  0xb7   : > { %592 = vadd.xlane.f32.xlu0 %v591_v14  ;;  %v343_v16 = vpop.xlane.xlu0 %342  ;;  %586 = vadd.xlane.f32.xlu1 %v585_v15  ;;  %v537_v24 = vsel %vm334_vm0, %v503_v19, 0.0  ;;  %v397_v25 = vpop.xlane.xlu2 %396  ;;  %v371_v15 = vsel %vm334_vm0, %v2299_v17, 0.0 }
  0xb8   : > { %v440_v29 = vmul.f32 %v2202_v58, %v343_v16  ;;  %538 = vadd.xlane.f32.xlu2 %v537_v24  ;;  %v346_v37 = vpop.xlane.xlu1 %345  ;;  %v458_v2 = vmul.f32 %v2202_v58, %v397_v25 }
  0xb9   : > { %v441_v51 = vmul.f32 %v2202_v58, %v346_v37  ;;  %v2321_v37 = vld [vmem:[%s2090_s14 + $0xe0] sm:$0xff] }
  0xba   : > { %v2238_v30 = vsub.f32 %v2123_v20, %v440_v29  ;;  %v534_v20 = vsel %vm334_vm0, %v502_v10, 0.0  ;;  %v2295_v7 = vsub.f32 %v2126_v21, %v458_v2 }
  0xbb   : > { %v2274_v59 = vsub.f32 %v2129_v22, %v441_v51 }
  0xbc   : > { %v504_v36 = vmul.f32 %v2238_v30, %v2238_v30  ;;  %v522_v19 = vmul.f32 %v2295_v7, %v2295_v7 }
  0xbd   : > { %v505_v0 = vmul.f32 %v2274_v59, %v2274_v59 }
  0xbe   : > { %v540_v42 = vsel %vm334_vm0, %v504_v36, 0.0  ;;  %v594_v24 = vsel %vm334_vm0, %v522_v19, 0.0  ;;  %v2371_v19 = vld [vmem:[%s2090_s14 + $0xf0] sm:$0xff] }
  0xbf   : > { %541 = vadd.xlane.f32.xlu0 %v540_v42  ;;  %535 = vadd.xlane.f32.xlu1 %v534_v20  ;;  %v352_v47 = vpop.xlane.xlu2 %351  ;;  %v400_v48 = vpop.xlane.xlu0 %399  ;;  %v543_v4 = vsel %vm334_vm0, %v505_v0, 0.0 }
  0xc0   : > { %369 = vadd.xlane.f32.xlu2 %v368_v41  ;;  %v443_v49 = vmul.f32 %v2202_v58, %v352_v47  ;;  %v459_v53 = vmul.f32 %v2202_v58, %v400_v48  ;;  %v349_v61 = vpop.xlane.xlu1 %348  ;;  %v419_v48 = vsel %vm334_vm0, %v2321_v37, 0.0 }
  0xc1   : > { %v442_v1 = vmul.f32 %v2202_v58, %v349_v61 }
  0xc2   : > { %v2267_v8 = vsub.f32 %v2138_v26, %v443_v49  ;;  %v2277_v60 = vsub.f32 %v2141_v27, %v459_v53 }
  0xc3   : > { %v2292_v6 = vsub.f32 %v2144_v28, %v442_v1 }
  0xc4   : > { %v507_v26 = vmul.f32 %v2267_v8, %v2267_v8  ;;  %v523_v22 = vmul.f32 %v2277_v60, %v2277_v60 }
  0xc5   : > { %v506_v18 = vmul.f32 %v2292_v6, %v2292_v6 }
  0xc6   : > { %v549_v3 = vsel %vm334_vm0, %v507_v26, 0.0  ;;  %v597_v5 = vsel %vm334_vm0, %v523_v22, 0.0 }
  0xc7   : > { %423 = vadd.xlane.f32.xlu0 %v422_v56  ;;  %366 = vadd.xlane.f32.xlu1 %v365_v57  ;;  %v403_v27 = vpop.xlane.xlu2 %402  ;;  %v406_v14 = vpop.xlane.xlu0 %405  ;;  %v546_v16 = vsel %vm334_vm0, %v506_v18, 0.0 }
  0xc8   : > { %589 = vadd.xlane.f32.xlu2 %v588_v62  ;;  %v460_v11 = vmul.f32 %v2202_v58, %v403_v27  ;;  %v358_v25 = vpop.xlane.xlu1 %357  ;;  %v461_v35 = vmul.f32 %v2202_v58, %v406_v14  ;;  %v2376_v14 = vld [vmem:[%s2090_s14 + $0x78] sm:$0xff] }
  0xc9   : > { %v445_v36 = vmul.f32 %v2202_v58, %v358_v25 }
  0xca   : > { %v2306_v21 = vsub.f32 %v2153_v32, %v460_v11  ;;  %v2317_v32 = vld [vmem:[%s2090_s14 + $0x68] sm:$0xff]  ;;  %v2328_v20 = vsub.f32 %v2156_v33, %v461_v35 }
  0xcb   : > { %v374_v47 = vsel %vm334_vm0, %v2317_v32, 0.0  ;;  %v2335_v49 = vsub.f32 %v2159_v34, %v445_v36  ;;  %v2391_v36 = vld [vmem:[%s2090_s14 + $0x70] sm:$0xff] }
  0xcc   : > { %v524_v10 = vmul.f32 %v2306_v21, %v2306_v21  ;;  %v525_v56 = vmul.f32 %v2328_v20, %v2328_v20 }
  0xcd   : > { %v509_v34 = vmul.f32 %v2335_v49, %v2335_v49 }
  0xce   : > { %v600_v42 = vsel %vm334_vm0, %v524_v10, 0.0  ;;  %v603_v26 = vsel %vm334_vm0, %v525_v56, 0.0  ;;  %v1673_v56 = vld [vmem:[%s2409_s30 + $0x34] sm:$0xf] }
  0xcf   : > { %550 = vadd.xlane.f32.xlu0 %v549_v3  ;;  %544 = vadd.xlane.f32.xlu1 %v543_v4  ;;  %v412_v28 = vpop.xlane.xlu2 %411  ;;  %v355_v53 = vpop.xlane.xlu0 %354  ;;  %v555_v0 = vsel %vm334_vm0, %v509_v34, 0.0 }
  0xd0   : > { %598 = vadd.xlane.f32.xlu2 %v597_v5  ;;  %v463_v29 = vmul.f32 %v2202_v58, %v412_v28  ;;  %v444_v55 = vmul.f32 %v2202_v58, %v355_v53  ;;  %v409_v22 = vpop.xlane.xlu1 %408 }
  0xd1   : > { %v462_v27 = vmul.f32 %v2202_v58, %v409_v22  ;;  %v1672_v22 = vld [vmem:[%s2409_s30 + $0x24] sm:$0xf0] }
  0xd2   : > { %v2324_v41 = vsub.f32 %v2168_v38, %v463_v29  ;;  %v2350_v62 = vsub.f32 %v2171_v39, %v444_v55  ;;  %v2360_v39 = vld [vmem:[%s2090_s14 + $0xf8] sm:$0xff] }
  0xd3   : > { %v428_v5 = vsel %vm334_vm0, %v2360_v39, 0.0  ;;  %v2367_v11 = vsub.f32 %v2174_v40, %v462_v27  ;;  %v425_v40 = vsel %vm334_vm0, %v2371_v19, 0.0  ;;  %v1674_v55 = vld [vmem:[%s2409_s30 + $0x34] sm:$0xf0]  ;;  %v1615_v27 = vld [vmem:[%s2409_s30 + $0x28] sm:$0xf0] }
  0xd4   : > { %v527_v33 = vmul.f32 %v2324_v41, %v2324_v41 }
  0xd5   : > { %v526_v28 = vmul.f32 %v2367_v11, %v2367_v11 }
  0xd6   : > { %v609_v61 = vsel %vm334_vm0, %v527_v33, 0.0 }
  0xd7   : > { %372 = vadd.xlane.f32.xlu0 %v371_v15  ;;  %595 = vadd.xlane.f32.xlu1 %v594_v24  ;;  %v361_v51 = vpop.xlane.xlu2 %360  ;;  %v364_v2 = vpop.xlane.xlu0 %363  ;;  %v606_v24 = vsel %vm334_vm0, %v526_v28, 0.0  ;;  %v1669_v28 = vld [vmem:[%s2409_s30 + $0x14] sm:$0xf] }
  0xd8   : > { %547 = vadd.xlane.f32.xlu2 %v546_v16  ;;  %v446_v38 = vmul.f32 %v2202_v58, %v361_v51  ;;  %v447_v18 = vmul.f32 %v2202_v58, %v364_v2  ;;  %v380_v16 = vsel %vm334_vm0, %v2376_v14, 0.0  ;;  %v418_v29 = vpop.xlane.xlu1 %417 }
  0xd9   : > { %v465_v35 = vmul.f32 %v2202_v58, %v418_v29  ;;  %v1597_v29 = vld [vmem:[%s2409_s30] sm:$0xf] }
  0xda   : > { %v2346_v57 = vsub.f32 %v2183_v44, %v446_v38  ;;  %v508_v44 = vmul.f32 %v2350_v62, %v2350_v62  ;;  %v2379_v15 = vsub.f32 %v2186_v45, %v447_v18  ;;  %v1670_v18 = vld [vmem:[%s2409_s30 + $0x14] sm:$0xf0] }
  0xdb   : > { %v2400_v51 = vsub.f32 %v2189_v46, %v465_v35  ;;  %v1621_v46 = vld [vmem:[%s2409_s30 + $0x30] sm:$0xf] }
  0xdc   : > { %v510_v1 = vmul.f32 %v2346_v57, %v2346_v57  ;;  %v552_v4 = vsel %vm334_vm0, %v508_v44, 0.0  ;;  %v511_v45 = vmul.f32 %v2379_v15, %v2379_v15  ;;  %v1622_v34 = vor.u32 %v1674_v55, %v1621_v46 }
  0xdd   : > { %v529_v38 = vmul.f32 %v2400_v51, %v2400_v51 }
  0xde   : > { %v558_v3 = vsel %vm334_vm0, %v510_v1, 0.0  ;;  %1676 = vmatpush.bf16.msra.mxu2 %v1622_v34  ;;  %1232 = vmatpush.bf16.msra.mxu0 %v1622_v34  ;;  %v1671_v1 = vld [vmem:[%s2409_s30 + $0x24] sm:$0xf] }
  0xdf   : > { %601 = vadd.xlane.f32.xlu0 %v600_v42  ;;  %375 = vadd.xlane.f32.xlu1 %v374_v47  ;;  %v415_v25 = vpop.xlane.xlu0 %414  ;;  %v561_v47 = vsel %vm334_vm0, %v511_v45, 0.0  ;;  %v1618_v2 = vor.u32 %v1671_v1, %v1615_v27  ;;  %v1667_v45 = vld [vmem:[%s2409_s30 + $0x4] sm:$0xf] }
  0xe0   : > { %420 = vadd.xlane.f32.xlu2 %v419_v48  ;;  %v464_v10 = vmul.f32 %v2202_v58, %v415_v25  ;;  %v377_v48 = vsel %vm334_vm0, %v2391_v36, 0.0 }
  0xe2   : > { %v2394_v42 = vsub.f32 %v2198_v50, %v464_v10  ;;  %v615_v50 = vsel %vm334_vm0, %v529_v38, 0.0  ;;  %v1668_v10 = vld [vmem:[%s2409_s30 + $0x4] sm:$0xf0] }
  0xe3   : > { %v1598_v35 = vor.u32 %v1668_v10, %v1597_v29 }
  0xe4   : > { %v528_v53 = vmul.f32 %v2394_v42, %v2394_v42 }
  0xe6   : > { %v612_v33 = vsel %vm334_vm0, %v528_v53, 0.0 }
  0xe7   : > { %610 = vadd.xlane.f32.xlu0 %v609_v61  ;;  %604 = vadd.xlane.f32.xlu1 %v603_v26  ;;  %v1623_v61 = vld [vmem:[%s2409_s30 + $0x38] sm:$0xf0] }
  0xe8   : > { %556 = vadd.xlane.f32.xlu2 %v555_v0  ;;  %v1626_v26 = vor.u32 %v1673_v56, %v1623_v61  ;;  %v1613_v0 = vld [vmem:[%s2409_s30 + $0x20] sm:$0xf] }
  0xe9   : > { %v1614_v44 = vor.u32 %v1672_v22, %v1613_v0 }
  0xea   : > { %1680 = vmatpush.bf16.msra.mxu3 %v1626_v26  ;;  %1321 = vmatpush.bf16.msra.mxu1 %v1626_v26 }
  0xeb   : > { %1677 = vmatpush.bf16.msra.mxu2 %v1614_v44  ;;  %1233 = vmatpush.bf16.msra.mxu0 %v1614_v44 }
  0xee   : > { %1681 = vmatpush.bf16.msra.mxu3 %v1618_v2  ;;  %1322 = vmatpush.bf16.msra.mxu1 %v1618_v2 }
  0xef   : > { %559 = vadd.xlane.f32.xlu0 %v558_v3  ;;  %553 = vadd.xlane.f32.xlu1 %v552_v4 }
  0xf0   : > { %429 = vadd.xlane.f32.xlu2 %v428_v5  ;;  %v1605_v5 = vld [vmem:[%s2409_s30 + $0x10] sm:$0xf] }
  0xf7   : > { %426 = vadd.xlane.f32.xlu1 %v425_v40  ;;  %381 = vadd.xlane.f32.xlu0 %v380_v16  ;;  %v1606_v40 = vor.u32 %v1670_v18, %v1605_v5  ;;  %v1607_v16 = vld [vmem:[%s2409_s30 + $0x18] sm:$0xf0] }
  0xf8   : > { %607 = vadd.xlane.f32.xlu2 %v606_v24  ;;  %v1610_v25 = vor.u32 %v1669_v28, %v1607_v16 }
  0xf9   : > { %1678 = vmatpush.bf16.msra.mxu2 %v1606_v40  ;;  %1234 = vmatpush.bf16.msra.mxu0 %v1606_v40 }
  0xfa   : > { %1682 = vmatpush.bf16.msra.mxu3 %v1610_v25  ;;  %1323 = vmatpush.bf16.msra.mxu1 %v1610_v25 }
  0xfd   : > { %1679 = vmatpush.bf16.msra.mxu2 %v1598_v35  ;;  %1235 = vmatpush.bf16.msra.mxu0 %v1598_v35 }
  0xff   : > { %562 = vadd.xlane.f32.xlu1 %v561_v47  ;;  %v1599_v47 = vld [vmem:[%s2409_s30 + $0x8] sm:$0xf0]  ;;  %s1859_s30 = sshra.s32 %s1489_s25, 4  ;;  %s1860_s30 = int_to_ptr.hbm [resolvable:$true] %s1859_s30 }
 0x100   : > { %378 = vadd.xlane.f32.xlu2 %v377_v48  ;;  %v1602_v48 = vor.u32 %v1667_v45, %v1599_v47  ;;  %s1861_s18 = scalar_lea.hbm %s1860_s30, 512  ;;  %p1866_p7 = scmp.lt.s32.totalorder %s1860_s30, %s3174_s4 }
 0x101   : > { %p1862_p4 = scmp.ne.s32.totalorder %s1860_s30, %s1861_s18  ;;  %p1867_p8 = scmp.lt.s32.totalorder %s1865_s5, %s1861_s18 }
 0x102   : > { %1683 = vmatpush.bf16.msra.mxu3 %v1602_v48  ;;  %1324 = vmatpush.bf16.msra.mxu1 %v1602_v48 }
 0x103   : > { %p1863_p5 = pnand %p1862_p4, %p2065_p10  ;;  %p1868_p9 = por %p1867_p8, %p1866_p7 }
 0x105   : > { %p1864_p6 = pneg %p1863_p5 }
 0x107   : > { %613 = vadd.xlane.f32.xlu1 %v612_v33  ;;  %p1869_p11 = pnand %p1868_p9, %p1864_p6 }
 0x108   : > { %616 = vadd.xlane.f32.xlu2 %v615_v50 }
 0x122   : > { %v584_v3 = vpop.xlane.xlu0 %583 }
 0x123   : > { %v646_v4 = vmul.f32 %v584_v3, %v2202_v58 }
 0x125   : > { %v678_v24 = vadd.f32 1e-05, %v646_v4 }
 0x127   : > { %1779 = vrsqrt.f32 %v678_v24  ;;  %vm860_vm3 = vweird.f32 %v678_v24 }
 0x12a   : > { %v593_v53 = vpop.xlane.xlu0 %592  ;;  %v587_v38 = vpop.xlane.xlu1 %586 }
 0x12b   : > { %v649_v33 = vmul.f32 %v593_v53, %v2202_v58  ;;  %v539_v50 = vpop.xlane.xlu2 %538  ;;  %v647_v46 = vmul.f32 %v587_v38, %v2202_v58 }
 0x12c   : > { %v631_v55 = vmul.f32 %v539_v50, %v2202_v58 }
 0x12d   : > { %v1780_v56 = vpop.eup %1779  ;;  %v2431_v34 = vadd.f32 1e-05, %v649_v33  ;;  %v2433_v61 = vadd.f32 1e-05, %v647_v46 }
 0x12e   : > { %v855_v26 = vmul.f32 %v1780_v56, %v678_v24  ;;  %v2435_v0 = vadd.f32 1e-05, %v631_v55  ;;  %vm861_vm2 = vweird.f32 %v1780_v56 }
 0x12f   : > { %1781 = vrsqrt.f32 %v2431_v34  ;;  %vm2463_vm4 = vmor %vm860_vm3, %vm861_vm2  ;;  %vm890_vm5 = vweird.f32 %v2431_v34  ;;  %vm870_vm7 = vweird.f32 %v2433_v61 }
 0x130   : > { %v856_v22 = vmul.f32 %v1780_v56, %v855_v26  ;;  %1783 = vrsqrt.f32 %v2435_v0  ;;  %vm710_vm6 = vweird.f32 %v2435_v0 }
 0x131   : > { %1785 = vrsqrt.f32 %v2433_v61 }
 0x132   : > { %v857_v1 = vmul.f32 0.5, %v856_v22  ;;  %v542_v44 = vpop.xlane.xlu0 %541  ;;  %v536_v27 = vpop.xlane.xlu1 %535 }
 0x133   : > { %v632_v2 = vmul.f32 %v542_v44, %v2202_v58  ;;  %v370_v3 = vpop.xlane.xlu2 %369  ;;  %v630_v4 = vmul.f32 %v536_v27, %v2202_v58 }
 0x134   : > { %v858_v5 = vsub.f32 1.5, %v857_v1  ;;  %v449_v18 = vmul.f32 %v2202_v58, %v370_v3 }
 0x135   : > { %v2443_v28 = vpop.eup %1781  ;;  %v2445_v40 = vadd.f32 1e-05, %v632_v2  ;;  %v2447_v16 = vadd.f32 1e-05, %v630_v4 }
 0x136   : > { %v2449_v25 = vpop.eup %1783  ;;  %v885_v29 = vmul.f32 %v2443_v28, %v2431_v34  ;;  %v2454_v10 = vsub.f32 %v2243_v31, %v449_v18  ;;  %v859_v35 = vmul.f32 %v1780_v56, %v858_v5  ;;  %vm891_vm9 = vweird.f32 %v2443_v28 }
 0x137   : > { %v1786_v45 = vpop.eup %1785  ;;  %v705_v47 = vmul.f32 %v2449_v25, %v2435_v0  ;;  %1787 = vrsqrt.f32 %v2445_v40  ;;  %vm711_vm10 = vweird.f32 %v2449_v25  ;;  %vm720_vm12 = vweird.f32 %v2445_v40  ;;  %vm2549_vm1 = vmor %vm890_vm5, %vm891_vm9 }
 0x138   : > { %v886_v48 = vmul.f32 %v2443_v28, %v885_v29  ;;  %v865_v53 = vmul.f32 %v1786_v45, %v2433_v61  ;;  %1789 = vrsqrt.f32 %v2447_v16  ;;  %v513_v46 = vmul.f32 %v2454_v10, %v2454_v10  ;;  %vm2521_vm13 = vmor %vm710_vm6, %vm711_vm10 }
 0x139   : > { %v706_v38 = vmul.f32 %v2449_v25, %v705_v47  ;;  %v863_v26 = vsel %vm2463_vm4, %v1780_v56, %v859_v35  ;;  %vm871_vm8 = vweird.f32 %v1786_v45  ;;  %vm700_vm15 = vweird.f32 %v2447_v16 }
 0x13a   : > { %v866_v33 = vmul.f32 %v1786_v45, %v865_v53  ;;  %v424_v50 = vpop.xlane.xlu0 %423  ;;  %v367_v55 = vpop.xlane.xlu1 %366  ;;  %v887_v22 = vmul.f32 0.5, %v886_v48  ;;  %v567_v4 = vsel %vm334_vm0, %v513_v46, 0.0  ;;  %v1030_v29 = vmul.f32 %v863_v26, %v2206_v63  ;;  %v2489_v48 = vld [vmem:[%s3171_s1] ss:$0 sm:$0xff]  ;;  %vm872_vm11 = vmor %vm870_vm7, %vm871_vm8 }
 0x13b   : > { %v707_v1 = vmul.f32 0.5, %v706_v38  ;;  %v590_v24 = vpop.xlane.xlu2 %589  ;;  %v448_v44 = vmul.f32 %v2202_v58, %v367_v55  ;;  %v467_v2 = vmul.f32 %v2202_v58, %v424_v50  ;;  %568 = vadd.xlane.f32.xlu1 %v567_v4 }
 0x13c   : > { %v867_v27 = vmul.f32 0.5, %v866_v33  ;;  %v648_v3 = vmul.f32 %v590_v24, %v2202_v58  ;;  %v888_v38 = vsub.f32 1.5, %v887_v22 }
 0x13d   : > { %v2475_v5 = vpop.eup %1787  ;;  %v708_v18 = vsub.f32 1.5, %v707_v1  ;;  %v2481_v56 = vsub.f32 %v2262_v54, %v448_v44  ;;  %v2499_v46 = vsub.f32 %v2258_v52, %v467_v2 }
 0x13e   : > { %v868_v35 = vsub.f32 1.5, %v867_v27  ;;  %v715_v47 = vmul.f32 %v2475_v5, %v2445_v40  ;;  %v1790_v53 = vpop.eup %1789  ;;  %v2492_v31 = vadd.f32 1e-05, %v648_v3  ;;  %v1065_v27 = vmul.f32 %v2489_v48, %v1030_v29 }
 0x13f   : > { %v512_v54 = vmul.f32 %v2481_v56, %v2481_v56  ;;  %v695_v50 = vmul.f32 %v1790_v53, %v2447_v16  ;;  %v709_v55 = vmul.f32 %v2449_v25, %v708_v18  ;;  %v889_v52 = vmul.f32 %v2443_v28, %v888_v38  ;;  %v2515_v18 = vld [vmem:[%s3172_s2] ss:$0 sm:$0xff] }
 0x140   : > { %v869_v63 = vmul.f32 %v1786_v45, %v868_v35  ;;  %v716_v33 = vmul.f32 %v2475_v5, %v715_v47  ;;  %1791 = vrsqrt.f32 %v2492_v31  ;;  %v531_v47 = vmul.f32 %v2499_v46, %v2499_v46 }
 0x141   : > { %v696_v1 = vmul.f32 %v1790_v53, %v695_v50  ;;  %v564_v61 = vsel %vm334_vm0, %v512_v54, 0.0  ;;  %v713_v38 = vsel %vm2521_vm13, %v2449_v25, %v709_v55  ;;  %vm701_vm14 = vweird.f32 %v1790_v53 }
 0x142   : > { %v873_v26 = vsel %vm872_vm11, %v1786_v45, %v869_v63  ;;  %v717_v22 = vmul.f32 0.5, %v716_v33  ;;  %v551_v24 = vpop.xlane.xlu0 %550  ;;  %v545_v44 = vpop.xlane.xlu1 %544  ;;  %565 = vadd.xlane.f32.xlu0 %v564_v61  ;;  %vm721_vm2 = vweird.f32 %v2475_v5  ;;  %vm702_vm3 = vmor %vm700_vm15, %vm701_vm14  ;;  %v621_v34 = vsel %vm334_vm0, %v531_v47, 0.0 }
 0x143   : > { %v1031_v2 = vmul.f32 %v873_v26, %v2219_v12  ;;  %v635_v3 = vmul.f32 %v551_v24, %v2202_v58  ;;  %v599_v4 = vpop.xlane.xlu2 %598  ;;  %v697_v29 = vmul.f32 0.5, %v696_v1  ;;  %v633_v35 = vmul.f32 %v545_v44, %v2202_v58  ;;  %vm2574_vm4 = vmor %vm720_vm12, %vm721_vm2 }
 0x144   : > { %v651_v12 = vmul.f32 %v599_v4, %v2202_v58  ;;  %v718_v54 = vsub.f32 1.5, %v717_v22  ;;  %v1100_v24 = vadd.f32 %v2515_v18, %v1065_v27  ;;  %v1015_v22 = vmul.f32 %v713_v38, %v2222_v13 }
 0x145   : > { %v2532_v63 = vadd.f32 1e-05, %v635_v3  ;;  %v1066_v0 = vmul.f32 %v2489_v48, %v1031_v2  ;;  %v698_v33 = vsub.f32 1.5, %v697_v29  ;;  %v2537_v26 = vadd.f32 1e-05, %v633_v35 }
 0x146   : > { %v2535_v50 = vadd.f32 1e-05, %v651_v12  ;;  %v2539_v1 = vpop.eup %1791  ;;  %v893_v27 = vsel %vm2549_vm1, %v2443_v28, %v889_v52  ;;  %v719_v2 = vmul.f32 %v2475_v5, %v718_v54  ;;  %v1050_v38 = vmul.f32 %v2489_v48, %v1015_v22 }
 0x147   : > { %1793 = vrsqrt.f32 %v2532_v63  ;;  %v1101_v25 = vadd.f32 %v2515_v18, %v1066_v0  ;;  %v699_v44 = vmul.f32 %v1790_v53, %v698_v33  ;;  %v875_v16 = vmul.f32 %v2539_v1, %v2492_v31 }
 0x148   : > { %1795 = vrsqrt.f32 %v2535_v50  ;;  %v1033_v35 = vmul.f32 %v893_v27, %v2216_v9  ;;  %v723_v9 = vsel %vm2574_vm4, %v2475_v5, %v719_v2  ;;  %vm881_vm5 = vweird.f32 %v2539_v1 }
 0x149   : > { %v703_v3 = vsel %vm702_vm3, %v1790_v53, %v699_v44  ;;  %v876_v13 = vmul.f32 %v2539_v1, %v875_v16  ;;  %1797 = vrsqrt.f32 %v2537_v26  ;;  %v1124_v4 = vpack.c.bf16 %v1101_v25, %v1100_v24 }
 0x14a   : > { %v373_v61 = vpop.xlane.xlu0 %372  ;;  %v596_v45 = vpop.xlane.xlu1 %595  ;;  %v1014_v29 = vmul.f32 %v703_v3, %v2231_v23  ;;  %622 = vadd.xlane.f32.xlu0 %v621_v34  ;;  %vm880_vm6 = vweird.f32 %v2492_v31  ;;  %v1085_v34 = vadd.f32 %v2515_v18, %v1050_v38  ;;  %v1016_v31 = vmul.f32 %v723_v9, %v2238_v30 }
 0x14b   : > { %v450_v28 = vmul.f32 %v2202_v58, %v373_v61  ;;  %v548_v52 = vpop.xlane.xlu2 %547  ;;  %v650_v12 = vmul.f32 %v596_v45, %v2202_v58  ;;  %v877_v47 = vmul.f32 0.5, %v876_v13  ;;  %1635 = vmatmul.msk.bf16.vlgmr.msra.gmra.mxu2 %vm334_vm0, %v1124_v4  ;;  %1651 = vmatmul.msk.bf16.vlgmr.msra.gmra.mxu3 %vm334_vm0, %v1124_v4  ;;  %vm882_vm7 = vmor %vm880_vm6, %vm881_vm5  ;;  %v1068_v13 = vmul.f32 %v2489_v48, %v1033_v35 }
 0x14c   : > { %v634_v23 = vmul.f32 %v548_v52, %v2202_v58  ;;  %v1049_v33 = vmul.f32 %v2489_v48, %v1014_v29  ;;  %vm730_vm8 = vweird.f32 %v2537_v26  ;;  %vm910_vm9 = vweird.f32 %v2535_v50 }
 0x14d   : > { %v2582_v54 = vpop.eup %1793  ;;  %v2588_v40 = vsub.f32 %v2299_v17, %v450_v28  ;;  %v2590_v0 = vadd.f32 1e-05, %v650_v12  ;;  %v878_v24 = vsub.f32 1.5, %v877_v47  ;;  %vm750_vm11 = vweird.f32 %v2532_v63 }
 0x14e   : > { %v745_v25 = vmul.f32 %v2582_v54, %v2532_v63  ;;  %v2596_v55 = vadd.f32 1e-05, %v634_v23  ;;  %v2598_v22 = vpop.eup %1795  ;;  %v1084_v17 = vadd.f32 %v2515_v18, %v1049_v33  ;;  %vm751_vm12 = vweird.f32 %v2582_v54 }
 0x14f   : > { %1799 = vrsqrt.f32 %v2590_v0  ;;  %v514_v5 = vmul.f32 %v2588_v40, %v2588_v40  ;;  %v2605_v44 = vpop.eup %1797  ;;  %v879_v16 = vmul.f32 %v2539_v1, %v878_v24  ;;  %v905_v2 = vmul.f32 %v2598_v22, %v2535_v50  ;;  %vm2718_vm6 = vmor %vm750_vm11, %vm751_vm12 }
 0x150   : > { %v746_v27 = vmul.f32 %v2582_v54, %v745_v25  ;;  %v725_v3 = vmul.f32 %v2605_v44, %v2537_v26  ;;  %1801 = vrsqrt.f32 %v2596_v55  ;;  %v1116_v29 = vpack.c.bf16 %v1085_v34, %v1084_v17 }
 0x151   : > { %v883_v4 = vsel %vm882_vm7, %v2539_v1, %v879_v16  ;;  %v906_v45 = vmul.f32 %v2598_v22, %v905_v2  ;;  %v570_v47 = vsel %vm334_vm0, %v514_v5, 0.0  ;;  %v2633_v24 = vmul.f32 %v2489_v48, %v1016_v31 }
 0x152   : > { %v747_v61 = vmul.f32 0.5, %v746_v27  ;;  %v602_v28 = vpop.xlane.xlu0 %601  ;;  %v376_v52 = vpop.xlane.xlu1 %375  ;;  %v1032_v12 = vmul.f32 %v883_v4, %v2253_v43  ;;  %v726_v30 = vmul.f32 %v2605_v44, %v725_v3  ;;  %1627 = vmatmul.msk.bf16.vlgmr.msra.gmra.mxu0 %vm334_vm0, %v1116_v29  ;;  %1643 = vmatmul.msk.bf16.vlgmr.msra.gmra.mxu1 %vm334_vm0, %v1116_v29  ;;  %vm731_vm10 = vweird.f32 %v2605_v44 }
 0x153   : > { %v652_v53 = vmul.f32 %v602_v28, %v2202_v58  ;;  %v421_v23 = vpop.xlane.xlu2 %420  ;;  %v907_v38 = vmul.f32 0.5, %v906_v45  ;;  %571 = vadd.xlane.f32.xlu1 %v570_v47  ;;  %v1103_v5 = vadd.f32 %v2515_v18, %v1068_v13  ;;  %vm911_vm13 = vweird.f32 %v2598_v22  ;;  %vm732_vm15 = vmor %vm730_vm8, %vm731_vm10 }
 0x154   : > { %v466_v1 = vmul.f32 %v2202_v58, %v421_v23  ;;  %v748_v9 = vsub.f32 1.5, %v747_v61  ;;  %v727_v43 = vmul.f32 0.5, %v726_v30  ;;  %v1067_v17 = vmul.f32 %v2489_v48, %v1032_v12  ;;  %vm2682_vm2 = vmor %vm910_vm9, %vm911_vm13 }
 0x155   : > { %v2627_v35 = vpop.eup %1799  ;;  %v2630_v33 = vadd.f32 1e-05, %v652_v53  ;;  %v908_v27 = vsub.f32 1.5, %v907_v38  ;;  %vm900_vm14 = vweird.f32 %v2590_v0  ;;  %v451_v61 = vmul.f32 %v2202_v58, %v376_v52 }
 0x156   : > { %v895_v25 = vmul.f32 %v2627_v35, %v2590_v0  ;;  %v2640_v16 = vpop.eup %1801  ;;  %v728_v2 = vsub.f32 1.5, %v727_v43  ;;  %v2645_v34 = vsub.f32 %v2321_v37, %v466_v1  ;;  %v2653_v3 = vmul.f32 %v2582_v54, %v748_v9 }
 0x157   : > { %1803 = vrsqrt.f32 %v2630_v33  ;;  %v735_v31 = vmul.f32 %v2640_v16, %v2596_v55  ;;  %vm901_vm1 = vweird.f32 %v2627_v35  ;;  %v1102_v45 = vadd.f32 %v2515_v18, %v1067_v17 }
 0x158   : > { %v729_v13 = vmul.f32 %v2605_v44, %v728_v2  ;;  %v896_v4 = vmul.f32 %v2627_v35, %v895_v25  ;;  %v530_v28 = vmul.f32 %v2645_v34, %v2645_v34  ;;  %v909_v30 = vmul.f32 %v2598_v22, %v908_v27  ;;  %vm902_vm4 = vmor %vm900_vm14, %vm901_vm1 }
 0x159   : > { %v736_v37 = vmul.f32 %v2640_v16, %v735_v31  ;;  %v1125_v1 = vpack.c.bf16 %v1103_v5, %v1102_v45  ;;  %v2689_v31 = vsub.f32 %v2317_v32, %v451_v61  ;;  %vm741_vm3 = vweird.f32 %v2640_v16 }
 0x15a   : > { %v611_v29 = vpop.xlane.xlu0 %610  ;;  %v605_v12 = vpop.xlane.xlu1 %604  ;;  %v733_v52 = vsel %vm732_vm15, %v2605_v44, %v729_v13  ;;  %v897_v53 = vmul.f32 0.5, %v896_v4  ;;  %v618_v2 = vsel %vm334_vm0, %v530_v28, 0.0  ;;  %v913_v50 = vsel %vm2682_vm2, %v2598_v22, %v909_v30 }
 0x15b   : > { %v655_v47 = vmul.f32 %v611_v29, %v2202_v58  ;;  %v557_v26 = vpop.xlane.xlu2 %556  ;;  %v1017_v23 = vmul.f32 %v733_v52, %v2274_v59  ;;  %v737_v38 = vmul.f32 0.5, %v736_v37  ;;  %v653_v27 = vmul.f32 %v605_v12, %v2202_v58  ;;  %1636 = vmatmul.msk.bf16.gmra.mxu2 %vm334_vm0, %v1125_v1  ;;  %1652 = vmatmul.msk.bf16.gmra.mxu3 %vm334_vm0, %v1125_v1 }
 0x15c   : > { %v637_v9 = vmul.f32 %v557_v26, %v2202_v58  ;;  %v898_v25 = vsub.f32 1.5, %v897_v53  ;;  %619 = vadd.xlane.f32.xlu2 %v618_v2  ;;  %vm740_vm5 = vweird.f32 %v2596_v55  ;;  %v1035_v0 = vmul.f32 %v913_v50, %v2277_v60 }
 0x15d   : > { %v2672_v43 = vpop.eup %1803  ;;  %v2674_v17 = vadd.f32 1e-05, %v655_v47  ;;  %v738_v59 = vsub.f32 1.5, %v737_v38  ;;  %v2700_v37 = vadd.f32 1e-05, %v653_v27  ;;  %v1052_v45 = vmul.f32 %v2489_v48, %v1017_v23  ;;  %vm2728_vm7 = vmor %vm740_vm5, %vm741_vm3 }
 0x15e   : > { %v915_v5 = vmul.f32 %v2672_v43, %v2630_v33  ;;  %v2693_v13 = vadd.f32 1e-05, %v637_v9  ;;  %v899_v4 = vmul.f32 %v2627_v35, %v898_v25  ;;  %v1086_v55 = vadd.f32 %v2515_v18, %v2633_v24 }
 0x15f   : > { %1805 = vrsqrt.f32 %v2674_v17  ;;  %v739_v32 = vmul.f32 %v2640_v16, %v738_v59  ;;  %v1087_v63 = vadd.f32 %v2515_v18, %v1052_v45  ;;  %v515_v60 = vmul.f32 %v2689_v31, %v2689_v31 }
 0x160   : > { %v916_v61 = vmul.f32 %v2672_v43, %v915_v5  ;;  %1807 = vrsqrt.f32 %v2693_v13  ;;  %v903_v22 = vsel %vm902_vm4, %v2627_v35, %v899_v4  ;;  %v753_v24 = vsel %vm2718_vm6, %v2582_v54, %v2653_v3 }
 0x161   : > { %1809 = vrsqrt.f32 %v2700_v37  ;;  %v1034_v28 = vmul.f32 %v903_v22, %v2295_v7  ;;  %v743_v26 = vsel %vm2728_vm7, %v2640_v16, %v739_v32  ;;  %v1117_v9 = vpack.c.bf16 %v1087_v63, %v1086_v55 }
 0x162   : > { %v917_v12 = vmul.f32 0.5, %v916_v61  ;;  %v560_v35 = vpop.xlane.xlu0 %559  ;;  %v554_v30 = vpop.xlane.xlu1 %553  ;;  %v1070_v3 = vmul.f32 %v2489_v48, %v1035_v0  ;;  %v573_v50 = vsel %vm334_vm0, %v515_v60, 0.0  ;;  %v1019_v4 = vmul.f32 %v753_v24, %v2267_v8 }
 0x163   : > { %v638_v53 = vmul.f32 %v560_v35, %v2202_v58  ;;  %v430_v47 = vpop.xlane.xlu2 %429  ;;  %v636_v7 = vmul.f32 %v554_v30, %v2202_v58  ;;  %v1069_v54 = vmul.f32 %v2489_v48, %v1034_v28  ;;  %1628 = vmatmul.msk.bf16.gmra.mxu0 %vm334_vm0, %v1117_v9  ;;  %1644 = vmatmul.msk.bf16.gmra.mxu1 %vm334_vm0, %v1117_v9  ;;  %vm920_vm8 = vweird.f32 %v2630_v33 }
 0x164   : > { %v469_v23 = vmul.f32 %v2202_v58, %v430_v47  ;;  %v918_v1 = vsub.f32 1.5, %v917_v12  ;;  %v1018_v32 = vmul.f32 %v743_v26, %v2292_v6  ;;  %574 = vadd.xlane.f32.xlu2 %v573_v50  ;;  %vm921_vm9 = vweird.f32 %v2672_v43 }
 0x165   : > { %v2745_v38 = vpop.eup %1805  ;;  %v2747_v25 = vadd.f32 1e-05, %v638_v53  ;;  %v2749_v2 = vadd.f32 1e-05, %v636_v7  ;;  %v1104_v6 = vadd.f32 %v2515_v18, %v1069_v54  ;;  %v1105_v29 = vadd.f32 %v2515_v18, %v1070_v3  ;;  %vm2786_vm10 = vmor %vm920_vm8, %vm921_vm9 }
 0x166   : > { %v2751_v27 = vpop.eup %1807  ;;  %v945_v44 = vmul.f32 %v2745_v38, %v2674_v17  ;;  %v2765_v5 = vsub.f32 %v2360_v39, %v469_v23  ;;  %v919_v22 = vmul.f32 %v2672_v43, %v918_v1  ;;  %v1053_v47 = vmul.f32 %v2489_v48, %v1018_v32 }
 0x167   : > { %v2757_v16 = vpop.eup %1809  ;;  %v765_v59 = vmul.f32 %v2751_v27, %v2693_v13  ;;  %1811 = vrsqrt.f32 %v2747_v25  ;;  %v1126_v63 = vpack.c.bf16 %v1105_v29, %v1104_v6  ;;  %vm930_vm11 = vweird.f32 %v2700_v37 }
 0x168   : > { %v925_v61 = vmul.f32 %v2757_v16, %v2700_v37  ;;  %1813 = vrsqrt.f32 %v2749_v2  ;;  %v946_v39 = vmul.f32 %v2745_v38, %v945_v44  ;;  %v533_v12 = vmul.f32 %v2765_v5, %v2765_v5 }
 0x169   : > { %v766_v45 = vmul.f32 %v2751_v27, %v765_v59  ;;  %v923_v7 = vsel %vm2786_vm10, %v2672_v43, %v919_v22  ;;  %vm931_vm12 = vweird.f32 %v2757_v16  ;;  %v1054_v1 = vmul.f32 %v2489_v48, %v1019_v4 }
 0x16a   : > { %v926_v8 = vmul.f32 %v2757_v16, %v925_v61  ;;  %v427_v0 = vpop.xlane.xlu1 %426  ;;  %v627_v33 = vsel %vm334_vm0, %v533_v12, 0.0  ;;  %v947_v26 = vmul.f32 0.5, %v946_v39  ;;  %vm771_vm13 = vweird.f32 %v2751_v27  ;;  %v382_v32 = vpop.xlane.xlu0 %381  ;;  %vm932_vm1 = vmor %vm930_vm11, %vm931_vm12 }
 0x16b   : > { %v767_v28 = vmul.f32 0.5, %v766_v45  ;;  %v608_v55 = vpop.xlane.xlu2 %607  ;;  %v468_v35 = vmul.f32 %v2202_v58, %v427_v0  ;;  %1637 = vmatmul.msk.bf16.gmra.mxu2 %vm334_vm0, %v1126_v63  ;;  %1653 = vmatmul.msk.bf16.gmra.mxu3 %vm334_vm0, %v1126_v63  ;;  %v1088_v4 = vadd.f32 %v2515_v18, %v1053_v47  ;;  %v1036_v61 = vmul.f32 %v923_v7, %v2306_v21 }
 0x16c   : > { %v927_v52 = vmul.f32 0.5, %v926_v8  ;;  %v654_v53 = vmul.f32 %v608_v55, %v2202_v58  ;;  %628 = vadd.xlane.f32.xlu1 %v627_v33  ;;  %vm950_vm14 = vweird.f32 %v2674_v17  ;;  %vm770_vm15 = vweird.f32 %v2693_v13 }
 0x16d   : > { %v2792_v60 = vpop.eup %1811  ;;  %v768_v24 = vsub.f32 1.5, %v767_v28  ;;  %v2815_v50 = vsub.f32 %v2371_v19, %v468_v35  ;;  %v948_v22 = vsub.f32 1.5, %v947_v26  ;;  %vm2828_vm2 = vmor %vm770_vm15, %vm771_vm13  ;;  %v1089_v13 = vadd.f32 %v2515_v18, %v1054_v1 }
 0x16e   : > { %v928_v23 = vsub.f32 1.5, %v927_v52  ;;  %v2803_v9 = vpop.eup %1813  ;;  %v775_v43 = vmul.f32 %v2792_v60, %v2747_v25  ;;  %v2809_v54 = vadd.f32 1e-05, %v654_v53  ;;  %v453_v29 = vmul.f32 %v2202_v58, %v382_v32 }
 0x16f   : > { %v769_v44 = vmul.f32 %v2751_v27, %v768_v24  ;;  %v755_v59 = vmul.f32 %v2803_v9, %v2749_v2  ;;  %v1118_v12 = vpack.c.bf16 %v1089_v13, %v1088_v4  ;;  %v532_v55 = vmul.f32 %v2815_v50, %v2815_v50 }
 0x170   : > { %v929_v3 = vmul.f32 %v2757_v16, %v928_v23  ;;  %1815 = vrsqrt.f32 %v2809_v54  ;;  %v776_v6 = vmul.f32 %v2792_v60, %v775_v43  ;;  %v2845_v35 = vsub.f32 %v2376_v14, %v453_v29 }
 0x171   : > { %v756_v45 = vmul.f32 %v2803_v9, %v755_v59  ;;  %v773_v37 = vsel %vm2828_vm2, %v2751_v27, %v769_v44  ;;  %v1071_v27 = vmul.f32 %v2489_v48, %v1036_v61  ;;  %vm761_vm3 = vweird.f32 %v2803_v9 }
 0x172   : > { %v933_v21 = vsel %vm932_vm1, %v2757_v16, %v929_v3  ;;  %v563_v39 = vpop.xlane.xlu1 %562  ;;  %v624_v53 = vsel %vm334_vm0, %v532_v55, 0.0  ;;  %vm951_vm4 = vweird.f32 %v2745_v38  ;;  %vm760_vm5 = vweird.f32 %v2749_v2 }
 0x173   : > { %v1037_v8 = vmul.f32 %v933_v21, %v2328_v20  ;;  %v379_v0 = vpop.xlane.xlu2 %378  ;;  %v757_v28 = vmul.f32 0.5, %v756_v45  ;;  %v639_v30 = vmul.f32 %v563_v39, %v2202_v58  ;;  %1629 = vmatmul.msk.bf16.gmra.mxu0 %vm334_vm0, %v1118_v12  ;;  %1645 = vmatmul.msk.bf16.gmra.mxu1 %vm334_vm0, %v1118_v12  ;;  %v949_v24 = vmul.f32 %v2745_v38, %v948_v22  ;;  %vm762_vm6 = vmor %vm760_vm5, %vm761_vm3 }
 0x174   : > { %v452_v16 = vmul.f32 %v2202_v58, %v379_v0  ;;  %625 = vadd.xlane.f32.xlu0 %v624_v53  ;;  %v1106_v26 = vadd.f32 %v2515_v18, %v1071_v27  ;;  %v1021_v23 = vmul.f32 %v773_v37, %v2335_v49  ;;  %v777_v2 = vmul.f32 0.5, %v776_v6  ;;  %vm2879_vm7 = vmor %vm950_vm14, %vm951_vm4 }
 0x175   : > { %v1072_v20 = vmul.f32 %v2489_v48, %v1037_v8  ;;  %v758_v52 = vsub.f32 1.5, %v757_v28  ;;  %v2859_v14 = vadd.f32 1e-05, %v639_v30  ;;  %v517_v1 = vmul.f32 %v2845_v35, %v2845_v35 }
 0x176   : > { %v2852_v63 = vsub.f32 %v2391_v36, %v452_v16  ;;  %v1816_v47 = vpop.eup %1815  ;;  %v778_v37 = vsub.f32 1.5, %v777_v2  ;;  %vm940_vm9 = vweird.f32 %v2809_v54  ;;  %vm780_vm10 = vweird.f32 %v2747_v25 }
 0x177   : > { %v1107_v7 = vadd.f32 %v2515_v18, %v1072_v20  ;;  %v759_v36 = vmul.f32 %v2803_v9, %v758_v52  ;;  %v935_v33 = vmul.f32 %v1816_v47, %v2809_v54  ;;  %1817 = vrsqrt.f32 %v2859_v14 }
 0x178   : > { %v516_v59 = vmul.f32 %v2852_v63, %v2852_v63  ;;  %v579_v17 = vsel %vm334_vm0, %v517_v1, 0.0  ;;  %vm941_vm8 = vweird.f32 %v1816_v47  ;;  %v779_v55 = vmul.f32 %v2792_v60, %v778_v37 }
 0x179   : > { %v763_v44 = vsel %vm762_vm6, %v2803_v9, %v759_v36  ;;  %v936_v43 = vmul.f32 %v1816_v47, %v935_v33  ;;  %v1127_v3 = vpack.c.bf16 %v1107_v7, %v1106_v26  ;;  %v953_v9 = vsel %vm2879_vm7, %v2745_v38, %v949_v24  ;;  %vm942_vm11 = vmor %vm940_vm9, %vm941_vm8 }
 0x17a   : > { %v614_v4 = vpop.xlane.xlu1 %613  ;;  %v1020_v32 = vmul.f32 %v763_v44, %v2350_v62  ;;  %v576_v45 = vsel %vm334_vm0, %v516_v59, 0.0  ;;  %v1056_v62 = vmul.f32 %v2489_v48, %v1021_v23  ;;  %v1039_v29 = vmul.f32 %v953_v9, %v2324_v41 }
 0x17b   : > { %v617_v61 = vpop.xlane.xlu2 %616  ;;  %v656_v22 = vmul.f32 %v614_v4, %v2202_v58  ;;  %v937_v19 = vmul.f32 0.5, %v936_v43  ;;  %577 = vadd.xlane.f32.xlu2 %v576_v45  ;;  %1638 = vmatmul.msk.bf16.gmra.mxu2 %vm334_vm0, %v1127_v3  ;;  %vm781_vm12 = vweird.f32 %v2792_v60  ;;  %vm790_vm13 = vweird.f32 %v2859_v14 }
 0x17c   : > { %v657_v21 = vmul.f32 %v617_v61, %v2202_v58  ;;  %v1055_v39 = vmul.f32 %v2489_v48, %v1020_v32  ;;  %1654 = vmatmul.msk.bf16.gmra.mxu3 %vm334_vm0, %v1127_v3  ;;  %580 = vadd.xlane.f32.xlu0 %v579_v17  ;;  %v1091_v16 = vadd.f32 %v2515_v18, %v1056_v62  ;;  %vm782_vm15 = vmor %vm780_vm10, %vm781_vm12 }
 0x17d   : > { %v688_v13 = vadd.f32 1e-05, %v656_v22  ;;  %v938_v8 = vsub.f32 1.5, %v937_v19  ;;  %v1818_v6 = vpop.eup %1817  ;;  %v1074_v54 = vmul.f32 %v2489_v48, %v1039_v29  ;;  %v783_v24 = vsel %vm782_vm15, %v2792_v60, %v779_v55 }
 0x17e   : > { %v689_v38 = vadd.f32 1e-05, %v657_v21  ;;  %v1090_v0 = vadd.f32 %v2515_v18, %v1055_v39  ;;  %v785_v12 = vmul.f32 %v1818_v6, %v2859_v14  ;;  %vm791_vm14 = vweird.f32 %v1818_v6 }
 0x17f   : > { %1819 = vrsqrt.f32 %v688_v13  ;;  %v939_v28 = vmul.f32 %v1816_v47, %v938_v8  ;;  %vm792_vm1 = vmor %vm790_vm13, %vm791_vm14  ;;  %v1109_v23 = vadd.f32 %v2515_v18, %v1074_v54  ;;  %v1022_v2 = vmul.f32 %v783_v24, %v2346_v57 }
 0x180   : > { %1821 = vrsqrt.f32 %v689_v38  ;;  %v786_v30 = vmul.f32 %v1818_v6, %v785_v12  ;;  %v1119_v20 = vpack.c.bf16 %v1091_v16, %v1090_v0  ;;  %vm960_vm2 = vweird.f32 %v688_v13 }
 0x181   : > { %v943_v41 = vsel %vm942_vm11, %v1816_v47, %v939_v28  ;;  %vm970_vm4 = vweird.f32 %v689_v38  ;;  %v1057_v32 = vmul.f32 %v2489_v48, %v1022_v2 }
 0x182   : > { %v1038_v27 = vmul.f32 %v943_v41, %v2367_v11  ;;  %v787_v52 = vmul.f32 0.5, %v786_v30 }
 0x183   : > { %1630 = vmatmul.msk.bf16.gmra.mxu0 %vm334_vm0, %v1119_v20  ;;  %1646 = vmatmul.msk.bf16.gmra.mxu1 %vm334_vm0, %v1119_v20  ;;  %v1092_v45 = vadd.f32 %v2515_v18, %v1057_v32 }
 0x184   : > { %v1073_v25 = vmul.f32 %v2489_v48, %v1038_v27  ;;  %v788_v36 = vsub.f32 1.5, %v787_v52 }
 0x185   : > { %v1820_v53 = vpop.eup %1819 }
 0x186   : > { %v1822_v7 = vpop.eup %1821  ;;  %v955_v33 = vmul.f32 %v1820_v53, %v688_v13  ;;  %v1108_v11 = vadd.f32 %v2515_v18, %v1073_v25  ;;  %v789_v14 = vmul.f32 %v1818_v6, %v788_v36  ;;  %vm961_vm3 = vweird.f32 %v1820_v53 }
 0x187   : > { %v965_v47 = vmul.f32 %v1822_v7, %v689_v38  ;;  %vm971_vm5 = vweird.f32 %v1822_v7  ;;  %vm962_vm6 = vmor %vm960_vm2, %vm961_vm3 }
 0x188   : > { %v956_v26 = vmul.f32 %v1820_v53, %v955_v33  ;;  %v793_v44 = vsel %vm792_vm1, %v1818_v6, %v789_v14  ;;  %v1128_v43 = vpack.c.bf16 %v1109_v23, %v1108_v11  ;;  %vm972_vm7 = vmor %vm970_vm4, %vm971_vm5 }
 0x189   : > { %v966_v1 = vmul.f32 %v1822_v7, %v965_v47  ;;  %v1023_v3 = vmul.f32 %v793_v44, %v2379_v15 }
 0x18a   : > { %v957_v60 = vmul.f32 0.5, %v956_v26 }
 0x18b   : > { %v967_v59 = vmul.f32 0.5, %v966_v1  ;;  %v1058_v61 = vmul.f32 %v2489_v48, %v1023_v3  ;;  %1639 = vmatmul.msk.bf16.gmra.mxu2 %vm334_vm0, %v1128_v43 }
 0x18c   : > { %v958_v4 = vsub.f32 1.5, %v957_v60  ;;  %1655 = vmatmul.msk.bf16.gmra.mxu3 %vm334_vm0, %v1128_v43 }
 0x18d   : > { %v968_v49 = vsub.f32 1.5, %v967_v59  ;;  %v1093_v9 = vadd.f32 %v2515_v18, %v1058_v61 }
 0x18e   : > { %v959_v57 = vmul.f32 %v1820_v53, %v958_v4 }
 0x18f   : > { %v969_v22 = vmul.f32 %v1822_v7, %v968_v49  ;;  %v1120_v13 = vpack.c.bf16 %v1093_v9, %v1092_v45 }
 0x190   : > { %v963_v15 = vsel %vm962_vm6, %v1820_v53, %v959_v57 }
 0x191   : > { %v973_v19 = vsel %vm972_vm7, %v1822_v7, %v969_v22  ;;  %v1040_v21 = vmul.f32 %v963_v15, %v2394_v42 }
 0x192   : > { %v1041_v17 = vmul.f32 %v973_v19, %v2400_v51 }
 0x193   : > { %v1075_v39 = vmul.f32 %v2489_v48, %v1040_v21  ;;  %1631 = vmatmul.msk.bf16.gmra.mxu0 %vm334_vm0, %v1120_v13  ;;  %1647 = vmatmul.msk.bf16.gmra.mxu1 %vm334_vm0, %v1120_v13 }
 0x194   : > { %v1076_v62 = vmul.f32 %v2489_v48, %v1041_v17 }
 0x195   : > { %v1110_v37 = vadd.f32 %v2515_v18, %v1075_v39 }
 0x196   : > { %v1111_v8 = vadd.f32 %v2515_v18, %v1076_v62 }
 0x198   : > { %v1129_v38 = vpack.c.bf16 %v1111_v8, %v1110_v37 }
 0x19b   : > { %1640 = vmatmul.msk.bf16.gmra.mxu2 %vm334_vm0, %v1129_v38 }
 0x19c   : > { %1656 = vmatmul.msk.bf16.gmra.mxu3 %vm334_vm0, %v1129_v38 }
 0x1ae   : > { %v569_v42 = vpop.xlane.xlu1 %568 }
 0x1af   : > { %v641_v51 = vmul.f32 %v569_v42, %v2202_v58 }
 0x1b1   : > { %v673_v6 = vadd.f32 1e-05, %v641_v51 }
 0x1b3   : > { %1823 = vrsqrt.f32 %v673_v6  ;;  %vm810_vm9 = vweird.f32 %v673_v6 }
 0x1b5   : > { %v566_v29 = vpop.xlane.xlu0 %565 }
 0x1b6   : > { %v640_v0 = vmul.f32 %v566_v29, %v2202_v58 }
 0x1b8   : > { %v672_v28 = vadd.f32 1e-05, %v640_v0 }
 0x1b9   : > { %v1824_v12 = vpop.eup %1823 }
 0x1ba   : > { %v805_v16 = vmul.f32 %v1824_v12, %v673_v6  ;;  %1825 = vrsqrt.f32 %v672_v28  ;;  %vm811_vm8 = vweird.f32 %v1824_v12  ;;  %vm800_vm12 = vweird.f32 %v672_v28 }
 0x1bb   : > { %vm812_vm10 = vmor %vm810_vm9, %vm811_vm8 }
 0x1bc   : > { %v806_v55 = vmul.f32 %v1824_v12, %v805_v16 }
 0x1bd   : > { %v623_v30 = vpop.xlane.xlu0 %622 }
 0x1be   : > { %v807_v41 = vmul.f32 0.5, %v806_v55  ;;  %v659_v27 = vmul.f32 %v623_v30, %v2202_v58 }
 0x1c0   : > { %v1826_v20 = vpop.eup %1825  ;;  %v808_v52 = vsub.f32 1.5, %v807_v41  ;;  %v2933_v53 = vadd.f32 1e-05, %v659_v27 }
 0x1c1   : > { %v795_v54 = vmul.f32 %v1826_v20, %v672_v28  ;;  %vm801_vm11 = vweird.f32 %v1826_v20 }
 0x1c2   : > { %v809_v25 = vmul.f32 %v1824_v12, %v808_v52  ;;  %1827 = vrsqrt.f32 %v2933_v53  ;;  %vm802_vm13 = vmor %vm800_vm12, %vm801_vm11  ;;  %vm990_vm15 = vweird.f32 %v2933_v53 }
 0x1c3   : > { %v796_v7 = vmul.f32 %v1826_v20, %v795_v54 }
 0x1c4   : > { %v813_v24 = vsel %vm812_vm10, %v1824_v12, %v809_v25 }
 0x1c5   : > { %v797_v36 = vmul.f32 0.5, %v796_v7  ;;  %v1025_v14 = vmul.f32 %v813_v24, %v2454_v10 }
 0x1c6   : > { %v572_v33 = vpop.xlane.xlu1 %571 }
 0x1c7   : > { %v798_v47 = vsub.f32 1.5, %v797_v36  ;;  %v642_v11 = vmul.f32 %v572_v33, %v2202_v58  ;;  %v1060_v43 = vmul.f32 %v2489_v48, %v1025_v14 }
 0x1c8   : > { %v2941_v26 = vpop.eup %1827 }
 0x1c9   : > { %v799_v23 = vmul.f32 %v1826_v20, %v798_v47  ;;  %v2943_v2 = vadd.f32 1e-05, %v642_v11  ;;  %v985_v60 = vmul.f32 %v2941_v26, %v2933_v53  ;;  %v1095_v57 = vadd.f32 %v2515_v18, %v1060_v43 }
 0x1ca   : > { %vm991_vm14 = vweird.f32 %v2941_v26 }
 0x1cb   : > { %v803_v1 = vsel %vm802_vm13, %v1826_v20, %v799_v23  ;;  %1829 = vrsqrt.f32 %v2943_v2  ;;  %v986_v49 = vmul.f32 %v2941_v26, %v985_v60  ;;  %vm992_vm1 = vmor %vm990_vm15, %vm991_vm14  ;;  %vm820_vm3 = vweird.f32 %v2943_v2 }
 0x1cc   : > { %v1024_v44 = vmul.f32 %v803_v1, %v2481_v56  ;;  %v2993_v1 = vld [vmem:[%s3171_s1] ss:$0 sm:$0xff] }
 0x1cd   : > { %v987_v19 = vmul.f32 0.5, %v986_v49 }
 0x1ce   : > { %v1277_v10 = vpop.f32.mrf.mxu2  ;;  %v1366_v3 = vpop.f32.mrf.mxu3  ;;  %v1059_v59 = vmul.f32 %v2489_v48, %v1024_v44 }
 0x1cf   : > { %1438 = vst [vmem:[%s2950_s13 + $0x100] sm:$0xff] %v1277_v10  ;;  %v1237_v56 = vpop.f32.mrf.mxu0  ;;  %v1326_v4 = vpop.f32.mrf.mxu1  ;;  %v988_v62 = vsub.f32 1.5, %v987_v19 }
 0x1d0   : > { %1439 = vst [vmem:[%s2950_s13 + $0x108] sm:$0xff] %v1366_v3  ;;  %v620_v32 = vpop.xlane.xlu2 %619  ;;  %v1094_v61 = vadd.f32 %v2515_v18, %v1059_v59 }
 0x1d1   : > { %1406 = vst [vmem:[%s2950_s13] sm:$0xff] %v1237_v56  ;;  %v658_v22 = vmul.f32 %v620_v32, %v2202_v58  ;;  %v2961_v9 = vpop.eup %1829  ;;  %v989_v51 = vmul.f32 %v2941_v26, %v988_v62 }
 0x1d2   : > { %1407 = vst [vmem:[%s2950_s13 + $0x8] sm:$0xff] %v1326_v4  ;;  %v1121_v48 = vpack.c.bf16 %v1095_v57, %v1094_v61  ;;  %v815_v21 = vmul.f32 %v2961_v9, %v2943_v2  ;;  %vm821_vm5 = vweird.f32 %v2961_v9 }
 0x1d3   : > { %v690_v15 = vadd.f32 1e-05, %v658_v22  ;;  %v993_v55 = vsel %vm992_vm1, %v2941_v26, %v989_v51  ;;  %vm2998_vm7 = vmor %vm820_vm3, %vm821_vm5 }
 0x1d4   : > { %1632 = vmatmul.msk.bf16.gmra.mxu0 %vm334_vm0, %v1121_v48  ;;  %1648 = vmatmul.msk.bf16.gmra.mxu1 %vm334_vm0, %v1121_v48  ;;  %v816_v37 = vmul.f32 %v2961_v9, %v815_v21  ;;  %v1043_v25 = vmul.f32 %v993_v55, %v2499_v46 }
 0x1d5   : > { %1831 = vrsqrt.f32 %v690_v15  ;;  %vm980_vm4 = vweird.f32 %v690_v15 }
 0x1d6   : > { %v1279_v45 = vpop.f32.mrf.mxu2  ;;  %v1368_v17 = vpop.f32.mrf.mxu3  ;;  %v817_v0 = vmul.f32 0.5, %v816_v37  ;;  %v1078_v44 = vmul.f32 %v2993_v1, %v1043_v25 }
 0x1d7   : > { %1440 = vst [vmem:[%s2950_s13 + $0x110] sm:$0xff] %v1279_v45  ;;  %v1239_v13 = vpop.f32.mrf.mxu0  ;;  %v1328_v39 = vpop.f32.mrf.mxu1 }
 0x1d8   : > { %1441 = vst [vmem:[%s2950_s13 + $0x118] sm:$0xff] %v1368_v17  ;;  %v575_v8 = vpop.xlane.xlu2 %574  ;;  %v818_v27 = vsub.f32 1.5, %v817_v0  ;;  %v1113_v61 = vadd.f32 %v2515_v18, %v1078_v44 }
 0x1d9   : > { %1408 = vst [vmem:[%s2950_s13 + $0x10] sm:$0xff] %v1239_v13  ;;  %v643_v38 = vmul.f32 %v575_v8, %v2202_v58 }
 0x1da   : > { %1409 = vst [vmem:[%s2950_s13 + $0x18] sm:$0xff] %v1328_v39  ;;  %v819_v33 = vmul.f32 %v2961_v9, %v818_v27 }
 0x1db   : > { %v1832_v42 = vpop.eup %1831  ;;  %v675_v29 = vadd.f32 1e-05, %v643_v38 }
 0x1dc   : > { %v975_v6 = vmul.f32 %v1832_v42, %v690_v15  ;;  %vm981_vm2 = vweird.f32 %v1832_v42 }
 0x1dd   : > { %1833 = vrsqrt.f32 %v675_v29  ;;  %vm982_vm6 = vmor %vm980_vm4, %vm981_vm2  ;;  %vm830_vm9 = vweird.f32 %v675_v29 }
 0x1de   : > { %v976_v28 = vmul.f32 %v1832_v42, %v975_v6  ;;  %v1282_v12 = vpop.f32.mrf.mxu2  ;;  %v1371_v16 = vpop.f32.mrf.mxu3 }
 0x1df   : > { %1442 = vst [vmem:[%s2950_s13 + $0x120] sm:$0xff] %v1282_v12  ;;  %v629_v30 = vpop.xlane.xlu1 %628 }
 0x1e0   : > { %v977_v41 = vmul.f32 0.5, %v976_v28  ;;  %1443 = vst [vmem:[%s2950_s13 + $0x128] sm:$0xff] %v1371_v16  ;;  %v661_v20 = vmul.f32 %v629_v30, %v2202_v58  ;;  %v1242_v54 = vpop.f32.mrf.mxu0  ;;  %v1331_v53 = vpop.f32.mrf.mxu1  ;;  %v3041_v28 = vld [vmem:[%s3172_s2] ss:$0 sm:$0xff] }
 0x1e1   : > { %1410 = vst [vmem:[%s2950_s13 + $0x20] sm:$0xff] %v1242_v54 }
 0x1e2   : > { %v978_v52 = vsub.f32 1.5, %v977_v41  ;;  %v2981_v7 = vadd.f32 1e-05, %v661_v20  ;;  %1411 = vst [vmem:[%s2950_s13 + $0x28] sm:$0xff] %v1331_v53 }
 0x1e3   : > { %v1834_v24 = vpop.eup %1833 }
 0x1e4   : > { %v979_v36 = vmul.f32 %v1832_v42, %v978_v52  ;;  %v825_v47 = vmul.f32 %v1834_v24, %v675_v29  ;;  %1835 = vrsqrt.f32 %v2981_v7  ;;  %vm831_vm8 = vweird.f32 %v1834_v24 }
 0x1e5   : > { %vm832_vm10 = vmor %vm830_vm9, %vm831_vm8  ;;  %vm1010_vm12 = vweird.f32 %v2981_v7 }
 0x1e6   : > { %v983_v46 = vsel %vm982_vm6, %v1832_v42, %v979_v36  ;;  %v826_v14 = vmul.f32 %v1834_v24, %v825_v47  ;;  %v1284_v26 = vpop.f32.mrf.mxu2  ;;  %v1373_v23 = vpop.f32.mrf.mxu3 }
 0x1e7   : > { %v1042_v11 = vmul.f32 %v983_v46, %v2645_v34  ;;  %1444 = vst [vmem:[%s2950_s13 + $0x130] sm:$0xff] %v1284_v26  ;;  %v823_v34 = vsel %vm2998_vm7, %v2961_v9, %v819_v33  ;;  %v626_v10 = vpop.xlane.xlu0 %625 }
 0x1e8   : > { %v827_v43 = vmul.f32 0.5, %v826_v14  ;;  %1445 = vst [vmem:[%s2950_s13 + $0x138] sm:$0xff] %v1373_v23  ;;  %v660_v59 = vmul.f32 %v626_v10, %v2202_v58  ;;  %v1244_v56 = vpop.f32.mrf.mxu0  ;;  %v1333_v4 = vpop.f32.mrf.mxu1  ;;  %v1026_v57 = vmul.f32 %v823_v34, %v2588_v40 }
 0x1e9   : > { %v1077_v3 = vmul.f32 %v2993_v1, %v1042_v11  ;;  %1412 = vst [vmem:[%s2950_s13 + $0x30] sm:$0xff] %v1244_v56 }
 0x1ea   : > { %v3009_v2 = vpop.eup %1835  ;;  %v828_v49 = vsub.f32 1.5, %v827_v43  ;;  %v3017_v9 = vadd.f32 1e-05, %v660_v59  ;;  %1413 = vst [vmem:[%s2950_s13 + $0x38] sm:$0xff] %v1333_v4  ;;  %v1061_v62 = vmul.f32 %v2993_v1, %v1026_v57 }
 0x1eb   : > { %v1112_v32 = vadd.f32 %v2515_v18, %v1077_v3  ;;  %v1005_v22 = vmul.f32 %v3009_v2, %v2981_v7  ;;  %vm1011_vm11 = vweird.f32 %v3009_v2 }
 0x1ec   : > { %v829_v48 = vmul.f32 %v1834_v24, %v828_v49  ;;  %1837 = vrsqrt.f32 %v3017_v9  ;;  %v1096_v12 = vadd.f32 %v3041_v28, %v1061_v62  ;;  %vm1012_vm13 = vmor %vm1010_vm12, %vm1011_vm11  ;;  %vm1000_vm15 = vweird.f32 %v3017_v9 }
 0x1ed   : > { %v1130_v15 = vpack.c.bf16 %v1113_v61, %v1112_v32  ;;  %v1006_v19 = vmul.f32 %v3009_v2, %v1005_v22 }
 0x1ee   : > { %v578_v21 = vpop.xlane.xlu2 %577  ;;  %v833_v18 = vsel %vm832_vm10, %v1834_v24, %v829_v48  ;;  %v1287_v45 = vpop.f32.mrf.mxu2 }
 0x1ef   : > { %1641 = vmatmul.msk.bf16.gmra.mxu2 %vm334_vm0, %v1130_v15  ;;  %v1376_v40 = vpop.f32.mrf.mxu3  ;;  %1657 = vmatmul.msk.bf16.gmra.mxu3 %vm334_vm0, %v1130_v15  ;;  %v644_v17 = vmul.f32 %v578_v21, %v2202_v58  ;;  %v1027_v13 = vmul.f32 %v833_v18, %v2689_v31  ;;  %v1007_v39 = vmul.f32 0.5, %v1006_v19  ;;  %1446 = vst [vmem:[%s2950_s13 + $0x140] sm:$0xff] %v1287_v45  ;;  %v581_v8 = vpop.xlane.xlu0 %580 }
 0x1f0   : > { %1447 = vst [vmem:[%s2950_s13 + $0x148] sm:$0xff] %v1376_v40  ;;  %v645_v42 = vmul.f32 %v581_v8, %v2202_v58  ;;  %v1247_v51 = vpop.f32.mrf.mxu0  ;;  %v1336_v6 = vpop.f32.mrf.mxu1 }
 0x1f1   : > { %v3029_v37 = vadd.f32 1e-05, %v644_v17  ;;  %v1008_v38 = vsub.f32 1.5, %v1007_v39  ;;  %v1062_v29 = vmul.f32 %v2993_v1, %v1027_v13  ;;  %1414 = vst [vmem:[%s2950_s13 + $0x40] sm:$0xff] %v1247_v51 }
 0x1f2   : > { %v1838_v31 = vpop.eup %1837  ;;  %v3035_v0 = vadd.f32 1e-05, %v645_v42  ;;  %1415 = vst [vmem:[%s2950_s13 + $0x48] sm:$0xff] %v1336_v6 }
 0x1f3   : > { %1839 = vrsqrt.f32 %v3029_v37  ;;  %v1097_v58 = vadd.f32 %v3041_v28, %v1062_v29  ;;  %v1009_v16 = vmul.f32 %v3009_v2, %v1008_v38  ;;  %v995_v55 = vmul.f32 %v1838_v31, %v3017_v9 }
 0x1f4   : > { %1841 = vrsqrt.f32 %v3035_v0  ;;  %vm1001_vm14 = vweird.f32 %v1838_v31  ;;  %vm840_vm3 = vweird.f32 %v3029_v37  ;;  %vm850_vm6 = vweird.f32 %v3035_v0 }
 0x1f5   : > { %v1122_v41 = vpack.c.bf16 %v1097_v58, %v1096_v12  ;;  %v996_v30 = vmul.f32 %v1838_v31, %v995_v55  ;;  %v1013_v54 = vsel %vm1012_vm13, %v3009_v2, %v1009_v16  ;;  %vm1002_vm1 = vmor %vm1000_vm15, %vm1001_vm14 }
 0x1f6   : > { %v1289_v27 = vpop.f32.mrf.mxu2  ;;  %v1045_v47 = vmul.f32 %v1013_v54, %v2765_v5 }
 0x1f7   : > { %v1378_v20 = vpop.f32.mrf.mxu3  ;;  %1633 = vmatmul.msk.bf16.gmra.mxu0 %vm334_vm0, %v1122_v41  ;;  %1448 = vst [vmem:[%s2950_s13 + $0x150] sm:$0xff] %v1289_v27  ;;  %1649 = vmatmul.msk.bf16.gmra.mxu1 %vm334_vm0, %v1122_v41  ;;  %v997_v53 = vmul.f32 0.5, %v996_v30 }
 0x1f8   : > { %1449 = vst [vmem:[%s2950_s13 + $0x158] sm:$0xff] %v1378_v20  ;;  %v1249_v24 = vpop.f32.mrf.mxu0  ;;  %v1338_v7 = vpop.f32.mrf.mxu1  ;;  %v1080_v5 = vmul.f32 %v2993_v1, %v1045_v47 }
 0x1f9   : > { %v1840_v52 = vpop.eup %1839  ;;  %v998_v36 = vsub.f32 1.5, %v997_v53  ;;  %1416 = vst [vmem:[%s2950_s13 + $0x50] sm:$0xff] %v1249_v24 }
 0x1fa   : > { %v835_v25 = vmul.f32 %v1840_v52, %v3029_v37  ;;  %v1842_v33 = vpop.eup %1841  ;;  %1417 = vst [vmem:[%s2950_s13 + $0x58] sm:$0xff] %v1338_v7  ;;  %vm841_vm2 = vweird.f32 %v1840_v52  ;;  %v1115_v61 = vadd.f32 %v3041_v28, %v1080_v5 }
 0x1fb   : > { %v999_v11 = vmul.f32 %v1838_v31, %v998_v36  ;;  %v845_v14 = vmul.f32 %v1842_v33, %v3035_v0  ;;  %vm842_vm4 = vmor %vm840_vm3, %vm841_vm2  ;;  %vm851_vm5 = vweird.f32 %v1842_v33 }
 0x1fc   : > { %v836_v46 = vmul.f32 %v1840_v52, %v835_v25  ;;  %vm852_vm7 = vmor %vm850_vm6, %vm851_vm5 }
 0x1fd   : > { %v1003_v23 = vsel %vm1002_vm1, %v1838_v31, %v999_v11  ;;  %v846_v44 = vmul.f32 %v1842_v33, %v845_v14 }
 0x1fe   : > { %v837_v26 = vmul.f32 0.5, %v836_v46  ;;  %v1292_v60 = vpop.f32.mrf.mxu2  ;;  %v1044_v43 = vmul.f32 %v1003_v23, %v2815_v50 }
 0x1ff   : > { %v1381_v34 = vpop.f32.mrf.mxu3  ;;  %1450 = vst [vmem:[%s2950_s13 + $0x160] sm:$0xff] %v1292_v60  ;;  %v847_v3 = vmul.f32 0.5, %v846_v44 }
 0x200   : > { %v838_v10 = vsub.f32 1.5, %v837_v26  ;;  %1451 = vst [vmem:[%s2950_s13 + $0x168] sm:$0xff] %v1381_v34  ;;  %v1252_v56 = vpop.f32.mrf.mxu0  ;;  %v1341_v4 = vpop.f32.mrf.mxu1  ;;  %v1079_v2 = vmul.f32 %v2993_v1, %v1044_v43 }
 0x201   : > { %v848_v49 = vsub.f32 1.5, %v847_v3  ;;  %1418 = vst [vmem:[%s2950_s13 + $0x60] sm:$0xff] %v1252_v56 }
 0x202   : > { %v839_v59 = vmul.f32 %v1840_v52, %v838_v10  ;;  %1419 = vst [vmem:[%s2950_s13 + $0x68] sm:$0xff] %v1341_v4  ;;  %v1114_v32 = vadd.f32 %v3041_v28, %v1079_v2 }
 0x203   : > { %v849_v22 = vmul.f32 %v1842_v33, %v848_v49 }
 0x204   : > { %v843_v50 = vsel %vm842_vm4, %v1840_v52, %v839_v59  ;;  %v1131_v9 = vpack.c.bf16 %v1115_v61, %v1114_v32 }
 0x205   : > { %v1028_v57 = vmul.f32 %v843_v50, %v2852_v63  ;;  %v853_v48 = vsel %vm852_vm7, %v1842_v33, %v849_v22 }
 0x206   : > { %v1294_v15 = vpop.f32.mrf.mxu2  ;;  %v1029_v18 = vmul.f32 %v853_v48, %v2845_v35  ;;  %1642 = vmatmul.msk.bf16.gmra.mxu2 %vm334_vm0, %v1131_v9  ;;  %1658 = vmatmul.msk.bf16.gmra.mxu3 %vm334_vm0, %v1131_v9 }
 0x207   : > { %v1383_v19 = vpop.f32.mrf.mxu3  ;;  %v1063_v21 = vmul.f32 %v2993_v1, %v1028_v57  ;;  %1452 = vst [vmem:[%s2950_s13 + $0x170] sm:$0xff] %v1294_v15 }
 0x208   : > { %1453 = vst [vmem:[%s2950_s13 + $0x178] sm:$0xff] %v1383_v19  ;;  %v1254_v63 = vpop.f32.mrf.mxu0  ;;  %v1343_v45 = vpop.f32.mrf.mxu1  ;;  %v1064_v40 = vmul.f32 %v2993_v1, %v1029_v18 }
 0x209   : > { %v1098_v17 = vadd.f32 %v3041_v28, %v1063_v21  ;;  %1420 = vst [vmem:[%s2950_s13 + $0x70] sm:$0xff] %v1254_v63 }
 0x20a   : > { %1421 = vst [vmem:[%s2950_s13 + $0x78] sm:$0xff] %v1343_v45  ;;  %v1099_v35 = vadd.f32 %v3041_v28, %v1064_v40 }
 0x20c   : > { %v1123_v13 = vpack.c.bf16 %v1099_v35, %v1098_v17 }
 0x20e   : > { %v1297_v39 = vpop.f32.mrf.mxu2  ;;  %1634 = vmatmul.msk.bf16.gmra.mxu0 %vm334_vm0, %v1123_v13  ;;  %1650 = vmatmul.msk.bf16.gmra.mxu1 %vm334_vm0, %v1123_v13 }
 0x20f   : > { %v1386_v62 = vpop.f32.mrf.mxu3  ;;  %1454 = vst [vmem:[%s2950_s13 + $0x180] sm:$0xff] %v1297_v39 }
 0x210   : > { %1455 = vst [vmem:[%s2950_s13 + $0x188] sm:$0xff] %v1386_v62  ;;  %v1257_v1 = vpop.f32.mrf.mxu0  ;;  %v1346_v37 = vpop.f32.mrf.mxu1 }
 0x211   : > { %1422 = vst [vmem:[%s2950_s13 + $0x80] sm:$0xff] %v1257_v1 }
 0x212   : > { %1423 = vst [vmem:[%s2950_s13 + $0x88] sm:$0xff] %v1346_v37 }
 0x216   : > { %v1299_v8 = vpop.f32.mrf.mxu2 }
 0x217   : > { %v1388_v38 = vpop.f32.mrf.mxu3  ;;  %1456 = vst [vmem:[%s2950_s13 + $0x190] sm:$0xff] %v1299_v8 }
 0x218   : > { %1457 = vst [vmem:[%s2950_s13 + $0x198] sm:$0xff] %v1388_v38  ;;  %v1259_v42 = vpop.f32.mrf.mxu0  ;;  %v1348_v51 = vpop.f32.mrf.mxu1 }
 0x219   : > { %1424 = vst [vmem:[%s2950_s13 + $0x90] sm:$0xff] %v1259_v42 }
 0x21a   : > { %1425 = vst [vmem:[%s2950_s13 + $0x98] sm:$0xff] %v1348_v51 }
 0x21e   : > { %v1302_v6 = vpop.f32.mrf.mxu2 }
 0x21f   : > { %v1391_v29 = vpop.f32.mrf.mxu3  ;;  %1458 = vst [vmem:[%s2950_s13 + $0x1a0] sm:$0xff] %v1302_v6 }
 0x220   : > { %1459 = vst [vmem:[%s2950_s13 + $0x1a8] sm:$0xff] %v1391_v29 }
 0x226   : > { %v1304_v31 = vpop.f32.mrf.mxu2 }
 0x227   : > { %v1393_v0 = vpop.f32.mrf.mxu3  ;;  %1460 = vst [vmem:[%s2950_s13 + $0x1b0] sm:$0xff] %v1304_v31 }
 0x228   : > { %1461 = vst [vmem:[%s2950_s13 + $0x1b8] sm:$0xff] %v1393_v0 }
 0x251   : > { %v1262_v28 = vpop.f32.mrf.mxu0  ;;  %v1351_v12 = vpop.f32.mrf.mxu1 }
 0x252   : > { %1426 = vst [vmem:[%s2950_s13 + $0xa0] sm:$0xff] %v1262_v28 }
 0x253   : > { %1427 = vst [vmem:[%s2950_s13 + $0xa8] sm:$0xff] %v1351_v12 }
 0x259   : > { %v1264_v58 = vpop.f32.mrf.mxu0  ;;  %v1353_v16 = vpop.f32.mrf.mxu1 }
 0x25a   : > { %1428 = vst [vmem:[%s2950_s13 + $0xb0] sm:$0xff] %v1264_v58 }
 0x25b   : > { %1429 = vst [vmem:[%s2950_s13 + $0xb8] sm:$0xff] %v1353_v16 }
 0x272   : > { %v1307_v55 = vpop.f32.mrf.mxu2  ;;  %v1396_v41 = vpop.f32.mrf.mxu3 }
 0x273   : > { %1462 = vst [vmem:[%s2950_s13 + $0x1c0] sm:$0xff] %v1307_v55 }
 0x274   : > { %1463 = vst [vmem:[%s2950_s13 + $0x1c8] sm:$0xff] %v1396_v41  ;;  %v1267_v30 = vpop.f32.mrf.mxu0  ;;  %v1356_v27 = vpop.f32.mrf.mxu1 }
 0x275   : > { %1430 = vst [vmem:[%s2950_s13 + $0xc0] sm:$0xff] %v1267_v30 }
 0x276   : > { %1431 = vst [vmem:[%s2950_s13 + $0xc8] sm:$0xff] %v1356_v27 }
 0x27a   : > { %v1309_v20 = vpop.f32.mrf.mxu2  ;;  %v1398_v52 = vpop.f32.mrf.mxu3 }
 0x27b   : > { %1464 = vst [vmem:[%s2950_s13 + $0x1d0] sm:$0xff] %v1309_v20 }
 0x27c   : > { %1465 = vst [vmem:[%s2950_s13 + $0x1d8] sm:$0xff] %v1398_v52  ;;  %v1269_v54 = vpop.f32.mrf.mxu0  ;;  %v1358_v53 = vpop.f32.mrf.mxu1 }
 0x27d   : > { %1432 = vst [vmem:[%s2950_s13 + $0xd0] sm:$0xff] %v1269_v54 }
 0x27e   : > { %1433 = vst [vmem:[%s2950_s13 + $0xd8] sm:$0xff] %v1358_v53 }
 0x289   : > { %v1312_v25 = vpop.f32.mrf.mxu2  ;;  %v1401_v24 = vpop.f32.mrf.mxu3 }
 0x28a   : > { %1466 = vst [vmem:[%s2950_s13 + $0x1e0] sm:$0xff] %v1312_v25 }
 0x28b   : > { %1467 = vst [vmem:[%s2950_s13 + $0x1e8] sm:$0xff] %v1401_v24  ;;  %v1272_v7 = vpop.f32.mrf.mxu0  ;;  %v1361_v36 = vpop.f32.mrf.mxu1 }
 0x28c   : > { %1434 = vst [vmem:[%s2950_s13 + $0xe0] sm:$0xff] %v1272_v7 }
 0x28d   : > { %1435 = vst [vmem:[%s2950_s13 + $0xe8] sm:$0xff] %v1361_v36 }
 0x291   : > { %v1314_v33 = vpop.f32.mrf.mxu2  ;;  %v1403_v47 = vpop.f32.mrf.mxu3 }
 0x292   : > { %1468 = vst [vmem:[%s2950_s13 + $0x1f0] sm:$0xff] %v1314_v33 }
 0x293   : > { %1469 = vst [vmem:[%s2950_s13 + $0x1f8] sm:$0xff] %v1403_v47  ;;  %v1274_v46 = vpop.f32.mrf.mxu0  ;;  %v1363_v11 = vpop.f32.mrf.mxu1 }
 0x294   : > { %1436 = vst [vmem:[%s2950_s13 + $0xf0] sm:$0xff] %v1274_v46 }
 0x295   : > { %1437 = vst [vmem:[%s2950_s13 + $0xf8] sm:$0xff] %v1363_v11 }
 0x296   : > { %1872 = shalt.err (!%p1869_p11)
}
 0x297   : > { %s1958_s8 = smov 256   ;;  %s1959_s13 = smov 512  }
 0x298   : > { %s1960_s20 = smov 16  }
 0x299   : > { %1684 = dma.vmem_to_hbm [thread:$0]  (%p2065_p10), %s1487_s21, 8192, %s1489_s25, %s1471_s29, %s1958_s8, %s1959_s13, %s1960_s20  }
 0x29a PF: > { %p1690_p13 = scmp.ge.s32.totalorder %s1955_s24, 2  ;;  %s1503_s26 = sand.u32 1, %s1919_s15  }
 0x29b   : > { %s1504_s30 = scalar_lea.sflag [#allocation4], %s1503_s26 }
 0x29c   : > { %p1687_p0 = pnand %p1690_p13, %p2072_p12 }
 0x29e   : > { %p1688_p1 = pneg %p1687_p0 }
 0x2a0   : > { %1914 = dma.done.wait (%p1688_p1), %s1504_s30, 8192  }
 0x2a1   : > { %1916 = vsyncadd (%p1688_p1), %s1504_s30, 4294959104  ;;  %s17_s24 = sadd.s32 1, %s1955_s24   ;;  %s3200_s15 = smov %s1923_s16 }
 0x2a2   : > { %p14_p2 = scmp.ge.s32.totalorder %s17_s24, 6   ;;  %s3201_s16 = smov %s1927_s17 }
 0x2a3   : > { %s3202_s17 = smov %s2070_s11  ;;  %s3203_s18 = smov %s1935_s19 }
 0x2a4   : > { %s3204_s19 = smov %s2059_s7  ;;  %s3205_s20 = smov %s1947_s22 }
 0x2a5   : > { %s3206_s21 = smov %s1951_s23  ;;  %s3207_s22 = smov %s3210_s27 }
 0x2a6   : > { %s3208_s23 = smov %s3214_s28  ;;  %16 = sbr.rel (!%p14_p2) target bundleno = 6 (0x6), region = 117 }
 0x2ab   :  { %1510 = vsyncpa [#allocation4], 1 }
 0x2ac   :  { %1512 = vsyncpa [#allocation4 + $0x1], 1 }

// kernel: gpt2_lm_forward.8
= control target key start
LH: loop header
LB: loop body
LE: loop exit
PB: predicated region body
PF: predicated region fallthrough
CT: control target
= control target key end

     0   :  { %s3841_s18 = smov 0   ;;  %s4831_s0 = inlined_call_operand.vmem [shape: f32[4,128,64], index: 0, kind: input, shape index: {}, may-alias: {0,5}]   ;;  %s4832_s1 = inlined_call_operand.vmem [shape: bf16[4,4,128,16], index: 1, kind: input, shape index: {}]   ;;  %s4833_s2 = inlined_call_operand.vmem [shape: bf16[4,4,128,16], index: 2, kind: input, shape index: {}]   ;;  %s4834_s3 = inlined_call_operand.vmem [shape: bf16[4,4,128,16], index: 3, kind: input, shape index: {}]   ;;  %s4835_s4 = inlined_call_operand.vmem [shape: bf16[64,64], index: 4, kind: input, shape index: {}]   ;;  %s4836_s5 = inlined_call_operand.vmem [shape: f32[4,128,64], index: 5, kind: output, shape index: {}, may-alias: {0,5}]  }
   0x1 LB: > { %s2800_s19 = sadd.s32 4294967295, %s3809_s18   ;;  %p2804_p0 = scmp.ge.s32.totalorder %s3809_s18, 1  ;;  %s3809_s18 = sphi %s3841_s18, %s15_s18  }
   0x2   : > { %p217_p1 = scmp.lt.s32.totalorder %s3809_s18, 5 }
   0x4   : > { %p218_p2 = pnand %p2804_p0, %p217_p1 }
   0x6   : > { %221 = sbr.rel (%p218_p2) target bundleno = 1969 (0x7b1), region = 40 }
   0xb   : > { %p260_p3 = scmp.lt.s32.totalorder %s2800_s19, 3  ;;  %vm430_vm0 = vcmask 130048   ;;  %vm2692_vm1 = vcmask 523264  }
   0xd   : > { %s4846_s19 = smov (!%p260_p3, %s2800_s19), 3 }
   0xe   : > { %s3852_s20 = sshll.u32 %s4846_s19, 8  ;;  %s3425_s9 = sshll.u32 %s4846_s19, 7 }
   0xf   : > { %s3858_s23 = scalar_lea.vmem %s4833_s2, %s3852_s20  ;;  %s3880_s26 = scalar_lea.vmem %s4832_s1, %s3852_s20 }
  0x10   : > { %v3445_v0 = vld [vmem:[%s3858_s23 + $0x38] sm:$0xff]  ;;  %v3444_v2 = vld [vmem:[%s3858_s23 + $0x30] sm:$0xff]  ;;  %v3443_v4 = vld [vmem:[%s3858_s23 + $0x28] sm:$0xff]  ;;  %s3974_s29 = scalar_lea.vmem %s4834_s3, %s3852_s20  ;;  %s4374_s12 = scalar_lea.vmem %s4831_s0, %s3425_s9 }
  0x11   : > { %v477_v1 = vsel %vm430_vm0, %v3445_v0, 0  ;;  %v474_v3 = vsel %vm430_vm0, %v3444_v2, 0  ;;  %v471_v5 = vsel %vm430_vm0, %v3443_v4, 0  ;;  %v3442_v6 = vld [vmem:[%s3858_s23 + $0x20] sm:$0xff]  ;;  %v3441_v8 = vld [vmem:[%s3858_s23 + $0x18] sm:$0xff]  ;;  %v3440_v10 = vld [vmem:[%s3858_s23 + $0x10] sm:$0xff]  ;;  %s4751_s21 = scalar_lea.vmem %s4836_s5, %s3425_s9 }
  0x12   : > { %479 = vmatpush.bf16.xpose.msra.mxu0 %v477_v1  ;;  %v468_v7 = vsel %vm430_vm0, %v3442_v6, 0  ;;  %v465_v9 = vsel %vm430_vm0, %v3441_v8, 0  ;;  %v462_v11 = vsel %vm430_vm0, %v3440_v10, 0  ;;  %v3439_v12 = vld [vmem:[%s3858_s23 + $0x8] sm:$0xff]  ;;  %v3438_v14 = vld [vmem:[%s3858_s23] sm:$0xff]  ;;  %v3432_v18 = vld [vmem:[%s3880_s26 + $0x10] sm:$0xff] }
  0x13   : > { %v459_v13 = vsel %vm430_vm0, %v3439_v12, 0  ;;  %v456_v15 = vsel %vm430_vm0, %v3438_v14, 0  ;;  %v3430_v16 = vld [vmem:[%s3880_s26] sm:$0xff]  ;;  %v3431_v17 = vld [vmem:[%s3880_s26 + $0x8] sm:$0xff]  ;;  %v3433_v19 = vld [vmem:[%s3880_s26 + $0x18] sm:$0xff] }
  0x14   : > { %v3434_v20 = vld [vmem:[%s3880_s26 + $0x20] sm:$0xff]  ;;  %v3435_v21 = vld [vmem:[%s3880_s26 + $0x28] sm:$0xff]  ;;  %v3436_v22 = vld [vmem:[%s3880_s26 + $0x30] sm:$0xff] }
  0x15   : > { %v3437_v26 = vld [vmem:[%s3880_s26 + $0x38] sm:$0xff]  ;;  %v3469_v36 = vld [vmem:[%s3858_s23 + $0x70] sm:$0xff]  ;;  %v3468_v40 = vld [vmem:[%s3858_s23 + $0x68] sm:$0xff] }
  0x16   : > { %v3470_v34 = vld [vmem:[%s3858_s23 + $0x78] sm:$0xff]  ;;  %v1072_v39 = vsel %vm430_vm0, %v3469_v36, 0  ;;  %v1069_v43 = vsel %vm430_vm0, %v3468_v40, 0  ;;  %v3467_v44 = vld [vmem:[%s3858_s23 + $0x60] sm:$0xff]  ;;  %v3465_v52 = vld [vmem:[%s3858_s23 + $0x50] sm:$0xff] }
  0x17   : > { %v1075_v35 = vsel %vm430_vm0, %v3470_v34, 0  ;;  %v1066_v47 = vsel %vm430_vm0, %v3467_v44, 0  ;;  %v3466_v48 = vld [vmem:[%s3858_s23 + $0x58] sm:$0xff]  ;;  %v1060_v53 = vsel %vm430_vm0, %v3465_v52, 0  ;;  %v3464_v54 = vld [vmem:[%s3858_s23 + $0x48] sm:$0xff]  ;;  %v3463_v56 = vld [vmem:[%s3858_s23 + $0x40] sm:$0xff] }
  0x18   : > { %1077 = vmatpush.bf16.xpose.msra.mxu3 %v1075_v35  ;;  %v1063_v51 = vsel %vm430_vm0, %v3466_v48, 0  ;;  %v1057_v55 = vsel %vm430_vm0, %v3464_v54, 0  ;;  %v1054_v57 = vsel %vm430_vm0, %v3463_v56, 0  ;;  %v3455_v58 = vld [vmem:[%s3880_s26 + $0x40] sm:$0xff]  ;;  %v3456_v63 = vld [vmem:[%s3880_s26 + $0x48] sm:$0xff]  ;;  %v3457_v10 = vld [vmem:[%s3880_s26 + $0x50] sm:$0xff] }
  0x19   : > { %v3459_v34 = vld [vmem:[%s3880_s26 + $0x60] sm:$0xff]  ;;  %v3451_v36 = vld [vmem:[%s3974_s29 + $0x28] sm:$0xff]  ;;  %v3449_v54 = vld [vmem:[%s3974_s29 + $0x18] sm:$0xff] }
  0x1a   : > { %480 = vmatpush.bf16.xpose.msra.mxu0 %v474_v3  ;;  %v3446_v56 = vld [vmem:[%s3974_s29] sm:$0xff] }
  0x20   : > { %1078 = vmatpush.bf16.xpose.msra.mxu3 %v1072_v39 }
  0x22   : > { %481 = vmatpush.bf16.xpose.msra.mxu0 %v471_v5 }
  0x28   : > { %1079 = vmatpush.bf16.xpose.msra.mxu3 %v1069_v43 }
  0x2a   : > { %482 = vmatpush.bf16.xpose.msra.mxu0 %v468_v7 }
  0x30   : > { %1080 = vmatpush.bf16.xpose.msra.mxu3 %v1066_v47 }
  0x32   : > { %483 = vmatpush.bf16.xpose.msra.mxu0 %v465_v9 }
  0x38   : > { %1081 = vmatpush.bf16.xpose.msra.mxu3 %v1063_v51 }
  0x3a   : > { %484 = vmatpush.bf16.xpose.msra.mxu0 %v462_v11 }
  0x40   : > { %1082 = vmatpush.bf16.xpose.msra.mxu3 %v1060_v53  ;;  %v3450_v53 = vld [vmem:[%s3974_s29 + $0x20] sm:$0xff] }
  0x42   : > { %485 = vmatpush.bf16.xpose.msra.mxu0 %v459_v13 }
  0x48   : > { %1083 = vmatpush.bf16.xpose.msra.mxu3 %v1057_v55  ;;  %v3447_v55 = vld [vmem:[%s3974_s29 + $0x8] sm:$0xff] }
  0x4a   : > { %486 = vmatpush.bf16.xpose.msra.mxu0 %v456_v15 }
  0x50   : > { %1084 = vmatpush.bf16.xpose.msra.mxu3 %v1054_v57 }
  0x51   : > { %2879 = vmatmul.msk.bf16.vlgmr.msra.gmra.mxu0 %vm430_vm0, %v3430_v16 }
  0x57   : > { %3043 = vmatmul.msk.bf16.vlgmr.msra.gmra.mxu3 %vm430_vm0, %v3455_v58 }
  0x61   : > { %2880 = vmatmul.msk.bf16.gmra.mxu0 %vm430_vm0, %v3431_v17 }
  0x67   : > { %3044 = vmatmul.msk.bf16.gmra.mxu3 %vm430_vm0, %v3456_v63 }
  0x71   : > { %2881 = vmatmul.msk.bf16.gmra.mxu0 %vm430_vm0, %v3432_v18 }
  0x77   : > { %3045 = vmatmul.msk.bf16.gmra.mxu3 %vm430_vm0, %v3457_v10 }
  0x81   : > { %2882 = vmatmul.msk.bf16.gmra.mxu0 %vm430_vm0, %v3433_v19 }
  0x91   : > { %2883 = vmatmul.msk.bf16.gmra.mxu0 %vm430_vm0, %v3434_v20 }
  0xa1   : > { %2884 = vmatmul.msk.bf16.gmra.mxu0 %vm430_vm0, %v3435_v21 }
  0xb1   : > { %2885 = vmatmul.msk.bf16.gmra.mxu0 %vm430_vm0, %v3436_v22 }
  0xc1   : > { %2886 = vmatmul.msk.bf16.gmra.mxu0 %vm430_vm0, %v3437_v26 }
  0xce   : > { %v488_v23 = vpop.f32.mrf.mxu0 }
  0xcf   : > { %v528_v24 = vmul.f32 0.25, %v488_v23  ;;  %v3458_v23 = vld [vmem:[%s3880_s26 + $0x58] sm:$0xff] }
  0xd0   : > { %3046 = vmatmul.msk.bf16.gmra.mxu3 %vm430_vm0, %v3458_v23 }
  0xd1   : > { %544 = vmax.xlane.f32.xlu0 %v528_v24 }
  0xd6   : > { %v490_v25 = vpop.f32.mrf.mxu0 }
  0xd7   : > { %v529_v27 = vmul.f32 0.25, %v490_v25 }
  0xd9   : > { %546 = vmax.xlane.f32.xlu0 %v529_v27 }
  0xda   : > { %v4014_v58 = vpop.f32.mrf.mxu3 }
  0xde   : > { %v493_v28 = vpop.f32.mrf.mxu0 }
  0xdf   : > { %v3898_v29 = vmul.f32 0.25, %v493_v28 }
  0xe0   : > { %3047 = vmatmul.msk.bf16.gmra.mxu3 %vm430_vm0, %v3459_v34 }
  0xe1   : > { %548 = vmax.xlane.f32.xlu1 %v3898_v29 }
  0xe6   : > { %v495_v30 = vpop.f32.mrf.mxu0 }
  0xe7   : > { %v3901_v31 = vmul.f32 0.25, %v495_v30  ;;  %v3453_v30 = vld [vmem:[%s3974_s29 + $0x38] sm:$0xff] }
  0xe8   : > { %744 = vmatpush.bf16.msra.mxu1 %v3453_v30 }
  0xe9   : > { %550 = vmax.xlane.f32.xlu1 %v3901_v31 }
  0xee   : > { %v498_v32 = vpop.f32.mrf.mxu0 }
  0xef   : > { %v3904_v33 = vmul.f32 0.25, %v498_v32 }
  0xf1   : > { %552 = vmax.xlane.f32.xlu2 %v3904_v33 }
  0xf6   : > { %v500_v37 = vpop.f32.mrf.mxu0 }
  0xf7   : > { %v3910_v38 = vmul.f32 0.25, %v500_v37 }
  0xf9   : > { %554 = vmax.xlane.f32.xlu2 %v3910_v38 }
  0xfe   : > { %v503_v41 = vpop.f32.mrf.mxu0 }
  0xff   : > { %v3915_v42 = vmul.f32 0.25, %v503_v41 }
 0x101   : > { %556 = vmax.xlane.f32.xlu0 %v3915_v42 }
 0x106   : > { %v505_v45 = vpop.f32.mrf.mxu0 }
 0x107   : > { %v3920_v46 = vmul.f32 0.25, %v505_v45 }
 0x109   : > { %558 = vmax.xlane.f32.xlu1 %v3920_v46 }
 0x10e   : > { %v508_v49 = vpop.f32.mrf.mxu0 }
 0x10f   : > { %v3925_v50 = vmul.f32 0.25, %v508_v49 }
 0x111   : > { %560 = vmax.xlane.f32.xlu1 %v3925_v50 }
 0x116   : > { %v510_v62 = vpop.f32.mrf.mxu0 }
 0x117   : > { %v3943_v7 = vmul.f32 0.25, %v510_v62 }
 0x11e   : > { %v513_v4 = vpop.f32.mrf.mxu0 }
 0x11f   : > { %v3951_v12 = vmul.f32 0.25, %v513_v4 }
 0x126   : > { %v515_v11 = vpop.f32.mrf.mxu0 }
 0x127   : > { %v3959_v20 = vmul.f32 0.25, %v515_v11 }
 0x12e   : > { %v518_v19 = vpop.f32.mrf.mxu0 }
 0x144   : > { %v545_v59 = vpop.xlane.xlu0 %544 }
 0x145   : > { %v576_v60 = vsub.f32 %v528_v24, %v545_v59  ;;  %v3967_v24 = vmul.f32 0.25, %v518_v19 }
 0x147   : > { %v592_v61 = vmul.f32 1.442695, %v576_v60 }
 0x149   : > { %3547 = vpow2.f32 %v592_v61 }
 0x14c   : > { %v547_v0 = vpop.xlane.xlu0 %546 }
 0x14d   : > { %v577_v1 = vsub.f32 %v529_v27, %v547_v0 }
 0x14f   : > { %v3939_v2 = vpop.eup %3547  ;;  %v594_v3 = vmul.f32 1.442695, %v577_v1  ;;  %v4017_v1 = vpop.f32.mrf.mxu3 }
 0x150   : > { %624 = vadd.xlane.f32.xlu2 %v3939_v2 }
 0x151   : > { %3549 = vpow2.f32 %v594_v3 }
 0x154   : > { %v549_v5 = vpop.xlane.xlu1 %548 }
 0x155   : > { %v578_v6 = vsub.f32 %v3898_v29, %v549_v5  ;;  %v520_v29 = vpop.f32.mrf.mxu0 }
 0x156   : > { %v3984_v35 = vmul.f32 0.25, %v520_v29 }
 0x157   : > { %v3945_v8 = vpop.eup %3549  ;;  %v596_v9 = vmul.f32 1.442695, %v578_v6 }
 0x158   : > { %626 = vadd.xlane.f32.xlu0 %v3945_v8  ;;  %562 = vmax.xlane.f32.xlu2 %v3943_v7 }
 0x159   : > { %3551 = vpow2.f32 %v596_v9 }
 0x15c   : > { %v551_v13 = vpop.xlane.xlu1 %550 }
 0x15d   : > { %v579_v14 = vsub.f32 %v3901_v31, %v551_v13  ;;  %v3452_v31 = vld [vmem:[%s3974_s29 + $0x30] sm:$0xff]  ;;  %v523_v39 = vpop.f32.mrf.mxu0 }
 0x15e   : > { %745 = vmatpush.bf16.msra.mxu1 %v3452_v31  ;;  %v3992_v40 = vmul.f32 0.25, %v523_v39 }
 0x15f   : > { %v3954_v15 = vpop.eup %3551  ;;  %v598_v16 = vmul.f32 1.442695, %v579_v14  ;;  %v3460_v14 = vld [vmem:[%s3880_s26 + $0x68] sm:$0xff] }
 0x160   : > { %628 = vadd.xlane.f32.xlu0 %v3954_v15  ;;  %564 = vmax.xlane.f32.xlu2 %v3951_v12 }
 0x161   : > { %3553 = vpow2.f32 %v598_v16  ;;  %3048 = vmatmul.msk.bf16.gmra.mxu3 %vm430_vm0, %v3460_v14 }
 0x162   : > { %746 = vmatpush.bf16.msra.mxu1 %v3451_v36 }
 0x164   : > { %v553_v17 = vpop.xlane.xlu2 %552 }
 0x165   : > { %v580_v18 = vsub.f32 %v3904_v33, %v553_v17  ;;  %v525_v45 = vpop.f32.mrf.mxu0 }
 0x166   : > { %v4000_v49 = vmul.f32 0.25, %v525_v45  ;;  %747 = vmatpush.bf16.msra.mxu1 %v3450_v53  ;;  %v3462_v53 = vld [vmem:[%s3880_s26 + $0x78] sm:$0xff] }
 0x167   : > { %v3961_v21 = vpop.eup %3553  ;;  %v600_v22 = vmul.f32 1.442695, %v580_v18 }
 0x168   : > { %630 = vadd.xlane.f32.xlu1 %v3961_v21  ;;  %566 = vmax.xlane.f32.xlu0 %v3959_v20 }
 0x169   : > { %3555 = vpow2.f32 %v600_v22 }
 0x16a   : > { %748 = vmatpush.bf16.msra.mxu1 %v3449_v54 }
 0x16c   : > { %v555_v25 = vpop.xlane.xlu2 %554 }
 0x16d   : > { %v581_v26 = vsub.f32 %v3910_v38, %v555_v25 }
 0x16f   : > { %v3976_v27 = vpop.eup %3555  ;;  %v602_v28 = vmul.f32 1.442695, %v581_v26 }
 0x170   : > { %632 = vadd.xlane.f32.xlu1 %v3976_v27  ;;  %568 = vmax.xlane.f32.xlu0 %v3967_v24 }
 0x171   : > { %3557 = vpow2.f32 %v602_v28 }
 0x174   : > { %v557_v32 = vpop.xlane.xlu0 %556 }
 0x175   : > { %v582_v33 = vsub.f32 %v3915_v42, %v557_v32  ;;  %v3461_v32 = vld [vmem:[%s3880_s26 + $0x70] sm:$0xff] }
 0x176   : > { %3049 = vmatmul.msk.bf16.gmra.mxu3 %vm430_vm0, %v3461_v32 }
 0x177   : > { %v3987_v37 = vpop.eup %3557  ;;  %v604_v38 = vmul.f32 1.442695, %v582_v33 }
 0x178   : > { %634 = vadd.xlane.f32.xlu2 %v3987_v37  ;;  %570 = vmax.xlane.f32.xlu1 %v3984_v35 }
 0x179   : > { %3559 = vpow2.f32 %v604_v38 }
 0x17c   : > { %v559_v41 = vpop.xlane.xlu1 %558 }
 0x17d   : > { %v583_v42 = vsub.f32 %v3920_v46, %v559_v41 }
 0x17f   : > { %v3995_v43 = vpop.eup %3559  ;;  %v606_v44 = vmul.f32 1.442695, %v583_v42 }
 0x180   : > { %636 = vadd.xlane.f32.xlu2 %v3995_v43  ;;  %572 = vmax.xlane.f32.xlu1 %v3992_v40 }
 0x181   : > { %3561 = vpow2.f32 %v606_v44 }
 0x184   : > { %v561_v47 = vpop.xlane.xlu1 %560 }
 0x185   : > { %v584_v48 = vsub.f32 %v3925_v50, %v561_v47  ;;  %v3448_v50 = vld [vmem:[%s3974_s29 + $0x10] sm:$0xff] }
 0x186   : > { %749 = vmatpush.bf16.msra.mxu1 %v3448_v50  ;;  %3050 = vmatmul.msk.bf16.gmra.mxu3 %vm430_vm0, %v3462_v53  ;;  %v4054_v50 = vmul.f32 0.25, %v4014_v58 }
 0x187   : > { %v4002_v46 = vpop.eup %3561  ;;  %v608_v51 = vmul.f32 1.442695, %v584_v48 }
 0x188   : > { %638 = vadd.xlane.f32.xlu0 %v4002_v46  ;;  %574 = vmax.xlane.f32.xlu2 %v4000_v49 }
 0x189   : > { %3563 = vpow2.f32 %v608_v51 }
 0x18a   : > { %750 = vmatpush.bf16.msra.mxu1 %v3447_v55 }
 0x18e   : > { %751 = vmatpush.bf16.msra.mxu1 %v3446_v56 }
 0x18f   : > { %v4006_v52 = vpop.eup %3563 }
 0x190   : > { %640 = vadd.xlane.f32.xlu0 %v4006_v52 }
 0x1c3   : > { %v625_v57 = vpop.xlane.xlu2 %624 }
 0x1c4   : > { %3565 = vrcp.f32 %v625_v57 }
 0x1ca   : > { %v3566_v63 = vpop.eup %3565 }
 0x1cb   : > { %v627_v59 = vpop.xlane.xlu0 %626  ;;  %v563_v60 = vpop.xlane.xlu2 %562  ;;  %v672_v5 = vmul.f32 %v3566_v63, %v3939_v2 }
 0x1cc   : > { %3567 = vrcp.f32 %v627_v59  ;;  %v585_v61 = vsub.f32 %v3943_v7, %v563_v60 }
 0x1ce   : > { %v610_v62 = vmul.f32 1.442695, %v585_v61 }
 0x1d0   : > { %3569 = vpow2.f32 %v610_v62 }
 0x1d2   : > { %v3568_v0 = vpop.eup %3567 }
 0x1d3   : > { %v629_v3 = vpop.xlane.xlu0 %628  ;;  %v565_v4 = vpop.xlane.xlu2 %564  ;;  %v673_v6 = vmul.f32 %v3568_v0, %v3945_v8 }
 0x1d4   : > { %v586_v9 = vsub.f32 %v3951_v12, %v565_v4  ;;  %v4028_v8 = vpop.f32.mrf.mxu3 }
 0x1d5   : > { %v688_v10 = vpack.c.bf16 %v673_v6, %v672_v5 }
 0x1d6   : > { %v4022_v11 = vpop.eup %3569  ;;  %v612_v13 = vmul.f32 1.442695, %v586_v9 }
 0x1d7   : > { %752 = vmatmul.bf16.vlgmr.msra.gmra.mxu1 %v688_v10  ;;  %642 = vadd.xlane.f32.xlu1 %v4022_v11  ;;  %v3454_v10 = vld [vmem:[%s4835_s4] sm:$0xff] }
 0x1d8   : > { %3571 = vpow2.f32 %v612_v13  ;;  %840 = vmatpush.bf16.msra.mxu2 %v3454_v10 }
 0x1d9   : > { %3573 = vrcp.f32 %v629_v3 }
 0x1db   : > { %v631_v7 = vpop.xlane.xlu1 %630  ;;  %v567_v16 = vpop.xlane.xlu0 %566 }
 0x1dc   : > { %3575 = vrcp.f32 %v631_v7  ;;  %v587_v2 = vsub.f32 %v3959_v20, %v567_v16  ;;  %v1093_v31 = vpop.f32.mrf.mxu3 }
 0x1dd   : > { %v4063_v61 = vmul.f32 0.25, %v1093_v31 }
 0x1de   : > { %v4030_v12 = vpop.eup %3571  ;;  %v614_v17 = vmul.f32 1.442695, %v587_v2 }
 0x1df   : > { %644 = vadd.xlane.f32.xlu2 %v4030_v12  ;;  %v3574_v18 = vpop.eup %3573 }
 0x1e0   : > { %3577 = vpow2.f32 %v614_v17  ;;  %v674_v25 = vmul.f32 %v3574_v18, %v3954_v15 }
 0x1e2   : > { %v3576_v19 = vpop.eup %3575 }
 0x1e3   : > { %v633_v22 = vpop.xlane.xlu1 %632  ;;  %v569_v23 = vpop.xlane.xlu0 %568  ;;  %v675_v26 = vmul.f32 %v3576_v19, %v3961_v21 }
 0x1e4   : > { %v588_v28 = vsub.f32 %v3967_v24, %v569_v23  ;;  %v1096_v38 = vpop.f32.mrf.mxu3 }
 0x1e5   : > { %v689_v20 = vpack.c.bf16 %v675_v26, %v674_v25  ;;  %v4073_v3 = vmul.f32 0.25, %v1096_v38 }
 0x1e6   : > { %v4036_v29 = vpop.eup %3577  ;;  %v616_v30 = vmul.f32 1.442695, %v588_v28 }
 0x1e7   : > { %757 = vmatmul.bf16.gmra.mxu1 %v689_v20  ;;  %646 = vadd.xlane.f32.xlu0 %v4036_v29 }
 0x1e8   : > { %3579 = vpow2.f32 %v616_v30 }
 0x1e9   : > { %3581 = vrcp.f32 %v633_v22 }
 0x1eb   : > { %v635_v33 = vpop.xlane.xlu2 %634  ;;  %v571_v34 = vpop.xlane.xlu1 %570 }
 0x1ec   : > { %3583 = vrcp.f32 %v635_v33  ;;  %v589_v15 = vsub.f32 %v3984_v35, %v571_v34  ;;  %v1098_v54 = vpop.f32.mrf.mxu3 }
 0x1ed   : > { %v4085_v5 = vmul.f32 0.25, %v1098_v54 }
 0x1ee   : > { %v4042_v21 = vpop.eup %3579  ;;  %v618_v24 = vmul.f32 1.442695, %v589_v15 }
 0x1ef   : > { %648 = vadd.xlane.f32.xlu1 %v4042_v21  ;;  %v3582_v36 = vpop.eup %3581 }
 0x1f0   : > { %3585 = vpow2.f32 %v618_v24  ;;  %v676_v44 = vmul.f32 %v3582_v36, %v3976_v27 }
 0x1f2   : > { %v3584_v39 = vpop.eup %3583 }
 0x1f3   : > { %v637_v41 = vpop.xlane.xlu2 %636  ;;  %v573_v42 = vpop.xlane.xlu1 %572  ;;  %v677_v45 = vmul.f32 %v3584_v39, %v3987_v37 }
 0x1f4   : > { %v590_v47 = vsub.f32 %v3992_v40, %v573_v42  ;;  %v1101_v62 = vpop.f32.mrf.mxu3 }
 0x1f5   : > { %v690_v48 = vpack.c.bf16 %v677_v45, %v676_v44 }
 0x1f6   : > { %v4048_v35 = vpop.eup %3585  ;;  %v620_v51 = vmul.f32 1.442695, %v590_v47 }
 0x1f7   : > { %762 = vmatmul.bf16.gmra.mxu1 %v690_v48  ;;  %650 = vadd.xlane.f32.xlu2 %v4048_v35 }
 0x1f8   : > { %3587 = vpow2.f32 %v620_v51 }
 0x1f9   : > { %3589 = vrcp.f32 %v637_v41 }
 0x1fb   : > { %v639_v27 = vpop.xlane.xlu0 %638  ;;  %v575_v37 = vpop.xlane.xlu2 %574 }
 0x1fc   : > { %3591 = vrcp.f32 %v639_v27  ;;  %v591_v40 = vsub.f32 %v4000_v49, %v575_v37  ;;  %v4066_v49 = vmul.f32 0.25, %v4017_v1  ;;  %v1103_v4 = vpop.f32.mrf.mxu3 }
 0x1fd   : > { %v4083_v1 = vmul.f32 0.25, %v1103_v4 }
 0x1fe   : > { %v4057_v55 = vpop.eup %3587  ;;  %v622_v56 = vmul.f32 1.442695, %v591_v40 }
 0x1ff   : > { %652 = vadd.xlane.f32.xlu0 %v4057_v55  ;;  %1142 = vmax.xlane.f32.xlu2 %v4054_v50  ;;  %v3590_v57 = vpop.eup %3589 }
 0x200   : > { %3593 = vpow2.f32 %v622_v56  ;;  %v678_v60 = vmul.f32 %v3590_v57, %v3995_v43  ;;  %v4076_v43 = vmul.f32 0.25, %v4028_v8 }
 0x202   : > { %v3592_v59 = vpop.eup %3591 }
 0x203   : > { %v679_v58 = vmul.f32 %v3592_v59, %v4002_v46  ;;  %v4078_v46 = vmul.f32 0.25, %v1101_v62  ;;  %v641_v13 = vpop.xlane.xlu0 %640  ;;  %v3495_v59 = vld [vmem:[%s3858_s23 + $0xb8] sm:$0xff] }
 0x204   : > { %v1106_v6 = vpop.f32.mrf.mxu3  ;;  %3595 = vrcp.f32 %v641_v13 }
 0x205   : > { %v691_v63 = vpack.c.bf16 %v679_v58, %v678_v60  ;;  %v4089_v9 = vmul.f32 0.25, %v1106_v6 }
 0x206   : > { %v4068_v0 = vpop.eup %3593 }
 0x207   : > { %767 = vmatmul.bf16.gmra.mxu1 %v691_v63  ;;  %1144 = vmax.xlane.f32.xlu0 %v4066_v49  ;;  %v4114_v63 = vsel %vm430_vm0, %v3495_v59, 0  ;;  %v3480_v59 = vld [vmem:[%s3880_s26 + $0x80] sm:$0xff] }
 0x208   : > { %1148 = vmax.xlane.f32.xlu2 %v4063_v61  ;;  %654 = vadd.xlane.f32.xlu1 %v4068_v0 }
 0x209   : > { %1675 = vmatpush.bf16.xpose.msrb.mxu0 %v4114_v63 }
 0x20a   : > { %v3596_v7 = vpop.eup %3595 }
 0x20b   : > { %v680_v2 = vmul.f32 %v3596_v7, %v4006_v52 }
 0x20f   : > { %1150 = vmax.xlane.f32.xlu0 %v4073_v3 }
 0x210   : > { %1154 = vmax.xlane.f32.xlu2 %v4078_v46  ;;  %1146 = vmax.xlane.f32.xlu1 %v4076_v43 }
 0x217   : > { %1156 = vmax.xlane.f32.xlu0 %v4083_v1 }
 0x218   : > { %1152 = vmax.xlane.f32.xlu1 %v4085_v5 }
 0x21f   : > { %1158 = vmax.xlane.f32.xlu0 %v4089_v9 }
 0x24a   : > { %v643_v14 = vpop.xlane.xlu1 %642 }
 0x24b   : > { %3597 = vrcp.f32 %v643_v14 }
 0x251   : > { %v3598_v16 = vpop.eup %3597 }
 0x252   : > { %v681_v8 = vmul.f32 %v3598_v16, %v4022_v11  ;;  %v645_v19 = vpop.xlane.xlu2 %644  ;;  %v1108_v11 = vpop.f32.mrf.mxu3 }
 0x253   : > { %3599 = vrcp.f32 %v645_v19  ;;  %v4121_v14 = vmul.f32 0.25, %v1108_v11 }
 0x254   : > { %v753_v17 = vpop.f32.mrf.mxu1  ;;  %v692_v18 = vpack.c.bf16 %v681_v8, %v680_v2 }
 0x256   : > { %772 = vmatmul.bf16.gmra.mxu1 %v692_v18 }
 0x259   : > { %v3600_v26 = vpop.eup %3599 }
 0x25a   : > { %v647_v22 = vpop.xlane.xlu0 %646  ;;  %v682_v20 = vmul.f32 %v3600_v26, %v4030_v12  ;;  %v1111_v24 = vpop.f32.mrf.mxu3 }
 0x25b   : > { %3601 = vrcp.f32 %v647_v22 }
 0x25c   : > { %v755_v23 = vpop.f32.mrf.mxu1 }
 0x25d   : > { %v793_v25 = vpack.c.bf16 %v755_v23, %v753_v17 }
 0x25f   : > { %2923 = vmatmul.msk.bf16.vlgmr.msra.gmra.mxu2 %vm430_vm0, %v793_v25 }
 0x261   : > { %v3602_v28 = vpop.eup %3601 }
 0x262   : > { %v683_v30 = vmul.f32 %v3602_v28, %v4036_v29  ;;  %v649_v32 = vpop.xlane.xlu1 %648  ;;  %v4104_v48 = vpop.f32.mrf.mxu3 }
 0x263   : > { %3603 = vrcp.f32 %v649_v32 }
 0x264   : > { %v758_v52 = vpop.f32.mrf.mxu1  ;;  %v693_v31 = vpack.c.bf16 %v683_v30, %v682_v20  ;;  %v3493_v30 = vld [vmem:[%s3858_s23 + $0xa8] sm:$0xff] }
 0x266   : > { %777 = vmatmul.bf16.gmra.mxu1 %v693_v31  ;;  %v4150_v31 = vsel %vm430_vm0, %v3493_v30, 0 }
 0x269   : > { %v3604_v36 = vpop.eup %3603 }
 0x26a   : > { %v651_v33 = vpop.xlane.xlu2 %650  ;;  %v684_v12 = vmul.f32 %v3604_v36, %v4042_v21  ;;  %v1116_v62 = vpop.f32.mrf.mxu3 }
 0x26b   : > { %3605 = vrcp.f32 %v651_v33 }
 0x26c   : > { %v760_v34 = vpop.f32.mrf.mxu1 }
 0x26d   : > { %v794_v15 = vpack.c.bf16 %v760_v34, %v758_v52  ;;  %v3478_v52 = vld [vmem:[%s3974_s29 + $0x78] sm:$0xff]  ;;  %v3492_v34 = vld [vmem:[%s3858_s23 + $0xa0] sm:$0xff] }
 0x26e   : > { %1342 = vmatpush.bf16.msrb.mxu2 %v3478_v52 }
 0x26f   : > { %2924 = vmatmul.msk.bf16.gmra.mxu2 %vm430_vm0, %v794_v15  ;;  %v4157_v15 = vmul.f32 0.25, %v4104_v48 }
 0x271   : > { %v3606_v38 = vpop.eup %3605 }
 0x272   : > { %v653_v39 = vpop.xlane.xlu0 %652  ;;  %v1143_v41 = vpop.xlane.xlu2 %1142  ;;  %v685_v29 = vmul.f32 %v3606_v38, %v4048_v35  ;;  %v4166_v38 = vsel %vm430_vm0, %v3492_v34, 0 }
 0x273   : > { %v1174_v42 = vsub.f32 %v4054_v50, %v1143_v41  ;;  %v1118_v22 = vpop.f32.mrf.mxu3 }
 0x274   : > { %v763_v44 = vpop.f32.mrf.mxu1  ;;  %v694_v45 = vpack.c.bf16 %v685_v29, %v684_v12  ;;  %v4153_v33 = vmul.f32 0.25, %v1118_v22  ;;  %v3491_v29 = vld [vmem:[%s3858_s23 + $0x98] sm:$0xff] }
 0x275   : > { %v1190_v47 = vmul.f32 1.442695, %v1174_v42 }
 0x276   : > { %782 = vmatmul.bf16.gmra.mxu1 %v694_v45 }
 0x277   : > { %3607 = vpow2.f32 %v1190_v47  ;;  %v4181_v47 = vsel %vm430_vm0, %v3491_v29, 0 }
 0x278   : > { %3609 = vrcp.f32 %v653_v39  ;;  %v4168_v39 = vmul.f32 0.25, %v1116_v62  ;;  %v3481_v62 = vld [vmem:[%s3880_s26 + $0x88] sm:$0xff] }
 0x27a   : > { %v1145_v51 = vpop.xlane.xlu0 %1144 }
 0x27b   : > { %v1175_v53 = vsub.f32 %v4066_v49, %v1145_v51  ;;  %v655_v54 = vpop.xlane.xlu1 %654  ;;  %v1149_v27 = vpop.xlane.xlu2 %1148 }
 0x27c   : > { %3611 = vrcp.f32 %v655_v54  ;;  %v1177_v21 = vsub.f32 %v4063_v61, %v1149_v27  ;;  %v765_v35 = vpop.f32.mrf.mxu1 }
 0x27d   : > { %v4108_v37 = vpop.eup %3607  ;;  %v1192_v50 = vmul.f32 1.442695, %v1175_v53  ;;  %v795_v40 = vpack.c.bf16 %v765_v35, %v763_v44  ;;  %v3490_v53 = vld [vmem:[%s3858_s23 + $0x90] sm:$0xff]  ;;  %v3489_v35 = vld [vmem:[%s3858_s23 + $0x88] sm:$0xff] }
 0x27e   : > { %v1196_v56 = vmul.f32 1.442695, %v1177_v21  ;;  %1222 = vadd.xlane.f32.xlu1 %v4108_v37  ;;  %v3610_v57 = vpop.eup %3609  ;;  %v3477_v21 = vld [vmem:[%s3974_s29 + $0x70] sm:$0xff] }
 0x27f   : > { %3613 = vpow2.f32 %v1192_v50  ;;  %2925 = vmatmul.msk.bf16.gmra.mxu2 %vm430_vm0, %v795_v40  ;;  %v686_v4 = vmul.f32 %v3610_v57, %v4057_v55  ;;  %v3494_v55 = vld [vmem:[%s3858_s23 + $0xb0] sm:$0xff]  ;;  %v4201_v50 = vsel %vm430_vm0, %v3489_v35, 0  ;;  %v3488_v40 = vld [vmem:[%s3858_s23 + $0x80] sm:$0xff]  ;;  %v3476_v57 = vld [vmem:[%s3974_s29 + $0x68] sm:$0xff] }
 0x280   : > { %3615 = vpow2.f32 %v1196_v56  ;;  %1343 = vmatpush.bf16.msrb.mxu2 %v3477_v21  ;;  %v4206_v56 = vsel %vm430_vm0, %v3488_v40, 0 }
 0x282   : > { %v3612_v60 = vpop.eup %3611  ;;  %v1151_v58 = vpop.xlane.xlu0 %1150 }
 0x283   : > { %v1178_v61 = vsub.f32 %v4073_v3, %v1151_v58  ;;  %v1147_v49 = vpop.xlane.xlu1 %1146  ;;  %v687_v6 = vmul.f32 %v3612_v60, %v4068_v0  ;;  %v4132_v0 = vsel %vm430_vm0, %v3494_v55, 0  ;;  %v1155_v25 = vpop.xlane.xlu2 %1154  ;;  %v3475_v58 = vld [vmem:[%s3974_s29 + $0x60] sm:$0xff]  ;;  %v3472_v55 = vld [vmem:[%s3974_s29 + $0x48] sm:$0xff] }
 0x284   : > { %v1176_v10 = vsub.f32 %v4076_v43, %v1147_v49  ;;  %v768_v13 = vpop.f32.mrf.mxu1  ;;  %v4134_v43 = vmul.f32 0.25, %v1111_v24  ;;  %1676 = vmatpush.bf16.xpose.msrb.mxu0 %v4132_v0  ;;  %1344 = vmatpush.bf16.msrb.mxu2 %v3476_v57 }
 0x285   : > { %v4123_v7 = vpop.eup %3613  ;;  %v1198_v16 = vmul.f32 1.442695, %v1178_v61  ;;  %v695_v2 = vpack.c.bf16 %v687_v6, %v686_v4  ;;  %v3474_v6 = vld [vmem:[%s3974_s29 + $0x58] sm:$0xff] }
 0x286   : > { %v4125_v8 = vpop.eup %3615  ;;  %v1194_v3 = vmul.f32 1.442695, %v1176_v10  ;;  %1224 = vadd.xlane.f32.xlu2 %v4123_v7  ;;  %1160 = vmax.xlane.f32.xlu1 %v4121_v14 }
 0x287   : > { %3617 = vpow2.f32 %v1198_v16  ;;  %787 = vmatmul.bf16.gmra.mxu1 %v695_v2  ;;  %1228 = vadd.xlane.f32.xlu0 %v4125_v8 }
 0x288   : > { %3619 = vpow2.f32 %v1194_v3  ;;  %1345 = vmatpush.bf16.msrb.mxu2 %v3475_v58  ;;  %v3473_v3 = vld [vmem:[%s3974_s29 + $0x50] sm:$0xff] }
 0x28a   : > { %v1157_v11 = vpop.xlane.xlu0 %1156 }
 0x28b   : > { %v1153_v17 = vpop.xlane.xlu1 %1152  ;;  %v1181_v36 = vsub.f32 %v4083_v1, %v1157_v11 }
 0x28c   : > { %v1179_v18 = vsub.f32 %v4085_v5, %v1153_v17  ;;  %v770_v19 = vpop.f32.mrf.mxu1  ;;  %v1180_v5 = vsub.f32 %v4078_v46, %v1155_v25  ;;  %1677 = vmatpush.bf16.xpose.msrb.mxu0 %v4150_v31  ;;  %v1121_v46 = vpop.f32.mrf.mxu3  ;;  %1346 = vmatpush.bf16.msrb.mxu2 %v3474_v6 }
 0x28d   : > { %v4138_v23 = vpop.eup %3617  ;;  %v796_v26 = vpack.c.bf16 %v770_v19, %v768_v13  ;;  %v1204_v41 = vmul.f32 1.442695, %v1181_v36  ;;  %v4171_v12 = vmul.f32 0.25, %v1121_v46 }
 0x28e   : > { %v4140_v28 = vpop.eup %3619  ;;  %v1200_v20 = vmul.f32 1.442695, %v1179_v18  ;;  %1162 = vmax.xlane.f32.xlu1 %v4134_v43  ;;  %v1202_v32 = vmul.f32 1.442695, %v1180_v5 }
 0x28f   : > { %1226 = vadd.xlane.f32.xlu2 %v4140_v28  ;;  %1230 = vadd.xlane.f32.xlu0 %v4138_v23 }
 0x290   : > { %3621 = vpow2.f32 %v1200_v20  ;;  %2926 = vmatmul.msk.bf16.gmra.mxu2 %vm430_vm0, %v796_v26  ;;  %v3471_v26 = vld [vmem:[%s3974_s29 + $0x40] sm:$0xff] }
 0x291   : > { %3623 = vpow2.f32 %v1202_v32  ;;  %1347 = vmatpush.bf16.msrb.mxu2 %v3473_v3 }
 0x292   : > { %v1159_v42 = vpop.xlane.xlu0 %1158  ;;  %3625 = vpow2.f32 %v1204_v41 }
 0x293   : > { %v1182_v1 = vsub.f32 %v4089_v9, %v1159_v42  ;;  %v4192_v9 = vsel %vm430_vm0, %v3490_v53, 0 }
 0x294   : > { %1678 = vmatpush.bf16.xpose.msrb.mxu0 %v4166_v38  ;;  %v1123_v45 = vpop.f32.mrf.mxu3 }
 0x295   : > { %v4183_v48 = vmul.f32 0.25, %v1123_v45  ;;  %v1206_v51 = vmul.f32 1.442695, %v1182_v1  ;;  %1348 = vmatpush.bf16.msrb.mxu2 %v3472_v55 }
 0x296   : > { %v4159_v24 = vpop.eup %3621 }
 0x297   : > { %1164 = vmax.xlane.f32.xlu2 %v4157_v15  ;;  %1232 = vadd.xlane.f32.xlu1 %v4159_v24  ;;  %v4174_v44 = vpop.eup %3623  ;;  %3627 = vpow2.f32 %v1206_v51 }
 0x298   : > { %1168 = vmax.xlane.f32.xlu0 %v4153_v33  ;;  %v4187_v54 = vpop.eup %3625 }
 0x299   : > { %1349 = vmatpush.bf16.msrb.mxu2 %v3471_v26 }
 0x29c   : > { %1679 = vmatpush.bf16.xpose.msrb.mxu0 %v4181_v47 }
 0x29d   : > { %v4195_v27 = vpop.eup %3627  ;;  %3530 = vmatpush.bf16.xpose.msra.mxu2 %v4114_v63 }
 0x29f   : > { %1166 = vmax.xlane.f32.xlu2 %v4168_v39  ;;  %1234 = vadd.xlane.f32.xlu1 %v4174_v44 }
 0x2a0   : > { %1170 = vmax.xlane.f32.xlu0 %v4171_v12 }
 0x2a4   : > { %1680 = vmatpush.bf16.xpose.msrb.mxu0 %v4192_v9 }
 0x2a5   : > { %3531 = vmatpush.bf16.xpose.msra.mxu2 %v4132_v0 }
 0x2a7   : > { %1236 = vadd.xlane.f32.xlu2 %v4187_v54  ;;  %1172 = vmax.xlane.f32.xlu1 %v4183_v48 }
 0x2ac   : > { %1681 = vmatpush.bf16.xpose.msrb.mxu0 %v4201_v50 }
 0x2ad   : > { %3532 = vmatpush.bf16.xpose.msra.mxu2 %v4150_v31 }
 0x2af   : > { %1238 = vadd.xlane.f32.xlu2 %v4195_v27 }
 0x2b4   : > { %1682 = vmatpush.bf16.xpose.msrb.mxu0 %v4206_v56 }
 0x2b5   : > { %3533 = vmatpush.bf16.xpose.msra.mxu2 %v4166_v38 }
 0x2bb   : > { %3207 = vmatmul.msk.bf16.vlgmr.msrb.gmra.mxu0 %vm430_vm0, %v3480_v59 }
 0x2bd   : > { %3534 = vmatpush.bf16.xpose.msra.mxu2 %v4181_v47  ;;  %v3479_v47 = vld [vmem:[%s4835_s4 + $0x8] sm:$0xff] }
 0x2be   : > { %1438 = vmatpush.bf16.msrb.mxu1 %v3479_v47 }
 0x2c5   : > { %3535 = vmatpush.bf16.xpose.msra.mxu2 %v4192_v9 }
 0x2cb   : > { %3208 = vmatmul.msk.bf16.gmra.mxu0 %vm430_vm0, %v3481_v62 }
 0x2cd   : > { %3536 = vmatpush.bf16.xpose.msra.mxu2 %v4201_v50 }
 0x2d3   : > { %v773_v60 = vpop.f32.mrf.mxu1 }
 0x2d5   : > { %3537 = vmatpush.bf16.xpose.msra.mxu2 %v4206_v56 }
 0x2db   : > { %v775_v61 = vpop.f32.mrf.mxu1 }
 0x2dc   : > { %v797_v49 = vpack.c.bf16 %v775_v61, %v773_v60 }
 0x2de   : > { %2927 = vmatmul.msk.bf16.gmra.mxu2 %vm430_vm0, %v797_v49 }
 0x2e2   : > { %v4240_v21 = vpop.f32.mrf.mxu2 }
 0x2e3   : > { %v778_v4 = vpop.f32.mrf.mxu1 }
 0x2ea   : > { %v4256_v6 = vpop.f32.mrf.mxu2 }
 0x2eb   : > { %v780_v10 = vpop.f32.mrf.mxu1 }
 0x2ec   : > { %v798_v13 = vpack.c.bf16 %v780_v10, %v778_v4 }
 0x2ee   : > { %2928 = vmatmul.msk.bf16.gmra.mxu2 %vm430_vm0, %v798_v13 }
 0x2f1   : > { %v1223_v16 = vpop.xlane.xlu1 %1222 }
 0x2f2   : > { %v4267_v38 = vpop.f32.mrf.mxu2 }
 0x2f3   : > { %v783_v2 = vpop.f32.mrf.mxu1 }
 0x2f9   : > { %v1161_v17 = vpop.xlane.xlu1 %1160  ;;  %v1225_v18 = vpop.xlane.xlu2 %1224 }
 0x2fa   : > { %v1183_v19 = vsub.f32 %v4121_v14, %v1161_v17  ;;  %v4221_v22 = vpop.xlane.xlu0 %1228  ;;  %v3482_v17 = vld [vmem:[%s3880_s26 + $0x90] sm:$0xff] }
 0x2fb   : > { %v785_v25 = vpop.f32.mrf.mxu1  ;;  %3209 = vmatmul.msk.bf16.gmra.mxu0 %vm430_vm0, %v3482_v17  ;;  %v3483_v17 = vld [vmem:[%s3880_s26 + $0x98] sm:$0xff] }
 0x2fc   : > { %v1208_v20 = vmul.f32 1.442695, %v1183_v19  ;;  %v799_v30 = vpack.c.bf16 %v785_v25, %v783_v2 }
 0x2fe   : > { %3629 = vpow2.f32 %v1208_v20  ;;  %2929 = vmatmul.msk.bf16.gmra.mxu2 %vm430_vm0, %v799_v30 }
 0x301   : > { %v1163_v52 = vpop.xlane.xlu1 %1162 }
 0x302   : > { %v1184_v5 = vsub.f32 %v4134_v43, %v1163_v52  ;;  %v4227_v11 = vpop.xlane.xlu0 %1230  ;;  %v1227_v32 = vpop.xlane.xlu2 %1226 }
 0x304   : > { %v4229_v34 = vpop.eup %3629  ;;  %v1210_v14 = vmul.f32 1.442695, %v1184_v5  ;;  %v788_v46 = vpop.f32.mrf.mxu1 }
 0x305   : > { %1240 = vadd.xlane.f32.xlu0 %v4229_v34 }
 0x306   : > { %3631 = vpow2.f32 %v1210_v14 }
 0x307   : > { %3633 = vrcp.f32 %v1225_v18  ;;  %v4277_v18 = vpop.f32.mrf.mxu2 }
 0x30a   : > { %v1233_v36 = vpop.xlane.xlu1 %1232  ;;  %v1165_v41 = vpop.xlane.xlu2 %1164 }
 0x30b   : > { %v1169_v29 = vpop.xlane.xlu0 %1168  ;;  %v1185_v63 = vsub.f32 %v4157_v15, %v1165_v41  ;;  %3210 = vmatmul.msk.bf16.gmra.mxu0 %vm430_vm0, %v3483_v17 }
 0x30c   : > { %v4234_v42 = vpop.eup %3631  ;;  %v1187_v43 = vsub.f32 %v4153_v33, %v1169_v29  ;;  %v790_v1 = vpop.f32.mrf.mxu1 }
 0x30d   : > { %v1212_v45 = vmul.f32 1.442695, %v1185_v63  ;;  %v800_v51 = vpack.c.bf16 %v790_v1, %v788_v46  ;;  %1242 = vadd.xlane.f32.xlu1 %v4234_v42  ;;  %v3634_v40 = vpop.eup %3633 }
 0x30e   : > { %v1216_v53 = vmul.f32 1.442695, %v1187_v43 }
 0x30f   : > { %3635 = vpow2.f32 %v1212_v45  ;;  %2930 = vmatmul.msk.bf16.gmra.mxu2 %vm430_vm0, %v800_v51  ;;  %v4283_v19 = vpop.f32.mrf.mxu2 }
 0x310   : > { %3637 = vpow2.f32 %v1216_v53 }
 0x311   : > { %3639 = vrcp.f32 %v1223_v16 }
 0x312   : > { %v1235_v0 = vpop.xlane.xlu1 %1234  ;;  %v1167_v15 = vpop.xlane.xlu2 %1166 }
 0x313   : > { %v1171_v35 = vpop.xlane.xlu0 %1170  ;;  %v1186_v33 = vsub.f32 %v4168_v39, %v1167_v15  ;;  %v1271_v39 = vmul.f32 %v3634_v40, %v4123_v7 }
 0x314   : > { %v1188_v57 = vsub.f32 %v4171_v12, %v1171_v35 }
 0x315   : > { %v4244_v59 = vpop.eup %3635  ;;  %v1214_v60 = vmul.f32 1.442695, %v1186_v33 }
 0x316   : > { %v4246_v58 = vpop.eup %3637  ;;  %v1218_v62 = vmul.f32 1.442695, %v1188_v57  ;;  %1244 = vadd.xlane.f32.xlu2 %v4244_v59 }
 0x317   : > { %3641 = vpow2.f32 %v1214_v60  ;;  %1248 = vadd.xlane.f32.xlu1 %v4246_v58  ;;  %v3640_v31 = vpop.eup %3639  ;;  %v4288_v30 = vpop.f32.mrf.mxu2 }
 0x318   : > { %3643 = vpow2.f32 %v1218_v62  ;;  %v1270_v49 = vmul.f32 %v3640_v31, %v4108_v37 }
 0x31a   : > { %v1173_v61 = vpop.xlane.xlu1 %1172  ;;  %v1286_v13 = vpack.c.bf16 %v1271_v39, %v1270_v49  ;;  %v1237_v25 = vpop.xlane.xlu2 %1236 }
 0x31b   : > { %v1189_v12 = vsub.f32 %v4183_v48, %v1173_v61 }
 0x31d   : > { %v4254_v4 = vpop.eup %3641  ;;  %v1220_v10 = vmul.f32 1.442695, %v1189_v12 }
 0x31e   : > { %v4258_v16 = vpop.eup %3643  ;;  %1246 = vadd.xlane.f32.xlu0 %v4254_v4 }
 0x31f   : > { %3645 = vpow2.f32 %v1220_v10  ;;  %1250 = vadd.xlane.f32.xlu2 %v4258_v16  ;;  %1350 = vmatmul.bf16.vlgmr.msrb.gmra.mxu2 %v1286_v13 }
 0x320   : > { %3647 = vrcp.f32 %v1227_v32  ;;  %v4295_v32 = vpop.f32.mrf.mxu2 }
 0x321   : > { %3649 = vrcp.f32 %v4221_v22 }
 0x322   : > { %3651 = vrcp.f32 %v1233_v36 }
 0x323   : > { %3653 = vrcp.f32 %v4227_v11 }
 0x324   : > { %3655 = vrcp.f32 %v1237_v25 }
 0x325   : > { %v4264_v37 = vpop.eup %3645  ;;  %3657 = vrcp.f32 %v1235_v0 }
 0x326   : > { %v3648_v7 = vpop.eup %3647  ;;  %1252 = vadd.xlane.f32.xlu0 %v4264_v37 }
 0x327   : > { %v3650_v48 = vpop.eup %3649  ;;  %v1272_v2 = vmul.f32 %v3648_v7, %v4140_v28 }
 0x328   : > { %v1273_v3 = vmul.f32 %v3650_v48, %v4125_v8  ;;  %v3652_v28 = vpop.eup %3651  ;;  %v4300_v36 = vpop.f32.mrf.mxu2 }
 0x329   : > { %v3654_v9 = vpop.eup %3653  ;;  %v1275_v8 = vmul.f32 %v3652_v28, %v4159_v24 }
 0x32a   : > { %v1287_v55 = vpack.c.bf16 %v1273_v3, %v1272_v2  ;;  %v1274_v22 = vmul.f32 %v3654_v9, %v4138_v23  ;;  %v3656_v52 = vpop.eup %3655 }
 0x32b   : > { %v3658_v56 = vpop.eup %3657  ;;  %v1277_v24 = vmul.f32 %v3656_v52, %v4187_v54 }
 0x32c   : > { %v1288_v26 = vpack.c.bf16 %v1275_v8, %v1274_v22  ;;  %v1276_v5 = vmul.f32 %v3658_v56, %v4174_v44  ;;  %v1239_v44 = vpop.xlane.xlu2 %1238  ;;  %v3520_v22 = vld [vmem:[%s3858_s23 + $0xf8] sm:$0xff] }
 0x32d   : > { %3659 = vrcp.f32 %v1239_v44  ;;  %v3519_v44 = vld [vmem:[%s3858_s23 + $0xf0] sm:$0xff] }
 0x32e   : > { %v1289_v23 = vpack.c.bf16 %v1277_v24, %v1276_v5 }
 0x32f   : > { %1355 = vmatmul.bf16.gmra.mxu2 %v1287_v55 }
 0x333   : > { %v3660_v1 = vpop.eup %3659 }
 0x334   : > { %v1278_v51 = vmul.f32 %v3660_v1, %v4195_v27 }
 0x338   : > { %v1684_v50 = vpop.f32.mrf.mxu0 }
 0x339   : > { %v4286_v20 = vmul.f32 0.25, %v1684_v50  ;;  %v2271_v50 = vsel %vm430_vm0, %v3520_v22, 0 }
 0x33a   : > { %2273 = vmatpush.bf16.xpose.msra.mxu1 %v2271_v50 }
 0x33b   : > { %1740 = vmax.xlane.f32.xlu1 %v4286_v20 }
 0x33f   : > { %1360 = vmatmul.bf16.gmra.mxu2 %v1288_v26 }
 0x340   : > { %v4293_v11 = vpop.f32.mrf.mxu0 }
 0x348   : > { %v1689_v14 = vpop.f32.mrf.mxu0 }
 0x349   : > { %v4297_v46 = vmul.f32 0.25, %v1689_v14  ;;  %v4340_v14 = vmul.f32 0.25, %v4293_v11 }
 0x34b   : > { %1744 = vmax.xlane.f32.xlu0 %v4297_v46  ;;  %1742 = vmax.xlane.f32.xlu2 %v4340_v14 }
 0x34f   : > { %1365 = vmatmul.bf16.gmra.mxu2 %v1289_v23 }
 0x350   : > { %v1691_v28 = vpop.f32.mrf.mxu0 }
 0x351   : > { %v4330_v25 = vmul.f32 0.25, %v1691_v28  ;;  %v3513_v28 = vld [vmem:[%s3858_s23 + $0xc0] sm:$0xff] }
 0x353   : > { %1746 = vmax.xlane.f32.xlu1 %v4330_v25 }
 0x361   : > { %v4302_v41 = vpop.f32.mrf.mxu2 }
 0x369   : > { %v4304_v29 = vpop.f32.mrf.mxu2 }
 0x371   : > { %v4306_v54 = vpop.f32.mrf.mxu2 }
 0x378   : > { %v1241_v63 = vpop.xlane.xlu0 %1240  ;;  %v1694_v52 = vpop.f32.mrf.mxu0 }
 0x379   : > { %3661 = vrcp.f32 %v1241_v63  ;;  %v4308_v43 = vpop.f32.mrf.mxu2  ;;  %v4334_v56 = vmul.f32 0.25, %v1694_v52  ;;  %v2268_v63 = vsel %vm430_vm0, %v3519_v44, 0 }
 0x37a   : > { %2274 = vmatpush.bf16.xpose.msra.mxu1 %v2268_v63 }
 0x37b   : > { %1748 = vmax.xlane.f32.xlu1 %v4334_v56 }
 0x37f   : > { %v3662_v45 = vpop.eup %3661 }
 0x380   : > { %v1279_v53 = vmul.f32 %v3662_v45, %v4229_v34  ;;  %v1243_v35 = vpop.xlane.xlu1 %1242  ;;  %v1696_v1 = vpop.f32.mrf.mxu0  ;;  %v3518_v45 = vld [vmem:[%s3858_s23 + $0xe8] sm:$0xff] }
 0x381   : > { %v4312_v0 = vpop.f32.mrf.mxu2  ;;  %3663 = vrcp.f32 %v1243_v35  ;;  %v2265_v11 = vsel %vm430_vm0, %v3518_v45, 0  ;;  %v3517_v35 = vld [vmem:[%s3858_s23 + $0xe0] sm:$0xff] }
 0x382   : > { %v1290_v15 = vpack.c.bf16 %v1279_v53, %v1278_v51  ;;  %v4346_v51 = vmul.f32 0.25, %v1696_v1  ;;  %2275 = vmatpush.bf16.xpose.msra.mxu1 %v2265_v11 }
 0x384   : > { %1370 = vmatmul.bf16.gmra.mxu2 %v1290_v15  ;;  %1750 = vmax.xlane.f32.xlu2 %v4346_v51 }
 0x387   : > { %v3664_v57 = vpop.eup %3663 }
 0x388   : > { %v1280_v62 = vmul.f32 %v3664_v57, %v4234_v42  ;;  %v4383_v50 = vpop.f32.mrf.mxu0 }
 0x389   : > { %v1245_v33 = vpop.xlane.xlu2 %1244  ;;  %v4314_v40 = vpop.f32.mrf.mxu2 }
 0x38a   : > { %3665 = vrcp.f32 %v1245_v33  ;;  %v1249_v61 = vpop.xlane.xlu1 %1248 }
 0x390   : > { %v3666_v60 = vpop.eup %3665 }
 0x391   : > { %v1281_v31 = vmul.f32 %v3666_v60, %v4244_v59  ;;  %v1247_v27 = vpop.xlane.xlu0 %1246 }
 0x392   : > { %v4318_v39 = vpop.f32.mrf.mxu2  ;;  %3667 = vrcp.f32 %v1247_v27  ;;  %v1251_v2 = vpop.xlane.xlu2 %1250 }
 0x393   : > { %v1291_v34 = vpack.c.bf16 %v1281_v31, %v1280_v62  ;;  %3669 = vrcp.f32 %v1249_v61  ;;  %v2262_v31 = vsel %vm430_vm0, %v3517_v35, 0  ;;  %v3485_v35 = vld [vmem:[%s3880_s26 + $0xa8] sm:$0xff] }
 0x394   : > { %2276 = vmatpush.bf16.xpose.msra.mxu1 %v2262_v31 }
 0x395   : > { %1375 = vmatmul.bf16.gmra.mxu2 %v1291_v34 }
 0x398   : > { %v3668_v49 = vpop.eup %3667 }
 0x399   : > { %v3670_v10 = vpop.eup %3669  ;;  %v1282_v13 = vmul.f32 %v3668_v49, %v4254_v4  ;;  %v1253_v48 = vpop.xlane.xlu0 %1252 }
 0x39a   : > { %v4320_v12 = vpop.f32.mrf.mxu2  ;;  %v1283_v7 = vmul.f32 %v3670_v10, %v4246_v58  ;;  %3671 = vrcp.f32 %v1253_v48 }
 0x39b   : > { %4837 = vst [vmem:[#allocation2_spill] sm:$0xff] %v4320_v12  ;;  %3673 = vrcp.f32 %v1251_v2  ;;  %v3514_v2 = vld [vmem:[%s3858_s23 + $0xc8] sm:$0xff] }
 0x39c   : > { %v1292_v59 = vpack.c.bf16 %v1283_v7, %v1282_v13  ;;  %v3515_v13 = vld [vmem:[%s3858_s23 + $0xd0] sm:$0xff] }
 0x39d   : > { %v2256_v7 = vsel %vm430_vm0, %v3515_v13, 0  ;;  %v3507_v13 = vld [vmem:[%s3880_s26 + $0xd0] sm:$0xff] }
 0x3a0   : > { %v3672_v47 = vpop.eup %3671 }
 0x3a1   : > { %v3674_v9 = vpop.eup %3673  ;;  %v1285_v4 = vmul.f32 %v3672_v47, %v4264_v37 }
 0x3a2   : > { %v1351_v42 = vpop.f32.mrf.mxu2  ;;  %v1284_v58 = vmul.f32 %v3674_v9, %v4258_v16  ;;  %v2250_v9 = vsel %vm430_vm0, %v3513_v28, 0 }
 0x3a4   : > { %v1293_v26 = vpack.c.bf16 %v1285_v4, %v1284_v58  ;;  %v286_v4 = vld [vmem:[%s4374_s12] sm:$0xff] }
 0x3a5   : > { %1380 = vmatmul.bf16.gmra.mxu2 %v1292_v59 }
 0x3aa   : > { %v1353_v3 = vpop.f32.mrf.mxu2 }
 0x3ab   : > { %v1391_v55 = vpack.c.bf16 %v1353_v3, %v1351_v42  ;;  %v2253_v3 = vsel %vm430_vm0, %v3514_v2, 0  ;;  %v3509_v2 = vld [vmem:[%s3880_s26 + $0xe0] sm:$0xff] }
 0x3ad   : > { %3087 = vmatmul.msk.bf16.vlgmr.msrb.gmra.mxu1 %vm430_vm0, %v1391_v55 }
 0x3ae   : > { %v1741_v37 = vpop.xlane.xlu1 %1740 }
 0x3af   : > { %v1772_v16 = vsub.f32 %v4286_v20, %v1741_v37 }
 0x3b1   : > { %v1788_v23 = vmul.f32 1.442695, %v1772_v16  ;;  %v3484_v16 = vld [vmem:[%s3880_s26 + $0xa0] sm:$0xff] }
 0x3b2   : > { %v1356_v8 = vpop.f32.mrf.mxu2  ;;  %3211 = vmatmul.msk.bf16.gmra.mxu0 %vm430_vm0, %v3484_v16 }
 0x3b3   : > { %3675 = vpow2.f32 %v1788_v23 }
 0x3b5   : > { %1385 = vmatmul.bf16.gmra.mxu2 %v1293_v26 }
 0x3b9   : > { %v4348_v53 = vpop.eup %3675 }
 0x3ba   : > { %v1358_v24 = vpop.f32.mrf.mxu2  ;;  %1820 = vadd.xlane.f32.xlu1 %v4348_v53 }
 0x3bb   : > { %v1392_v5 = vpack.c.bf16 %v1358_v24, %v1356_v8  ;;  %v882_v8 = vadd.f32 %v4240_v21, %v286_v4  ;;  %v288_v21 = vld [vmem:[%s4374_s12 + $0x10] sm:$0xff] }
 0x3bc   : > { %v884_v63 = vadd.f32 %v4267_v38, %v288_v21 }
 0x3bd   : > { %3088 = vmatmul.msk.bf16.gmra.mxu1 %vm430_vm0, %v1392_v5  ;;  %v1701_v5 = vpop.f32.mrf.mxu0 }
 0x3be   : > { %v1745_v15 = vpop.xlane.xlu0 %1744  ;;  %v4390_v23 = vmul.f32 0.25, %v1701_v5 }
 0x3bf   : > { %v1774_v57 = vsub.f32 %v4297_v46, %v1745_v15  ;;  %v3516_v46 = vld [vmem:[%s3858_s23 + $0xd8] sm:$0xff] }
 0x3c0   : > { %v2259_v10 = vsel %vm430_vm0, %v3516_v46, 0  ;;  %1754 = vmax.xlane.f32.xlu0 %v4390_v23 }
 0x3c1   : > { %v1792_v62 = vmul.f32 1.442695, %v1774_v57  ;;  %2277 = vmatpush.bf16.xpose.msra.mxu1 %v2259_v10  ;;  %v3506_v10 = vld [vmem:[%s3880_s26 + $0xc8] sm:$0xff] }
 0x3c2   : > { %v1361_v20 = vpop.f32.mrf.mxu2  ;;  %3212 = vmatmul.msk.bf16.gmra.mxu0 %vm430_vm0, %v3485_v35 }
 0x3c3   : > { %3677 = vpow2.f32 %v1792_v62  ;;  %v3505_v62 = vld [vmem:[%s3880_s26 + $0xc0] sm:$0xff] }
 0x3c9   : > { %v4357_v34 = vpop.eup %3677  ;;  %2278 = vmatpush.bf16.xpose.msra.mxu1 %v2256_v7  ;;  %v3508_v7 = vld [vmem:[%s3880_s26 + $0xd8] sm:$0xff] }
 0x3ca   : > { %v1363_v33 = vpop.f32.mrf.mxu2  ;;  %1824 = vadd.xlane.f32.xlu1 %v4357_v34 }
 0x3cb   : > { %v1393_v60 = vpack.c.bf16 %v1363_v33, %v1361_v20  ;;  %v290_v33 = vld [vmem:[%s4374_s12 + $0x20] sm:$0xff] }
 0x3cc   : > { %v886_v57 = vadd.f32 %v4283_v19, %v290_v33  ;;  %v3486_v19 = vld [vmem:[%s3880_s26 + $0xb0] sm:$0xff] }
 0x3cd   : > { %3089 = vmatmul.msk.bf16.gmra.mxu1 %vm430_vm0, %v1393_v60 }
 0x3d1   : > { %2279 = vmatpush.bf16.xpose.msra.mxu1 %v2253_v3 }
 0x3d2   : > { %v1366_v27 = vpop.f32.mrf.mxu2  ;;  %3213 = vmatmul.msk.bf16.gmra.mxu0 %vm430_vm0, %v3486_v19 }
 0x3d9   : > { %2280 = vmatpush.bf16.xpose.msra.mxu1 %v2250_v9 }
 0x3da   : > { %v1368_v61 = vpop.f32.mrf.mxu2 }
 0x3db   : > { %v1394_v49 = vpack.c.bf16 %v1368_v61, %v1366_v27  ;;  %v292_v27 = vld [vmem:[%s4374_s12 + $0x30] sm:$0xff] }
 0x3dc   : > { %v888_v61 = vadd.f32 %v4295_v32, %v292_v27  ;;  %v294_v32 = vld [vmem:[%s4374_s12 + $0x40] sm:$0xff]  ;;  %v3511_v27 = vld [vmem:[%s3880_s26 + $0xf0] sm:$0xff] }
 0x3dd   : > { %3090 = vmatmul.msk.bf16.gmra.mxu1 %vm430_vm0, %v1394_v49 }
 0x407   : > { %v1371_v42 = vpop.f32.mrf.mxu2 }
 0x40f   : > { %v1373_v48 = vpop.f32.mrf.mxu2 }
 0x410   : > { %v1395_v59 = vpack.c.bf16 %v1373_v48, %v1371_v42  ;;  %v890_v48 = vadd.f32 %v4302_v41, %v294_v32  ;;  %v298_v41 = vld [vmem:[%s4374_s12 + $0x60] sm:$0xff] }
 0x412   : > { %3091 = vmatmul.msk.bf16.gmra.mxu1 %vm430_vm0, %v1395_v59 }
 0x418   : > { %v1376_v55 = vpop.f32.mrf.mxu2 }
 0x420   : > { %v1378_v47 = vpop.f32.mrf.mxu2 }
 0x421   : > { %v1396_v17 = vpack.c.bf16 %v1378_v47, %v1376_v55  ;;  %v296_v47 = vld [vmem:[%s4374_s12 + $0x50] sm:$0xff] }
 0x423   : > { %3092 = vmatmul.msk.bf16.gmra.mxu1 %vm430_vm0, %v1396_v17  ;;  %v892_v17 = vadd.f32 %v4306_v54, %v296_v47  ;;  %v3487_v54 = vld [vmem:[%s3880_s26 + $0xb8] sm:$0xff] }
 0x424   : > { %3214 = vmatmul.msk.bf16.vlgmr.msra.gmra.mxu2 %vm430_vm0, %v3487_v54  ;;  %v3512_v47 = vld [vmem:[%s3880_s26 + $0xf8] sm:$0xff] }
 0x428   : > { %v1381_v58 = vpop.f32.mrf.mxu2 }
 0x42a   : > { %v1440_v22 = vpop.f32.mrf.mxu1 }
 0x42b   : > { %v4381_v26 = vadd.f32 %v1440_v22, %v882_v8 }
 0x430   : > { %v1383_v52 = vpop.f32.mrf.mxu2 }
 0x431   : > { %v1397_v37 = vpack.c.bf16 %v1383_v52, %v1381_v58  ;;  %v894_v58 = vadd.f32 %v4312_v0, %v298_v41 }
 0x432   : > { %v4385_v24 = vpop.f32.mrf.mxu1 }
 0x433   : > { %4838 = vst [vmem:[#allocation3_spill] sm:$0xff] %v4385_v24  ;;  %3093 = vmatmul.msk.bf16.gmra.mxu1 %vm430_vm0, %v1397_v37  ;;  %v300_v37 = vld [vmem:[%s4374_s12 + $0x70] sm:$0xff] }
 0x434   : > { %v896_v16 = vadd.f32 %v4318_v39, %v300_v37 }
 0x438   : > { %v1386_v44 = vpop.f32.mrf.mxu2 }
 0x43a   : > { %v1445_v1 = vpop.f32.mrf.mxu1 }
 0x43b   : > { %v4395_v45 = vadd.f32 %v1445_v1, %v884_v63  ;;  %v3510_v63 = vld [vmem:[%s3880_s26 + $0xe8] sm:$0xff]  ;;  %v1743_v1 = vpop.xlane.xlu2 %1742 }
 0x43c   : > { %v1773_v39 = vsub.f32 %v4340_v14, %v1743_v1 }
 0x43e   : > { %v1790_v35 = vmul.f32 1.442695, %v1773_v39  ;;  %v3503_v39 = vld [vmem:[%s3974_s29 + $0xb8] sm:$0xff] }
 0x43f   : > { %1940 = vmatpush.bf16.msrb.mxu3 %v3503_v39 }
 0x440   : > { %v1388_v20 = vpop.f32.mrf.mxu2  ;;  %3679 = vpow2.f32 %v1790_v35 }
 0x441   : > { %v1398_v11 = vpack.c.bf16 %v1388_v20, %v1386_v44 }
 0x442   : > { %v4397_v15 = vpop.f32.mrf.mxu1 }
 0x443   : > { %3094 = vmatmul.msk.bf16.gmra.mxu1 %vm430_vm0, %v1398_v11  ;;  %v1704_v11 = vpop.f32.mrf.mxu0  ;;  %v1751_v41 = vpop.xlane.xlu2 %1750 }
 0x444   : > { %v1777_v37 = vsub.f32 %v4346_v51, %v1751_v41  ;;  %v3497_v41 = vld [vmem:[%s3974_s29 + $0x88] sm:$0xff] }
 0x44a   : > { %v1450_v38 = vpop.f32.mrf.mxu1 }
 0x44b   : > { %v4404_v60 = vadd.f32 %v1450_v38, %v886_v57  ;;  %v1747_v57 = vpop.xlane.xlu1 %1746  ;;  %v4459_v38 = vmul.f32 0.25, %v4383_v50 }
 0x452   : > { %v4407_v31 = vpop.f32.mrf.mxu1 }
 0x453   : > { %3371 = vmatmul.msk.bf16.vlgmr.msra.gmra.mxu1 %vm430_vm0, %v3505_v62  ;;  %v1749_v19 = vpop.xlane.xlu1 %1748 }
 0x454   : > { %v1776_v50 = vsub.f32 %v4334_v56, %v1749_v19 }
 0x45a   : > { %v1455_v49 = vpop.f32.mrf.mxu1 }
 0x45b   : > { %v4412_v46 = vadd.f32 %v1455_v49, %v888_v61  ;;  %v1706_v61 = vpop.f32.mrf.mxu0 }
 0x45c   : > { %v4467_v49 = vmul.f32 0.25, %v1706_v61 }
 0x462   : > { %v4422_v42 = vpop.f32.mrf.mxu1 }
 0x463   : > { %3372 = vmatmul.msk.bf16.gmra.mxu1 %vm430_vm0, %v3506_v10  ;;  %v4469_v10 = vpop.eup %3679 }
 0x473   : > { %3373 = vmatmul.msk.bf16.gmra.mxu1 %vm430_vm0, %v3507_v13  ;;  %v1775_v13 = vsub.f32 %v4330_v25, %v1747_v57  ;;  %v1709_v25 = vpop.f32.mrf.mxu0 }
 0x474   : > { %v4486_v56 = vmul.f32 0.25, %v1709_v25  ;;  %v3499_v25 = vld [vmem:[%s3974_s29 + $0x98] sm:$0xff] }
 0x483   : > { %3374 = vmatmul.msk.bf16.gmra.mxu1 %vm430_vm0, %v3508_v7  ;;  %v1796_v7 = vmul.f32 1.442695, %v1776_v50 }
 0x485   : > { %3681 = vpow2.f32 %v1796_v7 }
 0x48f   : > { %v1460_v59 = vpop.f32.mrf.mxu1 }
 0x490   : > { %v4427_v3 = vadd.f32 %v1460_v59, %v890_v48  ;;  %v1794_v48 = vmul.f32 1.442695, %v1775_v13 }
 0x492   : > { %3683 = vpow2.f32 %v1794_v48  ;;  %v3501_v48 = vld [vmem:[%s3974_s29 + $0xa8] sm:$0xff] }
 0x493   : > { %3375 = vmatmul.msk.bf16.gmra.mxu1 %vm430_vm0, %v3509_v2 }
 0x497   : > { %v4430_v55 = vpop.f32.mrf.mxu1 }
 0x4a0   : > { %v1465_v28 = vpop.f32.mrf.mxu1 }
 0x4a1   : > { %v4434_v9 = vadd.f32 %v1465_v28, %v892_v17  ;;  %v4480_v17 = vmul.f32 0.25, %v1704_v11 }
 0x4a3   : > { %3376 = vmatmul.msk.bf16.gmra.mxu1 %vm430_vm0, %v3510_v63 }
 0x4a8   : > { %v4436_v4 = vpop.f32.mrf.mxu1 }
 0x4b0   : > { %v1470_v8 = vpop.f32.mrf.mxu1 }
 0x4b1   : > { %v4440_v22 = vadd.f32 %v1470_v8, %v894_v58  ;;  %v4488_v58 = vpop.eup %3681 }
 0x4b2   : > { %v4490_v8 = vpop.eup %3683 }
 0x4b3   : > { %3377 = vmatmul.msk.bf16.gmra.mxu1 %vm430_vm0, %v3511_v27 }
 0x4b8   : > { %v4442_v52 = vpop.f32.mrf.mxu1 }
 0x4c0   : > { %v1475_v5 = vpop.f32.mrf.mxu1 }
 0x4c1   : > { %v4446_v21 = vadd.f32 %v1475_v5, %v896_v16  ;;  %v1711_v16 = vpop.f32.mrf.mxu0  ;;  %v1798_v5 = vmul.f32 1.442695, %v1777_v37  ;;  %v3496_v37 = vld [vmem:[%s3974_s29 + $0x80] sm:$0xff] }
 0x4c2   : > { %v4500_v1 = vmul.f32 0.25, %v1711_v16  ;;  %v1755_v16 = vpop.xlane.xlu0 %1754 }
 0x4c3   : > { %4839 = vst [vmem:[#allocation4_spill] sm:$0xff] %v4446_v21  ;;  %3378 = vmatmul.msk.bf16.gmra.mxu1 %vm430_vm0, %v3512_v47  ;;  %3685 = vpow2.f32 %v1798_v5  ;;  %v3500_v47 = vld [vmem:[%s3974_s29 + $0xa0] sm:$0xff] }
 0x4c8   : > { %v4450_v44 = vpop.f32.mrf.mxu1 }
 0x4c9   : > { %4840 = vst [vmem:[#allocation5_spill] sm:$0xff] %v4450_v44  ;;  %v4508_v35 = vpop.eup %3685  ;;  %v1719_v44 = vpop.f32.mrf.mxu2 }
 0x4d0   : > { %v2282_v0 = vpop.f32.mrf.mxu1 }
 0x4d1   : > { %v4454_v20 = vmul.f32 0.25, %v2282_v0 }
 0x4d3   : > { %2338 = vmax.xlane.f32.xlu2 %v4454_v20 }
 0x4d8   : > { %v2284_v33 = vpop.f32.mrf.mxu1 }
 0x4d9   : > { %v4461_v62 = vmul.f32 0.25, %v2284_v33  ;;  %v4510_v33 = vpop.f32.mrf.mxu0 }
 0x4db   : > { %1752 = vmax.xlane.f32.xlu2 %v4459_v38  ;;  %2340 = vmax.xlane.f32.xlu0 %v4461_v62 }
 0x4e0   : > { %v2287_v14 = vpop.f32.mrf.mxu1 }
 0x4e1   : > { %v4475_v59 = vmul.f32 0.25, %v2287_v14  ;;  %v1716_v61 = vpop.f32.mrf.mxu0 }
 0x4e2   : > { %v4517_v14 = vmul.f32 0.25, %v1716_v61 }
 0x4e3   : > { %1758 = vmax.xlane.f32.xlu0 %v4467_v49  ;;  %1822 = vadd.xlane.f32.xlu2 %v4469_v10 }
 0x4e8   : > { %v2289_v32 = vpop.f32.mrf.mxu1 }
 0x4e9   : > { %v4477_v2 = vmul.f32 0.25, %v2289_v32  ;;  %v3502_v32 = vld [vmem:[%s3974_s29 + $0xb0] sm:$0xff] }
 0x4ea   : > { %1941 = vmatpush.bf16.msrb.mxu3 %v3502_v32 }
 0x4eb   : > { %2342 = vmax.xlane.f32.xlu0 %v4475_v59  ;;  %2344 = vmax.xlane.f32.xlu1 %v4477_v2 }
 0x4ec   : > { %1756 = vmax.xlane.f32.xlu2 %v4480_v17 }
 0x4ee   : > { %1942 = vmatpush.bf16.msrb.mxu3 %v3501_v48 }
 0x4f0   : > { %v2292_v28 = vpop.f32.mrf.mxu1 }
 0x4f1   : > { %v4496_v63 = vmul.f32 0.25, %v2292_v28  ;;  %v3498_v28 = vld [vmem:[%s3974_s29 + $0x90] sm:$0xff] }
 0x4f2   : > { %1943 = vmatpush.bf16.msrb.mxu3 %v3500_v47 }
 0x4f3   : > { %1828 = vadd.xlane.f32.xlu0 %v4488_v58  ;;  %1760 = vmax.xlane.f32.xlu1 %v4486_v56 }
 0x4f4   : > { %1826 = vadd.xlane.f32.xlu2 %v4490_v8 }
 0x4f6   : > { %1944 = vmatpush.bf16.msrb.mxu3 %v3499_v25 }
 0x4f8   : > { %v2294_v54 = vpop.f32.mrf.mxu1 }
 0x4f9   : > { %v4498_v0 = vmul.f32 0.25, %v2294_v54 }
 0x4fa   : > { %1945 = vmatpush.bf16.msrb.mxu3 %v3498_v28 }
 0x4fb   : > { %2346 = vmax.xlane.f32.xlu0 %v4496_v63  ;;  %2348 = vmax.xlane.f32.xlu1 %v4498_v0 }
 0x4fc   : > { %1762 = vmax.xlane.f32.xlu2 %v4500_v1 }
 0x4fe   : > { %1946 = vmatpush.bf16.msrb.mxu3 %v3497_v41 }
 0x500   : > { %v2297_v51 = vpop.f32.mrf.mxu1 }
 0x501   : > { %v4506_v11 = vmul.f32 0.25, %v2297_v51  ;;  %v1821_v51 = vpop.xlane.xlu1 %1820 }
 0x502   : > { %1947 = vmatpush.bf16.msrb.mxu3 %v3496_v37 }
 0x503   : > { %2350 = vmax.xlane.f32.xlu0 %v4506_v11  ;;  %1830 = vadd.xlane.f32.xlu1 %v4508_v35 }
 0x508   : > { %v2299_v57 = vpop.f32.mrf.mxu1 }
 0x509   : > { %v4514_v27 = vmul.f32 0.25, %v2299_v57  ;;  %v1825_v25 = vpop.xlane.xlu1 %1824 }
 0x50b   : > { %2352 = vmax.xlane.f32.xlu1 %v4514_v27 }
 0x510   : > { %v2302_v19 = vpop.f32.mrf.mxu1 }
 0x511   : > { %v4519_v50 = vmul.f32 0.25, %v2302_v19 }
 0x513   : > { %2354 = vmax.xlane.f32.xlu2 %v4519_v50  ;;  %1766 = vmax.xlane.f32.xlu1 %v4517_v14 }
 0x518   : > { %v2304_v13 = vpop.f32.mrf.mxu1 }
 0x519   : > { %v4523_v7 = vmul.f32 0.25, %v2304_v13 }
 0x51b   : > { %2356 = vmax.xlane.f32.xlu0 %v4523_v7 }
 0x546   : > { %v2339_v5 = vpop.xlane.xlu2 %2338 }
 0x547   : > { %v2370_v54 = vsub.f32 %v4454_v20, %v2339_v5 }
 0x549   : > { %v2386_v39 = vmul.f32 1.442695, %v2370_v54 }
 0x54b   : > { %3687 = vpow2.f32 %v2386_v39 }
 0x54e   : > { %v2341_v57 = vpop.xlane.xlu0 %2340  ;;  %v1753_v61 = vpop.xlane.xlu2 %1752 }
 0x54f   : > { %v2371_v19 = vsub.f32 %v4461_v62, %v2341_v57  ;;  %v1778_v13 = vsub.f32 %v4459_v38, %v1753_v61  ;;  %v1779_v38 = vsub.f32 %v4390_v23, %v1755_v16  ;;  %v4553_v23 = vmul.f32 0.25, %v4510_v33 }
 0x551   : > { %v4536_v32 = vpop.eup %3687  ;;  %v2388_v48 = vmul.f32 1.442695, %v2371_v19  ;;  %v1800_v47 = vmul.f32 1.442695, %v1778_v13  ;;  %v1802_v54 = vmul.f32 1.442695, %v1779_v38  ;;  %v2307_v38 = vpop.f32.mrf.mxu1 }
 0x552   : > { %2418 = vadd.xlane.f32.xlu2 %v4536_v32 }
 0x553   : > { %3689 = vpow2.f32 %v2388_v48 }
 0x554   : > { %3691 = vpow2.f32 %v1800_v47 }
 0x555   : > { %3693 = vrcp.f32 %v1821_v51 }
 0x556   : > { %v4539_v20 = vpop.xlane.xlu0 %1758  ;;  %v1823_v28 = vpop.xlane.xlu2 %1822 }
 0x557   : > { %3695 = vrcp.f32 %v1823_v28 }
 0x558   : > { %3697 = vpow2.f32 %v1802_v54  ;;  %v1721_v54 = vpop.f32.mrf.mxu2 }
 0x559   : > { %v4541_v41 = vpop.eup %3689 }
 0x55a   : > { %v4543_v37 = vpop.eup %3691  ;;  %2420 = vadd.xlane.f32.xlu0 %v4541_v41 }
 0x55b   : > { %v3694_v62 = vpop.eup %3693  ;;  %1832 = vadd.xlane.f32.xlu2 %v4543_v37 }
 0x55c   : > { %v1868_v57 = vmul.f32 %v3694_v62, %v4348_v53 }
 0x55d   : > { %v3696_v5 = vpop.eup %3695 }
 0x55e   : > { %v2343_v39 = vpop.xlane.xlu0 %2342  ;;  %v2345_v51 = vpop.xlane.xlu1 %2344  ;;  %v1869_v61 = vmul.f32 %v3696_v5, %v4469_v10 }
 0x55f   : > { %v2372_v19 = vsub.f32 %v4475_v59, %v2343_v39  ;;  %v2373_v13 = vsub.f32 %v4477_v2, %v2345_v51  ;;  %v1757_v48 = vpop.xlane.xlu2 %1756  ;;  %v4558_v2 = vpop.eup %3697  ;;  %v4567_v51 = vmul.f32 0.25, %v2307_v38  ;;  %v1781_v38 = vsub.f32 %v4467_v49, %v4539_v20 }
 0x560   : > { %v1884_v16 = vpack.c.bf16 %v1869_v61, %v1868_v57 }
 0x561   : > { %v2390_v47 = vmul.f32 1.442695, %v2372_v19  ;;  %v2392_v28 = vmul.f32 1.442695, %v2373_v13  ;;  %v4569_v19 = vmul.f32 0.25, %v1721_v54 }
 0x562   : > { %1764 = vmax.xlane.f32.xlu0 %v4553_v23  ;;  %1948 = vmatmul.bf16.vlgmr.msrb.gmra.mxu3 %v1884_v16 }
 0x563   : > { %3699 = vpow2.f32 %v2390_v47 }
 0x564   : > { %3701 = vpow2.f32 %v2392_v28 }
 0x565   : > { %3703 = vrcp.f32 %v1825_v25  ;;  %v2309_v25 = vpop.f32.mrf.mxu1 }
 0x566   : > { %v1829_v53 = vpop.xlane.xlu0 %1828  ;;  %v4556_v10 = vpop.xlane.xlu1 %1760  ;;  %v4574_v28 = vmul.f32 0.25, %v2309_v25  ;;  %v4585_v25 = vmul.f32 0.25, %v1719_v44 }
 0x567   : > { %v1827_v59 = vpop.xlane.xlu2 %1826 }
 0x568   : > { %3705 = vrcp.f32 %v1827_v59 }
 0x569   : > { %v4560_v33 = vpop.eup %3699 }
 0x56a   : > { %v4562_v62 = vpop.eup %3701  ;;  %1834 = vadd.xlane.f32.xlu0 %v4558_v2  ;;  %2422 = vadd.xlane.f32.xlu1 %v4560_v33 }
 0x56b   : > { %v3704_v5 = vpop.eup %3703  ;;  %2424 = vadd.xlane.f32.xlu2 %v4562_v62 }
 0x56c   : > { %v1870_v13 = vmul.f32 %v3704_v5, %v4357_v34  ;;  %v1780_v34 = vsub.f32 %v4480_v17, %v1757_v48 }
 0x56d   : > { %v2312_v5 = vpop.f32.mrf.mxu1 }
 0x56e   : > { %v3706_v39 = vpop.eup %3705  ;;  %v2347_v57 = vpop.xlane.xlu0 %2346  ;;  %v4593_v49 = vmul.f32 0.25, %v2312_v5 }
 0x56f   : > { %v2349_v61 = vpop.xlane.xlu1 %2348  ;;  %v2374_v16 = vsub.f32 %v4496_v63, %v2347_v57  ;;  %v1871_v59 = vmul.f32 %v3706_v39, %v4490_v8  ;;  %v1806_v8 = vmul.f32 1.442695, %v1781_v38  ;;  %v1782_v38 = vsub.f32 %v4486_v56, %v4556_v10  ;;  %v3526_v10 = vld [vmem:[%s3974_s29 + $0xe8] sm:$0xff] }
 0x570   : > { %v2375_v47 = vsub.f32 %v4498_v0, %v2349_v61  ;;  %v1804_v0 = vmul.f32 1.442695, %v1780_v34 }
 0x571   : > { %v2394_v12 = vmul.f32 1.442695, %v2374_v16  ;;  %v1885_v24 = vpack.c.bf16 %v1871_v59, %v1870_v13  ;;  %v1763_v16 = vpop.xlane.xlu2 %1762  ;;  %v1808_v34 = vmul.f32 1.442695, %v1782_v38  ;;  %v3525_v38 = vld [vmem:[%s3974_s29 + $0xe0] sm:$0xff] }
 0x572   : > { %v2396_v21 = vmul.f32 1.442695, %v2375_v47  ;;  %1770 = vmax.xlane.f32.xlu0 %v4569_v19  ;;  %2358 = vmax.xlane.f32.xlu1 %v4567_v51 }
 0x573   : > { %3707 = vpow2.f32 %v2394_v12  ;;  %2360 = vmax.xlane.f32.xlu2 %v4574_v28  ;;  %1953 = vmatmul.bf16.gmra.mxu3 %v1885_v24 }
 0x574   : > { %3709 = vpow2.f32 %v2396_v21 }
 0x575   : > { %3711 = vrcp.f32 %v1829_v53 }
 0x576   : > { %v2351_v39 = vpop.xlane.xlu0 %2350 }
 0x577   : > { %v1831_v63 = vpop.xlane.xlu1 %1830  ;;  %v2376_v24 = vsub.f32 %v4506_v11, %v2351_v39  ;;  %v2314_v11 = vpop.f32.mrf.mxu1 }
 0x578   : > { %3713 = vrcp.f32 %v1831_v63 }
 0x579   : > { %v4583_v54 = vpop.eup %3707  ;;  %3715 = vpow2.f32 %v1806_v8  ;;  %v2398_v53 = vmul.f32 1.442695, %v2376_v24 }
 0x57a   : > { %v4587_v57 = vpop.eup %3709  ;;  %2426 = vadd.xlane.f32.xlu0 %v4583_v54  ;;  %3717 = vpow2.f32 %v1804_v0  ;;  %v4612_v0 = vmul.f32 0.25, %v2314_v11 }
 0x57b   : > { %v3712_v12 = vpop.eup %3711  ;;  %2428 = vadd.xlane.f32.xlu1 %v4587_v57  ;;  %1768 = vmax.xlane.f32.xlu2 %v4585_v25 }
 0x57c   : > { %v1872_v44 = vmul.f32 %v3712_v12, %v4488_v58  ;;  %v3528_v58 = vld [vmem:[%s3974_s29 + $0xf8] sm:$0xff] }
 0x57d   : > { %2538 = vmatpush.bf16.msra.mxu0 %v3528_v58  ;;  %v3524_v58 = vld [vmem:[%s3974_s29 + $0xd8] sm:$0xff] }
 0x57e   : > { %v3714_v21 = vpop.eup %3713 }
 0x57f   : > { %v2353_v17 = vpop.xlane.xlu1 %2352  ;;  %v1873_v20 = vmul.f32 %v3714_v21, %v4508_v35  ;;  %v4598_v13 = vpop.eup %3715  ;;  %v1783_v35 = vsub.f32 %v4500_v1, %v1763_v16 }
 0x580   : > { %v2377_v48 = vsub.f32 %v4514_v27, %v2353_v17  ;;  %v4600_v59 = vpop.eup %3717  ;;  %v3527_v27 = vld [vmem:[%s3974_s29 + $0xf0] sm:$0xff]  ;;  %v2317_v39 = vpop.f32.mrf.mxu1 }
 0x581   : > { %v1886_v61 = vpack.c.bf16 %v1873_v20, %v1872_v44  ;;  %v1810_v63 = vmul.f32 1.442695, %v1783_v35  ;;  %2539 = vmatpush.bf16.msra.mxu0 %v3527_v27  ;;  %v4621_v12 = vmul.f32 0.25, %v2317_v39  ;;  %v3523_v35 = vld [vmem:[%s3974_s29 + $0xd0] sm:$0xff]  ;;  %v3522_v27 = vld [vmem:[%s3974_s29 + $0xc8] sm:$0xff] }
 0x582   : > { %v2400_v47 = vmul.f32 1.442695, %v2377_v48  ;;  %2362 = vmax.xlane.f32.xlu0 %v4593_v49 }
 0x583   : > { %1838 = vadd.xlane.f32.xlu2 %v4598_v13  ;;  %1836 = vadd.xlane.f32.xlu1 %v4600_v59 }
 0x584   : > { %3719 = vpow2.f32 %v2400_v47  ;;  %1958 = vmatmul.bf16.gmra.mxu3 %v1886_v61 }
 0x585   : > { %3721 = vpow2.f32 %v2398_v53  ;;  %2540 = vmatpush.bf16.msra.mxu0 %v3526_v10 }
 0x586   : > { %v2355_v56 = vpop.xlane.xlu2 %2354  ;;  %3723 = vpow2.f32 %v1808_v34  ;;  %v3521_v34 = vld [vmem:[%s3974_s29 + $0xc0] sm:$0xff] }
 0x587   : > { %3725 = vpow2.f32 %v1810_v63  ;;  %v2378_v1 = vsub.f32 %v4519_v50, %v2355_v56  ;;  %v1767_v20 = vpop.xlane.xlu1 %1766  ;;  %v3504_v56 = vld [vmem:[%s4835_s4 + $0x10] sm:$0xff] }
 0x588   : > { %v1785_v50 = vsub.f32 %v4517_v14, %v1767_v20  ;;  %2036 = vmatpush.bf16.msrb.mxu2 %v3504_v56 }
 0x589   : > { %v2402_v17 = vmul.f32 1.442695, %v2378_v1  ;;  %2541 = vmatpush.bf16.msra.mxu0 %v3525_v38 }
 0x58a   : > { %v4610_v8 = vpop.eup %3719  ;;  %v1814_v61 = vmul.f32 1.442695, %v1785_v50 }
 0x58b   : > { %v4615_v5 = vpop.eup %3721  ;;  %2432 = vadd.xlane.f32.xlu0 %v4610_v8  ;;  %2364 = vmax.xlane.f32.xlu1 %v4612_v0 }
 0x58c   : > { %2430 = vadd.xlane.f32.xlu2 %v4615_v5  ;;  %v4624_v44 = vpop.eup %3723 }
 0x58d   : > { %v4626_v53 = vpop.eup %3725  ;;  %2542 = vmatpush.bf16.msra.mxu0 %v3524_v58 }
 0x58e   : > { %v2357_v24 = vpop.xlane.xlu0 %2356 }
 0x58f   : > { %v2379_v21 = vsub.f32 %v4523_v7, %v2357_v24  ;;  %v2319_v7 = vpop.f32.mrf.mxu1 }
 0x590   : > { %v4634_v47 = vmul.f32 0.25, %v2319_v7 }
 0x591   : > { %v2404_v48 = vmul.f32 1.442695, %v2379_v21  ;;  %2543 = vmatpush.bf16.msra.mxu0 %v3523_v35 }
 0x593   : > { %2366 = vmax.xlane.f32.xlu0 %v4621_v12  ;;  %3727 = vpow2.f32 %v2404_v48  ;;  %1840 = vadd.xlane.f32.xlu1 %v4624_v44 }
 0x594   : > { %1842 = vadd.xlane.f32.xlu2 %v4626_v53  ;;  %3729 = vpow2.f32 %v2402_v17 }
 0x595   : > { %3731 = vpow2.f32 %v1814_v61  ;;  %2544 = vmatpush.bf16.msra.mxu0 %v3522_v27 }
 0x599   : > { %v4632_v16 = vpop.eup %3727  ;;  %2545 = vmatpush.bf16.msra.mxu0 %v3521_v34 }
 0x59a   : > { %v4636_v11 = vpop.eup %3729 }
 0x59b   : > { %2436 = vadd.xlane.f32.xlu0 %v4632_v16  ;;  %2368 = vmax.xlane.f32.xlu1 %v4634_v47  ;;  %v4641_v14 = vpop.eup %3731 }
 0x59c   : > { %2434 = vadd.xlane.f32.xlu2 %v4636_v11 }
 0x5a4   : > { %1846 = vadd.xlane.f32.xlu2 %v4641_v14 }
 0x5c5   : > { %v2419_v63 = vpop.xlane.xlu2 %2418 }
 0x5c6   : > { %3733 = vrcp.f32 %v2419_v63 }
 0x5cc   : > { %v3734_v1 = vpop.eup %3733 }
 0x5cd   : > { %v2421_v10 = vpop.xlane.xlu0 %2420  ;;  %v2466_v24 = vmul.f32 %v3734_v1, %v4536_v32 }
 0x5ce   : > { %3735 = vrcp.f32 %v2421_v10  ;;  %v1833_v20 = vpop.xlane.xlu2 %1832 }
 0x5d4   : > { %v3736_v39 = vpop.eup %3735 }
 0x5d5   : > { %v2467_v21 = vmul.f32 %v3736_v39, %v4541_v41  ;;  %v1765_v17 = vpop.xlane.xlu0 %1764 }
 0x5d6   : > { %v1784_v48 = vsub.f32 %v4553_v23, %v1765_v17 }
 0x5d7   : > { %v2482_v50 = vpack.c.bf16 %v2467_v21, %v2466_v24 }
 0x5d8   : > { %v1812_v7 = vmul.f32 1.442695, %v1784_v48 }
 0x5d9   : > { %2546 = vmatmul.bf16.vlgmr.msra.gmra.mxu0 %v2482_v50 }
 0x5da   : > { %3737 = vpow2.f32 %v1812_v7 }
 0x5db   : > { %3739 = vrcp.f32 %v1833_v20 }
 0x5dd   : > { %v1835_v61 = vpop.xlane.xlu0 %1834  ;;  %v2423_v38 = vpop.xlane.xlu1 %2422 }
 0x5de   : > { %3741 = vrcp.f32 %v1835_v61  ;;  %v2425_v58 = vpop.xlane.xlu2 %2424 }
 0x5df   : > { %3743 = vrcp.f32 %v2423_v38 }
 0x5e0   : > { %v4655_v35 = vpop.eup %3737  ;;  %3745 = vrcp.f32 %v2425_v58 }
 0x5e1   : > { %1844 = vadd.xlane.f32.xlu1 %v4655_v35  ;;  %v3740_v32 = vpop.eup %3739 }
 0x5e2   : > { %v1874_v63 = vmul.f32 %v3740_v32, %v4543_v37 }
 0x5e4   : > { %v3742_v41 = vpop.eup %3741 }
 0x5e5   : > { %v3744_v27 = vpop.eup %3743  ;;  %v1771_v34 = vpop.xlane.xlu0 %1770  ;;  %v1875_v56 = vmul.f32 %v3742_v41, %v4558_v2 }
 0x5e6   : > { %v2359_v23 = vpop.xlane.xlu1 %2358  ;;  %v3746_v10 = vpop.eup %3745  ;;  %v2468_v21 = vmul.f32 %v3744_v27, %v4560_v33  ;;  %v1787_v37 = vsub.f32 %v4569_v19, %v1771_v34 }
 0x5e7   : > { %v2380_v1 = vsub.f32 %v4567_v51, %v2359_v23  ;;  %v1949_v39 = vpop.f32.mrf.mxu3  ;;  %v2361_v24 = vpop.xlane.xlu2 %2360  ;;  %v1887_v20 = vpack.c.bf16 %v1875_v56, %v1874_v63  ;;  %v2469_v48 = vmul.f32 %v3746_v10, %v4562_v62 }
 0x5e8   : > { %v2381_v17 = vsub.f32 %v4574_v28, %v2361_v24  ;;  %v1818_v58 = vmul.f32 1.442695, %v1787_v37 }
 0x5e9   : > { %v2406_v50 = vmul.f32 1.442695, %v2380_v1  ;;  %1963 = vmatmul.bf16.gmra.mxu3 %v1887_v20  ;;  %v2483_v61 = vpack.c.bf16 %v2469_v48, %v2468_v21 }
 0x5ea   : > { %v2408_v7 = vmul.f32 1.442695, %v2381_v17 }
 0x5eb   : > { %3747 = vpow2.f32 %v2406_v50  ;;  %2551 = vmatmul.bf16.gmra.mxu0 %v2483_v61 }
 0x5ec   : > { %3749 = vpow2.f32 %v2408_v7 }
 0x5ed   : > { %v2427_v2 = vpop.xlane.xlu0 %2426 }
 0x5ee   : > { %3751 = vrcp.f32 %v2427_v2  ;;  %v2429_v51 = vpop.xlane.xlu1 %2428 }
 0x5ef   : > { %v1951_v38 = vpop.f32.mrf.mxu3  ;;  %3753 = vrcp.f32 %v2429_v51  ;;  %v1769_v28 = vpop.xlane.xlu2 %1768 }
 0x5f0   : > { %v1989_v33 = vpack.c.bf16 %v1951_v38, %v1949_v39  ;;  %v1786_v32 = vsub.f32 %v4585_v25, %v1769_v28  ;;  %3755 = vpow2.f32 %v1818_v58 }
 0x5f1   : > { %v4666_v62 = vpop.eup %3747 }
 0x5f2   : > { %3251 = vmatmul.msk.bf16.vlgmr.msrb.gmra.mxu2 %vm430_vm0, %v1989_v33  ;;  %v4669_v41 = vpop.eup %3749  ;;  %v1816_v19 = vmul.f32 1.442695, %v1786_v32  ;;  %2438 = vadd.xlane.f32.xlu0 %v4666_v62 }
 0x5f3   : > { %2440 = vadd.xlane.f32.xlu1 %v4669_v41 }
 0x5f4   : > { %v3752_v27 = vpop.eup %3751  ;;  %3757 = vpow2.f32 %v1816_v19 }
 0x5f5   : > { %v3754_v34 = vpop.eup %3753  ;;  %v2363_v23 = vpop.xlane.xlu0 %2362  ;;  %v2470_v63 = vmul.f32 %v3752_v27, %v4583_v54  ;;  %v3529_v54 = vld [vmem:[%s4835_s4 + $0x18] sm:$0xff] }
 0x5f6   : > { %v2382_v25 = vsub.f32 %v4593_v49, %v2363_v23  ;;  %v1837_v56 = vpop.xlane.xlu1 %1836  ;;  %v2471_v1 = vmul.f32 %v3754_v34, %v4587_v57  ;;  %v4676_v17 = vpop.eup %3755  ;;  %3538 = vmatpush.bf16.msra.mxu3 %v3529_v54  ;;  %2634 = vmatpush.bf16.msra.mxu2 %v3529_v54 }
 0x5f7   : > { %v1954_v10 = vpop.f32.mrf.mxu3  ;;  %3759 = vrcp.f32 %v1837_v56  ;;  %v1839_v39 = vpop.xlane.xlu2 %1838 }
 0x5f8   : > { %v2410_v24 = vmul.f32 1.442695, %v2382_v25  ;;  %3761 = vrcp.f32 %v1839_v39  ;;  %v2484_v21 = vpack.c.bf16 %v2471_v1, %v2470_v63 }
 0x5fa   : > { %v4678_v20 = vpop.eup %3757  ;;  %3763 = vpow2.f32 %v2410_v24  ;;  %1850 = vadd.xlane.f32.xlu0 %v4676_v17 }
 0x5fb   : > { %2556 = vmatmul.bf16.gmra.mxu0 %v2484_v21  ;;  %1848 = vadd.xlane.f32.xlu2 %v4678_v20 }
 0x5fd   : > { %v3760_v57 = vpop.eup %3759 }
 0x5fe   : > { %v2433_v49 = vpop.xlane.xlu0 %2432  ;;  %v3762_v48 = vpop.eup %3761  ;;  %v1876_v61 = vmul.f32 %v3760_v57, %v4600_v59 }
 0x5ff   : > { %3765 = vrcp.f32 %v2433_v49  ;;  %v2365_v50 = vpop.xlane.xlu1 %2364  ;;  %v1956_v7 = vpop.f32.mrf.mxu3  ;;  %v1877_v38 = vmul.f32 %v3762_v48, %v4598_v13 }
 0x600   : > { %v2383_v37 = vsub.f32 %v4612_v0, %v2365_v50  ;;  %v1990_v2 = vpack.c.bf16 %v1956_v7, %v1954_v10  ;;  %v2431_v51 = vpop.xlane.xlu2 %2430  ;;  %v4688_v58 = vpop.eup %3763 }
 0x601   : > { %3767 = vrcp.f32 %v2431_v51  ;;  %2442 = vadd.xlane.f32.xlu1 %v4688_v58  ;;  %v1888_v28 = vpack.c.bf16 %v1877_v38, %v1876_v61 }
 0x602   : > { %v2412_v33 = vmul.f32 1.442695, %v2383_v37  ;;  %3252 = vmatmul.msk.bf16.gmra.mxu2 %vm430_vm0, %v1990_v2 }
 0x603   : > { %1968 = vmatmul.bf16.gmra.mxu3 %v1888_v28 }
 0x604   : > { %3769 = vpow2.f32 %v2412_v33 }
 0x605   : > { %v3766_v32 = vpop.eup %3765 }
 0x606   : > { %v2367_v19 = vpop.xlane.xlu0 %2366  ;;  %v2473_v59 = vmul.f32 %v3766_v32, %v4610_v8 }
 0x607   : > { %v3768_v0 = vpop.eup %3767  ;;  %v2384_v27 = vsub.f32 %v4621_v12, %v2367_v19  ;;  %v1841_v34 = vpop.xlane.xlu1 %1840 }
 0x608   : > { %3771 = vrcp.f32 %v1841_v34  ;;  %v1959_v13 = vpop.f32.mrf.mxu3  ;;  %v1843_v23 = vpop.xlane.xlu2 %1842  ;;  %v2472_v63 = vmul.f32 %v3768_v0, %v4615_v5 }
 0x609   : > { %v2414_v25 = vmul.f32 1.442695, %v2384_v27  ;;  %3773 = vrcp.f32 %v1843_v23 }
 0x60a   : > { %v4695_v56 = vpop.eup %3769  ;;  %v2485_v10 = vpack.c.bf16 %v2473_v59, %v2472_v63 }
 0x60b   : > { %3775 = vpow2.f32 %v2414_v25  ;;  %2444 = vadd.xlane.f32.xlu2 %v4695_v56 }
 0x60c   : > { %2561 = vmatmul.bf16.gmra.mxu0 %v2485_v10 }
 0x60e   : > { %v3772_v1 = vpop.eup %3771  ;;  %v2437_v8 = vpop.xlane.xlu0 %2436 }
 0x60f   : > { %v3774_v39 = vpop.eup %3773  ;;  %3777 = vrcp.f32 %v2437_v8  ;;  %v2369_v12 = vpop.xlane.xlu1 %2368  ;;  %v1878_v24 = vmul.f32 %v3772_v1, %v4624_v44 }
 0x610   : > { %v2385_v21 = vsub.f32 %v4634_v47, %v2369_v12  ;;  %v1961_v54 = vpop.f32.mrf.mxu3  ;;  %v2435_v5 = vpop.xlane.xlu2 %2434  ;;  %v1879_v57 = vmul.f32 %v3774_v39, %v4626_v53 }
 0x611   : > { %v4701_v49 = vpop.eup %3775  ;;  %v1991_v48 = vpack.c.bf16 %v1961_v54, %v1959_v13  ;;  %3779 = vrcp.f32 %v2435_v5 }
 0x612   : > { %v2416_v50 = vmul.f32 1.442695, %v2385_v21  ;;  %2446 = vadd.xlane.f32.xlu0 %v4701_v49  ;;  %v1889_v7 = vpack.c.bf16 %v1879_v57, %v1878_v24 }
 0x613   : > { %3253 = vmatmul.msk.bf16.gmra.mxu2 %vm430_vm0, %v1991_v48 }
 0x614   : > { %3781 = vpow2.f32 %v2416_v50  ;;  %1973 = vmatmul.bf16.gmra.mxu3 %v1889_v7 }
 0x615   : > { %v3778_v61 = vpop.eup %3777 }
 0x616   : > { %v2475_v44 = vmul.f32 %v3778_v61, %v4632_v16 }
 0x617   : > { %v3780_v47 = vpop.eup %3779 }
 0x618   : > { %v2474_v37 = vmul.f32 %v3780_v47, %v4636_v11  ;;  %v1847_v51 = vpop.xlane.xlu2 %1846 }
 0x619   : > { %3783 = vrcp.f32 %v1847_v51 }
 0x61a   : > { %v4707_v2 = vpop.eup %3781  ;;  %v2486_v53 = vpack.c.bf16 %v2475_v44, %v2474_v37 }
 0x61b   : > { %2448 = vadd.xlane.f32.xlu1 %v4707_v2 }
 0x61c   : > { %2566 = vmatmul.bf16.gmra.mxu0 %v2486_v53 }
 0x61f   : > { %v3784_v28 = vpop.eup %3783 }
 0x620   : > { %v1881_v16 = vmul.f32 %v3784_v28, %v4641_v14 }
 0x654   : > { %v1845_v38 = vpop.xlane.xlu1 %1844 }
 0x655   : > { %3785 = vrcp.f32 %v1845_v38 }
 0x656   : > { %v4710_v33 = vpop.f32.mrf.mxu0 }
 0x65b   : > { %v3786_v32 = vpop.eup %3785 }
 0x65c   : > { %v1880_v19 = vmul.f32 %v3786_v32, %v4655_v35 }
 0x65e   : > { %v4714_v59 = vpop.f32.mrf.mxu0  ;;  %v1890_v11 = vpack.c.bf16 %v1881_v16, %v1880_v19 }
 0x65f   : > { %v2587_v0 = vpack.c.bf16 %v4714_v59, %v4710_v33 }
 0x660   : > { %1978 = vmatmul.bf16.gmra.mxu3 %v1890_v11 }
 0x665   : > { %v2439_v27 = vpop.xlane.xlu0 %2438 }
 0x666   : > { %3787 = vrcp.f32 %v2439_v27  ;;  %v2441_v34 = vpop.xlane.xlu1 %2440 }
 0x667   : > { %3789 = vrcp.f32 %v2441_v34 }
 0x668   : > { %v2552_v1 = vpop.f32.mrf.mxu0 }
 0x66c   : > { %v3788_v13 = vpop.eup %3787  ;;  %v1964_v23 = vpop.f32.mrf.mxu3 }
 0x66d   : > { %v3790_v63 = vpop.eup %3789  ;;  %v1851_v25 = vpop.xlane.xlu0 %1850  ;;  %v2476_v10 = vmul.f32 %v3788_v13, %v4666_v62 }
 0x66e   : > { %3791 = vrcp.f32 %v1851_v25  ;;  %v1849_v35 = vpop.xlane.xlu2 %1848  ;;  %v2477_v14 = vmul.f32 %v3790_v63, %v4669_v41 }
 0x66f   : > { %3793 = vrcp.f32 %v1849_v35 }
 0x670   : > { %v2487_v8 = vpack.c.bf16 %v2477_v14, %v2476_v10  ;;  %v2554_v41 = vpop.f32.mrf.mxu0 }
 0x671   : > { %v2588_v51 = vpack.c.bf16 %v2554_v41, %v2552_v1 }
 0x672   : > { %2571 = vmatmul.bf16.gmra.mxu0 %v2487_v8 }
 0x674   : > { %v3792_v39 = vpop.eup %3791  ;;  %v1966_v24 = vpop.f32.mrf.mxu3 }
 0x675   : > { %v2038_v12 = vpop.f32.mrf.mxu2  ;;  %v3794_v21 = vpop.eup %3793  ;;  %v1992_v5 = vpack.c.bf16 %v1966_v24, %v1964_v23  ;;  %v1883_v57 = vmul.f32 %v3792_v39, %v4676_v17 }
 0x676   : > { %v4721_v54 = vadd.f32 %v2038_v12, %v4381_v26  ;;  %v1882_v62 = vmul.f32 %v3794_v21, %v4678_v20  ;;  %v2443_v50 = vpop.xlane.xlu1 %2442 }
 0x677   : > { %3254 = vmatmul.msk.bf16.gmra.mxu2 %vm430_vm0, %v1992_v5  ;;  %3795 = vrcp.f32 %v2443_v50 }
 0x678   : > { %v1891_v48 = vpack.c.bf16 %v1883_v57, %v1882_v62  ;;  %v2557_v44 = vpop.f32.mrf.mxu0 }
 0x67a   : > { %1983 = vmatmul.bf16.gmra.mxu3 %v1891_v48 }
 0x67d   : > { %v3796_v61 = vpop.eup %3795  ;;  %v4737_v24 = vpop.f32.mrf.mxu2 }
 0x67e   : > { %v2445_v7 = vpop.xlane.xlu2 %2444  ;;  %v2478_v26 = vmul.f32 %v3796_v61, %v4688_v58 }
 0x67f   : > { %3797 = vrcp.f32 %v2445_v7 }
 0x680   : > { %v2559_v38 = vpop.f32.mrf.mxu0 }
 0x681   : > { %v2589_v23 = vpack.c.bf16 %v2559_v38, %v2557_v44  ;;  %v4743_v44 = vld [vmem:[%s4374_s12 + $0x8] sm:$0xff]  ;;  %v297_v38 = vld [vmem:[%s4374_s12 + $0x58] sm:$0xff] }
 0x685   : > { %v3798_v47 = vpop.eup %3797  ;;  %v2447_v20 = vpop.xlane.xlu0 %2446 }
 0x686   : > { %v2479_v37 = vmul.f32 %v3798_v47, %v4695_v56  ;;  %v1969_v53 = vpop.f32.mrf.mxu3  ;;  %3799 = vrcp.f32 %v2447_v20  ;;  %v2043_v62 = vpop.f32.mrf.mxu2  ;;  %v289_v47 = vld [vmem:[%s4374_s12 + $0x18] sm:$0xff] }
 0x687   : > { %v2080_v61 = vadd.f32 %v2043_v62, %v4395_v45  ;;  %v4758_v45 = vld [vmem:[%s4374_s12 + $0x68] sm:$0xff] }
 0x688   : > { %v2488_v17 = vpack.c.bf16 %v2479_v37, %v2478_v26  ;;  %v291_v37 = vld [vmem:[%s4374_s12 + $0x28] sm:$0xff] }
 0x689   : > { %v2562_v34 = vpop.f32.mrf.mxu0 }
 0x68a   : > { %2576 = vmatmul.bf16.gmra.mxu0 %v2488_v17  ;;  %3416 = vmatmul.msk.bf16.vlgmr.msra.gmra.mxu3 %vm430_vm0, %v2588_v51  ;;  %v295_v17 = vld [vmem:[%s4374_s12 + $0x48] sm:$0xff] }
 0x68b   : > { %v891_v62 = vadd.f32 %v4304_v29, %v295_v17  ;;  %v893_v29 = vadd.f32 %v4308_v43, %v297_v38  ;;  %v895_v43 = vadd.f32 %v4314_v40, %v4758_v45  ;;  %v4841_v40 = vld [vmem:[#allocation3_spill] sm:$0xff] }
 0x68c   : > { %v3800_v16 = vpop.eup %3799 }
 0x68d   : > { %v2480_v58 = vmul.f32 %v3800_v16, %v4701_v49 }
 0x68e   : > { %v2449_v28 = vpop.xlane.xlu1 %2448  ;;  %v1971_v32 = vpop.f32.mrf.mxu3 }
 0x68f   : > { %3801 = vrcp.f32 %v2449_v28  ;;  %v1993_v19 = vpack.c.bf16 %v1971_v32, %v1969_v53  ;;  %v2045_v7 = vpop.f32.mrf.mxu2  ;;  %v293_v53 = vld [vmem:[%s4374_s12 + $0x38] sm:$0xff] }
 0x690   : > { %v4761_v28 = vld [vmem:[%s4374_s12 + $0x78] sm:$0xff] }
 0x691   : > { %3255 = vmatmul.msk.bf16.gmra.mxu2 %vm430_vm0, %v1993_v19  ;;  %v2564_v10 = vpop.f32.mrf.mxu0  ;;  %v885_v19 = vadd.f32 %v4277_v18, %v289_v47 }
 0x692   : > { %v2590_v35 = vpack.c.bf16 %v2564_v10, %v2562_v34  ;;  %v887_v10 = vadd.f32 %v4288_v30, %v291_v37  ;;  %v889_v30 = vadd.f32 %v4300_v36, %v293_v53 }
 0x693   : > { %v1483_v16 = vadd.f32 %v4397_v15, %v885_v19 }
 0x695   : > { %v3802_v11 = vpop.eup %3801 }
 0x696   : > { %v2481_v56 = vmul.f32 %v3802_v11, %v4707_v2 }
 0x697   : > { %v1974_v27 = vpop.f32.mrf.mxu3  ;;  %v2048_v11 = vpop.f32.mrf.mxu2 }
 0x698   : > { %v2489_v13 = vpack.c.bf16 %v2481_v56, %v2480_v58  ;;  %v2081_v58 = vadd.f32 %v2045_v7, %v1483_v16  ;;  %v2082_v18 = vadd.f32 %v2048_v11, %v4404_v60 }
 0x699   : > { %v2567_v14 = vpop.f32.mrf.mxu0 }
 0x69a   : > { %2581 = vmatmul.bf16.gmra.mxu0 %v2489_v13  ;;  %3417 = vmatmul.msk.bf16.gmra.mxu3 %vm430_vm0, %v2589_v23 }
 0x69f   : > { %v1976_v63 = vpop.f32.mrf.mxu3  ;;  %v2050_v13 = vpop.f32.mrf.mxu2 }
 0x6a0   : > { %v1994_v25 = vpack.c.bf16 %v1976_v63, %v1974_v27 }
 0x6a1   : > { %v2569_v1 = vpop.f32.mrf.mxu0 }
 0x6a2   : > { %3256 = vmatmul.msk.bf16.gmra.mxu2 %vm430_vm0, %v1994_v25  ;;  %v2591_v49 = vpack.c.bf16 %v2569_v1, %v2567_v14 }
 0x6aa   : > { %3418 = vmatmul.msk.bf16.gmra.mxu3 %vm430_vm0, %v2590_v35  ;;  %v1485_v35 = vadd.f32 %v4407_v31, %v887_v10 }
 0x6ac   : > { %v2083_v33 = vadd.f32 %v2050_v13, %v1485_v35 }
 0x6ba   : > { %3419 = vmatmul.msk.bf16.gmra.mxu3 %vm430_vm0, %v2591_v49 }
 0x6e3   : > { %v1979_v2 = vpop.f32.mrf.mxu3 }
 0x6eb   : > { %v1981_v8 = vpop.f32.mrf.mxu3 }
 0x6ec   : > { %v1995_v39 = vpack.c.bf16 %v1981_v8, %v1979_v2  ;;  %v1487_v8 = vadd.f32 %v4422_v42, %v889_v30 }
 0x6ee   : > { %3257 = vmatmul.msk.bf16.gmra.mxu2 %vm430_vm0, %v1995_v39 }
 0x6ef   : > { %v2572_v12 = vpop.f32.mrf.mxu0 }
 0x6f7   : > { %v2574_v21 = vpop.f32.mrf.mxu0 }
 0x6f8   : > { %v2592_v5 = vpack.c.bf16 %v2574_v21, %v2572_v12 }
 0x6fa   : > { %3420 = vmatmul.msk.bf16.gmra.mxu3 %vm430_vm0, %v2592_v5  ;;  %v2053_v59 = vpop.f32.mrf.mxu2 }
 0x6fb   : > { %v2084_v60 = vadd.f32 %v2053_v59, %v4412_v46 }
 0x6fd   : > { %v1984_v57 = vpop.f32.mrf.mxu3 }
 0x702   : > { %v2055_v2 = vpop.f32.mrf.mxu2 }
 0x703   : > { %v2085_v31 = vadd.f32 %v2055_v2, %v1487_v8 }
 0x705   : > { %v1986_v48 = vpop.f32.mrf.mxu3 }
 0x706   : > { %v1996_v41 = vpack.c.bf16 %v1986_v48, %v1984_v57  ;;  %v1489_v48 = vadd.f32 %v4430_v55, %v891_v62  ;;  %v1491_v55 = vadd.f32 %v4436_v4, %v893_v29  ;;  %v1493_v4 = vadd.f32 %v4442_v52, %v895_v43 }
 0x707   : > { %v2577_v50 = vpop.f32.mrf.mxu0 }
 0x708   : > { %3258 = vmatmul.msk.bf16.gmra.mxu2 %vm430_vm0, %v1996_v41 }
 0x70d   : > { %v2641_v26 = vpop.f32.mrf.mxu3 }
 0x70e   : > { %v2678_v51 = vadd.f32 %v2641_v26, %v2080_v61 }
 0x70f   : > { %v2579_v20 = vpop.f32.mrf.mxu0 }
 0x710   : > { %v2593_v32 = vpack.c.bf16 %v2579_v20, %v2577_v50  ;;  %2695 = vst.msk [vmem:[%s4751_s21 + $0x10] sm:$0xff] %vm2692_vm1, %v2678_v51 }
 0x712   : > { %3421 = vmatmul.msk.bf16.gmra.mxu3 %vm430_vm0, %v2593_v32 }
 0x714   : > { %v2058_v21 = vpop.f32.mrf.mxu2 }
 0x715   : > { %v2643_v56 = vpop.f32.mrf.mxu3  ;;  %v2086_v5 = vadd.f32 %v2058_v21, %v4427_v3 }
 0x716   : > { %v2679_v27 = vadd.f32 %v2643_v56, %v2081_v58 }
 0x717   : > { %v2582_v34 = vpop.f32.mrf.mxu0 }
 0x718   : > { %2696 = vst.msk [vmem:[%s4751_s21 + $0x18] sm:$0xff] %vm2692_vm1, %v2679_v27  ;;  %3415 = vmatmul.msk.bf16.vlgmr.msra.gmra.mxu2 %vm430_vm0, %v2587_v0 }
 0x71c   : > { %v2060_v36 = vpop.f32.mrf.mxu2 }
 0x71d   : > { %v2646_v23 = vpop.f32.mrf.mxu3  ;;  %v2087_v42 = vadd.f32 %v2060_v36, %v1489_v48 }
 0x71e   : > { %v2680_v63 = vadd.f32 %v2646_v23, %v2082_v18  ;;  %v4842_v18 = vld [vmem:[#allocation4_spill] sm:$0xff] }
 0x71f   : > { %v2584_v25 = vpop.f32.mrf.mxu0 }
 0x720   : > { %v2594_v15 = vpack.c.bf16 %v2584_v25, %v2582_v34  ;;  %2697 = vst.msk [vmem:[%s4751_s21 + $0x20] sm:$0xff] %vm2692_vm1, %v2680_v63 }
 0x722   : > { %3422 = vmatmul.msk.bf16.gmra.mxu3 %vm430_vm0, %v2594_v15  ;;  %v4843_v15 = vld [vmem:[#allocation2_spill] sm:$0xff] }
 0x725   : > { %v2648_v0 = vpop.f32.mrf.mxu3  ;;  %v2063_v7 = vpop.f32.mrf.mxu2 }
 0x726   : > { %v2681_v14 = vadd.f32 %v2648_v0, %v2083_v33  ;;  %v2088_v3 = vadd.f32 %v2063_v7, %v4434_v9 }
 0x728   : > { %2698 = vst.msk [vmem:[%s4751_s21 + $0x28] sm:$0xff] %vm2692_vm1, %v2681_v14 }
 0x72d   : > { %v2651_v1 = vpop.f32.mrf.mxu3  ;;  %v2065_v61 = vpop.f32.mrf.mxu2 }
 0x72e   : > { %v2682_v49 = vadd.f32 %v2651_v1, %v2084_v60  ;;  %v2089_v17 = vadd.f32 %v2065_v61, %v1491_v55 }
 0x730   : > { %2699 = vst.msk [vmem:[%s4751_s21 + $0x30] sm:$0xff] %vm2692_vm1, %v2682_v49 }
 0x735   : > { %v2653_v39 = vpop.f32.mrf.mxu3 }
 0x736   : > { %v2683_v12 = vadd.f32 %v2653_v39, %v2085_v31 }
 0x738   : > { %2700 = vst.msk [vmem:[%s4751_s21 + $0x38] sm:$0xff] %vm2692_vm1, %v2683_v12 }
 0x73d   : > { %v2656_v46 = vpop.f32.mrf.mxu3 }
 0x73e   : > { %v2684_v57 = vadd.f32 %v2656_v46, %v2086_v5 }
 0x740   : > { %2701 = vst.msk [vmem:[%s4751_s21 + $0x40] sm:$0xff] %vm2692_vm1, %v2684_v57 }
 0x745   : > { %v2658_v41 = vpop.f32.mrf.mxu3 }
 0x746   : > { %v2685_v50 = vadd.f32 %v2658_v41, %v2087_v42 }
 0x748   : > { %2702 = vst.msk [vmem:[%s4751_s21 + $0x48] sm:$0xff] %vm2692_vm1, %v2685_v50 }
 0x771   : > { %v2068_v47 = vpop.f32.mrf.mxu2 }
 0x772   : > { %v2090_v9 = vadd.f32 %v2068_v47, %v4440_v22  ;;  %v883_v22 = vadd.f32 %v4256_v6, %v4743_v44  ;;  %v897_v6 = vadd.f32 %v4843_v15, %v4761_v28  ;;  %v4844_v44 = vld [vmem:[#allocation5_spill] sm:$0xff] }
 0x774   : > { %v1481_v45 = vadd.f32 %v4841_v40, %v883_v22  ;;  %v1495_v10 = vadd.f32 %v4844_v44, %v897_v6 }
 0x776   : > { %v2079_v52 = vadd.f32 %v4737_v24, %v1481_v45 }
 0x779   : > { %v2070_v53 = vpop.f32.mrf.mxu2 }
 0x77a   : > { %v2091_v38 = vadd.f32 %v2070_v53, %v1493_v4 }
 0x77d   : > { %v2661_v26 = vpop.f32.mrf.mxu3 }
 0x77e   : > { %v2686_v37 = vadd.f32 %v2661_v26, %v2088_v3 }
 0x780   : > { %2703 = vst.msk [vmem:[%s4751_s21 + $0x50] sm:$0xff] %vm2692_vm1, %v2686_v37 }
 0x785   : > { %v2663_v51 = vpop.f32.mrf.mxu3 }
 0x786   : > { %v2687_v20 = vadd.f32 %v2663_v51, %v2089_v17 }
 0x788   : > { %2704 = vst.msk [vmem:[%s4751_s21 + $0x58] sm:$0xff] %vm2692_vm1, %v2687_v20 }
 0x78b   : > { %v2073_v32 = vpop.f32.mrf.mxu2 }
 0x78c   : > { %v2092_v13 = vadd.f32 %v2073_v32, %v4842_v18 }
 0x793   : > { %v2075_v19 = vpop.f32.mrf.mxu2 }
 0x794   : > { %v2093_v35 = vadd.f32 %v2075_v19, %v1495_v10 }
 0x795   : > { %v2666_v16 = vpop.f32.mrf.mxu3 }
 0x796   : > { %v2688_v11 = vadd.f32 %v2666_v16, %v2090_v9 }
 0x798   : > { %2705 = vst.msk [vmem:[%s4751_s21 + $0x60] sm:$0xff] %vm2692_vm1, %v2688_v11 }
 0x79b   : > { %v2636_v58 = vpop.f32.mrf.mxu2 }
 0x79c   : > { %v2676_v56 = vadd.f32 %v2636_v58, %v4721_v54 }
 0x79d   : > { %v2668_v27 = vpop.f32.mrf.mxu3 }
 0x79e   : > { %v2689_v34 = vadd.f32 %v2668_v27, %v2091_v38  ;;  %2693 = vst.msk [vmem:[%s4751_s21] sm:$0xff] %vm2692_vm1, %v2676_v56 }
 0x7a0   : > { %2706 = vst.msk [vmem:[%s4751_s21 + $0x68] sm:$0xff] %vm2692_vm1, %v2689_v34 }
 0x7a3   : > { %v2638_v23 = vpop.f32.mrf.mxu2 }
 0x7a4   : > { %v2677_v63 = vadd.f32 %v2638_v23, %v2079_v52 }
 0x7a5   : > { %v2671_v25 = vpop.f32.mrf.mxu3 }
 0x7a6   : > { %v2690_v54 = vadd.f32 %v2671_v25, %v2092_v13  ;;  %2694 = vst.msk [vmem:[%s4751_s21 + $0x8] sm:$0xff] %vm2692_vm1, %v2677_v63 }
 0x7a8   : > { %2707 = vst.msk [vmem:[%s4751_s21 + $0x70] sm:$0xff] %vm2692_vm1, %v2690_v54 }
 0x7ad   : > { %v2673_v33 = vpop.f32.mrf.mxu3 }
 0x7ae   : > { %v2691_v59 = vadd.f32 %v2673_v33, %v2093_v35 }
 0x7b0   : > { %2708 = vst.msk [vmem:[%s4751_s21 + $0x78] sm:$0xff] %vm2692_vm1, %v2691_v59 }
 0x7b1 PF: > { %s15_s18 = sadd.s32 1, %s3809_s18  }
 0x7b2   : > { %p12_p4 = scmp.ge.s32.totalorder %s15_s18, 6  }
 0x7b4   :  { %14 = sbr.rel (!%p12_p4) target bundleno = 1 (0x1), region = 88 }

</bundles_post_ra>
